<compile_context>
chip_gen: v5e
topology: v5e:2x2
jax: 0.10.0
libtpu: 0.0.40
codegen_flags: <defaults>
</compile_context>

<pallas_src>
import functools

import jax
import jax.numpy as jnp
import numpy as np
from jax.experimental import pallas as pl
from jax.experimental.pallas import tpu as pltpu


# ----------------------------- kernel ---------------------------------------


def _layer_norm(x, g, b, eps=1e-5):
    mu = jnp.mean(x, axis=-1, keepdims=True)
    var = jnp.mean((x - mu) ** 2, axis=-1, keepdims=True)
    return (x - mu) * jax.lax.rsqrt(var + eps) * g + b


def _block_kernel(
    q_ref, k_ref, v_ref,
    ln1_g_ref, ln1_b_ref, ln2_g_ref, ln2_b_ref,
    wq_ref, bq_ref, wk_ref, bk_ref, wv_ref, bv_ref,
    wc_ref, bc_ref, w_fc_ref, b_fc_ref, w_pr_ref, b_pr_ref,
    y_ref, *attn_refs,
    num_heads, matmul_dtype, need_weights,
):
    f32 = jnp.float32
    cd = matmul_dtype

    q = q_ref[0]            # (TQ, E) f32
    k = k_ref[0]            # (Lk, E) f32
    v = v_ref[0]            # (Lk, E) f32
    TQ, E = q.shape
    Lk = k.shape[0]
    H = num_heads
    hd = E // H
    scale = 1.0 / float(np.sqrt(hd))

    ln1_g = ln1_g_ref[...]  # (1, E)
    ln1_b = ln1_b_ref[...]

    qn = _layer_norm(q, ln1_g, ln1_b)
    kn = _layer_norm(k, ln1_g, ln1_b)
    vn = _layer_norm(v, ln1_g, ln1_b)

    # q/k/v projections, computed output-transposed:
    #   pT[o, l] = sum_e W[o, e] * xn[l, e]      (PyTorch Linear, W in (out, in))
    # Single dot_general contracting the minor dims of both operands -> no
    # weight transpose in the kernel; bf16 operands, f32 accumulation.
    qpT = (jnp.einsum("oe,le->ol", wq_ref[...], qn.astype(cd),
                      preferred_element_type=f32) + bq_ref[...]) * scale   # (E, TQ)
    kpT = jnp.einsum("oe,le->ol", wk_ref[...], kn.astype(cd),
                     preferred_element_type=f32) + bk_ref[...]             # (E, Lk)
    vpT = jnp.einsum("oe,le->ol", wv_ref[...], vn.astype(cd),
                     preferred_element_type=f32) + bv_ref[...]             # (E, Lk)

    # Head split: (E, L) -> (H, hd, L) is a sublane-dim split (tile aligned when
    # hd % 8 == 0).  Only Q needs a minor-dims swap to (H, TQ, hd).
    kh = kpT.reshape(H, hd, Lk).astype(cd)                        # (H, hd, Lk)
    vh = vpT.reshape(H, hd, Lk).astype(cd)                        # (H, hd, Lk)
    qh = jnp.swapaxes(qpT.reshape(H, hd, TQ), 1, 2).astype(cd)    # (H, TQ, hd)

    # Scores for all heads in one batched contraction; single softmax (f32).
    s = jnp.einsum("hqd,hdk->hqk", qh, kh,
                   preferred_element_type=f32)                    # (H, TQ, Lk)
    s = s - jnp.max(s, axis=-1, keepdims=True)
    ex = jnp.exp(s)
    p = ex * pl.reciprocal(jnp.sum(ex, axis=-1, keepdims=True), approx=True)

    # Context, batched over heads, produced head-major/transposed: (H, hd, TQ).
    ctxT = jnp.einsum("hdk,hqk->hdq", vh, p.astype(cd),
                      preferred_element_type=f32)
    ctx = ctxT.reshape(E, TQ).T                                   # (TQ, E), heads concatenated

    # Output projection (c_proj): ctx @ Wc.T + bc, via dimension numbers.
    attn_out = jnp.einsum("te,oe->to", ctx.astype(cd), wc_ref[...],
                          preferred_element_type=f32) + bc_ref[...]

    # residual 1
    x = q + attn_out

    # MLP: c_fc -> QuickGELU -> c_proj on ln_2(x)   (GELU math in f32)
    xn = _layer_norm(x, ln2_g_ref[...], ln2_b_ref[...])
    h1 = jnp.einsum("te,fe->tf", xn.astype(cd), w_fc_ref[...],
                    preferred_element_type=f32) + b_fc_ref[...]
    h1 = h1 * jax.nn.sigmoid(1.702 * h1)
    h2 = jnp.einsum("tf,of->to", h1.astype(cd), w_pr_ref[...],
                    preferred_element_type=f32) + b_pr_ref[...]

    # residual 2
    y_ref[0] = (x + h2).astype(y_ref.dtype)

    if need_weights:
        attn_ref = attn_refs[0]
        attn_ref[0] = (jnp.sum(p, axis=0) * (1.0 / H)).astype(attn_ref.dtype)


# ----------------------------- wrapper ---------------------------------------


def _pick_q_tile(lq):
    for t in (256, 128):
        if lq % t == 0:
            return t
    return lq


def cross_residual_attention_block(q, k, v, params, num_heads, *,
                                    need_weights=True,
                                    matmul_dtype=jnp.bfloat16,
                                    q_tile=None):
    """q,k,v: (L, N, E) sequence-first.  Returns (y: (Lq,N,E), attn_w: (N,Lq,Lk) or None)."""
    Lq, N, E = q.shape
    Lk = k.shape[0]
    assert E % num_heads == 0

    TQ = q_tile if q_tile is not None else _pick_q_tile(Lq)
    assert Lq % TQ == 0
    nq = Lq // TQ

    # batch-first layout so blocks are (1, L, E) and tile-aligned in (sublane, lane)
    qb = jnp.transpose(q, (1, 0, 2))
    kb = jnp.transpose(k, (1, 0, 2))
    vb = jnp.transpose(v, (1, 0, 2))

    f32 = jnp.float32
    wd = matmul_dtype
    p = params
    # Weights stay in PyTorch (out, in) layout (bf16); q/k/v biases as columns
    # (E, 1) since those projections are produced output-transposed in-kernel.
    weights = [
        p["ln1_g"].reshape(1, E).astype(f32), p["ln1_b"].reshape(1, E).astype(f32),
        p["ln2_g"].reshape(1, E).astype(f32), p["ln2_b"].reshape(1, E).astype(f32),
        p["wq"].astype(wd), p["bq"].reshape(E, 1).astype(f32),
        p["wk"].astype(wd), p["bk"].reshape(E, 1).astype(f32),
        p["wv"].astype(wd), p["bv"].reshape(E, 1).astype(f32),
        p["wc"].astype(wd), p["bc"].reshape(1, E).astype(f32),
        p["w_fc"].astype(wd), p["b_fc"].reshape(1, 4 * E).astype(f32),
        p["w_pr"].astype(wd), p["b_pr"].reshape(1, E).astype(f32),
    ]

    def const_spec(arr):
        # constant block index -> never re-fetched across grid steps
        return pl.BlockSpec(arr.shape, lambda n, i: (0, 0))

    in_specs = [
        pl.BlockSpec((1, TQ, E), lambda n, i: (n, i, 0)),
        pl.BlockSpec((1, Lk, E), lambda n, i: (n, 0, 0)),
        pl.BlockSpec((1, Lk, E), lambda n, i: (n, 0, 0)),
    ] + [const_spec(a) for a in weights]

    out_shape = [jax.ShapeDtypeStruct((N, Lq, E), q.dtype)]
    out_specs = [pl.BlockSpec((1, TQ, E), lambda n, i: (n, i, 0))]
    if need_weights:
        out_shape.append(jax.ShapeDtypeStruct((N, Lq, Lk), jnp.float32))
        out_specs.append(pl.BlockSpec((1, TQ, Lk), lambda n, i: (n, i, 0)))

    kernel = functools.partial(
        _block_kernel, num_heads=num_heads, matmul_dtype=wd,
        need_weights=need_weights)

    outs = pl.pallas_call(
        kernel,
        out_shape=tuple(out_shape),
        grid_spec=pltpu.PrefetchScalarGridSpec(
            num_scalar_prefetch=0,
            grid=(N, nq),
            in_specs=in_specs,
            out_specs=out_specs,
        ),
        compiler_params=pltpu.CompilerParams(
            dimension_semantics=("parallel", "parallel"),
            vmem_limit_bytes=64 * 1024 * 1024,
        ),
    )(qb, kb, vb, *weights)

    y_b = outs[0]
    attn_w = outs[1] if need_weights else None
    return jnp.transpose(y_b, (1, 0, 2)), attn_w


# ----------------------------- reference (plain JAX, f32) ---------------------


def reference(q, k, v, p, num_heads):
    def ln(x, g, b, eps=1e-5):
        mu = jnp.mean(x, axis=-1, keepdims=True)
        var = jnp.mean((x - mu) ** 2, axis=-1, keepdims=True)
        return (x - mu) * jax.lax.rsqrt(var + eps) * g + b

    Lq, N, E = q.shape
    Lk = k.shape[0]
    hd = E // num_heads
    scale = 1.0 / float(np.sqrt(hd))

    qn = ln(q, p["ln1_g"], p["ln1_b"])
    kn = ln(k, p["ln1_g"], p["ln1_b"])
    vn = ln(v, p["ln1_g"], p["ln1_b"])

    qp = qn @ p["wq"].T + p["bq"]
    kp = kn @ p["wk"].T + p["bk"]
    vp = vn @ p["wv"].T + p["bv"]

    qh = jnp.transpose(qp, (1, 0, 2)).reshape(N, Lq, num_heads, hd) * scale
    kh = jnp.transpose(kp, (1, 0, 2)).reshape(N, Lk, num_heads, hd)
    vh = jnp.transpose(vp, (1, 0, 2)).reshape(N, Lk, num_heads, hd)

    s = jnp.einsum("nlhd,nshd->nhls", qh, kh)
    attn = jax.nn.softmax(s, axis=-1)
    ctx = jnp.einsum("nhls,nshd->nlhd", attn, vh).reshape(N, Lq, E)
    out = ctx @ p["wc"].T + p["bc"]                        # (N, Lq, E)
    out = jnp.transpose(out, (1, 0, 2))                    # (Lq, N, E)

    x = q + out
    xn = ln(x, p["ln2_g"], p["ln2_b"])
    h1 = xn @ p["w_fc"].T + p["b_fc"]
    h1 = h1 * jax.nn.sigmoid(1.702 * h1)
    y = x + h1 @ p["w_pr"].T + p["b_pr"]
    return y, attn.mean(axis=1)


# ----------------------------- main -------------------------------------------


if __name__ == "__main__":
    d_model = 256     # E (multiple of 128 lanes)
    n_head = 8        # head_dim = 32 (multiple of 8 sublanes)
    Lq, Lk, N = 16, 128, 2

    key = jax.random.PRNGKey(0)
    keys = jax.random.split(key, 16)

    def w(kk, shape, scale=0.05):
        return (scale * jax.random.normal(kk, shape)).astype(jnp.float32)

    params = {
        "ln1_g": jnp.ones((1, d_model), jnp.float32),
        "ln1_b": jnp.zeros((1, d_model), jnp.float32),
        "ln2_g": jnp.ones((1, d_model), jnp.float32),
        "ln2_b": jnp.zeros((1, d_model), jnp.float32),
        "wq": w(keys[0], (d_model, d_model)),
        "bq": w(keys[1], (1, d_model)),
        "wk": w(keys[2], (d_model, d_model)),
        "bk": w(keys[3], (1, d_model)),
        "wv": w(keys[4], (d_model, d_model)),
        "bv": w(keys[5], (1, d_model)),
        "wc": w(keys[6], (d_model, d_model)),
        "bc": w(keys[7], (1, d_model)),
        "w_fc": w(keys[8], (4 * d_model, d_model)),
        "b_fc": w(keys[9], (1, 4 * d_model)),
        "w_pr": w(keys[10], (d_model, 4 * d_model)),
        "b_pr": w(keys[11], (1, d_model)),
    }

    q = jax.random.normal(keys[12], (Lq, N, d_model), jnp.float32)
    k = jax.random.normal(keys[13], (Lk, N, d_model), jnp.float32)
    v = jax.random.normal(keys[14], (Lk, N, d_model), jnp.float32)

    y, attn_w = cross_residual_attention_block(q, k, v, params, n_head)
    jax.block_until_ready((y, attn_w))

    y_ref, attn_ref = reference(q, k, v, params, n_head)
    # bf16 MXU inputs with f32 accumulation vs. pure-f32 reference
    np.testing.assert_allclose(np.asarray(y), np.asarray(y_ref), rtol=2e-2, atol=2e-2)
    np.testing.assert_allclose(np.asarray(attn_w), np.asarray(attn_ref), rtol=2e-2, atol=2e-2)

    print("KERNEL_OK")
</pallas_src>

<mosaic_0001>
module attributes {stable_mosaic.version = 11 : i64} {
  func.func @_block_kernel(%arg0: i32, %arg1: i32, %arg2: memref<1x16x256xf32, #tpu.memory_space<vmem>>, %arg3: memref<1x128x256xf32, #tpu.memory_space<vmem>>, %arg4: memref<1x128x256xf32, #tpu.memory_space<vmem>>, %arg5: memref<1x256xf32, #tpu.memory_space<vmem>>, %arg6: memref<1x256xf32, #tpu.memory_space<vmem>>, %arg7: memref<1x256xf32, #tpu.memory_space<vmem>>, %arg8: memref<1x256xf32, #tpu.memory_space<vmem>>, %arg9: memref<256x256xbf16, #tpu.memory_space<vmem>>, %arg10: memref<256x1xf32, #tpu.memory_space<vmem>>, %arg11: memref<256x256xbf16, #tpu.memory_space<vmem>>, %arg12: memref<256x1xf32, #tpu.memory_space<vmem>>, %arg13: memref<256x256xbf16, #tpu.memory_space<vmem>>, %arg14: memref<256x1xf32, #tpu.memory_space<vmem>>, %arg15: memref<256x256xbf16, #tpu.memory_space<vmem>>, %arg16: memref<1x256xf32, #tpu.memory_space<vmem>>, %arg17: memref<1024x256xbf16, #tpu.memory_space<vmem>>, %arg18: memref<1x1024xf32, #tpu.memory_space<vmem>>, %arg19: memref<256x1024xbf16, #tpu.memory_space<vmem>>, %arg20: memref<1x256xf32, #tpu.memory_space<vmem>>, %arg21: memref<1x16x256xf32, #tpu.memory_space<vmem>>, %arg22: memref<1x16x128xf32, #tpu.memory_space<vmem>>) attributes {dimension_semantics = [#tpu.dimension_semantics<parallel>, #tpu.dimension_semantics<parallel>], iteration_bounds = array<i64: 2, 1>, scalar_prefetch = 0 : i64, scratch_operands = 0 : i64, tpu.core_type = #tpu.core_type<tc>, window_params = [{transform_indices = @transform_0, window_bounds = array<i64: 1, 16, 256>}, {transform_indices = @transform_1, window_bounds = array<i64: 1, 128, 256>}, {transform_indices = @transform_2, window_bounds = array<i64: 1, 128, 256>}, {pipeline_mode = #tpu.pipeline_mode<synchronous>, transform_indices = @transform_3, window_bounds = array<i64: 1, 256>}, {pipeline_mode = #tpu.pipeline_mode<synchronous>, transform_indices = @transform_4, window_bounds = array<i64: 1, 256>}, {pipeline_mode = #tpu.pipeline_mode<synchronous>, transform_indices = @transform_5, window_bounds = array<i64: 1, 256>}, {pipeline_mode = #tpu.pipeline_mode<synchronous>, transform_indices = @transform_6, window_bounds = array<i64: 1, 256>}, {pipeline_mode = #tpu.pipeline_mode<synchronous>, transform_indices = @transform_7, window_bounds = array<i64: 256, 256>}, {pipeline_mode = #tpu.pipeline_mode<synchronous>, transform_indices = @transform_8, window_bounds = array<i64: 256, 1>}, {pipeline_mode = #tpu.pipeline_mode<synchronous>, transform_indices = @transform_9, window_bounds = array<i64: 256, 256>}, {pipeline_mode = #tpu.pipeline_mode<synchronous>, transform_indices = @transform_10, window_bounds = array<i64: 256, 1>}, {pipeline_mode = #tpu.pipeline_mode<synchronous>, transform_indices = @transform_11, window_bounds = array<i64: 256, 256>}, {pipeline_mode = #tpu.pipeline_mode<synchronous>, transform_indices = @transform_12, window_bounds = array<i64: 256, 1>}, {pipeline_mode = #tpu.pipeline_mode<synchronous>, transform_indices = @transform_13, window_bounds = array<i64: 256, 256>}, {pipeline_mode = #tpu.pipeline_mode<synchronous>, transform_indices = @transform_14, window_bounds = array<i64: 1, 256>}, {pipeline_mode = #tpu.pipeline_mode<synchronous>, transform_indices = @transform_15, window_bounds = array<i64: 1024, 256>}, {pipeline_mode = #tpu.pipeline_mode<synchronous>, transform_indices = @transform_16, window_bounds = array<i64: 1, 1024>}, {pipeline_mode = #tpu.pipeline_mode<synchronous>, transform_indices = @transform_17, window_bounds = array<i64: 256, 1024>}, {pipeline_mode = #tpu.pipeline_mode<synchronous>, transform_indices = @transform_18, window_bounds = array<i64: 1, 256>}, {transform_indices = @transform_19, window_bounds = array<i64: 1, 16, 256>}, {transform_indices = @transform_20, window_bounds = array<i64: 1, 16, 128>}]} {
    %c0 = arith.constant 0 : index
    %c0_0 = arith.constant 0 : index
    %c0_1 = arith.constant 0 : index
    %0 = vector.load %arg2[%c0, %c0_0, %c0_1] : memref<1x16x256xf32, #tpu.memory_space<vmem>>, vector<1x16x256xf32>
    %1 = vector.shape_cast %0 : vector<1x16x256xf32> to vector<16x256xf32>
    %c0_2 = arith.constant 0 : index
    %c0_3 = arith.constant 0 : index
    %c0_4 = arith.constant 0 : index
    %2 = vector.load %arg3[%c0_2, %c0_3, %c0_4] : memref<1x128x256xf32, #tpu.memory_space<vmem>>, vector<1x128x256xf32>
    %3 = vector.shape_cast %2 : vector<1x128x256xf32> to vector<128x256xf32>
    %c0_5 = arith.constant 0 : index
    %c0_6 = arith.constant 0 : index
    %c0_7 = arith.constant 0 : index
    %4 = vector.load %arg4[%c0_5, %c0_6, %c0_7] : memref<1x128x256xf32, #tpu.memory_space<vmem>>, vector<1x128x256xf32>
    %5 = vector.shape_cast %4 : vector<1x128x256xf32> to vector<128x256xf32>
    %c0_8 = arith.constant 0 : index
    %c0_9 = arith.constant 0 : index
    %6 = vector.load %arg5[%c0_8, %c0_9] : memref<1x256xf32, #tpu.memory_space<vmem>>, vector<1x256xf32>
    %c0_10 = arith.constant 0 : index
    %c0_11 = arith.constant 0 : index
    %7 = vector.load %arg6[%c0_10, %c0_11] : memref<1x256xf32, #tpu.memory_space<vmem>>, vector<1x256xf32>
    %cst = arith.constant dense<0.000000e+00> : vector<16xf32>
    %8 = vector.multi_reduction <add>, %1, %cst [1] : vector<16x256xf32> to vector<16xf32>
    %9 = vector.shape_cast %8 : vector<16xf32> to vector<16x1xf32>
    %cst_12 = arith.constant 2.560000e+02 : f32
    %10 = vector.broadcast %cst_12 : f32 to vector<16x1xf32>
    %11 = arith.divf %9, %10 : vector<16x1xf32>
    %12 = vector.broadcast %11 : vector<16x1xf32> to vector<16x256xf32>
    %13 = arith.subf %1, %12 : vector<16x256xf32>
    %14 = arith.mulf %13, %13 : vector<16x256xf32>
    %cst_13 = arith.constant dense<0.000000e+00> : vector<16xf32>
    %15 = vector.multi_reduction <add>, %14, %cst_13 [1] : vector<16x256xf32> to vector<16xf32>
    %16 = vector.shape_cast %15 : vector<16xf32> to vector<16x1xf32>
    %cst_14 = arith.constant 2.560000e+02 : f32
    %17 = vector.broadcast %cst_14 : f32 to vector<16x1xf32>
    %18 = arith.divf %16, %17 : vector<16x1xf32>
    %19 = vector.broadcast %11 : vector<16x1xf32> to vector<16x256xf32>
    %20 = arith.subf %1, %19 : vector<16x256xf32>
    %cst_15 = arith.constant 9.99999974E-6 : f32
    %21 = vector.broadcast %cst_15 : f32 to vector<16x1xf32>
    %22 = arith.addf %18, %21 : vector<16x1xf32>
    %23 = math.rsqrt %22 : vector<16x1xf32>
    %24 = vector.broadcast %23 : vector<16x1xf32> to vector<16x256xf32>
    %25 = arith.mulf %20, %24 : vector<16x256xf32>
    %26 = vector.broadcast %6 : vector<1x256xf32> to vector<16x256xf32>
    %27 = arith.mulf %25, %26 : vector<16x256xf32>
    %28 = vector.broadcast %7 : vector<1x256xf32> to vector<16x256xf32>
    %29 = arith.addf %27, %28 : vector<16x256xf32>
    %cst_16 = arith.constant dense<0.000000e+00> : vector<128xf32>
    %30 = vector.multi_reduction <add>, %3, %cst_16 [1] : vector<128x256xf32> to vector<128xf32>
    %31 = vector.shape_cast %30 : vector<128xf32> to vector<128x1xf32>
    %cst_17 = arith.constant 2.560000e+02 : f32
    %32 = vector.broadcast %cst_17 : f32 to vector<128x1xf32>
    %33 = arith.divf %31, %32 : vector<128x1xf32>
    %34 = vector.broadcast %33 : vector<128x1xf32> to vector<128x256xf32>
    %35 = arith.subf %3, %34 : vector<128x256xf32>
    %36 = arith.mulf %35, %35 : vector<128x256xf32>
    %cst_18 = arith.constant dense<0.000000e+00> : vector<128xf32>
    %37 = vector.multi_reduction <add>, %36, %cst_18 [1] : vector<128x256xf32> to vector<128xf32>
    %38 = vector.shape_cast %37 : vector<128xf32> to vector<128x1xf32>
    %cst_19 = arith.constant 2.560000e+02 : f32
    %39 = vector.broadcast %cst_19 : f32 to vector<128x1xf32>
    %40 = arith.divf %38, %39 : vector<128x1xf32>
    %41 = vector.broadcast %33 : vector<128x1xf32> to vector<128x256xf32>
    %42 = arith.subf %3, %41 : vector<128x256xf32>
    %cst_20 = arith.constant 9.99999974E-6 : f32
    %43 = vector.broadcast %cst_20 : f32 to vector<128x1xf32>
    %44 = arith.addf %40, %43 : vector<128x1xf32>
    %45 = math.rsqrt %44 : vector<128x1xf32>
    %46 = vector.broadcast %45 : vector<128x1xf32> to vector<128x256xf32>
    %47 = arith.mulf %42, %46 : vector<128x256xf32>
    %48 = vector.broadcast %6 : vector<1x256xf32> to vector<128x256xf32>
    %49 = arith.mulf %47, %48 : vector<128x256xf32>
    %50 = vector.broadcast %7 : vector<1x256xf32> to vector<128x256xf32>
    %51 = arith.addf %49, %50 : vector<128x256xf32>
    %cst_21 = arith.constant dense<0.000000e+00> : vector<128xf32>
    %52 = vector.multi_reduction <add>, %5, %cst_21 [1] : vector<128x256xf32> to vector<128xf32>
    %53 = vector.shape_cast %52 : vector<128xf32> to vector<128x1xf32>
    %cst_22 = arith.constant 2.560000e+02 : f32
    %54 = vector.broadcast %cst_22 : f32 to vector<128x1xf32>
    %55 = arith.divf %53, %54 : vector<128x1xf32>
    %56 = vector.broadcast %55 : vector<128x1xf32> to vector<128x256xf32>
    %57 = arith.subf %5, %56 : vector<128x256xf32>
    %58 = arith.mulf %57, %57 : vector<128x256xf32>
    %cst_23 = arith.constant dense<0.000000e+00> : vector<128xf32>
    %59 = vector.multi_reduction <add>, %58, %cst_23 [1] : vector<128x256xf32> to vector<128xf32>
    %60 = vector.shape_cast %59 : vector<128xf32> to vector<128x1xf32>
    %cst_24 = arith.constant 2.560000e+02 : f32
    %61 = vector.broadcast %cst_24 : f32 to vector<128x1xf32>
    %62 = arith.divf %60, %61 : vector<128x1xf32>
    %63 = vector.broadcast %55 : vector<128x1xf32> to vector<128x256xf32>
    %64 = arith.subf %5, %63 : vector<128x256xf32>
    %cst_25 = arith.constant 9.99999974E-6 : f32
    %65 = vector.broadcast %cst_25 : f32 to vector<128x1xf32>
    %66 = arith.addf %62, %65 : vector<128x1xf32>
    %67 = math.rsqrt %66 : vector<128x1xf32>
    %68 = vector.broadcast %67 : vector<128x1xf32> to vector<128x256xf32>
    %69 = arith.mulf %64, %68 : vector<128x256xf32>
    %70 = vector.broadcast %6 : vector<1x256xf32> to vector<128x256xf32>
    %71 = arith.mulf %69, %70 : vector<128x256xf32>
    %72 = vector.broadcast %7 : vector<1x256xf32> to vector<128x256xf32>
    %73 = arith.addf %71, %72 : vector<128x256xf32>
    %c0_26 = arith.constant 0 : index
    %c0_27 = arith.constant 0 : index
    %74 = vector.load %arg9[%c0_26, %c0_27] : memref<256x256xbf16, #tpu.memory_space<vmem>>, vector<256x256xbf16>
    %75 = arith.truncf %29 : vector<16x256xf32> to vector<16x256xbf16>
    "tpu.trace_start"() <{level = 10 : i32, message = "oe,le->ol"}> : () -> ()
    %cst_28 = arith.constant dense<0.000000e+00> : vector<256x16xf32>
    %76 = tpu.matmul %74, %75, %cst_28 {dimension_numbers = #tpu.dot_dimension_numbers<[1], [1], [0], [0], [0, 0, 1, 0], [], []>} : vector<256x256xbf16>, vector<16x256xbf16>, vector<256x16xf32> -> vector<256x16xf32>
    "tpu.trace_stop"() : () -> ()
    %c0_29 = arith.constant 0 : index
    %c0_30 = arith.constant 0 : index
    %77 = vector.load %arg10[%c0_29, %c0_30] : memref<256x1xf32, #tpu.memory_space<vmem>>, vector<256x1xf32>
    %78 = vector.broadcast %77 : vector<256x1xf32> to vector<256x16xf32>
    %79 = arith.addf %76, %78 : vector<256x16xf32>
    %cst_31 = arith.constant 0.176776692 : f32
    %80 = vector.broadcast %cst_31 : f32 to vector<256x16xf32>
    %81 = arith.mulf %79, %80 : vector<256x16xf32>
    %c0_32 = arith.constant 0 : index
    %c0_33 = arith.constant 0 : index
    %82 = vector.load %arg11[%c0_32, %c0_33] : memref<256x256xbf16, #tpu.memory_space<vmem>>, vector<256x256xbf16>
    %83 = arith.truncf %51 : vector<128x256xf32> to vector<128x256xbf16>
    "tpu.trace_start"() <{level = 10 : i32, message = "oe,le->ol"}> : () -> ()
    %cst_34 = arith.constant dense<0.000000e+00> : vector<256x128xf32>
    %84 = tpu.matmul %82, %83, %cst_34 {dimension_numbers = #tpu.dot_dimension_numbers<[1], [1], [0], [0], [0, 0, 1, 0], [], []>} : vector<256x256xbf16>, vector<128x256xbf16>, vector<256x128xf32> -> vector<256x128xf32>
    "tpu.trace_stop"() : () -> ()
    %c0_35 = arith.constant 0 : index
    %c0_36 = arith.constant 0 : index
    %85 = vector.load %arg12[%c0_35, %c0_36] : memref<256x1xf32, #tpu.memory_space<vmem>>, vector<256x1xf32>
    %86 = vector.broadcast %85 : vector<256x1xf32> to vector<256x128xf32>
    %87 = arith.addf %84, %86 : vector<256x128xf32>
    %c0_37 = arith.constant 0 : index
    %c0_38 = arith.constant 0 : index
    %88 = vector.load %arg13[%c0_37, %c0_38] : memref<256x256xbf16, #tpu.memory_space<vmem>>, vector<256x256xbf16>
    %89 = arith.truncf %73 : vector<128x256xf32> to vector<128x256xbf16>
    "tpu.trace_start"() <{level = 10 : i32, message = "oe,le->ol"}> : () -> ()
    %cst_39 = arith.constant dense<0.000000e+00> : vector<256x128xf32>
    %90 = tpu.matmul %88, %89, %cst_39 {dimension_numbers = #tpu.dot_dimension_numbers<[1], [1], [0], [0], [0, 0, 1, 0], [], []>} : vector<256x256xbf16>, vector<128x256xbf16>, vector<256x128xf32> -> vector<256x128xf32>
    "tpu.trace_stop"() : () -> ()
    %c0_40 = arith.constant 0 : index
    %c0_41 = arith.constant 0 : index
    %91 = vector.load %arg14[%c0_40, %c0_41] : memref<256x1xf32, #tpu.memory_space<vmem>>, vector<256x1xf32>
    %92 = vector.broadcast %91 : vector<256x1xf32> to vector<256x128xf32>
    %93 = arith.addf %90, %92 : vector<256x128xf32>
    %94 = vector.shape_cast %87 : vector<256x128xf32> to vector<8x32x128xf32>
    %95 = arith.truncf %94 : vector<8x32x128xf32> to vector<8x32x128xbf16>
    %96 = vector.shape_cast %93 : vector<256x128xf32> to vector<8x32x128xf32>
    %97 = arith.truncf %96 : vector<8x32x128xf32> to vector<8x32x128xbf16>
    %98 = vector.shape_cast %81 : vector<256x16xf32> to vector<8x32x16xf32>
    %99 = tpu.transpose %98, [0, 2, 1] : vector<8x32x16xf32> -> vector<8x16x32xf32>
    %100 = arith.truncf %99 : vector<8x16x32xf32> to vector<8x16x32xbf16>
    "tpu.trace_start"() <{level = 10 : i32, message = "hqd,hdk->hqk"}> : () -> ()
    %cst_42 = arith.constant dense<0.000000e+00> : vector<8x16x128xf32>
    %101 = tpu.matmul %100, %95, %cst_42 {dimension_numbers = #tpu.dot_dimension_numbers<[2], [1], [1], [2], [0, 0, 0, 1, 1, 2], [0], [0]>} : vector<8x16x32xbf16>, vector<8x32x128xbf16>, vector<8x16x128xf32> -> vector<8x16x128xf32>
    "tpu.trace_stop"() : () -> ()
    %cst_43 = arith.constant dense<0xFF800000> : vector<8x16xf32>
    %102 = vector.multi_reduction <maximumf>, %101, %cst_43 [2] : vector<8x16x128xf32> to vector<8x16xf32>
    %103 = vector.shape_cast %102 : vector<8x16xf32> to vector<8x16x1xf32>
    %104 = vector.broadcast %103 : vector<8x16x1xf32> to vector<8x16x128xf32>
    %105 = arith.subf %101, %104 : vector<8x16x128xf32>
    %106 = math.exp %105 : vector<8x16x128xf32>
    %cst_44 = arith.constant dense<0.000000e+00> : vector<8x16xf32>
    %107 = vector.multi_reduction <add>, %106, %cst_44 [2] : vector<8x16x128xf32> to vector<8x16xf32>
    %108 = vector.shape_cast %107 : vector<8x16xf32> to vector<8x16x1xf32>
    %109 = tpu.reciprocal %108 {approx = true} : vector<8x16x1xf32> -> vector<8x16x1xf32>
    %110 = vector.broadcast %109 : vector<8x16x1xf32> to vector<8x16x128xf32>
    %111 = arith.mulf %106, %110 : vector<8x16x128xf32>
    %112 = arith.truncf %111 : vector<8x16x128xf32> to vector<8x16x128xbf16>
    "tpu.trace_start"() <{level = 10 : i32, message = "hdk,hqk->hdq"}> : () -> ()
    %cst_45 = arith.constant dense<0.000000e+00> : vector<8x32x16xf32>
    %113 = tpu.matmul %97, %112, %cst_45 {dimension_numbers = #tpu.dot_dimension_numbers<[2], [2], [1], [1], [0, 0, 0, 1, 1, 1], [0], [0]>} : vector<8x32x128xbf16>, vector<8x16x128xbf16>, vector<8x32x16xf32> -> vector<8x32x16xf32>
    "tpu.trace_stop"() : () -> ()
    %114 = vector.shape_cast %113 : vector<8x32x16xf32> to vector<256x16xf32>
    %115 = tpu.transpose %114, [1, 0] : vector<256x16xf32> -> vector<16x256xf32>
    %116 = arith.truncf %115 : vector<16x256xf32> to vector<16x256xbf16>
    %c0_46 = arith.constant 0 : index
    %c0_47 = arith.constant 0 : index
    %117 = vector.load %arg15[%c0_46, %c0_47] : memref<256x256xbf16, #tpu.memory_space<vmem>>, vector<256x256xbf16>
    "tpu.trace_start"() <{level = 10 : i32, message = "te,oe->to"}> : () -> ()
    %cst_48 = arith.constant dense<0.000000e+00> : vector<16x256xf32>
    %118 = tpu.matmul %116, %117, %cst_48 {dimension_numbers = #tpu.dot_dimension_numbers<[1], [1], [0], [0], [0, 0, 1, 0], [], []>} : vector<16x256xbf16>, vector<256x256xbf16>, vector<16x256xf32> -> vector<16x256xf32>
    "tpu.trace_stop"() : () -> ()
    %c0_49 = arith.constant 0 : index
    %c0_50 = arith.constant 0 : index
    %119 = vector.load %arg16[%c0_49, %c0_50] : memref<1x256xf32, #tpu.memory_space<vmem>>, vector<1x256xf32>
    %120 = vector.broadcast %119 : vector<1x256xf32> to vector<16x256xf32>
    %121 = arith.addf %118, %120 : vector<16x256xf32>
    %122 = arith.addf %1, %121 : vector<16x256xf32>
    %c0_51 = arith.constant 0 : index
    %c0_52 = arith.constant 0 : index
    %123 = vector.load %arg7[%c0_51, %c0_52] : memref<1x256xf32, #tpu.memory_space<vmem>>, vector<1x256xf32>
    %c0_53 = arith.constant 0 : index
    %c0_54 = arith.constant 0 : index
    %124 = vector.load %arg8[%c0_53, %c0_54] : memref<1x256xf32, #tpu.memory_space<vmem>>, vector<1x256xf32>
    %cst_55 = arith.constant dense<0.000000e+00> : vector<16xf32>
    %125 = vector.multi_reduction <add>, %122, %cst_55 [1] : vector<16x256xf32> to vector<16xf32>
    %126 = vector.shape_cast %125 : vector<16xf32> to vector<16x1xf32>
    %cst_56 = arith.constant 2.560000e+02 : f32
    %127 = vector.broadcast %cst_56 : f32 to vector<16x1xf32>
    %128 = arith.divf %126, %127 : vector<16x1xf32>
    %129 = vector.broadcast %128 : vector<16x1xf32> to vector<16x256xf32>
    %130 = arith.subf %122, %129 : vector<16x256xf32>
    %131 = arith.mulf %130, %130 : vector<16x256xf32>
    %cst_57 = arith.constant dense<0.000000e+00> : vector<16xf32>
    %132 = vector.multi_reduction <add>, %131, %cst_57 [1] : vector<16x256xf32> to vector<16xf32>
    %133 = vector.shape_cast %132 : vector<16xf32> to vector<16x1xf32>
    %cst_58 = arith.constant 2.560000e+02 : f32
    %134 = vector.broadcast %cst_58 : f32 to vector<16x1xf32>
    %135 = arith.divf %133, %134 : vector<16x1xf32>
    %136 = vector.broadcast %128 : vector<16x1xf32> to vector<16x256xf32>
    %137 = arith.subf %122, %136 : vector<16x256xf32>
    %cst_59 = arith.constant 9.99999974E-6 : f32
    %138 = vector.broadcast %cst_59 : f32 to vector<16x1xf32>
    %139 = arith.addf %135, %138 : vector<16x1xf32>
    %140 = math.rsqrt %139 : vector<16x1xf32>
    %141 = vector.broadcast %140 : vector<16x1xf32> to vector<16x256xf32>
    %142 = arith.mulf %137, %141 : vector<16x256xf32>
    %143 = vector.broadcast %123 : vector<1x256xf32> to vector<16x256xf32>
    %144 = arith.mulf %142, %143 : vector<16x256xf32>
    %145 = vector.broadcast %124 : vector<1x256xf32> to vector<16x256xf32>
    %146 = arith.addf %144, %145 : vector<16x256xf32>
    %147 = arith.truncf %146 : vector<16x256xf32> to vector<16x256xbf16>
    %c0_60 = arith.constant 0 : index
    %c0_61 = arith.constant 0 : index
    %148 = vector.load %arg17[%c0_60, %c0_61] : memref<1024x256xbf16, #tpu.memory_space<vmem>>, vector<1024x256xbf16>
    "tpu.trace_start"() <{level = 10 : i32, message = "te,fe->tf"}> : () -> ()
    %cst_62 = arith.constant dense<0.000000e+00> : vector<16x1024xf32>
    %149 = tpu.matmul %147, %148, %cst_62 {dimension_numbers = #tpu.dot_dimension_numbers<[1], [1], [0], [0], [0, 0, 1, 0], [], []>} : vector<16x256xbf16>, vector<1024x256xbf16>, vector<16x1024xf32> -> vector<16x1024xf32>
    "tpu.trace_stop"() : () -> ()
    %c0_63 = arith.constant 0 : index
    %c0_64 = arith.constant 0 : index
    %150 = vector.load %arg18[%c0_63, %c0_64] : memref<1x1024xf32, #tpu.memory_space<vmem>>, vector<1x1024xf32>
    %151 = vector.broadcast %150 : vector<1x1024xf32> to vector<16x1024xf32>
    %152 = arith.addf %149, %151 : vector<16x1024xf32>
    %cst_65 = arith.constant 1.702000e+00 : f32
    %153 = vector.broadcast %cst_65 : f32 to vector<16x1024xf32>
    %154 = arith.mulf %153, %152 : vector<16x1024xf32>
    %155 = arith.negf %154 : vector<16x1024xf32>
    %156 = math.exp %155 : vector<16x1024xf32>
    %cst_66 = arith.constant 1.000000e+00 : f32
    %157 = vector.broadcast %cst_66 : f32 to vector<16x1024xf32>
    %158 = arith.addf %157, %156 : vector<16x1024xf32>
    %159 = arith.divf %157, %158 : vector<16x1024xf32>
    %160 = arith.mulf %152, %159 : vector<16x1024xf32>
    %161 = arith.truncf %160 : vector<16x1024xf32> to vector<16x1024xbf16>
    %c0_67 = arith.constant 0 : index
    %c0_68 = arith.constant 0 : index
    %162 = vector.load %arg19[%c0_67, %c0_68] : memref<256x1024xbf16, #tpu.memory_space<vmem>>, vector<256x1024xbf16>
    "tpu.trace_start"() <{level = 10 : i32, message = "tf,of->to"}> : () -> ()
    %cst_69 = arith.constant dense<0.000000e+00> : vector<16x256xf32>
    %163 = tpu.matmul %161, %162, %cst_69 {dimension_numbers = #tpu.dot_dimension_numbers<[1], [1], [0], [0], [0, 0, 1, 0], [], []>} : vector<16x1024xbf16>, vector<256x1024xbf16>, vector<16x256xf32> -> vector<16x256xf32>
    "tpu.trace_stop"() : () -> ()
    %c0_70 = arith.constant 0 : index
    %c0_71 = arith.constant 0 : index
    %164 = vector.load %arg20[%c0_70, %c0_71] : memref<1x256xf32, #tpu.memory_space<vmem>>, vector<1x256xf32>
    %165 = vector.broadcast %164 : vector<1x256xf32> to vector<16x256xf32>
    %166 = arith.addf %163, %165 : vector<16x256xf32>
    %167 = arith.addf %122, %166 : vector<16x256xf32>
    %c0_72 = arith.constant 0 : index
    %c0_73 = arith.constant 0 : index
    %c0_74 = arith.constant 0 : index
    %168 = vector.load %arg21[%c0_72, %c0_73, %c0_74] : memref<1x16x256xf32, #tpu.memory_space<vmem>>, vector<1x16x256xf32>
    %169 = vector.shape_cast %168 : vector<1x16x256xf32> to vector<16x256xf32>
    %170 = vector.shape_cast %167 : vector<16x256xf32> to vector<1x16x256xf32>
    tpu.vector_store %arg21[%c0_72, %c0_73, %c0_74], %170 {strides = array<i32>} : memref<1x16x256xf32, #tpu.memory_space<vmem>>, vector<1x16x256xf32>,
    %cst_75 = arith.constant dense<0.000000e+00> : vector<16x128xf32>
    %171 = vector.multi_reduction <add>, %111, %cst_75 [0] : vector<8x16x128xf32> to vector<16x128xf32>
    %cst_76 = arith.constant 1.250000e-01 : f32
    %172 = vector.broadcast %cst_76 : f32 to vector<16x128xf32>
    %173 = arith.mulf %171, %172 : vector<16x128xf32>
    %c0_77 = arith.constant 0 : index
    %c0_78 = arith.constant 0 : index
    %c0_79 = arith.constant 0 : index
    %174 = vector.load %arg22[%c0_77, %c0_78, %c0_79] : memref<1x16x128xf32, #tpu.memory_space<vmem>>, vector<1x16x128xf32>
    %175 = vector.shape_cast %174 : vector<1x16x128xf32> to vector<16x128xf32>
    %176 = vector.shape_cast %173 : vector<16x128xf32> to vector<1x16x128xf32>
    tpu.vector_store %arg22[%c0_77, %c0_78, %c0_79], %176 {strides = array<i32>} : memref<1x16x128xf32, #tpu.memory_space<vmem>>, vector<1x16x128xf32>,
    return
  }
  func.func @transform_0(%arg0: i32, %arg1: i32) -> (i32, i32, i32) {
    %c0_i32 = arith.constant 0 : i32
    %c0_i32_0 = arith.constant 0 : i32
    return %arg0, %arg1, %c0_i32 : i32, i32, i32
  }
  func.func @transform_1(%arg0: i32, %arg1: i32) -> (i32, i32, i32) {
    %c0_i32 = arith.constant 0 : i32
    %c0_i32_0 = arith.constant 0 : i32
    %c0_i32_1 = arith.constant 0 : i32
    return %arg0, %c0_i32, %c0_i32_0 : i32, i32, i32
  }
  func.func @transform_2(%arg0: i32, %arg1: i32) -> (i32, i32, i32) {
    %c0_i32 = arith.constant 0 : i32
    %c0_i32_0 = arith.constant 0 : i32
    %c0_i32_1 = arith.constant 0 : i32
    return %arg0, %c0_i32, %c0_i32_0 : i32, i32, i32
  }
  func.func @transform_3(%arg0: i32, %arg1: i32) -> (i32, i32) {
    %c0_i32 = arith.constant 0 : i32
    %c0_i32_0 = arith.constant 0 : i32
    %c0_i32_1 = arith.constant 0 : i32
    return %c0_i32, %c0_i32_0 : i32, i32
  }
  func.func @transform_4(%arg0: i32, %arg1: i32) -> (i32, i32) {
    %c0_i32 = arith.constant 0 : i32
    %c0_i32_0 = arith.constant 0 : i32
    %c0_i32_1 = arith.constant 0 : i32
    return %c0_i32, %c0_i32_0 : i32, i32
  }
  func.func @transform_5(%arg0: i32, %arg1: i32) -> (i32, i32) {
    %c0_i32 = arith.constant 0 : i32
    %c0_i32_0 = arith.constant 0 : i32
    %c0_i32_1 = arith.constant 0 : i32
    return %c0_i32, %c0_i32_0 : i32, i32
  }
  func.func @transform_6(%arg0: i32, %arg1: i32) -> (i32, i32) {
    %c0_i32 = arith.constant 0 : i32
    %c0_i32_0 = arith.constant 0 : i32
    %c0_i32_1 = arith.constant 0 : i32
    return %c0_i32, %c0_i32_0 : i32, i32
  }
  func.func @transform_7(%arg0: i32, %arg1: i32) -> (i32, i32) {
    %c0_i32 = arith.constant 0 : i32
    %c0_i32_0 = arith.constant 0 : i32
    %c0_i32_1 = arith.constant 0 : i32
    return %c0_i32, %c0_i32_0 : i32, i32
  }
  func.func @transform_8(%arg0: i32, %arg1: i32) -> (i32, i32) {
    %c0_i32 = arith.constant 0 : i32
    %c0_i32_0 = arith.constant 0 : i32
    %c0_i32_1 = arith.constant 0 : i32
    return %c0_i32, %c0_i32_0 : i32, i32
  }
  func.func @transform_9(%arg0: i32, %arg1: i32) -> (i32, i32) {
    %c0_i32 = arith.constant 0 : i32
    %c0_i32_0 = arith.constant 0 : i32
    %c0_i32_1 = arith.constant 0 : i32
    return %c0_i32, %c0_i32_0 : i32, i32
  }
  func.func @transform_10(%arg0: i32, %arg1: i32) -> (i32, i32) {
    %c0_i32 = arith.constant 0 : i32
    %c0_i32_0 = arith.constant 0 : i32
    %c0_i32_1 = arith.constant 0 : i32
    return %c0_i32, %c0_i32_0 : i32, i32
  }
  func.func @transform_11(%arg0: i32, %arg1: i32) -> (i32, i32) {
    %c0_i32 = arith.constant 0 : i32
    %c0_i32_0 = arith.constant 0 : i32
    %c0_i32_1 = arith.constant 0 : i32
    return %c0_i32, %c0_i32_0 : i32, i32
  }
  func.func @transform_12(%arg0: i32, %arg1: i32) -> (i32, i32) {
    %c0_i32 = arith.constant 0 : i32
    %c0_i32_0 = arith.constant 0 : i32
    %c0_i32_1 = arith.constant 0 : i32
    return %c0_i32, %c0_i32_0 : i32, i32
  }
  func.func @transform_13(%arg0: i32, %arg1: i32) -> (i32, i32) {
    %c0_i32 = arith.constant 0 : i32
    %c0_i32_0 = arith.constant 0 : i32
    %c0_i32_1 = arith.constant 0 : i32
    return %c0_i32, %c0_i32_0 : i32, i32
  }
  func.func @transform_14(%arg0: i32, %arg1: i32) -> (i32, i32) {
    %c0_i32 = arith.constant 0 : i32
    %c0_i32_0 = arith.constant 0 : i32
    %c0_i32_1 = arith.constant 0 : i32
    return %c0_i32, %c0_i32_0 : i32, i32
  }
  func.func @transform_15(%arg0: i32, %arg1: i32) -> (i32, i32) {
    %c0_i32 = arith.constant 0 : i32
    %c0_i32_0 = arith.constant 0 : i32
    %c0_i32_1 = arith.constant 0 : i32
    return %c0_i32, %c0_i32_0 : i32, i32
  }
  func.func @transform_16(%arg0: i32, %arg1: i32) -> (i32, i32) {
    %c0_i32 = arith.constant 0 : i32
    %c0_i32_0 = arith.constant 0 : i32
    %c0_i32_1 = arith.constant 0 : i32
    return %c0_i32, %c0_i32_0 : i32, i32
  }
  func.func @transform_17(%arg0: i32, %arg1: i32) -> (i32, i32) {
    %c0_i32 = arith.constant 0 : i32
    %c0_i32_0 = arith.constant 0 : i32
    %c0_i32_1 = arith.constant 0 : i32
    return %c0_i32, %c0_i32_0 : i32, i32
  }
  func.func @transform_18(%arg0: i32, %arg1: i32) -> (i32, i32) {
    %c0_i32 = arith.constant 0 : i32
    %c0_i32_0 = arith.constant 0 : i32
    %c0_i32_1 = arith.constant 0 : i32
    return %c0_i32, %c0_i32_0 : i32, i32
  }
  func.func @transform_19(%arg0: i32, %arg1: i32) -> (i32, i32, i32) {
    %c0_i32 = arith.constant 0 : i32
    %c0_i32_0 = arith.constant 0 : i32
    return %arg0, %arg1, %c0_i32 : i32, i32, i32
  }
  func.func @transform_20(%arg0: i32, %arg1: i32) -> (i32, i32, i32) {
    %c0_i32 = arith.constant 0 : i32
    %c0_i32_0 = arith.constant 0 : i32
    return %arg0, %arg1, %c0_i32 : i32, i32, i32
  }
}

</mosaic_0001>

<bundles_post_ra>
// kernel: tpu_custom_call.1
= control target key start
LH: loop header
LB: loop body
LE: loop exit
PB: predicated region body
PF: predicated region fallthrough
CT: control target
= control target key end

     0   :  { %s14514_s0 = inlined_call_operand.hbm [shape: f32[2,16,256], index: 0, kind: input, shape index: {}]   ;;  %s14515_s1 = inlined_call_operand.vmem [shape: f32[2,128,256], index: 1, kind: input, shape index: {}]   ;;  %s14516_s2 = inlined_call_operand.hbm [shape: f32[2,128,256], index: 2, kind: input, shape index: {}]   ;;  %s14517_s3 = inlined_call_operand.vmem [shape: f32[1,256], index: 3, kind: input, shape index: {}]   ;;  %s14518_s4 = inlined_call_operand.hbm [shape: f32[1,256], index: 4, kind: input, shape index: {}]   ;;  %s14519_s5 = inlined_call_operand.hbm [shape: f32[1,256], index: 5, kind: input, shape index: {}]   ;;  %s14520_s6 = inlined_call_operand.hbm [shape: f32[1,256], index: 6, kind: input, shape index: {}]   ;;  %s14521_s7 = inlined_call_operand.vmem [shape: bf16[256,256], index: 7, kind: input, shape index: {}]   ;;  %s14522_s8 = inlined_call_operand.vmem [shape: f32[256,1], index: 8, kind: input, shape index: {}]   ;;  %s14523_s9 = inlined_call_operand.hbm [shape: bf16[256,256], index: 9, kind: input, shape index: {}]   ;;  %s14524_s10 = inlined_call_operand.vmem [shape: f32[256,1], index: 10, kind: input, shape index: {}]   ;;  %s14525_s11 = inlined_call_operand.hbm [shape: bf16[256,256], index: 11, kind: input, shape index: {}]   ;;  %s14526_s12 = inlined_call_operand.vmem [shape: f32[256,1], index: 12, kind: input, shape index: {}]   ;;  %s14527_s13 = inlined_call_operand.hbm [shape: bf16[256,256], index: 13, kind: input, shape index: {}]   ;;  %s14528_s14 = inlined_call_operand.vmem [shape: f32[1,256], index: 14, kind: input, shape index: {}]   ;;  %s14529_s15 = inlined_call_operand.hbm [shape: bf16[1024,256], index: 15, kind: input, shape index: {}]   ;;  %s14530_s16 = inlined_call_operand.hbm [shape: f32[1,1024], index: 16, kind: input, shape index: {}]   ;;  %s14531_s17 = inlined_call_operand.hbm [shape: bf16[256,1024], index: 17, kind: input, shape index: {}]   ;;  %s14532_s18 = inlined_call_operand.vmem [shape: f32[1,256], index: 18, kind: input, shape index: {}]   ;;  %s14533_s19 = inlined_call_operand.hbm [shape: f32[2,16,256], index: 19, kind: output, shape index: {0}]   ;;  %s14534_s20 = inlined_call_operand.hbm [shape: f32[2,16,128], index: 20, kind: output, shape index: {1}]  }
   0x1   :  { %14609 = sst [smem:[#allocation83_spill]] %s14514_s0 }
   0x2   :  { %14610 = sst [smem:[#allocation84_spill]] %s14515_s1 }
   0x3   :  { %14611 = sst [smem:[#allocation85_spill]] %s14516_s2 }
   0x4   :  { %14612 = sst [smem:[#allocation86_spill]] %s14517_s3 }
   0x5   :  { %14613 = sst [smem:[#allocation87_spill]] %s14518_s4 }
   0x6   :  { %14614 = sst [smem:[#allocation88_spill]] %s14519_s5 }
   0x7   :  { %14615 = sst [smem:[#allocation89_spill]] %s14520_s6 }
   0x8   :  { %14616 = sst [smem:[#allocation90_spill]] %s14522_s8 }
   0x9   :  { %14617 = sst [smem:[#allocation91_spill]] %s14523_s9 }
   0xa   :  { %14618 = sst [smem:[#allocation92_spill]] %s14524_s10 }
   0xb   :  { %14619 = sst [smem:[#allocation93_spill]] %s14525_s11 }
   0xc   :  { %14620 = sst [smem:[#allocation94_spill]] %s14526_s12 }
   0xd   :  { %14621 = sst [smem:[#allocation95_spill]] %s14527_s13 }
   0xe   :  { %14622 = sst [smem:[#allocation96_spill]] %s14528_s14 }
   0xf   :  { %14623 = sst [smem:[#allocation97_spill]] %s14529_s15 }
  0x10   :  { %14624 = sst [smem:[#allocation98_spill]] %s14530_s16 }
  0x11   :  { %14625 = sst [smem:[#allocation99_spill]] %s14531_s17 }
  0x12   :  { %14626 = sst [smem:[#allocation100_spill]] %s14532_s18 }
  0x13   :  { %14627 = sst [smem:[#allocation101_spill]] %s14533_s19 }
  0x14   :  { %14628 = sst [smem:[#allocation102_spill]] %s14534_s20 }
  0x15   :  { %26 = vsyncpa [#allocation3], 0 }
  0x16   :  { %28 = vsyncpa [#allocation3 + $0x1], 0 }
  0x17   :  { %29 = vsyncpa [#allocation6], 0 }
  0x18   :  { %31 = vsyncpa [#allocation6 + $0x1], 0 }
  0x19   :  { %32 = vsyncpa [#allocation9], 0 }
  0x1a   :  { %33 = vsyncpa [#allocation12], 0 }
  0x1b   :  { %34 = vsyncpa [#allocation15], 0 }
  0x1c   :  { %35 = vsyncpa [#allocation18], 0 }
  0x1d   :  { %36 = vsyncpa [#allocation4], 0 }
  0x1e   :  { %38 = vsyncpa [#allocation4 + $0x1], 0 }
  0x1f   :  { %39 = vsyncpa [#allocation22], 0 }
  0x20   :  { %41 = vsyncpa [#allocation22 + $0x1], 0  ;;  %s10928_s1 = smov 0   ;;  %s10930_s22 = smov 0  }
  0x21   :  { %s10932_s23 = smov 0   ;;  %s10934_s24 = smov 0  }
  0x22   :  { %s10936_s2 = smov 0   ;;  %s10938_s25 = smov 0  }
  0x23 LB: > { %s10959_s3 = sadd.s32 4294967295, %s10800_s25   ;;  %p7840_p0 = scmp.ge.s32.totalorder %s10800_s25, 1  ;;  %s10800_s25 = sphi %s10938_s25, %s47_s25   ;;  %s10796_s2 = sphi %s10936_s2, %s14892_s2   ;;  %s10792_s24 = sphi %s10934_s24, %s14891_s24   ;;  %s10788_s23 = sphi %s10932_s23, %s14890_s23   ;;  %s10784_s22 = sphi %s10930_s22, %s14889_s22   ;;  %s10780_s1 = sphi %s10928_s1, %s14888_s1  }
  0x24   : > { %p82_p1 = scmp.eq.s32.totalorder %s10959_s3, 0  ;;  %p536_p2 = scmp.lt.s32.totalorder %s10800_s25, 3 }
  0x25   : > { %s14629_s28 = sld [smem:[#allocation87_spill]]  ;;  %p7850_p4 = scmp.ge.s32.totalorder %s10800_s25, 2 }
  0x26   : > { %p10967_p3 = pnand %p7840_p0, %p536_p2  ;;  %s10802_s30 = smov [#allocation7]  }
  0x27   : > { %s553_s0 = sshll.u32 %s10802_s30, 4  ;;  %s14631_s5 = sld [smem:[#allocation88_spill]]  ;;  %s554_s0 = int_to_ptr.vmem [resolvable:$true] %s553_s0 }
  0x28   : > { %p9874_p5 = pneg %p10967_p3  ;;  %s14633_s9 = sld [smem:[#allocation91_spill]] }
  0x29   : > { %s10803_s14 = smov [#allocation8]   ;;  %s10804_s19 = smov [#allocation11]  }
  0x2a   : > { %p10979_p6 = pnand %p9874_p5, %p82_p1  ;;  %s565_s30 = sshll.u32 %s10803_s14, 4  ;;  %s566_s30 = int_to_ptr.vmem [resolvable:$true] %s565_s30 }
  0x2b   : > { %s551_s4 = sshll.u32 %s14629_s28, 4  ;;  %s594_s21 = sshll.u32 %s10804_s19, 4  ;;  %s552_s4 = int_to_ptr.hbm [resolvable:$true] %s551_s4  ;;  %s595_s21 = int_to_ptr.vmem [resolvable:$true] %s594_s21 }
  0x2c   : > { %9877 = dma.hbm_to_vmem [thread:$0]  (!%p10979_p6), %s552_s4, 32, %s554_s0, [#allocation6]  }
  0x2d   : > { %s563_s18 = sshll.u32 %s14631_s5, 4  ;;  %s14634_s13 = sld [smem:[#allocation95_spill]]  ;;  %s564_s18 = int_to_ptr.hbm [resolvable:$true] %s563_s18 }
  0x2e   : > { %s592_s20 = sshll.u32 %s14633_s9, 4  ;;  %s10805_s8 = smov 128   ;;  %s593_s20 = int_to_ptr.hbm [resolvable:$true] %s592_s20 }
  0x2f   : > { %9880 = dma.hbm_to_vmem [thread:$0]  (!%p10979_p6), %s564_s18, 32, %s566_s30, [#allocation9]  }
  0x30   : > { %s10806_s27 = smov 8   ;;  %s10807_s14 = smov [#allocation14]  }
  0x31   : > { %9886 = dma.hbm_to_vmem [thread:$0]  (!%p10979_p6), %s593_s20, 4096, %s595_s21, [#allocation12], %s10805_s8, %s10805_s8, %s10806_s27  }
  0x32   : > { %s628_s4 = sshll.u32 %s10807_s14, 4  ;;  %s14635_s16 = sld [smem:[#allocation98_spill]]  ;;  %s629_s4 = int_to_ptr.vmem [resolvable:$true] %s628_s4 }
  0x33   : > { %s626_s10 = sshll.u32 %s14634_s13, 4  ;;  %s14636_s6 = sld [smem:[#allocation89_spill]]  ;;  %s627_s10 = int_to_ptr.hbm [resolvable:$true] %s626_s10 }
  0x34   : > { %9892 = dma.hbm_to_vmem [thread:$0]  (!%p10979_p6), %s627_s10, 4096, %s629_s4, [#allocation15], %s10805_s8, %s10805_s8, %s10806_s27  }
  0x35   : > { %s10808_s20 = smov [#allocation17]   ;;  %s10809_s21 = smov [#allocation10]  }
  0x36   : > { %s660_s19 = sshll.u32 %s10808_s20, 4  ;;  %s577_s14 = sshll.u32 %s10809_s21, 4  ;;  %s661_s19 = int_to_ptr.vmem [resolvable:$true] %s660_s19  ;;  %s578_s14 = int_to_ptr.vmem [resolvable:$true] %s577_s14 }
  0x37   : > { %s14637_s11 = sld [smem:[#allocation93_spill]]  ;;  %s10810_s12 = smov [#allocation13]  }
  0x38   : > { %s658_s28 = sshll.u32 %s14635_s16, 4  ;;  %s14638_s15 = sld [smem:[#allocation97_spill]]  ;;  %s659_s28 = int_to_ptr.hbm [resolvable:$true] %s658_s28 }
  0x39   : > { %s575_s30 = sshll.u32 %s14636_s6, 4  ;;  %s611_s20 = sshll.u32 %s10810_s12, 4  ;;  %s576_s30 = int_to_ptr.hbm [resolvable:$true] %s575_s30  ;;  %s612_s20 = int_to_ptr.vmem [resolvable:$true] %s611_s20 }
  0x3a   : > { %9898 = dma.hbm_to_vmem [thread:$0]  (!%p10979_p6), %s659_s28, 128, %s661_s19, [#allocation18]  }
  0x3b   : > { %9883 = dma.hbm_to_vmem [thread:$0]  (!%p10979_p6), %s576_s30, 32, %s578_s14, [#allocation9]  }
  0x3c   : > { %s10811_s28 = smov [#allocation16]   ;;  %s14639_s17 = sld [smem:[#allocation99_spill]] }
  0x3d   : > { %s609_s9 = sshll.u32 %s14637_s11, 4  ;;  %s645_s30 = sshll.u32 %s10811_s28, 4  ;;  %s610_s9 = int_to_ptr.hbm [resolvable:$true] %s609_s9  ;;  %s646_s30 = int_to_ptr.vmem [resolvable:$true] %s645_s30 }
  0x3e   : > { %s643_s5 = sshll.u32 %s14638_s15, 4  ;;  %s10813_s18 = smov 512   ;;  %s644_s5 = int_to_ptr.hbm [resolvable:$true] %s643_s5 }
  0x3f   : > { %9889 = dma.hbm_to_vmem [thread:$0]  (!%p10979_p6), %s610_s9, 4096, %s612_s20, [#allocation12], %s10805_s8, %s10805_s8, %s10806_s27  }
  0x40   : > { %9895 = dma.hbm_to_vmem [thread:$0]  (!%p10979_p6), %s644_s5, 16384, %s646_s30, [#allocation15], %s10805_s8, %s10805_s8, %s10806_s27  }
  0x41   : > { %s10812_s9 = smov [#allocation19]   ;;  %s10814_s10 = smov 32  }
  0x42   : > { %s669_s14 = sshll.u32 %s14639_s17, 4  ;;  %s671_s0 = sshll.u32 %s10812_s9, 4  ;;  %s670_s14 = int_to_ptr.hbm [resolvable:$true] %s669_s14  ;;  %s672_s0 = int_to_ptr.vmem [resolvable:$true] %s671_s0 }
  0x43   : > { %9901 = dma.hbm_to_vmem [thread:$0]  (!%p10979_p6), %s670_s14, 16384, %s672_s0, [#allocation18], %s10813_s18, %s10813_s18, %s10814_s10  }
  0x44   : > { %s7839_s4 = sadd.s32 4294967294, %s10800_s25   ;;  %s59_s12 = sadd.s32 1, %s10796_s2 }
  0x45   : > { %s68_s20 = sadd.s32 1, %s10788_s23  ;;  %p61_p7 = scmp.ge.s32.totalorder %s59_s12, 2 }
  0x46   : > { %p75_p8 = scmp.ne.s32.totalorder %s10788_s23, %s10784_s22  ;;  %p76_p9 = scmp.eq.s32.totalorder %s10800_s25, 0 }
  0x47   : > { %p81_p10 = scmp.ne.s32.totalorder %s10784_s22, %s10780_s1  ;;  %s14894_s12 = smov (%p61_p7, %s59_s12), 0 }
  0x48   : > { %14640 = sst [smem:[#allocation32_spill]] %s14894_s12  ;;  %p11044_p11 = por %p76_p9, %p75_p8 }
  0x49   : > { %p11050_p12 = por %p82_p1, %p81_p10  ;;  %s63_s27 = ssub.s32 %s10796_s2, %s14894_s12 }
  0x4a   : > { %p495_p13 = scmp.eq.s32.totalorder %s10959_s3, 1  ;;  %p66_p0 = scmp.eq.s32.totalorder %s63_s27, 0 }
  0x4b   : > { %p501_p2 = scmp.eq.s32.totalorder %s7839_s4, 1  ;;  %p9925_p6 = scmp.lt.s32.totalorder %s10800_s25, 2 }
  0x4c   : > { %p11057_p5 = por %p495_p13, %p75_p8  ;;  %s688_s19 = sand.u32 1, %s10788_s23  }
  0x4d   : > { %s11063_s28 = scalar_select %p66_p0, %s10788_s23, %s68_s20  }
  0x4e   : > { %p11065_p7 = por %p501_p2, %p81_p10  ;;  %s7851_s21 = sshll.u32 %s688_s19, 5 }
  0x4f   : > { %s9441_s14 = sshll.u32 %s10796_s2, 5  ;;  %s14645_s18 = sld [smem:[#allocation83_spill]] }
  0x50   : > { %s692_s4 = scalar_lea.vmem [#allocation2], %s7851_s21  ;;  %p11076_p8 = pnand %p9925_p6, %p11044_p11 }
  0x51   : > { %s703_s27 = sshll.u32 %s692_s4, 4  ;;  %s721_s11 = sand.u32 1, %s10800_s25   ;;  %s704_s27 = int_to_ptr.vmem [resolvable:$true] %s703_s27 }
  0x52   : > { %s689_s13 = scalar_lea.sflag [#allocation3], %s688_s19  ;;  %s10815_s15 = smov 256  }
  0x53   : > { %s10816_s16 = smov 16   ;;  %s7854_s9 = sshll.u32 %s688_s19, 8 }
  0x54   : > { %s725_s4 = scalar_lea.vmem [#allocation5], %s7854_s9  ;;  %s722_s12 = scalar_lea.sflag [#allocation6], %s721_s11 }
  0x55   : > { %s700_s10 = scalar_lea.hbm %s14645_s18, %s9441_s14  ;;  %s9442_s14 = sshll.u32 %s10796_s2, 8 }
  0x56   : > { %s701_s6 = sshll.u32 %s700_s10, 4  ;;  %s14647_s18 = sld [smem:[#allocation85_spill]]  ;;  %s702_s6 = int_to_ptr.hbm [resolvable:$true] %s701_s6 }
  0x57   : > { %9905 = dma.hbm_to_vmem [thread:$0]  (!%p11076_p8), %s702_s6, 512, %s704_s27, %s689_s13, %s10815_s15, %s10815_s15, %s10816_s16  }
  0x58   : > { %s733_s8 = sshll.u32 %s725_s4, 4  ;;  %s734_s8 = int_to_ptr.vmem [resolvable:$true] %s733_s8 }
  0x5a   : > { %745 = sbr.rel (%p10967_p3) target bundleno = 2811 (0xafb), region = 96 }
  0x5c   : > { %s730_s10 = scalar_lea.hbm %s14647_s18, %s9442_s14 }
  0x5d   : > { %s731_s17 = sshll.u32 %s730_s10, 4  ;;  %s732_s17 = int_to_ptr.hbm [resolvable:$true] %s731_s17 }
  0x5e   : > { %9908 = dma.hbm_to_vmem [thread:$0]  (!%p11076_p8), %s732_s17, 4096, %s734_s8, %s722_s12, %s10815_s15, %s10815_s15, %s10816_s16  }
  0x5f   : > { %s11092_s6 = sand.u32 1, %s10784_s22  }
  0x60   : > { %s7858_s13 = sshll.u32 %s11092_s6, 5  ;;  %s748_s19 = scalar_lea.sflag [#allocation3], %s11092_s6 }
  0x61   : > { %s11098_s27 = scalar_lea.vmem [#allocation2], %s7858_s13 }
  0x62   : > { %10743 = dma.done.wait (%p11050_p12), %s748_s19, 512  }
  0x63   : > { %10745 = vsyncadd (%p11050_p12), %s748_s19, 4294966784  ;;  %s757_s11 = sand.u32 1, %s10959_s3   ;;  %s7859_s15 = sshll.u32 %s11092_s6, 8 }
  0x64   : > { %s758_s16 = scalar_lea.sflag [#allocation6], %s757_s11  ;;  %s11106_s17 = scalar_lea.vmem [#allocation5], %s7859_s15 }
  0x65   : > { %10747 = dma.done.wait (%p11050_p12), %s758_s16, 4096  }
  0x66   : > { %10749 = vsyncadd (%p11050_p12), %s758_s16, 4294963200 }
  0x67   : > { %10751 = dma.done.wait (%p82_p1), [#allocation6], 32  }
  0x68   : > { %10753 = vsyncadd (%p82_p1), [#allocation6], 4294967264 }
  0x69   : > { %10755 = dma.done.wait (%p82_p1), [#allocation9], 64  }
  0x6a   : > { %10757 = vsyncadd (%p82_p1), [#allocation9], 4294967232 }
  0x6b   : > { %10759 = dma.done.wait (%p82_p1), [#allocation12], 8192  }
  0x6c   : > { %10761 = vsyncadd (%p82_p1), [#allocation12], 4294959104 }
  0x6d   : > { %10763 = dma.done.wait (%p82_p1), [#allocation15], 20480  }
  0x6e   : > { %10765 = vsyncadd (%p82_p1), [#allocation15], 4294946816 }
  0x6f   : > { %10767 = dma.done.wait (%p82_p1), [#allocation18], 16512  }
  0x70   : > { %10769 = vsyncadd (%p82_p1), [#allocation18], 4294950784  ;;  %p880_p3 = scmp.lt.s32.totalorder %s10792_s24, 1  ;;  %s14648_s9 = sld [smem:[#allocation84_spill]]  ;;  %v11236_v36 = vld [vmem:[%s11098_s27] sm:$0xff]  ;;  %v11239_v37 = vld [vmem:[%s11098_s27 + $0x8] sm:$0xff] }
  0x71   : > { %v11242_v38 = vld [vmem:[%s11098_s27 + $0x10] sm:$0xff]  ;;  %v11245_v39 = vld [vmem:[%s11098_s27 + $0x18] sm:$0xff]  ;;  %v958_v40 = vadd.f32 %v11239_v37, %v11236_v36  ;;  %v10817_v54 = vmov 256.0   ;;  %s14696_s0 = sld [smem:[#allocation86_spill]]  ;;  %s7558_s11 = scalar_lea.sflag [#allocation22], %s11092_s6 }
  0x72   : > { %s881_s29 = scalar_select %p880_p3, %s10792_s24, 1  ;;  %v961_v43 = vadd.f32 %v11245_v39, %v11242_v38  ;;  %10123 = vrcp.f32 %v10817_v54 }
  0x73   : > { %s14784_s10 = sld [smem:[#allocation92_spill]] }
  0x74   : > { %s9443_s12 = sshll.u32 %s881_s29, 8  ;;  %s14825_s20 = sld [smem:[#allocation94_spill]] }
  0x75   : > { %s14884_s4 = sld [smem:[#allocation102_spill]] }
  0x76   : > { %s11137_s14 = scalar_lea.vmem %s14648_s9, %s9443_s12 }
  0x77   : > { %v11140_v0 = vld [vmem:[%s11137_s14 + $0xe0] sm:$0xff]  ;;  %v11143_v1 = vld [vmem:[%s11137_s14 + $0xe8] sm:$0xff]  ;;  %v11162_v8 = vld [vmem:[%s11137_s14 + $0xf0] sm:$0xff] }
  0x78   : > { %v11146_v2 = vld [vmem:[%s11137_s14 + $0xc0] sm:$0xff]  ;;  %v1075_v3 = vadd.f32 %v11143_v1, %v11140_v0  ;;  %v11151_v4 = vld [vmem:[%s11137_s14 + $0xc8] sm:$0xff]  ;;  %v11165_v9 = vld [vmem:[%s11137_s14 + $0xf8] sm:$0xff]  ;;  %v10124_v55 = vpop.eup %10123 }
  0x79   : > { %v1069_v5 = vadd.f32 %v11151_v4, %v11146_v2  ;;  %v11156_v6 = vld [vmem:[%s11137_s14 + $0xa0] sm:$0xff]  ;;  %v11159_v7 = vld [vmem:[%s11137_s14 + $0xa8] sm:$0xff]  ;;  %v11170_v11 = vld [vmem:[%s11137_s14 + $0xd0] sm:$0xff]  ;;  %v1078_v13 = vadd.f32 %v11165_v9, %v11162_v8  ;;  %v965_v56 = vmul.f32 256.0, %v10124_v55  ;;  %vm969_vm0 = vweird.f32 %v10124_v55 }
  0x7a   : > { %1076 = vadd.xlane.f32.xlu0 %v1075_v3  ;;  %v1063_v10 = vadd.f32 %v11159_v7, %v11156_v6  ;;  %v11173_v12 = vld [vmem:[%s11137_s14 + $0xd8] sm:$0xff]  ;;  %v11178_v14 = vld [vmem:[%s11137_s14 + $0xb0] sm:$0xff]  ;;  %v11188_v18 = vld [vmem:[%s11137_s14 + $0x80] sm:$0xff] }
  0x7b   : > { %1070 = vadd.xlane.f32.xlu1 %v1069_v5  ;;  %v11181_v15 = vld [vmem:[%s11137_s14 + $0xb8] sm:$0xff]  ;;  %v1072_v16 = vadd.f32 %v11173_v12, %v11170_v11  ;;  %v11191_v19 = vld [vmem:[%s11137_s14 + $0x88] sm:$0xff]  ;;  %v11194_v20 = vld [vmem:[%s11137_s14 + $0x90] sm:$0xff]  ;;  %v966_v57 = vsub.f32 1.0, %v965_v56  ;;  %s10682_s26 = scalar_lea.hbm %s14884_s4, 32 }
  0x7c   : > { %1064 = vadd.xlane.f32.xlu2 %v1063_v10  ;;  %v1066_v17 = vadd.f32 %v11181_v15, %v11178_v14  ;;  %v11197_v21 = vld [vmem:[%s11137_s14 + $0x98] sm:$0xff]  ;;  %v1057_v22 = vadd.f32 %v11191_v19, %v11188_v18  ;;  %v11202_v23 = vld [vmem:[%s11137_s14 + $0x60] sm:$0xff]  ;;  %v11205_v24 = vld [vmem:[%s11137_s14 + $0x68] sm:$0xff] }
  0x7d   : > { %v1060_v25 = vadd.f32 %v11197_v21, %v11194_v20  ;;  %v1051_v26 = vadd.f32 %v11205_v24, %v11202_v23  ;;  %v11212_v27 = vld [vmem:[%s11137_s14 + $0x70] sm:$0xff]  ;;  %v11215_v28 = vld [vmem:[%s11137_s14 + $0x78] sm:$0xff]  ;;  %v11218_v29 = vld [vmem:[%s11137_s14 + $0x40] sm:$0xff]  ;;  %v967_v58 = vmul.f32 %v10124_v55, %v966_v57 }
  0x7e   : > { %v11221_v30 = vld [vmem:[%s11137_s14 + $0x48] sm:$0xff]  ;;  %v1054_v31 = vadd.f32 %v11215_v28, %v11212_v27  ;;  %v11226_v32 = vld [vmem:[%s11137_s14 + $0x50] sm:$0xff]  ;;  %v11229_v33 = vld [vmem:[%s11137_s14 + $0x58] sm:$0xff] }
  0x7f   : > { %v1045_v34 = vadd.f32 %v11221_v30, %v11218_v29  ;;  %v1048_v35 = vadd.f32 %v11229_v33, %v11226_v32  ;;  %v11250_v41 = vld [vmem:[%s11137_s14 + $0x20] sm:$0xff]  ;;  %v11253_v42 = vld [vmem:[%s11137_s14 + $0x28] sm:$0xff]  ;;  %v11260_v45 = vld [vmem:[%s11137_s14 + $0x30] sm:$0xff]  ;;  %v968_v59 = vadd.f32 %v10124_v55, %v967_v58 }
  0x80   : > { %v1039_v44 = vadd.f32 %v11253_v42, %v11250_v41  ;;  %v11263_v46 = vld [vmem:[%s11137_s14 + $0x38] sm:$0xff]  ;;  %v11266_v47 = vld [vmem:[%s11137_s14 + $0x10] sm:$0xff]  ;;  %v11276_v51 = vld [vmem:[%s11137_s14] sm:$0xff] }
  0x81   : > { %v11269_v48 = vld [vmem:[%s11137_s14 + $0x18] sm:$0xff]  ;;  %v1042_v49 = vadd.f32 %v11263_v46, %v11260_v45  ;;  %v11279_v52 = vld [vmem:[%s11137_s14 + $0x8] sm:$0xff]  ;;  %v11283_v60 = vsel %vm969_vm0, %v10124_v55, %v968_v59  ;;  %s14852_s14 = sld [smem:[#allocation96_spill]] }
  0x82   : > { %1079 = vadd.xlane.f32.xlu0 %v1078_v13  ;;  %v1036_v50 = vadd.f32 %v11269_v48, %v11266_v47  ;;  %v1033_v53 = vadd.f32 %v11279_v52, %v11276_v51  ;;  %14649 = vst [vmem:[#allocation33_spill] sm:$0xff] %v11283_v60 }
  0x83   : > { %1073 = vadd.xlane.f32.xlu1 %v1072_v16 }
  0x84   : > { %1067 = vadd.xlane.f32.xlu2 %v1066_v17 }
  0x8a   : > { %1058 = vadd.xlane.f32.xlu0 %v1057_v22 }
  0x8b   : > { %1061 = vadd.xlane.f32.xlu1 %v1060_v25 }
  0x8c   : > { %1052 = vadd.xlane.f32.xlu2 %v1051_v26 }
  0x92   : > { %1055 = vadd.xlane.f32.xlu0 %v1054_v31 }
  0x93   : > { %1046 = vadd.xlane.f32.xlu1 %v1045_v34 }
  0x94   : > { %1049 = vadd.xlane.f32.xlu2 %v1048_v35 }
  0x9a   : > { %959 = vadd.xlane.f32.xlu0 %v958_v40 }
  0x9b   : > { %962 = vadd.xlane.f32.xlu1 %v961_v43 }
  0x9c   : > { %1040 = vadd.xlane.f32.xlu2 %v1039_v44 }
  0xa2   : > { %1043 = vadd.xlane.f32.xlu0 %v1042_v49 }
  0xa3   : > { %1037 = vadd.xlane.f32.xlu1 %v1036_v50 }
  0xaa   : > { %1034 = vadd.xlane.f32.xlu0 %v1033_v53 }
  0xed   : > { %v1077_v61 = vpop.xlane.xlu0 %1076 }
  0xee   : > { %v1095_v62 = vmul.f32 %v1077_v61, %v11283_v60  ;;  %v1071_v63 = vpop.xlane.xlu1 %1070 }
  0xef   : > { %v1065_v10 = vpop.xlane.xlu2 %1064 }
  0xf0   : > { %v11287_v3 = vsub.f32 %v11140_v0, %v1095_v62  ;;  %v11290_v5 = vsub.f32 %v11143_v1, %v1095_v62  ;;  %v1091_v13 = vmul.f32 %v1065_v10, %v11283_v60 }
  0xf2   : > { %v1157_v16 = vmul.f32 %v11287_v3, %v11287_v3  ;;  %v1158_v17 = vmul.f32 %v11290_v5, %v11290_v5  ;;  %v11298_v22 = vsub.f32 %v11156_v6, %v1091_v13  ;;  %v11301_v25 = vsub.f32 %v11159_v7, %v1091_v13 }
  0xf3   : > { %v1093_v6 = vmul.f32 %v1071_v63, %v11283_v60 }
  0xf4   : > { %v1203_v0 = vadd.f32 %v1158_v17, %v1157_v16  ;;  %v1149_v34 = vmul.f32 %v11298_v22, %v11298_v22  ;;  %v1150_v35 = vmul.f32 %v11301_v25, %v11301_v25 }
  0xf5   : > { %v1080_v26 = vpop.xlane.xlu0 %1079  ;;  %v11331_v56 = vsub.f32 %v11146_v2, %v1093_v6 }
  0xf6   : > { %v1096_v1 = vmul.f32 %v1080_v26, %v11283_v60  ;;  %v1074_v31 = vpop.xlane.xlu1 %1073  ;;  %1204 = vadd.xlane.f32.xlu1 %v1203_v0  ;;  %v1191_v55 = vadd.f32 %v1150_v35, %v1149_v34 }
  0xf7   : > { %v1094_v40 = vmul.f32 %v1074_v31, %v11283_v60  ;;  %v1068_v44 = vpop.xlane.xlu2 %1067 }
  0xf8   : > { %v11311_v43 = vsub.f32 %v11162_v8, %v1096_v1  ;;  %v11314_v7 = vsub.f32 %v11165_v9, %v1096_v1  ;;  %v1092_v62 = vmul.f32 %v1068_v44, %v11283_v60 }
  0xf9   : > { %v11317_v49 = vsub.f32 %v11170_v11, %v1094_v40  ;;  %v11320_v50 = vsub.f32 %v11173_v12, %v1094_v40  ;;  %v11334_v11 = vsub.f32 %v11151_v4, %v1093_v6  ;;  %v1153_v4 = vmul.f32 %v11331_v56, %v11331_v56 }
  0xfa   : > { %v1159_v53 = vmul.f32 %v11311_v43, %v11311_v43  ;;  %v1160_v54 = vmul.f32 %v11314_v7, %v11314_v7  ;;  %v11356_v26 = vsub.f32 %v11178_v14, %v1092_v62 }
  0xfb   : > { %v1155_v8 = vmul.f32 %v11317_v49, %v11317_v49  ;;  %v1156_v9 = vmul.f32 %v11320_v50, %v11320_v50  ;;  %v1154_v13 = vmul.f32 %v11334_v11, %v11334_v11 }
  0xfc   : > { %v1206_v12 = vadd.f32 %v1160_v54, %v1159_v53  ;;  %v1151_v44 = vmul.f32 %v11356_v26, %v11356_v26 }
  0xfd   : > { %v1059_v57 = vpop.xlane.xlu0 %1058  ;;  %v1200_v58 = vadd.f32 %v1156_v9, %v1155_v8 }
  0xfe   : > { %v1062_v59 = vpop.xlane.xlu1 %1061  ;;  %v1089_v61 = vmul.f32 %v1059_v57, %v11283_v60  ;;  %1207 = vadd.xlane.f32.xlu2 %v1206_v12  ;;  %1192 = vadd.xlane.f32.xlu1 %v1191_v55 }
  0xff   : > { %v1090_v63 = vmul.f32 %v1062_v59, %v11283_v60  ;;  %1201 = vadd.xlane.f32.xlu0 %v1200_v58  ;;  %v1053_v16 = vpop.xlane.xlu2 %1052 }
 0x100   : > { %v11340_v10 = vsub.f32 %v11188_v18, %v1089_v61  ;;  %v11343_v2 = vsub.f32 %v11191_v19, %v1089_v61  ;;  %v11359_v18 = vsub.f32 %v11181_v15, %v1092_v62  ;;  %v1087_v40 = vmul.f32 %v1053_v16, %v11283_v60 }
 0x101   : > { %v11350_v17 = vsub.f32 %v11194_v20, %v1090_v63  ;;  %v11353_v0 = vsub.f32 %v11197_v21, %v1090_v63  ;;  %v1197_v21 = vadd.f32 %v1154_v13, %v1153_v4 }
 0x102   : > { %14650 = vst [vmem:[#allocation34_spill] sm:$0xff] %v11340_v10  ;;  %v1145_v19 = vmul.f32 %v11340_v10, %v11340_v10  ;;  %v1146_v1 = vmul.f32 %v11343_v2, %v11343_v2  ;;  %v1152_v53 = vmul.f32 %v11359_v18, %v11359_v18  ;;  %v11389_v58 = vsub.f32 %v11202_v23, %v1087_v40 }
 0x103   : > { %14651 = vst [vmem:[#allocation35_spill] sm:$0xff] %v11343_v2  ;;  %v1147_v31 = vmul.f32 %v11350_v17, %v11350_v17  ;;  %v1148_v20 = vmul.f32 %v11353_v0, %v11353_v0  ;;  %v11392_v59 = vsub.f32 %v11205_v24, %v1087_v40 }
 0x104   : > { %14652 = vst [vmem:[#allocation36_spill] sm:$0xff] %v11350_v17  ;;  %v1185_v34 = vadd.f32 %v1146_v1, %v1145_v19  ;;  %v1194_v61 = vadd.f32 %v1152_v53, %v1151_v44  ;;  %v1141_v24 = vmul.f32 %v11389_v58, %v11389_v58 }
 0x105   : > { %14653 = vst [vmem:[#allocation37_spill] sm:$0xff] %v11353_v0  ;;  %v1056_v35 = vpop.xlane.xlu0 %1055  ;;  %v1188_v14 = vadd.f32 %v1148_v20, %v1147_v31  ;;  %v1142_v4 = vmul.f32 %v11392_v59, %v11392_v59 }
 0x106   : > { %v1088_v15 = vmul.f32 %v1056_v35, %v11283_v60  ;;  %v1047_v6 = vpop.xlane.xlu1 %1046  ;;  %1198 = vadd.xlane.f32.xlu2 %v1197_v21  ;;  %14658 = vst [vmem:[#allocation42_spill] sm:$0xff] %v11389_v58 }
 0x107   : > { %v1085_v54 = vmul.f32 %v1047_v6, %v11283_v60  ;;  %1189 = vadd.xlane.f32.xlu1 %v1188_v14  ;;  %1186 = vadd.xlane.f32.xlu0 %v1185_v34  ;;  %v1050_v9 = vpop.xlane.xlu2 %1049  ;;  %14659 = vst [vmem:[#allocation43_spill] sm:$0xff] %v11392_v59  ;;  %v1179_v35 = vadd.f32 %v1142_v4, %v1141_v24 }
 0x108   : > { %v11377_v55 = vsub.f32 %v11212_v27, %v1088_v15  ;;  %v11380_v8 = vsub.f32 %v11215_v28, %v1088_v15  ;;  %v1086_v19 = vmul.f32 %v1050_v9, %v11283_v60 }
 0x109   : > { %v11383_v12 = vsub.f32 %v11218_v29, %v1085_v54  ;;  %v11386_v57 = vsub.f32 %v11221_v30, %v1085_v54 }
 0x10a   : > { %14654 = vst [vmem:[#allocation38_spill] sm:$0xff] %v11377_v55  ;;  %v1143_v27 = vmul.f32 %v11377_v55, %v11377_v55  ;;  %v1144_v28 = vmul.f32 %v11380_v8, %v11380_v8  ;;  %v11422_v14 = vsub.f32 %v11226_v32, %v1086_v19  ;;  %v11425_v40 = vsub.f32 %v11229_v33, %v1086_v19  ;;  %v11470_v19 = vld [vmem:[%s11106_s17 + $0xe0] sm:$0xff] }
 0x10b   : > { %14655 = vst [vmem:[#allocation39_spill] sm:$0xff] %v11380_v8  ;;  %v1137_v29 = vmul.f32 %v11383_v12, %v11383_v12  ;;  %v1138_v30 = vmul.f32 %v11386_v57, %v11386_v57 }
 0x10c   : > { %14656 = vst [vmem:[#allocation40_spill] sm:$0xff] %v11383_v12  ;;  %v1182_v62 = vadd.f32 %v1144_v28, %v1143_v27  ;;  %v1139_v54 = vmul.f32 %v11422_v14, %v11422_v14  ;;  %v1140_v9 = vmul.f32 %v11425_v40, %v11425_v40 }
 0x10d   : > { %14657 = vst [vmem:[#allocation41_spill] sm:$0xff] %v11386_v57  ;;  %v960_v63 = vpop.xlane.xlu0 %959  ;;  %v1173_v23 = vadd.f32 %v1138_v30, %v1137_v29 }
 0x10e   : > { %v963_v13 = vpop.xlane.xlu1 %962  ;;  %v971_v16 = vmul.f32 %v11283_v60, %v960_v63  ;;  %1195 = vadd.xlane.f32.xlu2 %v1194_v61  ;;  %14664 = vst [vmem:[#allocation48_spill] sm:$0xff] %v11422_v14  ;;  %v1176_v30 = vadd.f32 %v1140_v9, %v1139_v54  ;;  %v11508_v9 = vld [vmem:[%s11106_s17 + $0xc0] sm:$0xff] }
 0x10f   : > { %v972_v1 = vmul.f32 %v11283_v60, %v963_v13  ;;  %1174 = vadd.xlane.f32.xlu1 %v1173_v23  ;;  %1183 = vadd.xlane.f32.xlu0 %v1182_v62  ;;  %14665 = vst [vmem:[#allocation49_spill] sm:$0xff] %v11425_v40  ;;  %v1041_v15 = vpop.xlane.xlu2 %1040 }
 0x110   : > { %v11410_v31 = vsub.f32 %v11236_v36, %v971_v16  ;;  %v11413_v20 = vsub.f32 %v11239_v37, %v971_v16  ;;  %v1083_v53 = vmul.f32 %v1041_v15, %v11283_v60  ;;  %14674 = vst [vmem:[#allocation58_spill] sm:$0xff] %v11508_v9 }
 0x111   : > { %v11416_v21 = vsub.f32 %v11242_v38, %v972_v1  ;;  %v11419_v34 = vsub.f32 %v11245_v39, %v972_v1  ;;  %v11473_v1 = vld [vmem:[%s11106_s17 + $0xe8] sm:$0xff] }
 0x112   : > { %14660 = vst [vmem:[#allocation44_spill] sm:$0xff] %v11410_v31  ;;  %v977_v36 = vmul.f32 %v11410_v31, %v11410_v31  ;;  %v978_v37 = vmul.f32 %v11413_v20, %v11413_v20  ;;  %v11448_v28 = vsub.f32 %v11250_v41, %v1083_v53  ;;  %v11451_v29 = vsub.f32 %v11253_v42, %v1083_v53 }
 0x113   : > { %14661 = vst [vmem:[#allocation45_spill] sm:$0xff] %v11413_v20  ;;  %v979_v38 = vmul.f32 %v11416_v21, %v11416_v21  ;;  %v980_v39 = vmul.f32 %v11419_v34, %v11419_v34  ;;  %v1539_v15 = vadd.f32 %v11473_v1, %v11470_v19 }
 0x114   : > { %14662 = vst [vmem:[#allocation46_spill] sm:$0xff] %v11416_v21  ;;  %v981_v6 = vadd.f32 %v978_v37, %v977_v36  ;;  %v1134_v41 = vmul.f32 %v11451_v29, %v11451_v29 }
 0x115   : > { %14663 = vst [vmem:[#allocation47_spill] sm:$0xff] %v11419_v34  ;;  %v1044_v44 = vpop.xlane.xlu0 %1043  ;;  %v984_v32 = vadd.f32 %v980_v39, %v979_v38  ;;  %v11492_v39 = vld [vmem:[%s11106_s17 + $0xf0] sm:$0xff] }
 0x116   : > { %v1084_v33 = vmul.f32 %v1044_v44, %v11283_v60  ;;  %1180 = vadd.xlane.f32.xlu2 %v1179_v35  ;;  %14668 = vst [vmem:[#allocation52_spill] sm:$0xff] %v11448_v28  ;;  %v11498_v44 = vld [vmem:[%s11106_s17 + $0xd0] sm:$0xff] }
 0x117   : > { %985 = vadd.xlane.f32.xlu1 %v984_v32  ;;  %982 = vadd.xlane.f32.xlu0 %v981_v6  ;;  %14669 = vst [vmem:[#allocation53_spill] sm:$0xff] %v11451_v29  ;;  %v11495_v6 = vld [vmem:[%s11106_s17 + $0xf8] sm:$0xff] }
 0x118   : > { %v11442_v61 = vsub.f32 %v11260_v45, %v1084_v33  ;;  %v11445_v27 = vsub.f32 %v11263_v46, %v1084_v33  ;;  %v1038_v45 = vpop.xlane.xlu1 %1037  ;;  %v1133_v46 = vmul.f32 %v11448_v28, %v11448_v28  ;;  %v11501_v32 = vld [vmem:[%s11106_s17 + $0xd8] sm:$0xff]  ;;  %v1542_v33 = vadd.f32 %v11495_v6, %v11492_v39 }
 0x119   : > { %v1082_v4 = vmul.f32 %v1038_v45, %v11283_v60  ;;  %v1536_v54 = vadd.f32 %v11501_v32, %v11498_v44  ;;  %v11520_v45 = vld [vmem:[%s11106_s17 + $0x80] sm:$0xff] }
 0x11a   : > { %14666 = vst [vmem:[#allocation50_spill] sm:$0xff] %v11442_v61  ;;  %v1135_v62 = vmul.f32 %v11442_v61, %v11442_v61  ;;  %v1136_v63 = vmul.f32 %v11445_v27, %v11445_v27  ;;  %v1167_v35 = vadd.f32 %v1134_v41, %v1133_v46  ;;  %v924_v61 = vld [vmem:[%s11106_s17] sm:$0xff] }
 0x11b   : > { %14667 = vst [vmem:[#allocation51_spill] sm:$0xff] %v11445_v27  ;;  %v11476_v36 = vsub.f32 %v11266_v47, %v1082_v4  ;;  %v11479_v37 = vsub.f32 %v11269_v48, %v1082_v4  ;;  %v11535_v4 = vld [vmem:[%s11106_s17 + $0xb8] sm:$0xff] }
 0x11c   : > { %v1170_v23 = vadd.f32 %v1136_v63, %v1135_v62  ;;  %v11514_v62 = vld [vmem:[%s11106_s17 + $0xa0] sm:$0xff]  ;;  %v11517_v63 = vld [vmem:[%s11106_s17 + $0xa8] sm:$0xff]  ;;  %14678 = vst [vmem:[#allocation62_spill] sm:$0xff] %v11520_v45 }
 0x11d   : > { %v1035_v24 = vpop.xlane.xlu0 %1034  ;;  %14672 = vst [vmem:[#allocation56_spill] sm:$0xff] %v11476_v36  ;;  %v1131_v47 = vmul.f32 %v11476_v36, %v11476_v36  ;;  %v1132_v48 = vmul.f32 %v11479_v37, %v11479_v37  ;;  %v1527_v46 = vadd.f32 %v11517_v63, %v11514_v62  ;;  %v11586_v36 = vld [vmem:[%s11106_s17 + $0x30] sm:$0xff] }
 0x11e   : > { %v1081_v42 = vmul.f32 %v1035_v24, %v11283_v60  ;;  %1177 = vadd.xlane.f32.xlu2 %v1176_v30  ;;  %14673 = vst [vmem:[#allocation57_spill] sm:$0xff] %v11479_v37  ;;  %v11511_v30 = vld [vmem:[%s11106_s17 + $0xc8] sm:$0xff]  ;;  %v11580_v37 = vld [vmem:[%s11106_s17 + $0x50] sm:$0xff] }
 0x11f   : > { %1171 = vadd.xlane.f32.xlu0 %v1170_v23  ;;  %v1164_v53 = vadd.f32 %v1132_v48, %v1131_v47  ;;  %14675 = vst [vmem:[#allocation59_spill] sm:$0xff] %v11511_v30  ;;  %v11523_v23 = vld [vmem:[%s11106_s17 + $0x88] sm:$0xff]  ;;  %v1533_v24 = vadd.f32 %v11511_v30, %v11508_v9 }
 0x120   : > { %v11464_v13 = vsub.f32 %v11276_v51, %v1081_v42  ;;  %v11467_v16 = vsub.f32 %v11279_v52, %v1081_v42  ;;  %14676 = vst [vmem:[#allocation60_spill] sm:$0xff] %v11514_v62  ;;  %v1521_v41 = vadd.f32 %v11523_v23, %v11520_v45  ;;  %v11532_v42 = vld [vmem:[%s11106_s17 + $0xb0] sm:$0xff] }
 0x121   : > { %14677 = vst [vmem:[#allocation61_spill] sm:$0xff] %v11517_v63 }
 0x122   : > { %14670 = vst [vmem:[#allocation54_spill] sm:$0xff] %v11464_v13  ;;  %v1129_v51 = vmul.f32 %v11464_v13, %v11464_v13  ;;  %v1130_v52 = vmul.f32 %v11467_v16, %v11467_v16  ;;  %v11589_v13 = vld [vmem:[%s11106_s17 + $0x38] sm:$0xff] }
 0x123   : > { %14671 = vst [vmem:[#allocation55_spill] sm:$0xff] %v11467_v16  ;;  %v11583_v16 = vld [vmem:[%s11106_s17 + $0x58] sm:$0xff]  ;;  %v1506_v29 = vadd.f32 %v11589_v13, %v11586_v36 }
 0x124   : > { %v1161_v38 = vadd.f32 %v1130_v52, %v1129_v51  ;;  %14679 = vst [vmem:[#allocation63_spill] sm:$0xff] %v11523_v23  ;;  %v11541_v51 = vld [vmem:[%s11106_s17 + $0x98] sm:$0xff]  ;;  %v11544_v52 = vld [vmem:[%s11106_s17 + $0x70] sm:$0xff]  ;;  %v1512_v27 = vadd.f32 %v11583_v16, %v11580_v37 }
 0x125   : > { %14680 = vst [vmem:[#allocation64_spill] sm:$0xff] %v11532_v42 }
 0x126   : > { %1168 = vadd.xlane.f32.xlu2 %v1167_v35  ;;  %1162 = vadd.xlane.f32.xlu1 %v1161_v38  ;;  %14681 = vst [vmem:[#allocation65_spill] sm:$0xff] %v11535_v4  ;;  %v11538_v35 = vld [vmem:[%s11106_s17 + $0x90] sm:$0xff]  ;;  %v1530_v38 = vadd.f32 %v11535_v4, %v11532_v42  ;;  %v957_v4 = vld [vmem:[#allocation7] sm:$0x3] }
 0x127   : > { %1540 = vadd.xlane.f32.xlu0 %v1539_v15  ;;  %14682 = vst [vmem:[#allocation66_spill] sm:$0xff] %v11538_v35  ;;  %v11547_v15 = vld [vmem:[%s11106_s17 + $0x78] sm:$0xff]  ;;  %v1524_v47 = vadd.f32 %v11541_v51, %v11538_v35  ;;  %v11669_v59 = vperm.slane %v957_v4, 0  ;;  %v11681_v62 = vperm.slane %v957_v4, 1 }
 0x128   : > { %14683 = vst [vmem:[#allocation67_spill] sm:$0xff] %v11541_v51  ;;  %v1518_v48 = vadd.f32 %v11547_v15, %v11544_v52  ;;  %v956_v51 = vld [vmem:[%s14696_s0] sm:$0x3]  ;;  %s14783_s0 = sld [smem:[#allocation90_spill]] }
 0x129   : > { %14684 = vst [vmem:[#allocation68_spill] sm:$0xff] %v11544_v52  ;;  %v11676_v45 = vperm.slane %v956_v51, 1 }
 0x12a   : > { %14685 = vst [vmem:[#allocation69_spill] sm:$0xff] %v11547_v15 }
 0x12b   : > { %14692 = vst [vmem:[#allocation76_spill] sm:$0xff] %v11580_v37 }
 0x12c   : > { %14693 = vst [vmem:[#allocation77_spill] sm:$0xff] %v11583_v16 }
 0x12d   : > { %14694 = vst [vmem:[#allocation78_spill] sm:$0xff] %v11586_v36 }
 0x12e   : > { %1165 = vadd.xlane.f32.xlu2 %v1164_v53  ;;  %1543 = vadd.xlane.f32.xlu1 %v1542_v33  ;;  %v11556_v53 = vld [vmem:[%s11106_s17 + $0x60] sm:$0xff]  ;;  %v11559_v33 = vld [vmem:[%s11106_s17 + $0x68] sm:$0xff]  ;;  %14695 = vst [vmem:[#allocation79_spill] sm:$0xff] %v11589_v13 }
 0x12f   : > { %1537 = vadd.xlane.f32.xlu0 %v1536_v54  ;;  %14686 = vst [vmem:[#allocation70_spill] sm:$0xff] %v11556_v53  ;;  %v11562_v54 = vld [vmem:[%s11106_s17 + $0x40] sm:$0xff] }
 0x130   : > { %14687 = vst [vmem:[#allocation71_spill] sm:$0xff] %v11559_v33 }
 0x131   : > { %14688 = vst [vmem:[#allocation72_spill] sm:$0xff] %v11562_v54 }
 0x136   : > { %1534 = vadd.xlane.f32.xlu2 %v1533_v24  ;;  %1528 = vadd.xlane.f32.xlu1 %v1527_v46  ;;  %v11565_v24 = vld [vmem:[%s11106_s17 + $0x48] sm:$0xff]  ;;  %v11568_v46 = vld [vmem:[%s11106_s17 + $0x20] sm:$0xff] }
 0x137   : > { %1522 = vadd.xlane.f32.xlu0 %v1521_v41  ;;  %14689 = vst [vmem:[#allocation73_spill] sm:$0xff] %v11565_v24  ;;  %v11571_v41 = vld [vmem:[%s11106_s17 + $0x28] sm:$0xff] }
 0x138   : > { %14690 = vst [vmem:[#allocation74_spill] sm:$0xff] %v11568_v46 }
 0x139   : > { %14691 = vst [vmem:[#allocation75_spill] sm:$0xff] %v11571_v41 }
 0x13e   : > { %1531 = vadd.xlane.f32.xlu2 %v1530_v38  ;;  %1525 = vadd.xlane.f32.xlu1 %v1524_v47  ;;  %v1515_v38 = vadd.f32 %v11559_v33, %v11556_v53  ;;  %v1509_v47 = vadd.f32 %v11565_v24, %v11562_v54 }
 0x13f   : > { %1519 = vadd.xlane.f32.xlu0 %v1518_v48  ;;  %v1503_v48 = vadd.f32 %v11571_v41, %v11568_v46 }
 0x146   : > { %1516 = vadd.xlane.f32.xlu2 %v1515_v38  ;;  %1510 = vadd.xlane.f32.xlu1 %v1509_v47  ;;  %v925_v38 = vld [vmem:[%s11106_s17 + $0x8] sm:$0xff] }
 0x147   : > { %1504 = vadd.xlane.f32.xlu0 %v1503_v48  ;;  %v1497_v47 = vadd.f32 %v925_v38, %v924_v61 }
 0x14e   : > { %1513 = vadd.xlane.f32.xlu2 %v1512_v27  ;;  %1507 = vadd.xlane.f32.xlu1 %v1506_v29 }
 0x156   : > { %1498 = vadd.xlane.f32.xlu1 %v1497_v47 }
 0x169   : > { %v1205_v28 = vpop.xlane.xlu1 %1204 }
 0x16a   : > { %v1223_v48 = vmul.f32 %v1205_v28, %v11283_v60 }
 0x16c   : > { %v11598_v41 = vadd.f32 1e-05, %v1223_v48 }
 0x16e   : > { %10125 = vrsqrt.f32 %v11598_v41  ;;  %vm1387_vm2 = vweird.f32 %v11598_v41 }
 0x171   : > { %v1208_v46 = vpop.xlane.xlu2 %1207  ;;  %v1193_v24 = vpop.xlane.xlu1 %1192 }
 0x172   : > { %v1224_v16 = vmul.f32 %v1208_v46, %v11283_v60  ;;  %v1219_v37 = vmul.f32 %v1193_v24, %v11283_v60  ;;  %v1202_v13 = vpop.xlane.xlu0 %1201 }
 0x173   : > { %v1222_v61 = vmul.f32 %v1202_v13, %v11283_v60 }
 0x174   : > { %v11603_v27 = vpop.eup %10125  ;;  %v11605_v29 = vadd.f32 1e-05, %v1224_v16  ;;  %v11609_v28 = vadd.f32 1e-05, %v1219_v37 }
 0x175   : > { %v1382_v38 = vmul.f32 %v11603_v27, %v11598_v41  ;;  %v11613_v47 = vadd.f32 1e-05, %v1222_v61  ;;  %vm1388_vm1 = vweird.f32 %v11603_v27 }
 0x176   : > { %10127 = vrsqrt.f32 %v11605_v29  ;;  %vm1389_vm3 = vmor %vm1387_vm2, %vm1388_vm1  ;;  %vm1397_vm5 = vweird.f32 %v11605_v29  ;;  %vm1347_vm11 = vweird.f32 %v11609_v28 }
 0x177   : > { %10129 = vrsqrt.f32 %v11609_v28  ;;  %v1383_v16 = vmul.f32 %v11603_v27, %v1382_v38  ;;  %vm1377_vm8 = vweird.f32 %v11613_v47 }
 0x178   : > { %10131 = vrsqrt.f32 %v11613_v47 }
 0x179   : > { %v1199_v48 = vpop.xlane.xlu2 %1198  ;;  %v1384_v38 = vmul.f32 0.5, %v1383_v16 }
 0x17a   : > { %v1221_v24 = vmul.f32 %v1199_v48, %v11283_v60  ;;  %v1190_v46 = vpop.xlane.xlu1 %1189  ;;  %v1187_v36 = vpop.xlane.xlu0 %1186 }
 0x17b   : > { %v1218_v13 = vmul.f32 %v1190_v46, %v11283_v60  ;;  %v1217_v54 = vmul.f32 %v1187_v36, %v11283_v60  ;;  %v1385_v12 = vsub.f32 1.5, %v1384_v38 }
 0x17c   : > { %v11620_v37 = vpop.eup %10127  ;;  %v11623_v33 = vadd.f32 1e-05, %v1221_v24 }
 0x17d   : > { %v1392_v61 = vmul.f32 %v11620_v37, %v11605_v29  ;;  %v11627_v53 = vadd.f32 1e-05, %v1218_v13  ;;  %v11630_v48 = vadd.f32 1e-05, %v1217_v54  ;;  %v11632_v40 = vpop.eup %10129  ;;  %v1386_v8 = vmul.f32 %v11603_v27, %v1385_v12 }
 0x17e   : > { %10133 = vrsqrt.f32 %v11623_v33  ;;  %v11636_v14 = vpop.eup %10131  ;;  %v1342_v54 = vmul.f32 %v11632_v40, %v11609_v28  ;;  %vm1398_vm4 = vweird.f32 %v11620_v37  ;;  %vm1367_vm9 = vweird.f32 %v11623_v33 }
 0x17f   : > { %v1393_v36 = vmul.f32 %v11620_v37, %v1392_v61  ;;  %10135 = vrsqrt.f32 %v11627_v53  ;;  %vm1399_vm6 = vmor %vm1397_vm5, %vm1398_vm4  ;;  %vm1378_vm7 = vweird.f32 %v11636_v14  ;;  %vm1348_vm12 = vweird.f32 %v11632_v40 }
 0x180   : > { %10137 = vrsqrt.f32 %v11630_v48  ;;  %vm1379_vm14 = vmor %vm1377_vm8, %vm1378_vm7  ;;  %vm1327_vm8 = vweird.f32 %v11630_v48 }
 0x181   : > { %v1196_v46 = vpop.xlane.xlu2 %1195  ;;  %v1394_v61 = vmul.f32 0.5, %v1393_v36  ;;  %v1343_v36 = vmul.f32 %v11632_v40, %v1342_v54  ;;  %vm11802_vm1 = vmor %vm1347_vm11, %vm1348_vm12 }
 0x182   : > { %v1220_v24 = vmul.f32 %v1196_v46, %v11283_v60  ;;  %v1175_v13 = vpop.xlane.xlu1 %1174  ;;  %v1184_v57 = vpop.xlane.xlu0 %1183  ;;  %v1372_v46 = vmul.f32 %v11636_v14, %v11613_v47 }
 0x183   : > { %v1213_v16 = vmul.f32 %v1175_v13, %v11283_v60  ;;  %v1216_v38 = vmul.f32 %v1184_v57, %v11283_v60  ;;  %v1395_v57 = vsub.f32 1.5, %v1394_v61 }
 0x184   : > { %v11643_v15 = vpop.eup %10133  ;;  %v11645_v52 = vadd.f32 1e-05, %v1220_v24  ;;  %v11662_v24 = vperm.slane %v956_v51, 0  ;;  %v1373_v55 = vmul.f32 %v11636_v14, %v1372_v46  ;;  %v11683_v46 = vmul.f32 0.5, %v1343_v36 }
 0x185   : > { %v11652_v35 = vadd.f32 1e-05, %v1213_v16  ;;  %v11655_v42 = vpop.eup %10135  ;;  %v1362_v13 = vmul.f32 %v11643_v15, %v11623_v33  ;;  %v11674_v23 = vadd.f32 1e-05, %v1216_v38  ;;  %v1390_v51 = vsel %vm1389_vm3, %v11603_v27, %v1386_v8 }
 0x186   : > { %10139 = vrsqrt.f32 %v11645_v52  ;;  %v11665_v16 = vpop.eup %10137  ;;  %v1332_v58 = vmul.f32 %v11655_v42, %v11627_v53  ;;  %v1396_v4 = vmul.f32 %v11620_v37, %v1395_v57  ;;  %v1374_v36 = vmul.f32 0.5, %v1373_v55 }
 0x187   : > { %14697 = vst [vmem:[#allocation80_spill] sm:$0xff] %v11652_v35  ;;  %10141 = vrsqrt.f32 %v11652_v35  ;;  %v1363_v12 = vmul.f32 %v11643_v15, %v1362_v13  ;;  %v1322_v38 = vmul.f32 %v11665_v16, %v11630_v48  ;;  %vm1368_vm10 = vweird.f32 %v11643_v15 }
 0x188   : > { %14698 = vst [vmem:[#allocation81_spill] sm:$0xff] %v11674_v23  ;;  %10143 = vrsqrt.f32 %v11674_v23  ;;  %v1333_v34 = vmul.f32 %v11655_v42, %v1332_v58  ;;  %vm1357_vm13 = vweird.f32 %v11645_v52  ;;  %vm1369_vm0 = vmor %vm1367_vm9, %vm1368_vm10  ;;  %vm1337_vm3 = vweird.f32 %v11627_v53 }
 0x189   : > { %v1181_v54 = vpop.xlane.xlu2 %1180  ;;  %v1364_v8 = vmul.f32 0.5, %v1363_v12  ;;  %v1323_v55 = vmul.f32 %v11665_v16, %v1322_v38  ;;  %v1430_v12 = vmul.f32 %v1390_v51, %v11290_v5  ;;  %vm1338_vm4 = vweird.f32 %v11655_v42 }
 0x18a   : > { %v1215_v41 = vmul.f32 %v1181_v54, %v11283_v60  ;;  %v986_v61 = vpop.xlane.xlu1 %985  ;;  %v983_v63 = vpop.xlane.xlu0 %982  ;;  %vm1328_vm5 = vweird.f32 %v11665_v16  ;;  %vm11895_vm11 = vmor %vm1337_vm3, %vm1338_vm4 }
 0x18b   : > { %v988_v13 = vmul.f32 %v986_v61, %v11283_v60  ;;  %v987_v54 = vmul.f32 %v983_v63, %v11283_v60  ;;  %v1345_v63 = vsub.f32 1.5, %v11683_v46  ;;  %v1375_v46 = vsub.f32 1.5, %v1374_v36  ;;  %vm11913_vm12 = vmor %vm1327_vm8, %vm1328_vm5 }
 0x18c   : > { %v11689_v30 = vpop.eup %10139  ;;  %v11691_v9 = vadd.f32 1e-05, %v1215_v41  ;;  %v1429_v41 = vmul.f32 %v1390_v51, %v11287_v3  ;;  %v1400_v3 = vsel %vm1399_vm6, %v11620_v37, %v1396_v4  ;;  %v1324_v51 = vmul.f32 0.5, %v1323_v55 }
 0x18d   : > { %v1352_v0 = vmul.f32 %v11689_v30, %v11645_v52  ;;  %v11700_v20 = vpop.eup %10141  ;;  %v11703_v27 = vadd.f32 1e-05, %v988_v13  ;;  %v11715_v57 = vadd.f32 1e-05, %v987_v54  ;;  %v1334_v13 = vmul.f32 0.5, %v1333_v34 }
 0x18e   : > { %14699 = vst [vmem:[#allocation82_spill] sm:$0xff] %v11691_v9  ;;  %10145 = vrsqrt.f32 %v11691_v9  ;;  %v1282_v29 = vmul.f32 %v11700_v20, %v11652_v35  ;;  %v11719_v61 = vpop.eup %10143  ;;  %v1365_v35 = vsub.f32 1.5, %v1364_v8  ;;  %v1461_v5 = vmul.f32 %v1429_v41, %v11662_v24 }
 0x18f   : > { %v1353_v58 = vmul.f32 %v11689_v30, %v1352_v0  ;;  %10147 = vrsqrt.f32 %v11703_v27  ;;  %v1431_v0 = vmul.f32 %v1400_v3, %v11311_v43  ;;  %v1312_v37 = vmul.f32 %v11719_v61, %v11674_v23 }
 0x190   : > { %v1283_v38 = vmul.f32 %v11700_v20, %v1282_v29  ;;  %10149 = vrsqrt.f32 %v11715_v57  ;;  %v1432_v43 = vmul.f32 %v1400_v3, %v11314_v7  ;;  %v1462_v8 = vmul.f32 %v1430_v12, %v11676_v45 }
 0x191   : > { %v1178_v21 = vpop.xlane.xlu2 %1177  ;;  %v1354_v54 = vmul.f32 0.5, %v1353_v58  ;;  %v1463_v34 = vmul.f32 %v1431_v0, %v11662_v24  ;;  %v1376_v41 = vmul.f32 %v11636_v14, %v1375_v46  ;;  %v1335_v55 = vsub.f32 1.5, %v1334_v13 }
 0x192   : > { %v1284_v4 = vmul.f32 0.5, %v1283_v38  ;;  %v1214_v29 = vmul.f32 %v1178_v21, %v11283_v60  ;;  %v1172_v31 = vpop.xlane.xlu0 %1171  ;;  %v1313_v58 = vmul.f32 %v11719_v61, %v1312_v37  ;;  %v1366_v7 = vmul.f32 %v11643_v15, %v1365_v35 }
 0x193   : > { %v1493_v3 = vadd.f32 %v1461_v5, %v11669_v59  ;;  %v1495_v21 = vadd.f32 %v1463_v34, %v11669_v59  ;;  %v1464_v12 = vmul.f32 %v1432_v43, %v11676_v45  ;;  %v1325_v23 = vsub.f32 1.5, %v1324_v51 }
 0x194   : > { %v11730_v36 = vpop.eup %10145  ;;  %v1355_v2 = vsub.f32 1.5, %v1354_v54  ;;  %v1285_v17 = vsub.f32 1.5, %v1284_v4  ;;  %v1494_v37 = vadd.f32 %v1462_v8, %v11681_v62  ;;  %v1346_v35 = vmul.f32 %v11632_v40, %v1345_v63 }
 0x195   : > { %v1302_v38 = vmul.f32 %v11730_v36, %v11691_v9  ;;  %v11742_v0 = vpop.eup %10147  ;;  %v2603_v13 = vpack.c.bf16 %v1495_v21, %v1493_v3  ;;  %v1496_v10 = vadd.f32 %v1464_v12, %v11681_v62  ;;  %v11751_v9 = vadd.f32 1e-05, %v1214_v29 }
 0x196   : > { %v1314_v5 = vmul.f32 0.5, %v1313_v58  ;;  %v1002_v34 = vmul.f32 %v11742_v0, %v11703_v27  ;;  %v11757_v54 = vpop.eup %10149  ;;  %v11764_v4 = vmul.f32 %v11655_v42, %v1335_v55  ;;  %vm1358_vm15 = vweird.f32 %v11689_v30 }
 0x197   : > { %v1303_v46 = vmul.f32 %v11730_v36, %v1302_v38  ;;  %2957 = vmatpush.bf16.xpose.msra.mxu2 %v2603_v13  ;;  %v2604_v63 = vpack.c.bf16 %v1496_v10, %v1494_v37  ;;  %10151 = vrsqrt.f32 %v11751_v9  ;;  %v11773_v43 = vmul.f32 %v11665_v16, %v1325_v23  ;;  %vm11814_vm2 = vmor %vm1357_vm13, %vm1358_vm15 }
 0x198   : > { %v1356_v47 = vmul.f32 %v11689_v30, %v1355_v2  ;;  %v1212_v29 = vmul.f32 %v1172_v31, %v11283_v60  ;;  %v11778_v55 = vmul.f32 %v11700_v20, %v1285_v17  ;;  %v1370_v10 = vsel %vm1369_vm0, %v11643_v15, %v1366_v7 }
 0x199   : > { %v1169_v51 = vpop.xlane.xlu2 %1168  ;;  %v1304_v8 = vmul.f32 0.5, %v1303_v46  ;;  %3046 = vmatpush.bf16.xpose.msra.mxu3 %v2604_v63  ;;  %v1380_v58 = vsel %vm1379_vm14, %v11636_v14, %v1376_v41  ;;  %v1163_v33 = vpop.xlane.xlu1 %1162  ;;  %v1315_v3 = vsub.f32 1.5, %v1314_v5  ;;  %v1003_v23 = vmul.f32 %v11742_v0, %v1002_v34 }
 0x19a   : > { %v1211_v38 = vmul.f32 %v1169_v51, %v11283_v60  ;;  %v992_v2 = vmul.f32 %v11757_v54, %v11715_v57  ;;  %v11786_v21 = vadd.f32 1e-05, %v1212_v29  ;;  %v1425_v31 = vmul.f32 %v1370_v10, %v11331_v56  ;;  %v1541_v14 = vpop.xlane.xlu0 %1540 }
 0x19b   : > { %v1427_v17 = vmul.f32 %v1380_v58, %v11317_v49  ;;  %v1426_v12 = vmul.f32 %v1370_v10, %v11334_v11  ;;  %v1428_v15 = vmul.f32 %v1380_v58, %v11320_v50  ;;  %v1305_v41 = vsub.f32 1.5, %v1304_v8 }
 0x19c   : > { %10153 = vrsqrt.f32 %v11786_v21  ;;  %v11793_v7 = vadd.f32 1e-05, %v1211_v38  ;;  %v1209_v46 = vmul.f32 %v1163_v33, %v11283_v60  ;;  %v1457_v50 = vmul.f32 %v1425_v31, %v11662_v24 }
 0x19d   : > { %v11796_v13 = vpop.eup %10151  ;;  %v1459_v56 = vmul.f32 %v1427_v17, %v11662_v24  ;;  %v1458_v11 = vmul.f32 %v1426_v12, %v11676_v45  ;;  %v1460_v37 = vmul.f32 %v1428_v15, %v11676_v45  ;;  %v11818_v28 = vmul.f32 0.5, %v1003_v23 }
 0x19e   : > { %v993_v34 = vmul.f32 %v11757_v54, %v992_v2  ;;  %v1292_v51 = vmul.f32 %v11796_v13, %v11751_v9  ;;  %10155 = vrsqrt.f32 %v11793_v7  ;;  %v1489_v63 = vadd.f32 %v1457_v50, %v11669_v59 }
 0x19f   : > { %v1491_v8 = vadd.f32 %v1459_v56, %v11669_v59  ;;  %v1490_v29 = vadd.f32 %v1458_v11, %v11681_v62  ;;  %v1492_v52 = vadd.f32 %v1460_v37, %v11681_v62  ;;  %v11831_v58 = vadd.f32 1e-05, %v1209_v46 }
 0x1a0   : > { %v1293_v10 = vmul.f32 %v11796_v13, %v1292_v51  ;;  %v1559_v38 = vmul.f32 %v1541_v14, %v11283_v60  ;;  %v1350_v33 = vsel %vm11802_vm1, %v11632_v40, %v1346_v35  ;;  %v1360_v31 = vsel %vm11814_vm2, %v11689_v30, %v1356_v47 }
 0x1a1   : > { %v2601_v23 = vpack.c.bf16 %v1491_v8, %v1489_v63  ;;  %v2602_v2 = vpack.c.bf16 %v1492_v52, %v1490_v29  ;;  %v1421_v17 = vmul.f32 %v1350_v33, %v11298_v22  ;;  %v11845_v15 = vmul.f32 %v11719_v61, %v1315_v3  ;;  %v1166_v50 = vpop.xlane.xlu2 %1165  ;;  %v1544_v5 = vpop.xlane.xlu1 %1543 }
 0x1a2   : > { %v11842_v12 = vpop.eup %10153  ;;  %vm1007_vm6 = vweird.f32 %v11703_v27  ;;  %vm1008_vm7 = vweird.f32 %v11742_v0  ;;  %v1294_v40 = vmul.f32 0.5, %v1293_v10  ;;  %10157 = vrsqrt.f32 %v11831_v58 }
 0x1a3   : > { %v11852_v35 = vmul.f32 %v11730_v36, %v1305_v41  ;;  %v1005_v30 = vsub.f32 1.5, %v11818_v28  ;;  %v1272_v22 = vmul.f32 %v11842_v12, %v11786_v21  ;;  %2958 = vmatpush.bf16.xpose.msra.mxu2 %v2601_v23  ;;  %3047 = vmatpush.bf16.xpose.msra.mxu3 %v2602_v2  ;;  %v1423_v47 = vmul.f32 %v1360_v31, %v11356_v26  ;;  %v1538_v28 = vpop.xlane.xlu0 %1537  ;;  %vm11928_vm13 = vmor %vm1007_vm6, %vm1008_vm7 }
 0x1a4   : > { %v11858_v3 = vpop.eup %10155  ;;  %v994_v14 = vmul.f32 0.5, %v993_v34  ;;  %vm998_vm9 = vweird.f32 %v11757_v54  ;;  %v1453_v46 = vmul.f32 %v1421_v17, %v11662_v24  ;;  %v1422_v49 = vmul.f32 %v1350_v33, %v11301_v25 }
 0x1a5   : > { %v1424_v41 = vmul.f32 %v1360_v31, %v11359_v18  ;;  %v1273_v56 = vmul.f32 %v11842_v12, %v1272_v22  ;;  %v1262_v11 = vmul.f32 %v11858_v3, %v11793_v7  ;;  %v11868_v37 = vsub.f32 %v11470_v19, %v1559_v38 }
 0x1a6   : > { %v1455_v26 = vmul.f32 %v1423_v47, %v11662_v24  ;;  %vm997_vm10 = vweird.f32 %v11715_v57  ;;  %v1295_v34 = vsub.f32 1.5, %v1294_v40  ;;  %v1485_v25 = vadd.f32 %v1453_v46, %v11669_v59  ;;  %v14713_v57 = vld [vmem:[#allocation35_spill] sm:$0xff] }
 0x1a7   : > { %v1454_v18 = vmul.f32 %v1422_v49, %v11676_v45  ;;  %v1456_v51 = vmul.f32 %v1424_v41, %v11676_v45  ;;  %v1274_v63 = vmul.f32 0.5, %v1273_v56  ;;  %v1263_v8 = vmul.f32 %v11858_v3, %v1262_v11  ;;  %vm999_vm0 = vmor %vm997_vm10, %vm998_vm9 }
 0x1a8   : > { %v1487_v29 = vadd.f32 %v1455_v26, %v11669_v59  ;;  %v1210_v19 = vmul.f32 %v1166_v50, %v11283_v60  ;;  %v11878_v52 = vpop.eup %10157  ;;  %v1560_v23 = vmul.f32 %v1544_v5, %v11283_v60  ;;  %v1558_v2 = vmul.f32 %v1538_v28, %v11283_v60 }
 0x1a9   : > { %v1486_v10 = vadd.f32 %v1454_v18, %v11681_v62  ;;  %v1488_v33 = vadd.f32 %v1456_v51, %v11681_v62  ;;  %v1275_v31 = vsub.f32 1.5, %v1274_v63  ;;  %v1264_v17 = vmul.f32 0.5, %v1263_v8  ;;  %v14711_v8 = vld [vmem:[#allocation34_spill] sm:$0xff] }
 0x1aa   : > { %v1242_v40 = vmul.f32 %v11878_v52, %v11831_v58  ;;  %v11887_v22 = vsub.f32 %v11473_v1, %v1559_v38  ;;  %v995_v47 = vsub.f32 1.5, %v994_v14  ;;  %v2599_v46 = vpack.c.bf16 %v1487_v29, %v1485_v25 }
 0x1ab   : > { %v2600_v49 = vpack.c.bf16 %v1488_v33, %v1486_v10  ;;  %v11889_v41 = vadd.f32 1e-05, %v1210_v19  ;;  %v11900_v56 = vmul.f32 %v11796_v13, %v1295_v34  ;;  %v11903_v11 = vmul.f32 %v11842_v12, %v1275_v31  ;;  %v1535_v10 = vpop.xlane.xlu2 %1534  ;;  %v1529_v33 = vpop.xlane.xlu1 %1528  ;;  %v14715_v31 = vld [vmem:[#allocation46_spill] sm:$0xff] }
 0x1ac   : > { %v1243_v1 = vmul.f32 %v11878_v52, %v1242_v40  ;;  %v11907_v38 = vsub.f32 %v11492_v39, %v1560_v23  ;;  %v1265_v14 = vsub.f32 1.5, %v1264_v17  ;;  %2959 = vmatpush.bf16.xpose.msra.mxu2 %v2599_v46  ;;  %v11919_v26 = vsub.f32 %v11495_v6, %v1560_v23  ;;  %v14714_v23 = vld [vmem:[#allocation44_spill] sm:$0xff]  ;;  %v14716_v40 = vld [vmem:[#allocation45_spill] sm:$0xff] }
 0x1ad   : > { %3048 = vmatpush.bf16.xpose.msra.mxu3 %v2600_v49  ;;  %10159 = vrsqrt.f32 %v11889_v41  ;;  %v11922_v5 = vsub.f32 %v11498_v44, %v1558_v2  ;;  %v11933_v28 = vsub.f32 %v11501_v32, %v1558_v2  ;;  %v1621_v34 = vmul.f32 %v11868_v37, %v11868_v37  ;;  %v14710_v44 = vld [vmem:[#allocation82_spill] sm:$0xff]  ;;  %v14717_v46 = vld [vmem:[#allocation37_spill] sm:$0xff] }
 0x1ae   : > { %v1244_v48 = vmul.f32 0.5, %v1243_v1  ;;  %v1622_v6 = vmul.f32 %v11887_v22, %v11887_v22  ;;  %vm1307_vm14 = vweird.f32 %v14710_v44  ;;  %vm1308_vm15 = vweird.f32 %v11730_v36  ;;  %v14718_v1 = vld [vmem:[#allocation81_spill] sm:$0xff]  ;;  %v9445_v44 = vld [vmem:[%s14521_s7 + $0x4] sm:$0xf0] }
 0x1af   : > { %v996_v27 = vmul.f32 %v11757_v54, %v995_v47  ;;  %v1006_v25 = vmul.f32 %v11742_v0, %v1005_v30  ;;  %v1330_v32 = vsel %vm11913_vm12, %v11665_v16, %v11773_v43  ;;  %v1340_v18 = vsel %vm11895_vm11, %v11655_v42, %v11764_v4  ;;  %v14712_v30 = vld [vmem:[#allocation36_spill] sm:$0xff]  ;;  %vm12015_vm7 = vmor %vm1307_vm14, %vm1308_vm15 }
 0x1b0   : > { %v1245_v51 = vsub.f32 1.5, %v1244_v48  ;;  %v1667_v63 = vadd.f32 %v1622_v6, %v1621_v34  ;;  %v1417_v29 = vmul.f32 %v1330_v32, %v14711_v8  ;;  %v1419_v19 = vmul.f32 %v1340_v18, %v14712_v30  ;;  %v1523_v48 = vpop.xlane.xlu0 %1522 }
 0x1b1   : > { %vm1318_vm1 = vweird.f32 %v11719_v61  ;;  %v11959_v16 = vmul.f32 %v11858_v3, %v1265_v14  ;;  %v1000_v43 = vsel %vm999_vm0, %v11757_v54, %v996_v27  ;;  %v1010_v42 = vsel %vm11928_vm13, %v11742_v0, %v1006_v25  ;;  %v14719_v54 = vld [vmem:[#allocation47_spill] sm:$0xff] }
 0x1b2   : > { %v1418_v4 = vmul.f32 %v1330_v32, %v14713_v57  ;;  %1668 = vadd.xlane.f32.xlu2 %v1667_v63  ;;  %v1011_v2 = vmul.f32 %v1000_v43, %v14714_v23  ;;  %v1013_v17 = vmul.f32 %v1010_v42, %v14715_v31  ;;  %v1012_v47 = vmul.f32 %v1000_v43, %v14716_v40  ;;  %v14720_v23 = vld [vmem:[#allocation80_spill] sm:$0xff] }
 0x1b3   : > { %v1420_v49 = vmul.f32 %v1340_v18, %v14717_v46  ;;  %v11970_v50 = vpop.eup %10159  ;;  %vm1317_vm2 = vweird.f32 %v14718_v1  ;;  %v1014_v53 = vmul.f32 %v1010_v42, %v14719_v54  ;;  %v1449_v0 = vmul.f32 %v1417_v29, %v11662_v24 }
 0x1b4   : > { %v1451_v14 = vmul.f32 %v1419_v19, %v11662_v24  ;;  %v1450_v39 = vmul.f32 %v1418_v4, %v11676_v45  ;;  %v11978_v34 = vmul.f32 %v11878_v52, %v1245_v51  ;;  %v1252_v6 = vmul.f32 %v11970_v50, %v11889_v41  ;;  %vm1319_vm8 = vmor %vm1317_vm2, %vm1318_vm1 }
 0x1b5   : > { %v1020_v27 = vmul.f32 %v11662_v24, %v1011_v2  ;;  %v1022_v25 = vmul.f32 %v11662_v24, %v1013_v17  ;;  %v1021_v32 = vmul.f32 %v11676_v45, %v1012_v47  ;;  %v1023_v18 = vmul.f32 %v11676_v45, %v1014_v53  ;;  %v12006_v53 = vld [vmem:[%s11106_s17 + $0x10] sm:$0xff] }
 0x1b6   : > { %v1481_v63 = vadd.f32 %v1449_v0, %v11669_v59  ;;  %v1483_v8 = vadd.f32 %v1451_v14, %v11669_v59  ;;  %v1253_v29 = vmul.f32 %v11970_v50, %v1252_v6  ;;  %v1452_v19 = vmul.f32 %v1420_v49, %v11676_v45  ;;  %v12009_v0 = vld [vmem:[%s11106_s17 + $0x18] sm:$0xff] }
 0x1b7   : > { %v1029_v51 = vadd.f32 %v11669_v59, %v1020_v27  ;;  %v1031_v30 = vadd.f32 %v11669_v59, %v1022_v25  ;;  %v1030_v43 = vadd.f32 %v11681_v62, %v1021_v32  ;;  %v1032_v42 = vadd.f32 %v11681_v62, %v1023_v18  ;;  %v14724_v6 = vld [vmem:[#allocation59_spill] sm:$0xff]  ;;  %v1532_v32 = vpop.xlane.xlu2 %1531  ;;  %v14725_v18 = vld [vmem:[#allocation60_spill] sm:$0xff] }
 0x1b8   : > { %v2597_v57 = vpack.c.bf16 %v1483_v8, %v1481_v63  ;;  %v1482_v4 = vadd.f32 %v1450_v39, %v11681_v62  ;;  %vm1287_vm3 = vweird.f32 %v14720_v23  ;;  %vm1288_vm4 = vweird.f32 %v11700_v20  ;;  %v14723_v39 = vld [vmem:[#allocation58_spill] sm:$0xff]  ;;  %v7875_v25 = vld [vmem:[%s14521_s7] sm:$0xf]  ;;  %v14726_v8 = vld [vmem:[#allocation61_spill] sm:$0xff] }
 0x1b9   : > { %v1254_v2 = vmul.f32 0.5, %v1253_v29  ;;  %v1993_v31 = vpack.c.bf16 %v1031_v30, %v1029_v51  ;;  %v1484_v17 = vadd.f32 %v1452_v19, %v11681_v62  ;;  %v1557_v40 = vmul.f32 %v1535_v10, %v11283_v60  ;;  %v14727_v51 = vld [vmem:[#allocation62_spill] sm:$0xff]  ;;  %v14728_v19 = vld [vmem:[#allocation63_spill] sm:$0xff]  ;;  %vm12097_vm10 = vmor %vm1287_vm3, %vm1288_vm4 }
 0x1ba   : > { %vm1297_vm5 = vweird.f32 %v11751_v9  ;;  %vm1298_vm6 = vweird.f32 %v11796_v13  ;;  %v1994_v47 = vpack.c.bf16 %v1032_v42, %v1030_v43  ;;  %2960 = vmatpush.bf16.xpose.msra.mxu2 %v2597_v57  ;;  %v1555_v46 = vmul.f32 %v1529_v33, %v11283_v60  ;;  %v1526_v42 = vpop.xlane.xlu1 %1525  ;;  %v14731_v10 = vld [vmem:[#allocation43_spill] sm:$0xff]  ;;  %v14748_v23 = vld [vmem:[#allocation70_spill] sm:$0xff] }
 0x1bb   : > { %v1553_v49 = vmul.f32 %v1523_v48, %v11283_v60  ;;  %v1623_v54 = vmul.f32 %v11907_v38, %v11907_v38  ;;  %v1255_v14 = vsub.f32 1.5, %v1254_v2  ;;  %2354 = vmatpush.bf16.xpose.msra.mxu0 %v1993_v31  ;;  %v2598_v33 = vpack.c.bf16 %v1484_v17, %v1482_v4  ;;  %vm12113_vm12 = vmor %vm1297_vm5, %vm1298_vm6 }
 0x1bc   : > { %v12020_v48 = vsub.f32 %v14723_v39, %v1557_v40  ;;  %v12023_v27 = vsub.f32 %v14724_v6, %v1557_v40  ;;  %2443 = vmatpush.bf16.xpose.msra.mxu1 %v1994_v47  ;;  %v12032_v63 = vsub.f32 %v14725_v18, %v1555_v46  ;;  %v12035_v29 = vsub.f32 %v14726_v8, %v1555_v46  ;;  %v9444_v46 = vld [vmem:[%s14521_s7 + $0x4] sm:$0xf]  ;;  %v14729_v39 = vld [vmem:[#allocation42_spill] sm:$0xff] }
 0x1bd   : > { %v12038_v30 = vsub.f32 %v14727_v51, %v1553_v49  ;;  %v12041_v43 = vsub.f32 %v14728_v19, %v1553_v49  ;;  %v12048_v57 = vmul.f32 %v11970_v50, %v1255_v14  ;;  %3049 = vmatpush.bf16.xpose.msra.mxu3 %v2598_v33  ;;  %v1624_v4 = vmul.f32 %v11919_v26, %v11919_v26  ;;  %v7877_v49 = vld [vmem:[%s14521_s7 + $0x8] sm:$0xf0]  ;;  %v1520_v14 = vpop.xlane.xlu0 %1519  ;;  %v14732_v18 = vld [vmem:[#allocation39_spill] sm:$0xff] }
 0x1be   : > { %v1500_v2 = vadd.f32 %v12009_v0, %v12006_v53  ;;  %v1619_v31 = vmul.f32 %v11922_v5, %v11922_v5  ;;  %v1620_v17 = vmul.f32 %v11933_v28, %v11933_v28  ;;  %v7876_v40 = vor.u32 %v9445_v44, %v7875_v25  ;;  %v14730_v25 = vld [vmem:[#allocation38_spill] sm:$0xff] }
 0x1bf   : > { %v1310_v1 = vsel %vm12015_vm7, %v11730_v36, %v11852_v35  ;;  %v1320_v47 = vsel %vm1319_vm8, %v11719_v61, %v11845_v15  ;;  %v1670_v33 = vadd.f32 %v1624_v4, %v1623_v54  ;;  %v1556_v15 = vmul.f32 %v1532_v32, %v11283_v60  ;;  %v14734_v32 = vld [vmem:[#allocation65_spill] sm:$0xff] }
 0x1c0   : > { %1501 = vadd.xlane.f32.xlu2 %v1500_v2  ;;  %v1413_v6 = vmul.f32 %v1310_v1, %v14729_v39  ;;  %v1415_v44 = vmul.f32 %v1320_v47, %v14730_v25  ;;  %v1414_v36 = vmul.f32 %v1310_v1, %v14731_v10  ;;  %v1664_v35 = vadd.f32 %v1620_v17, %v1619_v31  ;;  %v14733_v31 = vld [vmem:[#allocation64_spill] sm:$0xff]  ;;  %v14735_v39 = vld [vmem:[#allocation66_spill] sm:$0xff] }
 0x1c1   : > { %v1416_v61 = vmul.f32 %v1320_v47, %v14732_v18  ;;  %v1554_v8 = vmul.f32 %v1526_v42, %v11283_v60  ;;  %1671 = vadd.xlane.f32.xlu0 %v1670_v33  ;;  %v7880_v4 = vor.u32 %v9444_v46, %v7877_v49  ;;  %vm1267_vm9 = vweird.f32 %v11793_v7  ;;  %v9447_v7 = vld [vmem:[%s14521_s7 + $0x14] sm:$0xf0] }
 0x1c2   : > { %v1445_v51 = vmul.f32 %v1413_v6, %v11662_v24  ;;  %v1447_v19 = vmul.f32 %v1415_v44, %v11662_v24  ;;  %v1446_v54 = vmul.f32 %v1414_v36, %v11676_v45  ;;  %1665 = vadd.xlane.f32.xlu1 %v1664_v35  ;;  %2355 = vmatmul.bf16.vlgmr.msra.gmra.mxu0 %v7876_v40  ;;  %vm1278_vm11 = vweird.f32 %v11842_v12  ;;  %v14738_v6 = vld [vmem:[#allocation67_spill] sm:$0xff]  ;;  %v14746_v40 = vld [vmem:[#allocation48_spill] sm:$0xff] }
 0x1c3   : > { %v1448_v2 = vmul.f32 %v1416_v61, %v11676_v45  ;;  %v12082_v17 = vsub.f32 %v14733_v31, %v1556_v15  ;;  %v12085_v1 = vsub.f32 %v14734_v32, %v1556_v15  ;;  %v12091_v46 = vsub.f32 %v14735_v39, %v1554_v8  ;;  %2444 = vmatmul.bf16.vlgmr.msra.gmra.mxu1 %v7880_v4  ;;  %v1517_v61 = vpop.xlane.xlu2 %1516  ;;  %v1511_v4 = vpop.xlane.xlu1 %1510 }
 0x1c4   : > { %v1477_v42 = vadd.f32 %v1445_v51, %v11669_v59  ;;  %v1479_v47 = vadd.f32 %v1447_v19, %v11669_v59  ;;  %v1478_v33 = vadd.f32 %v1446_v54, %v11681_v62  ;;  %v12104_v25 = vsub.f32 %v14738_v6, %v1554_v8  ;;  %v14741_v8 = vld [vmem:[#allocation68_spill] sm:$0xff]  ;;  %v14742_v51 = vld [vmem:[#allocation69_spill] sm:$0xff] }
 0x1c5   : > { %v1480_v49 = vadd.f32 %v1448_v2, %v11681_v62  ;;  %v1552_v44 = vmul.f32 %v1520_v14, %v11283_v60  ;;  %v1617_v10 = vmul.f32 %v12020_v48, %v12020_v48  ;;  %v1618_v35 = vmul.f32 %v12023_v27, %v12023_v27 }
 0x1c6   : > { %v2595_v36 = vpack.c.bf16 %v1479_v47, %v1477_v42  ;;  %v1613_v18 = vmul.f32 %v12032_v63, %v12032_v63  ;;  %v1614_v14 = vmul.f32 %v12035_v29, %v12035_v29  ;;  %vm1277_vm13 = vweird.f32 %v11786_v21 }
 0x1c7   : > { %v2596_v15 = vpack.c.bf16 %v1480_v49, %v1478_v33  ;;  %v12125_v9 = vsub.f32 %v14741_v8, %v1552_v44  ;;  %v12128_v19 = vsub.f32 %v14742_v51, %v1552_v44  ;;  %v1609_v54 = vmul.f32 %v12038_v30, %v12038_v30  ;;  %v14744_v33 = vld [vmem:[#allocation40_spill] sm:$0xff]  ;;  %v14745_v49 = vld [vmem:[#allocation41_spill] sm:$0xff]  ;;  %vm1279_vm2 = vmor %vm1277_vm13, %vm1278_vm11 }
 0x1c8   : > { %2961 = vmatpush.bf16.xpose.msra.mxu2 %v2595_v36  ;;  %v1661_v2 = vadd.f32 %v1618_v35, %v1617_v10  ;;  %v1655_v31 = vadd.f32 %v1614_v14, %v1613_v18  ;;  %v1610_v32 = vmul.f32 %v12041_v43, %v12041_v43  ;;  %v1290_v42 = vsel %vm12097_vm10, %v11700_v20, %v11778_v55  ;;  %v1505_v10 = vpop.xlane.xlu0 %1504  ;;  %v14747_v55 = vld [vmem:[#allocation49_spill] sm:$0xff]  ;;  %v14749_v14 = vld [vmem:[#allocation71_spill] sm:$0xff] }
 0x1c9   : > { %14743 = vst [vmem:[#allocation82_spill] sm:$0xff] %v12128_v19  ;;  %3050 = vmatpush.bf16.xpose.msra.mxu3 %v2596_v15  ;;  %v1300_v47 = vsel %vm12113_vm12, %v11796_v13, %v11900_v56  ;;  %v1409_v39 = vmul.f32 %v1290_v42, %v14744_v33  ;;  %v1410_v6 = vmul.f32 %v1290_v42, %v14745_v49  ;;  %vm1268_vm14 = vweird.f32 %v11858_v3 }
 0x1ca   : > { %v1551_v44 = vmul.f32 %v1517_v61, %v11283_v60  ;;  %1662 = vadd.xlane.f32.xlu0 %v1661_v2  ;;  %1656 = vadd.xlane.f32.xlu2 %v1655_v31  ;;  %v1649_v36 = vadd.f32 %v1610_v32, %v1609_v54  ;;  %v1411_v20 = vmul.f32 %v1300_v47, %v14746_v40  ;;  %vm1247_vm15 = vweird.f32 %v11831_v58  ;;  %vm12172_vm1 = vmor %vm1267_vm9, %vm1268_vm14 }
 0x1cb   : > { %v1412_v35 = vmul.f32 %v1300_v47, %v14747_v55  ;;  %vm1248_vm0 = vweird.f32 %v11878_v52  ;;  %v1441_v13 = vmul.f32 %v1409_v39, %v11662_v24  ;;  %v1442_v56 = vmul.f32 %v1410_v6, %v11676_v45  ;;  %v14753_v39 = vld [vmem:[#allocation72_spill] sm:$0xff]  ;;  %v14755_v6 = vld [vmem:[#allocation73_spill] sm:$0xff]  ;;  %v14764_v47 = vld [vmem:[#allocation51_spill] sm:$0xff] }
 0x1cc   : > { %v12153_v18 = vsub.f32 %v14748_v23, %v1551_v44  ;;  %v12156_v61 = vsub.f32 %v14749_v14, %v1551_v44  ;;  %1650 = vadd.xlane.f32.xlu1 %v1649_v36  ;;  %v1443_v15 = vmul.f32 %v1411_v20, %v11662_v24  ;;  %v1549_v51 = vmul.f32 %v1511_v4, %v11283_v60  ;;  %v14757_v36 = vld [vmem:[#allocation74_spill] sm:$0xff]  ;;  %v14759_v20 = vld [vmem:[#allocation75_spill] sm:$0xff]  ;;  %vm12238_vm5 = vmor %vm1247_vm15, %vm1248_vm0 }
 0x1cd   : > { %v1444_v8 = vmul.f32 %v1412_v35, %v11676_v45  ;;  %v1547_v54 = vmul.f32 %v1505_v10, %v11283_v60  ;;  %v1473_v2 = vadd.f32 %v1441_v13, %v11669_v59  ;;  %v1474_v31 = vadd.f32 %v1442_v56, %v11681_v62  ;;  %v7883_v10 = vld [vmem:[%s14521_s7 + $0x10] sm:$0xf] }
 0x1ce   : > { %14750 = vst [vmem:[#allocation34_spill] sm:$0xff] %v12156_v61  ;;  %v1615_v32 = vmul.f32 %v12082_v17, %v12082_v17  ;;  %v1616_v42 = vmul.f32 %v12085_v1, %v12085_v1  ;;  %v1475_v4 = vadd.f32 %v1443_v15, %v11669_v59  ;;  %v12179_v49 = vsub.f32 %v14753_v39, %v1549_v51 }
 0x1cf   : > { %v1476_v33 = vadd.f32 %v1444_v8, %v11681_v62  ;;  %v12182_v44 = vsub.f32 %v14755_v6, %v1549_v51  ;;  %v12191_v40 = vsub.f32 %v14757_v36, %v1547_v54  ;;  %v12194_v55 = vsub.f32 %v14759_v20, %v1547_v54  ;;  %v9446_v6 = vld [vmem:[%s14521_s7 + $0x14] sm:$0xf] }
 0x1d0   : > { %14754 = vst [vmem:[#allocation36_spill] sm:$0xff] %v12179_v49  ;;  %v1658_v35 = vadd.f32 %v1616_v42, %v1615_v32  ;;  %v1611_v13 = vmul.f32 %v12091_v46, %v12091_v46  ;;  %v2593_v56 = vpack.c.bf16 %v1475_v4, %v1473_v2  ;;  %v1612_v14 = vmul.f32 %v12104_v25, %v12104_v25  ;;  %v1514_v2 = vpop.xlane.xlu2 %1513  ;;  %v14761_v42 = vld [vmem:[#allocation52_spill] sm:$0xff] }
 0x1d1   : > { %14756 = vst [vmem:[#allocation35_spill] sm:$0xff] %v12182_v44  ;;  %v2594_v23 = vpack.c.bf16 %v1476_v33, %v1474_v31  ;;  %v1607_v15 = vmul.f32 %v12125_v9, %v12125_v9  ;;  %v1608_v8 = vmul.f32 %v12128_v19, %v12128_v19  ;;  %v7884_v51 = vor.u32 %v9447_v7, %v7883_v10  ;;  %v1508_v31 = vpop.xlane.xlu1 %1507  ;;  %v14762_v33 = vld [vmem:[#allocation50_spill] sm:$0xff] }
 0x1d2   : > { %14758 = vst [vmem:[#allocation44_spill] sm:$0xff] %v12191_v40  ;;  %v1270_v54 = vsel %vm12172_vm1, %v11858_v3, %v11959_v16  ;;  %v1280_v21 = vsel %vm1279_vm2, %v11842_v12, %v11903_v11  ;;  %vm1257_vm3 = vweird.f32 %v11889_v41  ;;  %2962 = vmatpush.bf16.xpose.msra.mxu2 %v2593_v56  ;;  %v1652_v32 = vadd.f32 %v1612_v14, %v1611_v13  ;;  %v7885_v3 = vld [vmem:[%s14521_s7 + $0x18] sm:$0xf0]  ;;  %v14763_v11 = vld [vmem:[#allocation53_spill] sm:$0xff] }
 0x1d3   : > { %14760 = vst [vmem:[#allocation46_spill] sm:$0xff] %v12194_v55  ;;  %3051 = vmatpush.bf16.xpose.msra.mxu3 %v2594_v23  ;;  %v1405_v4 = vmul.f32 %v1270_v54, %v14761_v42  ;;  %v1407_v39 = vmul.f32 %v1280_v21, %v14762_v33  ;;  %vm1258_vm4 = vweird.f32 %v11970_v50  ;;  %1659 = vadd.xlane.f32.xlu0 %v1658_v35 }
 0x1d4   : > { %v1646_v12 = vadd.f32 %v1608_v8, %v1607_v15  ;;  %2360 = vmatmul.bf16.gmra.mxu0 %v7884_v51  ;;  %v1406_v16 = vmul.f32 %v1270_v54, %v14763_v11  ;;  %v1408_v10 = vmul.f32 %v1280_v21, %v14764_v47  ;;  %1653 = vadd.xlane.f32.xlu2 %v1652_v32  ;;  %v14767_v54 = vld [vmem:[#allocation76_spill] sm:$0xff]  ;;  %vm12254_vm6 = vmor %vm1257_vm3, %vm1258_vm4 }
 0x1d5   : > { %v1437_v7 = vmul.f32 %v1405_v4, %v11662_v24  ;;  %v1439_v36 = vmul.f32 %v1407_v39, %v11662_v24  ;;  %v1550_v20 = vmul.f32 %v1514_v2, %v11283_v60  ;;  %v1548_v13 = vmul.f32 %v1508_v31, %v11283_v60  ;;  %v14769_v2 = vld [vmem:[#allocation77_spill] sm:$0xff]  ;;  %v14773_v4 = vld [vmem:[#allocation78_spill] sm:$0xff]  ;;  %v14775_v39 = vld [vmem:[#allocation79_spill] sm:$0xff] }
 0x1d6   : > { %1647 = vadd.xlane.f32.xlu1 %v1646_v12  ;;  %v1438_v56 = vmul.f32 %v1406_v16, %v11676_v45  ;;  %v1440_v35 = vmul.f32 %v1408_v10, %v11676_v45  ;;  %v7888_v23 = vor.u32 %v9446_v6, %v7885_v3  ;;  %v1605_v14 = vmul.f32 %v12153_v18, %v12153_v18 }
 0x1d7   : > { %v1469_v8 = vadd.f32 %v1437_v7, %v11669_v59  ;;  %v1471_v51 = vadd.f32 %v1439_v36, %v11669_v59  ;;  %v12245_v21 = vsub.f32 %v14767_v54, %v1550_v20  ;;  %v12248_v31 = vsub.f32 %v14769_v2, %v1550_v20  ;;  %v14779_v54 = vld [vmem:[#allocation55_spill] sm:$0xff] }
 0x1d8   : > { %v1470_v32 = vadd.f32 %v1438_v56, %v11681_v62  ;;  %v1472_v42 = vadd.f32 %v1440_v35, %v11681_v62  ;;  %v12261_v33 = vsub.f32 %v14773_v4, %v1548_v13  ;;  %v12264_v6 = vsub.f32 %v14775_v39, %v1548_v13  ;;  %2449 = vmatmul.bf16.gmra.mxu1 %v7888_v23  ;;  %v14777_v56 = vld [vmem:[#allocation54_spill] sm:$0xff]  ;;  %v7891_v39 = vld [vmem:[%s14521_s7 + $0x20] sm:$0xf] }
 0x1d9   : > { %14768 = vst [vmem:[#allocation45_spill] sm:$0xff] %v12245_v21  ;;  %v2591_v3 = vpack.c.bf16 %v1471_v51, %v1469_v8  ;;  %v1606_v12 = vmul.f32 %v12156_v61, %v12156_v61  ;;  %v1601_v41 = vmul.f32 %v12179_v49, %v12179_v49  ;;  %v1602_v11 = vmul.f32 %v12182_v44, %v12182_v44  ;;  %v14778_v8 = vld [vmem:[#allocation56_spill] sm:$0xff] }
 0x1da   : > { %14770 = vst [vmem:[#allocation37_spill] sm:$0xff] %v12248_v31  ;;  %v2592_v16 = vpack.c.bf16 %v1472_v42, %v1470_v32  ;;  %v1597_v47 = vmul.f32 %v12191_v40, %v12191_v40  ;;  %v1598_v10 = vmul.f32 %v12194_v55, %v12194_v55  ;;  %v1250_v7 = vsel %vm12238_vm5, %v11878_v52, %v11978_v34  ;;  %v14780_v32 = vld [vmem:[#allocation57_spill] sm:$0xff]  ;;  %v7949_v40 = vld [vmem:[%s14521_s7 + $0x98] sm:$0xf0] }
 0x1db   : > { %14774 = vst [vmem:[#allocation81_spill] sm:$0xff] %v12261_v33  ;;  %2963 = vmatpush.bf16.xpose.msra.mxu2 %v2591_v3  ;;  %v1643_v36 = vadd.f32 %v1606_v12, %v1605_v14  ;;  %v1637_v20 = vadd.f32 %v1602_v11, %v1601_v41  ;;  %v1260_v13 = vsel %vm12254_vm6, %v11970_v50, %v12048_v57  ;;  %v9449_v3 = vld [vmem:[%s14521_s7 + $0x24] sm:$0xf0] }
 0x1dc   : > { %14776 = vst [vmem:[#allocation47_spill] sm:$0xff] %v12264_v6  ;;  %v1401_v35 = vmul.f32 %v1250_v7, %v14777_v56  ;;  %3052 = vmatpush.bf16.xpose.msra.mxu3 %v2592_v16  ;;  %v1631_v23 = vadd.f32 %v1598_v10, %v1597_v47  ;;  %v1403_v51 = vmul.f32 %v1260_v13, %v14778_v8  ;;  %v1499_v47 = vpop.xlane.xlu1 %1498 }
 0x1dd   : > { %v1402_v2 = vmul.f32 %v1250_v7, %v14779_v54  ;;  %v1404_v42 = vmul.f32 %v1260_v13, %v14780_v32  ;;  %1644 = vadd.xlane.f32.xlu0 %v1643_v36  ;;  %1638 = vadd.xlane.f32.xlu2 %v1637_v20  ;;  %v1603_v34 = vmul.f32 %v12245_v21, %v12245_v21  ;;  %v9448_v36 = vld [vmem:[%s14521_s7 + $0x24] sm:$0xf]  ;;  %v7893_v20 = vld [vmem:[%s14521_s7 + $0x28] sm:$0xf0]  ;;  %v8005_v32 = vld [vmem:[#allocation11 + $0x8] sm:$0xf0] }
 0x1de   : > { %v1433_v52 = vmul.f32 %v1401_v35, %v11662_v24  ;;  %v1604_v50 = vmul.f32 %v12248_v31, %v12248_v31  ;;  %1632 = vadd.xlane.f32.xlu1 %v1631_v23  ;;  %v1435_v57 = vmul.f32 %v1403_v51, %v11662_v24  ;;  %v1599_v58 = vmul.f32 %v12261_v33, %v12261_v33  ;;  %v8003_v23 = vld [vmem:[#allocation11] sm:$0xf]  ;;  %v9477_v51 = vld [vmem:[#allocation11 + $0x4] sm:$0xf0] }
 0x1df   : > { %v1434_v14 = vmul.f32 %v1402_v2, %v11676_v45  ;;  %v1436_v15 = vmul.f32 %v1404_v42, %v11676_v45  ;;  %v1600_v4 = vmul.f32 %v12264_v6, %v12264_v6  ;;  %v7892_v35 = vor.u32 %v9449_v3, %v7891_v39  ;;  %v9476_v2 = vld [vmem:[#allocation11 + $0x4] sm:$0xf]  ;;  %v10325_v42 = vld [vmem:[%s11106_s17] sm:$0xff]  ;;  %v7899_v39 = vld [vmem:[%s14521_s7 + $0x30] sm:$0xf] }
 0x1e0   : > { %v1465_v12 = vadd.f32 %v1433_v52, %v11669_v59  ;;  %v1467_v41 = vadd.f32 %v1435_v57, %v11669_v59  ;;  %v1640_v10 = vadd.f32 %v1604_v50, %v1603_v34  ;;  %v1545_v8 = vmul.f32 %v1499_v47, %v11283_v60  ;;  %v10326_v34 = vld [vmem:[%s11106_s17 + $0x8] sm:$0xff]  ;;  %v9451_v3 = vld [vmem:[%s14521_s7 + $0x34] sm:$0xf0]  ;;  %v9479_v47 = vld [vmem:[#allocation11 + $0x14] sm:$0xf0]  ;;  %s7870_s17 = sshll.u32 %s11092_s6, 4 }
 0x1e1   : > { %v1466_v11 = vadd.f32 %v1434_v14, %v11681_v62  ;;  %v1468_v16 = vadd.f32 %v1436_v15, %v11681_v62  ;;  %v1634_v7 = vadd.f32 %v1600_v4, %v1599_v58  ;;  %v7896_v54 = vor.u32 %v9448_v36, %v7893_v20  ;;  %v8013_v36 = vld [vmem:[#allocation11 + $0x18] sm:$0xf0]  ;;  %s13921_s12 = scalar_lea.vmem [#allocation21], %s7870_s17 }
 0x1e2   : > { %v2589_v13 = vpack.c.bf16 %v1467_v41, %v1465_v12  ;;  %v12318_v52 = vsub.f32 %v10325_v42, %v1545_v8  ;;  %v12321_v50 = vsub.f32 %v10326_v34, %v1545_v8  ;;  %v8004_v57 = vor.u32 %v9477_v51, %v8003_v23  ;;  %v9450_v12 = vld [vmem:[%s14521_s7 + $0x34] sm:$0xf]  ;;  %v7901_v41 = vld [vmem:[%s14521_s7 + $0x38] sm:$0xf0]  ;;  %v7907_v23 = vld [vmem:[%s14521_s7 + $0x40] sm:$0xf] }
 0x1e3   : > { %v2590_v56 = vpack.c.bf16 %v1468_v16, %v1466_v11  ;;  %v8008_v14 = vor.u32 %v9476_v2, %v8005_v32  ;;  %v7900_v11 = vor.u32 %v9451_v3, %v7899_v39  ;;  %v8011_v16 = vld [vmem:[#allocation11 + $0x10] sm:$0xf]  ;;  %v9453_v8 = vld [vmem:[%s14521_s7 + $0x44] sm:$0xf0]  ;;  %v9452_v51 = vld [vmem:[%s14521_s7 + $0x44] sm:$0xf] }
 0x1e4   : > { %2964 = vmatpush.bf16.xpose.msra.mxu2 %v2589_v13  ;;  %14781 = vst [vmem:[#allocation80_spill] sm:$0xff] %v12318_v52  ;;  %2365 = vmatmul.bf16.gmra.mxu0 %v7892_v35  ;;  %v1593_v15 = vmul.f32 %v12318_v52, %v12318_v52  ;;  %v1594_v58 = vmul.f32 %v12321_v50, %v12321_v50  ;;  %v1996_v35 = vld [vmem:[%s14783_s0 + $0x8] sm:$0xff]  ;;  %v9455_v39 = vld [vmem:[%s14521_s7 + $0x54] sm:$0xf0]  ;;  %v9454_v3 = vld [vmem:[%s14521_s7 + $0x54] sm:$0xf] }
 0x1e5   : > { %3053 = vmatpush.bf16.xpose.msra.mxu3 %v2590_v56  ;;  %1641 = vadd.xlane.f32.xlu0 %v1640_v10  ;;  %14782 = vst [vmem:[#allocation58_spill] sm:$0xff] %v12321_v50  ;;  %v7904_v10 = vor.u32 %v9450_v12, %v7901_v41  ;;  %v8012_v20 = vor.u32 %v9479_v47, %v8011_v16  ;;  %v10818_v56 = vmov 0   ;;  %v8019_v32 = vld [vmem:[#allocation11 + $0x20] sm:$0xf]  ;;  %v9481_v42 = vld [vmem:[#allocation11 + $0x24] sm:$0xf0] }
 0x1e6   : > { %1635 = vadd.xlane.f32.xlu2 %v1634_v7  ;;  %v1625_v4 = vadd.f32 %v1594_v58, %v1593_v15  ;;  %v9478_v7 = vld [vmem:[#allocation11 + $0x14] sm:$0xf]  ;;  %10007 = vset.pattern.permute.xlu0 %v10818_v56  ;;  %v7908_v2 = vor.u32 %v9453_v8, %v7907_v23  ;;  %v8020_v15 = vor.u32 %v9481_v42, %v8019_v32  ;;  %v9483_v16 = vld [vmem:[#allocation11 + $0x34] sm:$0xf0]  ;;  %v9457_v23 = vld [vmem:[%s14521_s7 + $0x64] sm:$0xf0] }
 0x1e7   : > { %v8016_v13 = vor.u32 %v9478_v7, %v8013_v36  ;;  %10006 = vset.pattern.permute.xlu2 %v10818_v56  ;;  %10008 = vset.pattern.permute.xlu1 %v10818_v56  ;;  %v7917_v12 = vld [vmem:[%s14521_s7 + $0x58] sm:$0xf0]  ;;  %v8029_v7 = vld [vmem:[#allocation11 + $0x38] sm:$0xf0]  ;;  %v9485_v32 = vld [vmem:[#allocation11 + $0x44] sm:$0xf0] }
 0x1e8   : > { %2454 = vmatmul.bf16.gmra.mxu1 %v7896_v54  ;;  %v7909_v54 = vld [vmem:[%s14521_s7 + $0x48] sm:$0xf0]  ;;  %v7920_v47 = vor.u32 %v9454_v3, %v7917_v12  ;;  %v1995_v56 = vld [vmem:[%s14783_s0] sm:$0xff]  ;;  %v1998_v12 = vld [vmem:[%s14783_s0 + $0x18] sm:$0xff]  ;;  %s7592_s3 = sshll.u32 %s13921_s12, 4  ;;  %s7593_s3 = int_to_ptr.vmem [resolvable:$true] %s7592_s3 }
 0x1e9   : > { %v7912_v34 = vor.u32 %v9452_v51, %v7909_v54  ;;  %v9456_v8 = vld [vmem:[%s14521_s7 + $0x64] sm:$0xf]  ;;  %v7925_v51 = vld [vmem:[%s14521_s7 + $0x68] sm:$0xf0] }
 0x1ea   : > { %v7928_v42 = vor.u32 %v9456_v8, %v7925_v51  ;;  %v2606_v3 = vld [vmem:[%s14784_s10 + $0x8] sm:$0xff] }
 0x1eb   : > { %2965 = vmatmul.bf16.vlgmr.msra.gmra.mxu2 %v8004_v57  ;;  %v9480_v57 = vld [vmem:[#allocation11 + $0x24] sm:$0xf] }
 0x1ec   : > { %3054 = vmatmul.bf16.vlgmr.msra.gmra.mxu3 %v8008_v14  ;;  %v8021_v14 = vld [vmem:[#allocation11 + $0x28] sm:$0xf0] }
 0x1ed   : > { %1626 = vadd.xlane.f32.xlu0 %v1625_v4  ;;  %v8024_v58 = vor.u32 %v9480_v57, %v8021_v14  ;;  %v7915_v4 = vld [vmem:[%s14521_s7 + $0x50] sm:$0xf] }
 0x1ee   : > { %v7916_v41 = vor.u32 %v9455_v39, %v7915_v4  ;;  %v8037_v57 = vld [vmem:[#allocation11 + $0x48] sm:$0xf0] }
 0x1f4   : > { %2370 = vmatmul.bf16.gmra.mxu0 %v7900_v11  ;;  %v8027_v11 = vld [vmem:[#allocation11 + $0x30] sm:$0xf] }
 0x1f5   : > { %v8028_v36 = vor.u32 %v9483_v16, %v8027_v11  ;;  %v9459_v11 = vld [vmem:[%s14521_s7 + $0x74] sm:$0xf0]  ;;  %v9458_v16 = vld [vmem:[%s14521_s7 + $0x74] sm:$0xf] }
 0x1f8   : > { %2459 = vmatmul.bf16.gmra.mxu1 %v7904_v10  ;;  %v9482_v10 = vld [vmem:[#allocation11 + $0x34] sm:$0xf] }
 0x1fb   : > { %2970 = vmatmul.bf16.gmra.mxu2 %v8012_v20  ;;  %v8032_v20 = vor.u32 %v9482_v10, %v8029_v7  ;;  %v8043_v7 = vld [vmem:[#allocation11 + $0x50] sm:$0xf] }
 0x1fc   : > { %3059 = vmatmul.bf16.gmra.mxu3 %v8016_v13  ;;  %v2607_v13 = vld [vmem:[%s14784_s10 + $0x10] sm:$0xff] }
 0x1fe   : > { %2029 = vperm.xlu2 %10006, %v1995_v56   ;;  %v8045_v56 = vld [vmem:[#allocation11 + $0x58] sm:$0xf0] }
 0x201   : > { %2034 = vperm.xlu0 %10007, %v1996_v35   ;;  %v7923_v35 = vld [vmem:[%s14521_s7 + $0x60] sm:$0xf] }
 0x202   : > { %v7924_v54 = vor.u32 %v9457_v23, %v7923_v35 }
 0x204   : > { %2375 = vmatmul.bf16.gmra.mxu0 %v7908_v2  ;;  %v8035_v2 = vld [vmem:[#allocation11 + $0x40] sm:$0xf] }
 0x205   : > { %v8036_v14 = vor.u32 %v9485_v32, %v8035_v2  ;;  %v1999_v2 = vld [vmem:[%s14783_s0 + $0x20] sm:$0xff] }
 0x206   : > { %2044 = vperm.xlu2 %10006, %v1998_v12  }
 0x208   : > { %2464 = vmatmul.bf16.gmra.mxu1 %v7912_v34  ;;  %v9484_v34 = vld [vmem:[#allocation11 + $0x44] sm:$0xf] }
 0x209   : > { %2649 = vperm.xlu0 %10007, %v2607_v13   ;;  %v9486_v13 = vld [vmem:[#allocation11 + $0x54] sm:$0xf] }
 0x20b   : > { %2975 = vmatmul.bf16.gmra.mxu2 %v8020_v15  ;;  %v8040_v15 = vor.u32 %v9484_v34, %v8037_v57  ;;  %v8048_v34 = vor.u32 %v9486_v13, %v8045_v56 }
 0x20c   : > { %3064 = vmatmul.bf16.gmra.mxu3 %v8024_v58 }
 0x20e   : > { %2049 = vperm.xlu2 %10006, %v1999_v2  }
 0x211   : > { %2644 = vperm.xlu0 %10007, %v2606_v3  }
 0x214   : > { %2380 = vmatmul.bf16.gmra.mxu0 %v7916_v41  ;;  %v7931_v41 = vld [vmem:[%s14521_s7 + $0x70] sm:$0xf] }
 0x215   : > { %v7932_v10 = vor.u32 %v9459_v11, %v7931_v41 }
 0x218   : > { %2469 = vmatmul.bf16.gmra.mxu1 %v7920_v47  ;;  %v7933_v47 = vld [vmem:[%s14521_s7 + $0x78] sm:$0xf0] }
 0x219   : > { %v7936_v8 = vor.u32 %v9458_v16, %v7933_v47 }
 0x21b   : > { %2980 = vmatmul.bf16.gmra.mxu2 %v8028_v36 }
 0x21c   : > { %3069 = vmatmul.bf16.gmra.mxu3 %v8032_v20  ;;  %v9487_v20 = vld [vmem:[#allocation11 + $0x54] sm:$0xf0] }
 0x224   : > { %2385 = vmatmul.bf16.gmra.mxu0 %v7924_v54  ;;  %v2611_v54 = vld [vmem:[%s14784_s10 + $0x30] sm:$0xff] }
 0x225   : > { %v1669_v58 = vpop.xlane.xlu2 %1668  ;;  %2669 = vperm.xlu0 %10007, %v2611_v54   ;;  %v7941_v54 = vld [vmem:[%s14521_s7 + $0x88] sm:$0xf0] }
 0x226   : > { %v1687_v4 = vmul.f32 %v1669_v58, %v11283_v60 }
 0x228   : > { %2474 = vmatmul.bf16.gmra.mxu1 %v7928_v42  ;;  %v12385_v39 = vadd.f32 1e-05, %v1687_v4  ;;  %v8044_v42 = vor.u32 %v9487_v20, %v8043_v7  ;;  %v2609_v7 = vld [vmem:[%s14784_s10 + $0x20] sm:$0xff] }
 0x22a   : > { %10161 = vrsqrt.f32 %v12385_v39  ;;  %vm1851_vm8 = vweird.f32 %v12385_v39 }
 0x22b   : > { %2985 = vmatmul.bf16.gmra.mxu2 %v8036_v14 }
 0x22c   : > { %3074 = vmatmul.bf16.gmra.mxu3 %v8040_v15 }
 0x22d   : > { %2659 = vperm.xlu0 %10007, %v2609_v7  }
 0x230   : > { %v12406_v36 = vpop.eup %10161 }
 0x231   : > { %v1846_v35 = vmul.f32 %v12406_v36, %v12385_v39  ;;  %vm1852_vm7 = vweird.f32 %v12406_v36  ;;  %v2608_v39 = vld [vmem:[%s14784_s10 + $0x18] sm:$0xff] }
 0x232   : > { %vm1853_vm9 = vmor %vm1851_vm8, %vm1852_vm7 }
 0x233   : > { %v1502_v23 = vpop.xlane.xlu2 %1501  ;;  %v1847_v57 = vmul.f32 %v12406_v36, %v1846_v35  ;;  %v7939_v35 = vld [vmem:[%s14521_s7 + $0x80] sm:$0xf] }
 0x234   : > { %v1546_v51 = vmul.f32 %v1502_v23, %v11283_v60  ;;  %v1672_v32 = vpop.xlane.xlu0 %1671  ;;  %2390 = vmatmul.bf16.gmra.mxu0 %v7932_v10  ;;  %v9461_v23 = vld [vmem:[%s14521_s7 + $0x84] sm:$0xf0] }
 0x235   : > { %v1666_v58 = vpop.xlane.xlu1 %1665  ;;  %v1688_v4 = vmul.f32 %v1672_v32, %v11283_v60 }
 0x236   : > { %v12419_v14 = vsub.f32 %v12006_v53, %v1546_v51  ;;  %v12422_v15 = vsub.f32 %v12009_v0, %v1546_v51  ;;  %v1686_v3 = vmul.f32 %v1666_v58, %v11283_v60  ;;  %v1848_v53 = vmul.f32 0.5, %v1847_v57  ;;  %v9460_v51 = vld [vmem:[%s14521_s7 + $0x84] sm:$0xf]  ;;  %v2001_v58 = vld [vmem:[%s14783_s0 + $0x30] sm:$0xff] }
 0x237   : > { %v12426_v12 = vadd.f32 1e-05, %v1688_v4  ;;  %2059 = vperm.xlu2 %10006, %v2001_v58   ;;  %v7944_v7 = vor.u32 %v9460_v51, %v7941_v54  ;;  %v2007_v54 = vld [vmem:[%s14783_s0 + $0x60] sm:$0xff] }
 0x238   : > { %14785 = vst [vmem:[#allocation59_spill] sm:$0xff] %v12419_v14  ;;  %2479 = vmatmul.bf16.gmra.mxu1 %v7936_v8  ;;  %v1595_v41 = vmul.f32 %v12419_v14, %v12419_v14  ;;  %v1596_v11 = vmul.f32 %v12422_v15, %v12422_v15  ;;  %v12432_v16 = vadd.f32 1e-05, %v1686_v3  ;;  %v1849_v20 = vsub.f32 1.5, %v1848_v53  ;;  %v8051_v53 = vld [vmem:[#allocation11 + $0x60] sm:$0xf]  ;;  %2089 = vperm.xlu0 %10007, %v2007_v54  }
 0x239   : > { %14786 = vst [vmem:[#allocation60_spill] sm:$0xff] %v12422_v15  ;;  %10163 = vrsqrt.f32 %v12426_v12  ;;  %vm1861_vm10 = vweird.f32 %v12426_v12 }
 0x23a   : > { %v1628_v0 = vadd.f32 %v1596_v11, %v1595_v41  ;;  %10165 = vrsqrt.f32 %v12432_v16  ;;  %v7940_v41 = vor.u32 %v9461_v23, %v7939_v35  ;;  %v1850_v11 = vmul.f32 %v12406_v36, %v1849_v20 }
 0x23b   : > { %2990 = vmatmul.bf16.gmra.mxu2 %v8044_v42  ;;  %vm1841_vm13 = vweird.f32 %v12432_v16 }
 0x23c   : > { %3079 = vmatmul.bf16.gmra.mxu3 %v8048_v34  ;;  %1629 = vadd.xlane.f32.xlu1 %v1628_v0  ;;  %v9489_v0 = vld [vmem:[#allocation11 + $0x64] sm:$0xf0] }
 0x23d   : > { %v1657_v47 = vpop.xlane.xlu2 %1656  ;;  %v1663_v10 = vpop.xlane.xlu0 %1662  ;;  %v8052_v23 = vor.u32 %v9489_v0, %v8051_v53  ;;  %v1854_v53 = vsel %vm1853_vm9, %v12406_v36, %v1850_v11 }
 0x23e   : > { %v1683_v13 = vmul.f32 %v1657_v47, %v11283_v60  ;;  %v1685_v56 = vmul.f32 %v1663_v10, %v11283_v60  ;;  %v1893_v54 = vmul.f32 %v1854_v53, %v11868_v37  ;;  %v2010_v37 = vld [vmem:[%s14783_s0 + $0x78] sm:$0xff] }
 0x23f   : > { %v1651_v8 = vpop.xlane.xlu1 %1650  ;;  %v12453_v2 = vpop.eup %10163  ;;  %2654 = vperm.xlu2 %10006, %v2608_v39  }
 0x240   : > { %v12455_v32 = vadd.f32 1e-05, %v1683_v13  ;;  %v1681_v42 = vmul.f32 %v1651_v8, %v11283_v60  ;;  %v12458_v34 = vadd.f32 1e-05, %v1685_v56  ;;  %v12460_v57 = vpop.f32.mrf.mxu0  ;;  %v1856_v4 = vmul.f32 %v12453_v2, %v12426_v12  ;;  %v12467_v3 = vpop.f32.mrf.mxu1  ;;  %v9488_v13 = vld [vmem:[#allocation11 + $0x64] sm:$0xf]  ;;  %2104 = vperm.xlu0 %10007, %v2010_v37  }
 0x241   : > { %14787 = vst [vmem:[#allocation61_spill] sm:$0xff] %v12460_v57  ;;  %v8053_v56 = vld [vmem:[#allocation11 + $0x68] sm:$0xf0]  ;;  %v12476_v8 = vpop.eup %10165  ;;  %vm1862_vm11 = vweird.f32 %v12453_v2 }
 0x242   : > { %14788 = vst [vmem:[#allocation62_spill] sm:$0xff] %v12467_v3  ;;  %10167 = vrsqrt.f32 %v12455_v32  ;;  %v1857_v47 = vmul.f32 %v12453_v2, %v1856_v4  ;;  %v12473_v10 = vadd.f32 1e-05, %v1681_v42  ;;  %v8056_v51 = vor.u32 %v9488_v13, %v8053_v56  ;;  %vm12506_vm12 = vmor %vm1861_vm10, %vm1862_vm11 }
 0x243   : > { %10169 = vrsqrt.f32 %v12458_v34  ;;  %v1836_v42 = vmul.f32 %v12476_v8, %v12432_v16  ;;  %vm1842_vm14 = vweird.f32 %v12476_v8  ;;  %vm1831_vm15 = vweird.f32 %v12458_v34 }
 0x244   : > { %v1858_v20 = vmul.f32 0.5, %v1857_v47  ;;  %10171 = vrsqrt.f32 %v12473_v10  ;;  %2395 = vmatmul.bf16.gmra.mxu0 %v7940_v41  ;;  %vm12636_vm1 = vmor %vm1841_vm13, %vm1842_vm14  ;;  %vm1811_vm2 = vweird.f32 %v12455_v32  ;;  %vm1791_vm6 = vweird.f32 %v12473_v10 }
 0x245   : > { %v1837_v12 = vmul.f32 %v12476_v8, %v1836_v42  ;;  %v1925_v42 = vmul.f32 %v1893_v54, %v11662_v24 }
 0x246   : > { %v1660_v35 = vpop.xlane.xlu0 %1659  ;;  %v1859_v58 = vsub.f32 1.5, %v1858_v20 }
 0x247   : > { %v1654_v4 = vpop.xlane.xlu2 %1653  ;;  %v1684_v41 = vmul.f32 %v1660_v35, %v11283_v60 }
 0x248   : > { %2484 = vmatmul.bf16.gmra.mxu1 %v7944_v7  ;;  %v12494_v0 = vpop.eup %10167  ;;  %v1682_v47 = vmul.f32 %v1654_v4, %v11283_v60  ;;  %v12497_v56 = vpop.f32.mrf.mxu0  ;;  %v1860_v14 = vmul.f32 %v12453_v2, %v1859_v58 }
 0x249   : > { %v1648_v13 = vpop.xlane.xlu1 %1647  ;;  %14789 = vst [vmem:[#allocation63_spill] sm:$0xff] %v12497_v56  ;;  %v12499_v15 = vpop.eup %10169  ;;  %v1806_v36 = vmul.f32 %v12494_v0, %v12455_v32  ;;  %v12525_v52 = vadd.f32 1e-05, %v1684_v41  ;;  %v1894_v41 = vmul.f32 %v1854_v53, %v11887_v22  ;;  %v2003_v22 = vld [vmem:[%s14783_s0 + $0x40] sm:$0xff]  ;;  %vm1812_vm3 = vweird.f32 %v12494_v0 }
 0x24a   : > { %v1680_v11 = vmul.f32 %v1648_v13, %v11283_v60  ;;  %v12513_v20 = vadd.f32 1e-05, %v1682_v47  ;;  %v12515_v35 = vpop.f32.mrf.mxu1  ;;  %v12518_v58 = vpop.eup %10171  ;;  %v1826_v4 = vmul.f32 %v12499_v15, %v12458_v34  ;;  %v7947_v47 = vld [vmem:[%s14521_s7 + $0x90] sm:$0xf]  ;;  %2069 = vperm.xlu2 %10006, %v2003_v22   ;;  %vm1832_vm0 = vweird.f32 %v12499_v15  ;;  %vm12692_vm10 = vmor %vm1811_vm2, %vm1812_vm3 }
 0x24b   : > { %2995 = vmatmul.bf16.gmra.mxu2 %v8052_v23  ;;  %14792 = vst [vmem:[#allocation42_spill] sm:$0xff] %v12515_v35  ;;  %v1807_v39 = vmul.f32 %v12494_v0, %v1806_v36  ;;  %v1864_v23 = vsel %vm12506_vm12, %v12453_v2, %v1860_v14  ;;  %v9463_v14 = vld [vmem:[%s14521_s7 + $0x94] sm:$0xf0]  ;;  %v12547_v2 = vmul.f32 0.5, %v1837_v12  ;;  %vm12649_vm4 = vmor %vm1831_vm15, %vm1832_vm0  ;;  %vm1821_vm5 = vweird.f32 %v12525_v52 }
 0x24c   : > { %3084 = vmatmul.bf16.gmra.mxu3 %v8056_v51  ;;  %v12523_v50 = vadd.f32 1e-05, %v1680_v11  ;;  %10173 = vrsqrt.f32 %v12513_v20  ;;  %v1786_v51 = vmul.f32 %v12518_v58, %v12473_v10  ;;  %v1827_v13 = vmul.f32 %v12499_v15, %v1826_v4 }
 0x24d   : > { %v1895_v11 = vmul.f32 %v1864_v23, %v11907_v38  ;;  %v12554_v53 = vmul.f32 0.5, %v1807_v39  ;;  %v1896_v12 = vmul.f32 %v1864_v23, %v11919_v26  ;;  %v7948_v37 = vor.u32 %v9463_v14, %v7947_v47  ;;  %v1997_v26 = vld [vmem:[%s14783_s0 + $0x10] sm:$0xff] }
 0x24e   : > { %10175 = vrsqrt.f32 %v12523_v50  ;;  %v1787_v39 = vmul.f32 %v12518_v58, %v1786_v51  ;;  %v1828_v6 = vmul.f32 0.5, %v1827_v13  ;;  %v2616_v13 = vld [vmem:[%s14784_s10 + $0x58] sm:$0xff]  ;;  %vm1792_vm7 = vweird.f32 %v12518_v58 }
 0x24f   : > { %10177 = vrsqrt.f32 %v12525_v52  ;;  %v1927_v4 = vmul.f32 %v1895_v11, %v11662_v24  ;;  %2694 = vperm.xlu0 %10007, %v2616_v13   ;;  %vm1801_vm8 = vweird.f32 %v12513_v20  ;;  %vm1781_vm12 = vweird.f32 %v12523_v50  ;;  %vm12783_vm3 = vmor %vm1791_vm6, %vm1792_vm7 }
 0x250   : > { %v1639_v7 = vpop.xlane.xlu2 %1638  ;;  %v1645_v36 = vpop.xlane.xlu0 %1644 }
 0x251   : > { %v1677_v54 = vmul.f32 %v1639_v7, %v11283_v60  ;;  %v1679_v55 = vmul.f32 %v1645_v36, %v11283_v60  ;;  %v12558_v35 = vpop.f32.mrf.mxu0  ;;  %v1633_v38 = vpop.xlane.xlu1 %1632  ;;  %v1957_v36 = vadd.f32 %v1925_v42, %v11669_v59  ;;  %v1959_v51 = vadd.f32 %v1927_v4, %v11669_v59 }
 0x252   : > { %14793 = vst [vmem:[#allocation38_spill] sm:$0xff] %v12558_v35  ;;  %v12564_v3 = vpop.eup %10173  ;;  %v1926_v35 = vmul.f32 %v1894_v41, %v11676_v45  ;;  %v1839_v42 = vsub.f32 1.5, %v12547_v2  ;;  %v1809_v41 = vsub.f32 1.5, %v12554_v53  ;;  %v1675_v22 = vmul.f32 %v1633_v38, %v11283_v60  ;;  %v8059_v53 = vld [vmem:[#allocation11 + $0x70] sm:$0xf] }
 0x253   : > { %v12567_v7 = vadd.f32 1e-05, %v1677_v54  ;;  %v1796_v47 = vmul.f32 %v12564_v3, %v12513_v20  ;;  %v12578_v14 = vadd.f32 1e-05, %v1679_v55  ;;  %v1928_v54 = vmul.f32 %v1896_v12, %v11676_v45  ;;  %v9491_v38 = vld [vmem:[#allocation11 + $0x74] sm:$0xf0] }
 0x254   : > { %v12574_v23 = vpop.eup %10175  ;;  %2400 = vmatmul.bf16.gmra.mxu0 %v7948_v37  ;;  %v12598_v12 = vmul.f32 0.5, %v1787_v39  ;;  %v2612_v37 = vld [vmem:[%s14784_s10 + $0x38] sm:$0xff]  ;;  %v1829_v39 = vsub.f32 1.5, %v1828_v6  ;;  %v3181_v57 = vpack.c.bf16 %v1959_v51, %v1957_v36  ;;  %v12614_v31 = vadd.f32 1e-05, %v1675_v22 }
 0x255   : > { %v12581_v11 = vpop.eup %10177  ;;  %v12587_v56 = vpop.f32.mrf.mxu1  ;;  %v1797_v55 = vmul.f32 %v12564_v3, %v1796_v47  ;;  %v1776_v4 = vmul.f32 %v12574_v23, %v12523_v50  ;;  %10179 = vrsqrt.f32 %v12567_v7  ;;  %2039 = vperm.xlu1 %10008, %v1997_v26   ;;  %v1958_v47 = vadd.f32 %v1926_v35, %v11681_v62  ;;  %2674 = vperm.xlu2 %10006, %v2612_v37   ;;  %v9490_v22 = vld [vmem:[#allocation11 + $0x74] sm:$0xf] }
 0x256   : > { %14794 = vst [vmem:[#allocation43_spill] sm:$0xff] %v12587_v56  ;;  %v1816_v2 = vmul.f32 %v12581_v11, %v12525_v52  ;;  %v9462_v56 = vld [vmem:[%s14521_s7 + $0x94] sm:$0xf]  ;;  %10181 = vrsqrt.f32 %v12578_v14  ;;  %v1960_v44 = vadd.f32 %v1928_v54, %v11681_v62  ;;  %3535 = vmatpush.bf16.xpose.msrb.mxu0 %v3181_v57  ;;  %v1789_v34 = vsub.f32 1.5, %v12598_v12  ;;  %v2012_v52 = vld [vmem:[%s14783_s0 + $0x88] sm:$0xff] }
 0x257   : > { %v12621_v61 = vmul.f32 0.5, %v1797_v55  ;;  %v1777_v6 = vmul.f32 %v12574_v23, %v1776_v4  ;;  %v7952_v36 = vor.u32 %v9462_v56, %v7949_v40  ;;  %v8061_v56 = vld [vmem:[#allocation11 + $0x78] sm:$0xf0]  ;;  %10183 = vrsqrt.f32 %v12614_v31 }
 0x258   : > { %v1817_v26 = vmul.f32 %v12581_v11, %v1816_v2  ;;  %v1642_v35 = vpop.xlane.xlu0 %1641  ;;  %v8060_v2 = vor.u32 %v9491_v38, %v8059_v53  ;;  %v3182_v51 = vpack.c.bf16 %v1960_v44, %v1958_v47  ;;  %v1810_v4 = vmul.f32 %v12494_v0, %v1809_v41  ;;  %v2610_v41 = vld [vmem:[%s14784_s10 + $0x28] sm:$0xff] }
 0x259   : > { %v1636_v33 = vpop.xlane.xlu2 %1635  ;;  %v1678_v49 = vmul.f32 %v1642_v35, %v11283_v60  ;;  %v12619_v19 = vpop.f32.mrf.mxu0  ;;  %v1840_v35 = vmul.f32 %v12476_v8, %v1839_v42  ;;  %2489 = vmatmul.bf16.gmra.mxu1 %v7952_v36  ;;  %v2614_v42 = vld [vmem:[%s14784_s10 + $0x48] sm:$0xff]  ;;  %v1799_v53 = vsub.f32 1.5, %v12621_v61  ;;  %v1778_v38 = vmul.f32 0.5, %v1777_v6 }
 0x25a   : > { %v1676_v21 = vmul.f32 %v1636_v33, %v11283_v60  ;;  %v2000_v33 = vld [vmem:[%s14783_s0 + $0x28] sm:$0xff]  ;;  %v1818_v44 = vmul.f32 0.5, %v1817_v26  ;;  %3624 = vmatpush.bf16.xpose.msrb.mxu1 %v3182_v51  ;;  %vm1802_vm9 = vweird.f32 %v12564_v3  ;;  %2684 = vperm.xlu0 %10007, %v2614_v42   ;;  %vm1822_vm11 = vweird.f32 %v12581_v11 }
 0x25b   : > { %v12624_v13 = vadd.f32 1e-05, %v1678_v49  ;;  %v12629_v54 = vpop.eup %10179  ;;  %v1830_v49 = vmul.f32 %v12499_v15, %v1829_v39  ;;  %3000 = vmatmul.bf16.gmra.mxu2 %v8060_v2  ;;  %v8064_v39 = vor.u32 %v9490_v22, %v8061_v56  ;;  %v1844_v26 = vsel %vm12636_vm1, %v12476_v8, %v1840_v35  ;;  %vm12725_vm15 = vmor %vm1821_vm5, %vm1822_vm11 }
 0x25c   : > { %v12641_v40 = vadd.f32 1e-05, %v1676_v21  ;;  %v12660_v55 = vpop.eup %10181  ;;  %v1746_v47 = vmul.f32 %v12629_v54, %v12567_v7  ;;  %v1819_v61 = vsub.f32 1.5, %v1818_v44  ;;  %v1891_v36 = vmul.f32 %v1844_v26, %v11922_v5 }
 0x25d   : > { %v12655_v21 = vpop.f32.mrf.mxu1  ;;  %2054 = vperm.xlu1 %10008, %v2000_v33   ;;  %v1766_v37 = vmul.f32 %v12660_v55, %v12578_v14  ;;  %10185 = vrsqrt.f32 %v12624_v13  ;;  %v1834_v12 = vsel %vm12649_vm4, %v12499_v15, %v1830_v49  ;;  %3089 = vmatmul.bf16.gmra.mxu3 %v8064_v39  ;;  %v12697_v8 = vmul.f32 %v12518_v58, %v1789_v34  ;;  %v12701_v5 = vpop.eup %10183  ;;  %vm12795_vm4 = vmor %vm1801_vm8, %vm1802_vm9 }
 0x25e   : > { %10187 = vrsqrt.f32 %v12641_v40  ;;  %v1889_v2 = vmul.f32 %v1834_v12, %v12020_v48  ;;  %v1890_v51 = vmul.f32 %v1834_v12, %v12023_v27  ;;  %v1779_v22 = vsub.f32 1.5, %v1778_v38  ;;  %2664 = vperm.xlu2 %10006, %v2610_v41  }
 0x25f   : > { %v1767_v6 = vmul.f32 %v12660_v55, %v1766_v37  ;;  %v1892_v48 = vmul.f32 %v1844_v26, %v11933_v28  ;;  %vm1782_vm13 = vweird.f32 %v12574_v23  ;;  %v1747_v27 = vmul.f32 %v12629_v54, %v1746_v47  ;;  %v2002_v28 = vld [vmem:[%s14783_s0 + $0x38] sm:$0xff] }
 0x260   : > { %v1921_v32 = vmul.f32 %v1889_v2, %v11662_v24  ;;  %v1923_v33 = vmul.f32 %v1891_v36, %v11662_v24  ;;  %v1922_v35 = vmul.f32 %v1890_v51, %v11676_v45  ;;  %v12715_v49 = vmul.f32 %v12564_v3, %v1799_v53  ;;  %v7955_v2 = vld [vmem:[%s14521_s7 + $0xa0] sm:$0xf]  ;;  %v9465_v36 = vld [vmem:[%s14521_s7 + $0xa4] sm:$0xf0]  ;;  %vm12829_vm6 = vmor %vm1781_vm12, %vm1782_vm13 }
 0x261   : > { %v12709_v57 = vpop.f32.mrf.mxu0  ;;  %v1820_v44 = vmul.f32 %v12581_v11, %v1819_v61  ;;  %v1768_v56 = vmul.f32 0.5, %v1767_v6  ;;  %vm1771_vm14 = vweird.f32 %v12578_v14  ;;  %v1924_v38 = vmul.f32 %v1892_v48, %v11676_v45  ;;  %v2008_v51 = vld [vmem:[%s14783_s0 + $0x68] sm:$0xff]  ;;  %v9466_v14 = vld [vmem:[%s14521_s7 + $0xb4] sm:$0xf] }
 0x262   : > { %v1953_v34 = vadd.f32 %v1921_v32, %v11669_v59  ;;  %v1955_v53 = vadd.f32 %v1923_v33, %v11669_v59  ;;  %v1814_v47 = vsel %vm12692_vm10, %v12494_v0, %v1810_v4  ;;  %v12743_v41 = vmul.f32 %v12574_v23, %v1779_v22  ;;  %v8067_v32 = vld [vmem:[#allocation11 + $0x80] sm:$0xf]  ;;  %v9493_v33 = vld [vmem:[#allocation11 + $0x84] sm:$0xf0]  ;;  %2114 = vperm.xlu0 %10007, %v2012_v52  }
 0x263   : > { %v12719_v16 = vpop.eup %10185  ;;  %v1726_v61 = vmul.f32 %v12701_v5, %v12614_v31  ;;  %vm1772_vm0 = vweird.f32 %v12660_v55  ;;  %v12750_v0 = vmul.f32 0.5, %v1747_v27  ;;  %v1954_v26 = vadd.f32 %v1922_v35, %v11681_v62 }
 0x264   : > { %v12740_v39 = vpop.eup %10187  ;;  %v1756_v12 = vmul.f32 %v12719_v16, %v12624_v13  ;;  %v3179_v4 = vpack.c.bf16 %v1955_v53, %v1953_v34  ;;  %v1956_v6 = vadd.f32 %v1924_v38, %v11681_v62  ;;  %v1769_v15 = vsub.f32 1.5, %v1768_v56  ;;  %v9492_v53 = vld [vmem:[#allocation11 + $0x84] sm:$0xf]  ;;  %v8069_v38 = vld [vmem:[#allocation11 + $0x88] sm:$0xf0]  ;;  %vm12813_vm5 = vmor %vm1771_vm14, %vm1772_vm0 }
 0x265   : > { %v12735_v37 = vpop.f32.mrf.mxu1  ;;  %2064 = vperm.xlu1 %10008, %v2002_v28   ;;  %v1824_v48 = vsel %vm12725_vm15, %v12581_v11, %v1820_v44  ;;  %v1885_v27 = vmul.f32 %v1814_v47, %v12032_v63  ;;  %vm1751_vm1 = vweird.f32 %v12567_v7  ;;  %vm1752_vm2 = vweird.f32 %v12629_v54  ;;  %v9464_v11 = vld [vmem:[%s14521_s7 + $0xa4] sm:$0xf]  ;;  %v7957_v63 = vld [vmem:[%s14521_s7 + $0xa8] sm:$0xf0] }
 0x266   : > { %v1757_v22 = vmul.f32 %v12719_v16, %v1756_v12  ;;  %3536 = vmatpush.bf16.xpose.msrb.mxu0 %v3179_v4  ;;  %v3180_v35 = vpack.c.bf16 %v1956_v6, %v1954_v26  ;;  %v1887_v28 = vmul.f32 %v1824_v48, %v12082_v17  ;;  %v1886_v56 = vmul.f32 %v1814_v47, %v12035_v29  ;;  %v2605_v26 = vld [vmem:[%s14784_s10] sm:$0xff]  ;;  %vm12875_vm9 = vmor %vm1751_vm1, %vm1752_vm2 }
 0x267   : > { %v1888_v34 = vmul.f32 %v1824_v48, %v12085_v1  ;;  %v1727_v29 = vmul.f32 %v12701_v5, %v1726_v61  ;;  %v1736_v17 = vmul.f32 %v12740_v39, %v12641_v40  ;;  %v1917_v1 = vmul.f32 %v1885_v27, %v11662_v24  ;;  %2094 = vperm.xlu2 %10006, %v2008_v51   ;;  %v9495_v51 = vld [vmem:[#allocation11 + $0x94] sm:$0xf0] }
 0x268   : > { %v7956_v42 = vor.u32 %v9465_v36, %v7955_v2  ;;  %3625 = vmatpush.bf16.xpose.msrb.mxu1 %v3180_v35  ;;  %v1919_v47 = vmul.f32 %v1887_v28, %v11662_v24  ;;  %v1918_v52 = vmul.f32 %v1886_v56, %v11676_v45  ;;  %v8068_v12 = vor.u32 %v9493_v33, %v8067_v32  ;;  %v2620_v33 = vld [vmem:[%s14784_s10 + $0x78] sm:$0xff] }
 0x269   : > { %v1920_v61 = vmul.f32 %v1888_v34, %v11676_v45  ;;  %v12802_v4 = vpop.f32.mrf.mxu0  ;;  %v1770_v20 = vmul.f32 %v12660_v55, %v1769_v15  ;;  %v1758_v6 = vmul.f32 0.5, %v1757_v22  ;;  %v1949_v2 = vadd.f32 %v1917_v1, %v11669_v59 }
 0x26a   : > { %2405 = vmatmul.bf16.gmra.mxu0 %v7956_v42  ;;  %v7960_v36 = vor.u32 %v9464_v11, %v7957_v63  ;;  %v1951_v48 = vadd.f32 %v1919_v47, %v11669_v59  ;;  %v1950_v27 = vadd.f32 %v1918_v52, %v11681_v62  ;;  %v8072_v15 = vor.u32 %v9492_v53, %v8069_v38 }
 0x26b   : > { %v1952_v32 = vadd.f32 %v1920_v61, %v11681_v62  ;;  %3005 = vmatmul.bf16.gmra.mxu2 %v8068_v12  ;;  %v1749_v35 = vsub.f32 1.5, %v12750_v0  ;;  %v1737_v28 = vmul.f32 %v12740_v39, %v1736_v17  ;;  %v1794_v56 = vsel %vm12783_vm3, %v12518_v58, %v12697_v8  ;;  %v2018_v17 = vld [vmem:[%s14783_s0 + $0xb8] sm:$0xff]  ;;  %2714 = vperm.xlu0 %10007, %v2620_v33  }
 0x26c   : > { %2494 = vmatmul.bf16.gmra.mxu1 %v7960_v36  ;;  %v1804_v34 = vsel %vm12795_vm4, %v12564_v3, %v12715_v49  ;;  %v3177_v50 = vpack.c.bf16 %v1951_v48, %v1949_v2  ;;  %v1881_v63 = vmul.f32 %v1794_v56, %v12038_v30  ;;  %v1759_v1 = vsub.f32 1.5, %v1758_v6  ;;  %v14815_v12 = vld [vmem:[#allocation34_spill] sm:$0xff] }
 0x26d   : > { %v12820_v22 = vpop.f32.mrf.mxu1  ;;  %2639 = vperm.xlu1 %10008, %v2605_v26   ;;  %v3178_v11 = vpack.c.bf16 %v1952_v32, %v1950_v27  ;;  %v1883_v0 = vmul.f32 %v1804_v34, %v12091_v46  ;;  %v1882_v44 = vmul.f32 %v1794_v56, %v12041_v43  ;;  %v1884_v58 = vmul.f32 %v1804_v34, %v12104_v25  ;;  %v8075_v36 = vld [vmem:[#allocation11 + $0x90] sm:$0xf] }
 0x26e   : > { %v1774_v3 = vsel %vm12813_vm5, %v12660_v55, %v1770_v20  ;;  %vm1761_vm7 = vweird.f32 %v12624_v13  ;;  %3537 = vmatpush.bf16.xpose.msrb.mxu0 %v3177_v50  ;;  %3094 = vmatmul.bf16.gmra.mxu3 %v8072_v15  ;;  %v1913_v30 = vmul.f32 %v1881_v63, %v11662_v24  ;;  %v1784_v43 = vsel %vm12829_vm6, %v12574_v23, %v12743_v41  ;;  %v2004_v23 = vld [vmem:[%s14783_s0 + $0x48] sm:$0xff]  ;;  %v2617_v13 = vld [vmem:[%s14784_s10 + $0x60] sm:$0xff]  ;;  %v14816_v15 = vld [vmem:[#allocation82_spill] sm:$0xff] }
 0x26f   : > { %v1915_v46 = vmul.f32 %v1883_v0, %v11662_v24  ;;  %v1728_v8 = vmul.f32 0.5, %v1727_v29  ;;  %v1738_v25 = vmul.f32 0.5, %v1737_v28  ;;  %vm1762_vm8 = vweird.f32 %v12719_v16  ;;  %2144 = vperm.xlu2 %10006, %v2018_v17   ;;  %v2025_v28 = vld [vmem:[%s14783_s0 + $0xf0] sm:$0xff] }
 0x270   : > { %v1916_v55 = vmul.f32 %v1884_v58, %v11676_v45  ;;  %3626 = vmatpush.bf16.xpose.msrb.mxu1 %v3178_v11  ;;  %v1914_v42 = vmul.f32 %v1882_v44, %v11676_v45  ;;  %v1877_v38 = vmul.f32 %v1774_v3, %v12153_v18  ;;  %v1750_v41 = vmul.f32 %v12629_v54, %v1749_v35  ;;  %v7963_v18 = vld [vmem:[%s14521_s7 + $0xb0] sm:$0xf]  ;;  %vm12886_vm10 = vmor %vm1761_vm7, %vm1762_vm8  ;;  %v7965_v35 = vld [vmem:[%s14521_s7 + $0xb8] sm:$0xf0] }
 0x271   : > { %v1947_v49 = vadd.f32 %v1915_v46, %v11669_v59  ;;  %v12864_v53 = vpop.f32.mrf.mxu0  ;;  %v1760_v10 = vmul.f32 %v12719_v16, %v1759_v1  ;;  %v1879_v47 = vmul.f32 %v1784_v43, %v12125_v9  ;;  %v1945_v7 = vadd.f32 %v1913_v30, %v11669_v59  ;;  %v9467_v9 = vld [vmem:[%s14521_s7 + $0xb4] sm:$0xf0]  ;;  %v8077_v58 = vld [vmem:[#allocation11 + $0x98] sm:$0xf0]  ;;  %v14817_v46 = vld [vmem:[#allocation36_spill] sm:$0xff] }
 0x272   : > { %v1948_v61 = vadd.f32 %v1916_v55, %v11681_v62  ;;  %v1878_v26 = vmul.f32 %v1774_v3, %v14815_v12  ;;  %v1729_v6 = vsub.f32 1.5, %v1728_v8  ;;  %vm1731_vm11 = vweird.f32 %v12614_v31  ;;  %v9494_v44 = vld [vmem:[#allocation11 + $0x94] sm:$0xf]  ;;  %v12927_v3 = vpop.xlane.xlu0 %1626  ;;  %v14818_v8 = vld [vmem:[#allocation45_spill] sm:$0xff]  ;;  %v2030_v12 = vpop.permute.xlu2 %2029 }
 0x273   : > { %v1739_v2 = vsub.f32 1.5, %v1738_v25  ;;  %v3175_v48 = vpack.c.bf16 %v1947_v49, %v1945_v7  ;;  %v1946_v27 = vadd.f32 %v1914_v42, %v11681_v62  ;;  %v1909_v32 = vmul.f32 %v1877_v38, %v11662_v24  ;;  %2699 = vperm.xlu0 %10007, %v2617_v13   ;;  %v2005_v55 = vld [vmem:[%s14783_s0 + $0x50] sm:$0xff] }
 0x274   : > { %v1880_v33 = vmul.f32 %v1784_v43, %v14816_v15  ;;  %v1911_v56 = vmul.f32 %v1879_v47, %v11662_v24  ;;  %v7964_v34 = vor.u32 %v9467_v9, %v7963_v18  ;;  %v1754_v50 = vsel %vm12875_vm9, %v12629_v54, %v1750_v41  ;;  %v14824_v18 = vld [vmem:[#allocation37_spill] sm:$0xff] }
 0x275   : > { %v12893_v20 = vpop.f32.mrf.mxu1  ;;  %2074 = vperm.xlu1 %10008, %v2004_v23   ;;  %v1764_v11 = vsel %vm12886_vm10, %v12719_v16, %v1760_v10  ;;  %vm1732_vm12 = vweird.f32 %v12701_v5  ;;  %v3176_v63 = vpack.c.bf16 %v1948_v61, %v1946_v27  ;;  %v1910_v0 = vmul.f32 %v1878_v26, %v11676_v45  ;;  %v14823_v10 = vld [vmem:[#allocation35_spill] sm:$0xff]  ;;  %v9497_v42 = vld [vmem:[#allocation11 + $0xa4] sm:$0xf0] }
 0x276   : > { %3538 = vmatpush.bf16.xpose.msrb.mxu0 %v3175_v48  ;;  %v8076_v17 = vor.u32 %v9495_v51, %v8075_v36  ;;  %vm1741_vm13 = vweird.f32 %v12641_v40  ;;  %vm1742_vm14 = vweird.f32 %v12740_v39  ;;  %v7968_v1 = vor.u32 %v9466_v14, %v7965_v35  ;;  %vm12941_vm15 = vmor %vm1731_vm11, %vm1732_vm12  ;;  %v2014_v61 = vld [vmem:[%s14783_s0 + $0x98] sm:$0xff]  ;;  %v14826_v14 = vld [vmem:[#allocation81_spill] sm:$0xff] }
 0x277   : > { %2179 = vperm.xlu2 %10006, %v2025_v28   ;;  %v1941_v54 = vadd.f32 %v1909_v32, %v11669_v59  ;;  %v1912_v16 = vmul.f32 %v1880_v33, %v11676_v45  ;;  %v1873_v43 = vmul.f32 %v1754_v50, %v14817_v46  ;;  %v1875_v25 = vmul.f32 %v1764_v11, %v14818_v8  ;;  %vm12951_vm0 = vmor %vm1741_vm13, %vm1742_vm14  ;;  %v12977_v32 = vpop.f32.mrf.mxu2  ;;  %v2006_v35 = vld [vmem:[%s14783_s0 + $0x58] sm:$0xff]  ;;  %v14827_v28 = vld [vmem:[#allocation61_spill] sm:$0xff] }
 0x278   : > { %3627 = vmatpush.bf16.xpose.msrb.mxu1 %v3176_v63  ;;  %v1730_v49 = vmul.f32 %v12701_v5, %v1729_v6  ;;  %v1740_v38 = vmul.f32 %v12740_v39, %v1739_v2  ;;  %v1943_v23 = vadd.f32 %v1911_v56, %v11669_v59  ;;  %v1942_v29 = vadd.f32 %v1910_v0, %v11681_v62  ;;  %v3183_v6 = vld [vmem:[%s14825_s20] sm:$0xff]  ;;  %v2016_v8 = vld [vmem:[%s14783_s0 + $0xa8] sm:$0xff] }
 0x279   : > { %v12929_v30 = vpop.f32.mrf.mxu0  ;;  %v8080_v31 = vor.u32 %v9494_v44, %v8077_v58  ;;  %v1874_v47 = vmul.f32 %v1754_v50, %v14823_v10  ;;  %v1876_v52 = vmul.f32 %v1764_v11, %v14824_v18  ;;  %v1944_v26 = vadd.f32 %v1912_v16, %v11681_v62  ;;  %v14828_v50 = vld [vmem:[#allocation44_spill] sm:$0xff]  ;;  %v14829_v63 = vld [vmem:[#allocation63_spill] sm:$0xff] }
 0x27a   : > { %2410 = vmatmul.bf16.gmra.mxu0 %v7964_v34  ;;  %v3173_v40 = vpack.c.bf16 %v1943_v23, %v1941_v54  ;;  %v1905_v9 = vmul.f32 %v1873_v43, %v11662_v24  ;;  %v1907_v13 = vmul.f32 %v1875_v25, %v11662_v24  ;;  %v1734_v2 = vsel %vm12941_vm15, %v12701_v5, %v1730_v49  ;;  %v2035_v34 = vpop.permute.xlu0 %2034  ;;  %v14830_v58 = vld [vmem:[#allocation47_spill] sm:$0xff]  ;;  %v9469_v43 = vld [vmem:[%s14521_s7 + $0xc4] sm:$0xf0]  ;;  %v14831_v25 = vld [vmem:[#allocation62_spill] sm:$0xff] }
 0x27b   : > { %3010 = vmatmul.bf16.gmra.mxu2 %v8076_v17  ;;  %v1744_v36 = vsel %vm12951_vm0, %v12740_v39, %v1740_v38  ;;  %2124 = vperm.xlu0 %10007, %v2014_v61   ;;  %v3174_v51 = vpack.c.bf16 %v1944_v26, %v1942_v29  ;;  %v1906_v48 = vmul.f32 %v1874_v47, %v11676_v45  ;;  %v12990_v17 = vpop.f32.mrf.mxu3  ;;  %v7971_v46 = vld [vmem:[%s14521_s7 + $0xc0] sm:$0xf]  ;;  %v8083_v49 = vld [vmem:[#allocation11 + $0xa0] sm:$0xf]  ;;  %v14832_v38 = vld [vmem:[#allocation42_spill] sm:$0xff]  ;;  %v2045_v61 = vpop.permute.xlu2 %2044  ;;  %vm4066_vm7 = vcmask 261120  }
 0x27c   : > { %2499 = vmatmul.bf16.gmra.mxu1 %v7968_v1  ;;  %v1908_v27 = vmul.f32 %v1876_v52, %v11676_v45  ;;  %v1937_v15 = vadd.f32 %v1905_v9, %v11669_v59  ;;  %v1939_v5 = vadd.f32 %v1907_v13, %v11669_v59  ;;  %v1871_v39 = vmul.f32 %v1744_v36, %v14826_v14  ;;  %v9468_v47 = vld [vmem:[%s14521_s7 + $0xc4] sm:$0xf]  ;;  %v7973_v18 = vld [vmem:[%s14521_s7 + $0xc8] sm:$0xf0] }
 0x27d   : > { %v12958_v7 = vpop.f32.mrf.mxu1  ;;  %2079 = vperm.xlu1 %10008, %v2005_v55   ;;  %v2357_v56 = vadd.f32 %v14827_v28, %v2030_v12  ;;  %v1869_v11 = vmul.f32 %v1734_v2, %v14828_v50  ;;  %v2359_v0 = vadd.f32 %v14829_v63, %v2035_v34  ;;  %v1938_v1 = vadd.f32 %v1906_v48, %v11681_v62  ;;  %v3188_v52 = vld [vmem:[%s14825_s20 + $0x28] sm:$0xff] }
 0x27e   : > { %3539 = vmatpush.bf16.xpose.msrb.mxu0 %v3173_v40  ;;  %3099 = vmatmul.bf16.gmra.mxu3 %v8080_v31  ;;  %v1940_v44 = vadd.f32 %v1908_v27, %v11681_v62  ;;  %v1872_v54 = vmul.f32 %v1744_v36, %v14830_v58  ;;  %v3171_v41 = vpack.c.bf16 %v1939_v5, %v1937_v15  ;;  %v14833_v31 = vld [vmem:[#allocation46_spill] sm:$0xff]  ;;  %v9496_v36 = vld [vmem:[#allocation11 + $0xa4] sm:$0xf] }
 0x27f   : > { %3217 = vperm.xlu2 %10006, %v3183_v6   ;;  %v13007_v55 = vadd.f32 %v14831_v25, %v2357_v56  ;;  %v13010_v23 = vadd.f32 %v14832_v38, %v2359_v0  ;;  %v1903_v29 = vmul.f32 %v1871_v39, %v11662_v24  ;;  %v1870_v10 = vmul.f32 %v1734_v2, %v14833_v31  ;;  %v2009_v5 = vld [vmem:[%s14783_s0 + $0x70] sm:$0xff]  ;;  %v13036_v14 = vpop.f32.mrf.mxu2  ;;  %v3192_v63 = vld [vmem:[%s14825_s20 + $0x48] sm:$0xff]  ;;  %v7981_v38 = vld [vmem:[%s14521_s7 + $0xd8] sm:$0xf0] }
 0x280   : > { %3628 = vmatpush.bf16.xpose.msrb.mxu1 %v3174_v51  ;;  %v7972_v12 = vor.u32 %v9469_v43, %v7971_v46  ;;  %v2364_v40 = vadd.f32 %v12619_v19, %v2045_v61  ;;  %v3172_v26 = vpack.c.bf16 %v1940_v44, %v1938_v1  ;;  %v1901_v9 = vmul.f32 %v1869_v11, %v11662_v24  ;;  %v8085_v51 = vld [vmem:[#allocation11 + $0xa8] sm:$0xf0]  ;;  %v9471_v46 = vld [vmem:[%s14521_s7 + $0xd4] sm:$0xf0]  ;;  %v2634_v43 = vld [vmem:[%s14784_s10 + $0xe8] sm:$0xff] }
 0x281   : > { %v12981_v33 = vpop.f32.mrf.mxu0  ;;  %v1904_v13 = vmul.f32 %v1872_v54, %v11676_v45  ;;  %v8084_v6 = vor.u32 %v9497_v42, %v8083_v49  ;;  %v7976_v2 = vor.u32 %v9468_v47, %v7973_v18  ;;  %v1935_v27 = vadd.f32 %v1903_v29, %v11669_v59  ;;  %v2021_v56 = vld [vmem:[%s14783_s0 + $0xd0] sm:$0xff]  ;;  %v9499_v49 = vld [vmem:[#allocation11 + $0xb4] sm:$0xf0]  ;;  %v9498_v18 = vld [vmem:[#allocation11 + $0xb4] sm:$0xf] }
 0x282   : > { %v13027_v48 = vadd.f32 %v12655_v21, %v2364_v40  ;;  %v1902_v15 = vmul.f32 %v1870_v10, %v11676_v45  ;;  %v1933_v39 = vadd.f32 %v1901_v9, %v11669_v59  ;;  %v8088_v21 = vor.u32 %v9496_v36, %v8085_v51  ;;  %v2615_v44 = vld [vmem:[%s14784_s10 + $0x50] sm:$0xff]  ;;  %v13080_v61 = vpop.permute.xlu0 %2649 }
 0x283   : > { %2134 = vperm.xlu0 %10007, %v2016_v8   ;;  %v13045_v34 = vpop.f32.mrf.mxu3  ;;  %v7979_v54 = vld [vmem:[%s14521_s7 + $0xd0] sm:$0xf]  ;;  %v8091_v25 = vld [vmem:[#allocation11 + $0xb0] sm:$0xf] }
 0x284   : > { %v3169_v50 = vpack.c.bf16 %v1935_v27, %v1933_v39  ;;  %v1934_v11 = vadd.f32 %v1902_v15, %v11681_v62  ;;  %v9470_v42 = vld [vmem:[%s14521_s7 + $0xd4] sm:$0xf]  ;;  %v7980_v29 = vor.u32 %v9471_v46, %v7979_v54  ;;  %v8092_v10 = vor.u32 %v9499_v49, %v8091_v25  ;;  %v2011_v15 = vld [vmem:[%s14783_s0 + $0x80] sm:$0xff] }
 0x285   : > { %v12995_v16 = vpop.f32.mrf.mxu1  ;;  %2084 = vperm.xlu1 %10008, %v2006_v35   ;;  %v1936_v35 = vadd.f32 %v1904_v13, %v11681_v62  ;;  %v7984_v47 = vor.u32 %v9470_v42, %v7981_v38  ;;  %v9500_v42 = vld [vmem:[#allocation11 + $0xc4] sm:$0xf]  ;;  %v8101_v38 = vld [vmem:[#allocation11 + $0xc8] sm:$0xf0] }
 0x286   : > { %3540 = vmatpush.bf16.xpose.msrb.mxu0 %v3171_v41  ;;  %v3195_v41 = vld [vmem:[%s14825_s20 + $0x60] sm:$0xff] }
 0x287   : > { %3242 = vperm.xlu2 %10006, %v3188_v52   ;;  %v3170_v0 = vpack.c.bf16 %v1936_v35, %v1934_v11  ;;  %v13067_v8 = vpop.f32.mrf.mxu2  ;;  %v8093_v52 = vld [vmem:[#allocation11 + $0xb8] sm:$0xf0]  ;;  %v8099_v11 = vld [vmem:[#allocation11 + $0xc0] sm:$0xf] }
 0x288   : > { %3629 = vmatpush.bf16.xpose.msrb.mxu1 %v3172_v26  ;;  %v2613_v26 = vld [vmem:[%s14784_s10 + $0x40] sm:$0xff]  ;;  %v8096_v9 = vor.u32 %v9498_v18, %v8093_v52  ;;  %v8104_v18 = vor.u32 %v9500_v42, %v8101_v38  ;;  %v9474_v42 = vld [vmem:[%s14521_s7 + $0xf4] sm:$0xf]  ;;  %v7997_v38 = vld [vmem:[%s14521_s7 + $0xf8] sm:$0xf0] }
 0x289   : > { %v13031_v19 = vpop.f32.mrf.mxu0 }
 0x28a   : > { %2415 = vmatmul.bf16.gmra.mxu0 %v7972_v12  ;;  %v1673_v12 = vmul.f32 %v12927_v3, %v11283_v60  ;;  %v3194_v3 = vld [vmem:[%s14825_s20 + $0x58] sm:$0xff]  ;;  %v13109_v39 = vpop.permute.xlu0 %2644 }
 0x28b   : > { %3015 = vmatmul.bf16.gmra.mxu2 %v8084_v6  ;;  %2159 = vperm.xlu0 %10007, %v2021_v56   ;;  %v13078_v31 = vpop.f32.mrf.mxu3  ;;  %v3184_v6 = vld [vmem:[%s14825_s20 + $0x8] sm:$0xff] }
 0x28c   : > { %2504 = vmatmul.bf16.gmra.mxu1 %v7976_v2  ;;  %v13094_v2 = vadd.f32 1e-05, %v1673_v12  ;;  %v9473_v56 = vld [vmem:[%s14521_s7 + $0xe4] sm:$0xf0] }
 0x28d   : > { %v13040_v28 = vpop.f32.mrf.mxu1  ;;  %2099 = vperm.xlu1 %10008, %v2009_v5   ;;  %v2050_v5 = vpop.permute.xlu2 %2049 }
 0x28e   : > { %3541 = vmatpush.bf16.xpose.msrb.mxu0 %v3169_v50  ;;  %3104 = vmatmul.bf16.gmra.mxu3 %v8088_v21  ;;  %10189 = vrsqrt.f32 %v13094_v2  ;;  %v7987_v21 = vld [vmem:[%s14521_s7 + $0xe0] sm:$0xf]  ;;  %v3186_v50 = vld [vmem:[%s14825_s20 + $0x18] sm:$0xff]  ;;  %vm1711_vm1 = vweird.f32 %v13094_v2 }
 0x28f   : > { %3262 = vperm.xlu2 %10006, %v3192_v63   ;;  %v13099_v36 = vpop.f32.mrf.mxu2  ;;  %v9501_v63 = vld [vmem:[#allocation11 + $0xc4] sm:$0xf0]  ;;  %v7988_v54 = vor.u32 %v9473_v56, %v7987_v21 }
 0x290   : > { %3630 = vmatpush.bf16.xpose.msrb.mxu1 %v3170_v0  ;;  %v9472_v0 = vld [vmem:[%s14521_s7 + $0xe4] sm:$0xf]  ;;  %v2013_v56 = vld [vmem:[%s14783_s0 + $0x90] sm:$0xff] }
 0x291   : > { %v13051_v1 = vpop.f32.mrf.mxu0 }
 0x293   : > { %2784 = vperm.xlu0 %10007, %v2634_v43   ;;  %v13102_v51 = vpop.f32.mrf.mxu3  ;;  %v8100_v43 = vor.u32 %v9501_v63, %v8099_v11 }
 0x294   : > { %v13128_v46 = vpop.eup %10189 }
 0x295   : > { %v13056_v58 = vpop.f32.mrf.mxu1  ;;  %2689 = vperm.xlu1 %10008, %v2615_v44   ;;  %v7989_v44 = vld [vmem:[%s14521_s7 + $0xe8] sm:$0xf0]  ;;  %v13143_v12 = vpop.permute.xlu2 %2059  ;;  %vm1712_vm2 = vweird.f32 %v13128_v46 }
 0x296   : > { %v7992_v49 = vor.u32 %v9472_v0, %v7989_v44  ;;  %v7995_v0 = vld [vmem:[%s14521_s7 + $0xf0] sm:$0xf]  ;;  %v9475_v44 = vld [vmem:[%s14521_s7 + $0xf4] sm:$0xf0]  ;;  %vm1713_vm3 = vmor %vm1711_vm1, %vm1712_vm2 }
 0x297   : > { %3277 = vperm.xlu2 %10006, %v3195_v41   ;;  %v13130_v25 = vpop.f32.mrf.mxu2 }
 0x299   : > { %v13084_v40 = vpop.f32.mrf.mxu0 }
 0x29a   : > { %2420 = vmatmul.bf16.gmra.mxu0 %v7980_v29  ;;  %v2619_v29 = vld [vmem:[%s14784_s10 + $0x70] sm:$0xff] }
 0x29b   : > { %3020 = vmatmul.bf16.gmra.mxu2 %v8092_v10  ;;  %3222 = vperm.xlu0 %10007, %v3184_v6   ;;  %v1706_v10 = vmul.f32 %v13128_v46, %v13094_v2 }
 0x29c   : > { %2509 = vmatmul.bf16.gmra.mxu1 %v7984_v47  ;;  %v13139_v47 = vpop.f32.mrf.mxu3 }
 0x29d   : > { %v13089_v13 = vpop.f32.mrf.mxu1  ;;  %2679 = vperm.xlu1 %10008, %v2613_v26   ;;  %v13145_v26 = vpop.permute.xlu0 %2669 }
 0x29e   : > { %14834 = vst [vmem:[#allocation39_spill] sm:$0xff] %v13089_v13  ;;  %3109 = vmatmul.bf16.gmra.mxu3 %v8096_v9  ;;  %v1707_v9 = vmul.f32 %v13128_v46, %v1706_v10  ;;  %v2367_v10 = vadd.f32 %v12709_v57, %v2050_v5 }
 0x29f   : > { %3272 = vperm.xlu2 %10006, %v3194_v3   ;;  %v13154_v11 = vpop.f32.mrf.mxu2 }
 0x2a0   : > { %v2456_v5 = vadd.f32 %v12735_v37, %v2367_v10 }
 0x2a1   : > { %v13104_v27 = vpop.f32.mrf.mxu0 }
 0x2a3   : > { %3232 = vperm.xlu0 %10007, %v3186_v50   ;;  %v1708_v50 = vmul.f32 0.5, %v1707_v9  ;;  %v7996_v9 = vor.u32 %v9475_v44, %v7995_v0 }
 0x2a5   : > { %v13111_v35 = vpop.f32.mrf.mxu1  ;;  %2109 = vperm.xlu1 %10008, %v2011_v15  }
 0x2a9   : > { %v13132_v41 = vpop.f32.mrf.mxu0 }
 0x2aa   : > { %2425 = vmatmul.bf16.gmra.mxu0 %v7988_v54  ;;  %v8107_v54 = vld [vmem:[#allocation11 + $0xd0] sm:$0xf] }
 0x2ab   : > { %3025 = vmatmul.bf16.gmra.mxu2 %v8100_v43  ;;  %v9503_v43 = vld [vmem:[#allocation11 + $0xd4] sm:$0xf0] }
 0x2ac   : > { %2514 = vmatmul.bf16.gmra.mxu1 %v7992_v49  ;;  %v13164_v49 = vpop.f32.mrf.mxu3 }
 0x2ad   : > { %v13141_v52 = vpop.f32.mrf.mxu1  ;;  %2709 = vperm.xlu1 %10008, %v2619_v29   ;;  %v1709_v29 = vsub.f32 1.5, %v1708_v50  ;;  %v2618_v50 = vld [vmem:[%s14784_s10 + $0x68] sm:$0xff] }
 0x2ae   : > { %3114 = vmatmul.bf16.gmra.mxu3 %v8104_v18  ;;  %v2655_v18 = vpop.permute.xlu2 %2654 }
 0x2af   : > { %v1630_v6 = vpop.xlane.xlu1 %1629  ;;  %v1710_v57 = vmul.f32 %v13128_v46, %v1709_v29  ;;  %v2529_v29 = vmul.f32 0.17677669, %v2456_v5  ;;  %v2974_v37 = vadd.f32 %v13099_v36, %v2655_v18  ;;  %v14840_v36 = vld [vmem:[#allocation58_spill] sm:$0xff] }
 0x2b0   : > { %v1674_v3 = vmul.f32 %v1630_v6, %v11283_v60  ;;  %v13173_v6 = vpop.permute.xlu0 %2659  ;;  %v9502_v60 = vld [vmem:[#allocation11 + $0xd4] sm:$0xf] }
 0x2b1   : > { %v13149_v21 = vpop.f32.mrf.mxu0 }
 0x2b2   : > { %v1690_v15 = vadd.f32 1e-05, %v1674_v3  ;;  %14835 = vst [vmem:[#allocation64_spill] sm:$0xff] %v13149_v21  ;;  %v8108_v3 = vor.u32 %v9503_v43, %v8107_v54  ;;  %v13186_v54 = vpop.f32.mrf.mxu2 }
 0x2b4   : > { %10191 = vrsqrt.f32 %v1690_v15  ;;  %vm1721_vm5 = vweird.f32 %v1690_v15 }
 0x2b5   : > { %v13156_v63 = vpop.f32.mrf.mxu1  ;;  %2119 = vperm.xlu1 %10008, %v2013_v56   ;;  %v8000_v56 = vor.u32 %v9474_v42, %v7997_v38  ;;  %v2525_v42 = vmul.f32 0.17677669, %v13007_v55  ;;  %v2972_v38 = vadd.f32 %v13067_v8, %v13080_v61  ;;  %v2015_v55 = vld [vmem:[%s14783_s0 + $0xa0] sm:$0xff] }
 0x2b6   : > { %14836 = vst [vmem:[#allocation65_spill] sm:$0xff] %v13156_v63  ;;  %v8109_v63 = vld [vmem:[#allocation11 + $0xd8] sm:$0xf0]  ;;  %v14839_v8 = vld [vmem:[#allocation80_spill] sm:$0xff] }
 0x2b7   : > { %v8112_v2 = vor.u32 %v9502_v60, %v8109_v63  ;;  %v2070_v63 = vpop.permute.xlu2 %2069  ;;  %v10027_v5 = vpack.i.bf16 %v2529_v29, %v2525_v42 }
 0x2b9   : > { %v13177_v13 = vpop.f32.mrf.mxu0 }
 0x2ba   : > { %v10192_v21 = vpop.eup %10191  ;;  %2430 = vmatmul.bf16.gmra.mxu0 %v7996_v9  ;;  %v1714_v9 = vsel %vm1713_vm3, %v13128_v46, %v1710_v57  ;;  %v3063_v46 = vadd.f32 %v13102_v51, %v2974_v37  ;;  %v13212_v29 = vpop.f32.mrf.mxu2 }
 0x2bb   : > { %v1716_v0 = vmul.f32 %v10192_v21, %v1690_v15  ;;  %3030 = vmatmul.bf16.gmra.mxu2 %v8108_v3  ;;  %v13193_v3 = vpop.f32.mrf.mxu3  ;;  %vm1722_vm4 = vweird.f32 %v10192_v21  ;;  %v1865_v61 = vmul.f32 %v1714_v9, %v14839_v8  ;;  %v1866_v18 = vmul.f32 %v1714_v9, %v14840_v36  ;;  %v14842_v36 = vld [vmem:[#allocation60_spill] sm:$0xff] }
 0x2bc   : > { %2519 = vmatmul.bf16.gmra.mxu1 %v8000_v56  ;;  %v3061_v56 = vadd.f32 %v13078_v31, %v2972_v38  ;;  %vm1723_vm6 = vmor %vm1721_vm5, %vm1722_vm4  ;;  %v8115_v38 = vld [vmem:[#allocation11 + $0xe0] sm:$0xf] }
 0x2bd   : > { %v13184_v44 = vpop.f32.mrf.mxu1  ;;  %v1717_v43 = vmul.f32 %v10192_v21, %v1716_v0  ;;  %2704 = vperm.xlu1 %10008, %v2618_v50   ;;  %v2090_v0 = vpop.permute.xlu0 %2089  ;;  %v1897_v9 = vmul.f32 %v1865_v61, %v11662_v24  ;;  %v1898_v15 = vmul.f32 %v1866_v18, %v11676_v45 }
 0x2be   : > { %14837 = vst [vmem:[#allocation66_spill] sm:$0xff] %v13184_v44  ;;  %3119 = vmatmul.bf16.gmra.mxu3 %v8112_v2  ;;  %v2377_v2 = vadd.f32 %v12981_v33, %v2070_v63  ;;  %v2387_v31 = vadd.f32 %v13104_v27, %v2090_v0  ;;  %v14841_v44 = vld [vmem:[#allocation59_spill] sm:$0xff]  ;;  %v3715_v42 = vpack.c.bf16 %v3061_v56, %v3061_v56  ;;  %v8117_v0 = vld [vmem:[#allocation11 + $0xe8] sm:$0xf0] }
 0x2bf   : > { %v1718_v10 = vmul.f32 0.5, %v1717_v43  ;;  %v3716_v33 = vpack.c.bf16 %v3063_v46, %v3063_v46  ;;  %v2017_v56 = vld [vmem:[%s14783_s0 + $0xb0] sm:$0xff]  ;;  %v1929_v18 = vadd.f32 %v1897_v9, %v11669_v59 }
 0x2c0   : > { %v2476_v63 = vadd.f32 %v13111_v35, %v2387_v31  ;;  %v1930_v35 = vadd.f32 %v1898_v15, %v11681_v62  ;;  %v9509_v9 = vld [vmem:[#allocation13 + $0x4] sm:$0xf0]  ;;  %v8133_v15 = vld [vmem:[#allocation13 + $0x8] sm:$0xf0] }
 0x2c1   : > { %v1719_v60 = vsub.f32 1.5, %v1718_v10  ;;  %v13196_v50 = vpop.f32.mrf.mxu0  ;;  %v9505_v10 = vld [vmem:[#allocation11 + $0xe4] sm:$0xf0] }
 0x2c2   : > { %14838 = vst [vmem:[#allocation67_spill] sm:$0xff] %v13196_v50  ;;  %v8116_v37 = vor.u32 %v9505_v10, %v8115_v38  ;;  %v2537_v31 = vmul.f32 0.17677669, %v2476_v63 }
 0x2c3   : > { %v1720_v57 = vmul.f32 %v10192_v21, %v1719_v60  ;;  %v2466_v60 = vadd.f32 %v12995_v16, %v2377_v2 }
 0x2c5   : > { %v13206_v43 = vpop.f32.mrf.mxu1  ;;  %2129 = vperm.xlu1 %10008, %v2015_v55   ;;  %v1724_v50 = vsel %vm1723_vm6, %v10192_v21, %v1720_v57  ;;  %10028 = vxpose.xlu2.b32.start [1/4] (short) (narrow) %v10027_v5, 16  ;;  %v9504_v21 = vld [vmem:[#allocation11 + $0xe4] sm:$0xf]  ;;  %v13229_v57 = vpop.permute.xlu2 %2674  ;;  %v4061_v5 = vunpack.c.l.b16 %v3716_v33  ;;  %v2533_v2 = vmul.f32 0.17677669, %v2466_v60 }
 0x2c6   : > { %v1867_v8 = vmul.f32 %v1724_v50, %v14841_v44  ;;  %v1868_v51 = vmul.f32 %v1724_v50, %v14842_v36  ;;  %v13218_v50 = vpop.f32.mrf.mxu3  ;;  %v13235_v60 = vpop.f32.mrf.mxu2 }
 0x2c7   : > { %v2040_v27 = vpop.permute.xlu1 %2039  ;;  %v10009_v33 = vpack.i.bf16 %v2537_v31, %v2533_v2 }
 0x2c8   : > { %v1899_v44 = vmul.f32 %v1867_v8, %v11662_v24  ;;  %v1900_v55 = vmul.f32 %v1868_v51, %v11676_v45  ;;  %v8120_v24 = vor.u32 %v9504_v21, %v8117_v0  ;;  %v4060_v45 = vunpack.c.l.b16 %v3715_v42  ;;  %v14843_v0 = vld [vmem:[#allocation38_spill] sm:$0xff] }
 0x2c9   : > { %v13220_v61 = vpop.f32.mrf.mxu0  ;;  %v2372_v21 = vadd.f32 %v12864_v53, %v13143_v12  ;;  %10010 = vxpose.xlu0.b32.start [1/4] (short) (narrow) %v10009_v33, 16  ;;  %v14844_v12 = vld [vmem:[#allocation43_spill] sm:$0xff] }
 0x2ca   : > { %v1931_v16 = vadd.f32 %v1899_v44, %v11669_v59  ;;  %v1932_v46 = vadd.f32 %v1900_v55, %v11681_v62  ;;  %v4063_v8 = vpack.c.b16 %v4061_v5, %v4060_v45  ;;  %v8131_v59 = vld [vmem:[#allocation13] sm:$0xf]  ;;  %v9508_v62 = vld [vmem:[#allocation13 + $0x4] sm:$0xf]  ;;  %v2362_v44 = vadd.f32 %v14843_v0, %v2040_v27 }
 0x2cb   : > { %3035 = vmatmul.bf16.gmra.mxu2 %v8116_v37  ;;  %v2526_v37 = vmul.f32 0.17677669, %v13010_v23  ;;  %v8132_v63 = vor.u32 %v9509_v9, %v8131_v59  ;;  %v2461_v53 = vadd.f32 %v12893_v20, %v2372_v21  ;;  %v8139_v9 = vld [vmem:[#allocation13 + $0x10] sm:$0xf] }
 0x2cc   : > { %v3167_v38 = vpack.c.bf16 %v1931_v16, %v1929_v18  ;;  %v3168_v10 = vpack.c.bf16 %v1932_v46, %v1930_v35  ;;  %4076 = vmatpush.bf16.msrb.mxu2 %v4063_v8  ;;  %v8136_v18 = vor.u32 %v9508_v62, %v8133_v15  ;;  %v2451_v27 = vadd.f32 %v14844_v12, %v2362_v44  ;;  %v9510_v15 = vld [vmem:[#allocation13 + $0x14] sm:$0xf] }
 0x2cd   : > { %2139 = vperm.xlu1 %10008, %v2017_v56   ;;  %v13231_v36 = vpop.f32.mrf.mxu1  ;;  %v2623_v56 = vld [vmem:[%s14784_s10 + $0x90] sm:$0xff]  ;;  %v13248_v35 = vpop.permute.xlu2 %2664  ;;  %v2531_v5 = vmul.f32 0.17677669, %v2461_v53 }
 0x2ce   : > { %3542 = vmatpush.bf16.xpose.msrb.mxu0 %v3167_v38  ;;  %3631 = vmatpush.bf16.xpose.msrb.mxu1 %v3168_v10  ;;  %v2527_v2 = vmul.f32 0.17677669, %v2451_v27  ;;  %v2624_v38 = vld [vmem:[%s14784_s10 + $0x98] sm:$0xff]  ;;  %v13260_v20 = vpop.f32.mrf.mxu2 }
 0x2cf   : > { %v2055_v51 = vpop.permute.xlu1 %2054  ;;  %3124 = vmatmul.bf16.gmra.mxu3 %v8120_v24  ;;  %v2969_v24 = vadd.f32 %v13036_v14, %v13109_v39 }
 0x2d0   : > { %v2369_v42 = vadd.f32 %v12802_v4, %v2055_v51  ;;  %v13244_v4 = vpop.f32.mrf.mxu3  ;;  %v10031_v59 = vpack.i.bf16 %v2531_v5, %v2527_v2  ;;  %v9511_v51 = vld [vmem:[#allocation13 + $0x14] sm:$0xf0] }
 0x2d1   : > { %v13246_v23 = vpop.f32.mrf.mxu0  ;;  %v3058_v10 = vadd.f32 %v13045_v34, %v2969_v24  ;;  %v2528_v34 = vmul.f32 0.17677669, %v13027_v48  ;;  %v8140_v21 = vor.u32 %v9511_v51, %v8139_v9 }
 0x2d2   : > { %v2458_v55 = vadd.f32 %v12820_v22, %v2369_v42  ;;  %v8141_v42 = vld [vmem:[#allocation13 + $0x18] sm:$0xf0] }
 0x2d3   : > { %v3714_v33 = vpack.c.bf16 %v3058_v10, %v3058_v10  ;;  %v2105_v10 = vpop.permute.xlu0 %2104 }
 0x2d4   : > { %v2530_v16 = vmul.f32 0.17677669, %v2458_v55  ;;  %v2621_v55 = vld [vmem:[%s14784_s10 + $0x80] sm:$0xff] }
 0x2d5   : > { %2729 = vperm.xlu1 %10008, %v2623_v56   ;;  %3543 = vmatmul.bf16.vlgmr.msrb.gmra.mxu0 %v8132_v63  ;;  %v2095_v62 = vpop.permute.xlu2 %2094  ;;  %v8144_v56 = vor.u32 %v9510_v15, %v8141_v42 }
 0x2d6   : > { %v10029_v22 = vpack.i.bf16 %v2530_v16, %v2526_v37  ;;  %3632 = vmatmul.bf16.vlgmr.msrb.gmra.mxu1 %v8136_v18  ;;  %v13254_v45 = vpop.f32.mrf.mxu1  ;;  %v2389_v0 = vadd.f32 %v13132_v41, %v2095_v62  ;;  %v4059_v16 = vunpack.c.l.b16 %v3714_v33  ;;  %v13277_v53 = vpop.f32.mrf.mxu2  ;;  %v2982_v41 = vadd.f32 %v13186_v54, %v13145_v26  ;;  %v2622_v26 = vld [vmem:[%s14784_s10 + $0x88] sm:$0xff] }
 0x2d7   : > { %v2065_v46 = vpop.permute.xlu1 %2064 }
 0x2d8   : > { %10030 = vxpose.xlu2.b32.cont [2/4] (short) (narrow) %v10029_v22, 16  ;;  %v2374_v31 = vadd.f32 %v12929_v30, %v2065_v46  ;;  %v13263_v8 = vpop.f32.mrf.mxu3  ;;  %v3071_v54 = vadd.f32 %v13193_v3, %v2982_v41  ;;  %v14845_v41 = vld [vmem:[#allocation39_spill] sm:$0xff] }
 0x2d9   : > { %v13266_v39 = vpop.f32.mrf.mxu0 }
 0x2da   : > { %v2463_v14 = vadd.f32 %v12958_v7, %v2374_v31  ;;  %v3719_v9 = vpack.c.bf16 %v3071_v54, %v3071_v54 }
 0x2dc   : > { %v2532_v7 = vmul.f32 0.17677669, %v2463_v14  ;;  %v9513_v14 = vld [vmem:[#allocation13 + $0x24] sm:$0xf0] }
 0x2dd   : > { %2734 = vperm.xlu1 %10008, %v2624_v38  }
 0x2de   : > { %v13268_v37 = vpop.f32.mrf.mxu1  ;;  %v10033_v48 = vpack.i.bf16 %v2532_v7, %v2528_v34 }
 0x2df   : > { %v2640_v30 = vpop.permute.xlu1 %2639 }
 0x2e0   : > { %v2967_v63 = vadd.f32 %v12977_v32, %v2640_v30  ;;  %10032 = vxpose.xlu2.b32.cont [3/4] (short) (narrow) %v10031_v59, 16  ;;  %v2478_v32 = vadd.f32 %v13141_v52, %v2389_v0  ;;  %v13287_v5 = vpop.f32.mrf.mxu3  ;;  %v2993_v30 = vpop.f32.mrf.mxu2  ;;  %v4095_v0 = vunpack.c.l.b16 %v3719_v9  ;;  %v14847_v9 = vld [vmem:[#allocation65_spill] sm:$0xff] }
 0x2e2   : > { %v3056_v44 = vadd.f32 %v12990_v17, %v2967_v63  ;;  %v2984_v17 = vadd.f32 %v13212_v29, %v13229_v57  ;;  %v2538_v2 = vmul.f32 0.17677669, %v2478_v32  ;;  %v2977_v29 = vadd.f32 %v13130_v25, %v13173_v6  ;;  %v9512_v25 = vld [vmem:[#allocation13 + $0x24] sm:$0xf]  ;;  %v8149_v6 = vld [vmem:[#allocation13 + $0x28] sm:$0xf0] }
 0x2e3   : > { %v2979_v57 = vadd.f32 %v13154_v11, %v13248_v35  ;;  %v8152_v63 = vor.u32 %v9512_v25, %v8149_v6 }
 0x2e4   : > { %v3713_v18 = vpack.c.bf16 %v3056_v44, %v3056_v44  ;;  %v3066_v51 = vadd.f32 %v13139_v47, %v2977_v29  ;;  %v2019_v47 = vld [vmem:[%s14783_s0 + $0xc0] sm:$0xff] }
 0x2e5   : > { %2719 = vperm.xlu1 %10008, %v2621_v55   ;;  %3548 = vmatmul.bf16.gmra.mxu0 %v8140_v21  ;;  %v3068_v3 = vadd.f32 %v13164_v49, %v2979_v57 }
 0x2e6   : > { %3637 = vmatmul.bf16.gmra.mxu1 %v8144_v56  ;;  %v4058_v12 = vunpack.c.l.b16 %v3713_v18  ;;  %v3717_v34 = vpack.c.bf16 %v3066_v51, %v3066_v51  ;;  %v2695_v18 = vpop.permute.xlu0 %2694 }
 0x2e7   : > { %v2075_v27 = vpop.permute.xlu1 %2074  ;;  %v13284_v22 = vpop.f32.mrf.mxu0  ;;  %v3718_v21 = vpack.c.bf16 %v3068_v3, %v3068_v3  ;;  %v2994_v54 = vadd.f32 %v2993_v30, %v2695_v18 }
 0x2e8   : > { %v2379_v46 = vadd.f32 %v13031_v19, %v2075_v27  ;;  %10034 = vxpose.xlu2.b32.end [4/4] (short) (narrow) %v10033_v48, 16  ;;  %v4062_v24 = vpack.c.b16 %v4059_v16, %v4058_v12  ;;  %v3073_v19 = vadd.f32 %v13218_v50, %v2984_v17  ;;  %v3082_v49 = vpop.f32.mrf.mxu3  ;;  %v4093_v55 = vunpack.c.l.b16 %v3717_v34  ;;  %v13315_v32 = vpop.f32.mrf.mxu2  ;;  %v2020_v27 = vld [vmem:[%s14783_s0 + $0xc8] sm:$0xff] }
 0x2e9   : > { %v13289_v52 = vpop.f32.mrf.mxu1  ;;  %v4094_v56 = vunpack.c.l.b16 %v3718_v21  ;;  %v3083_v30 = vadd.f32 %v3082_v49, %v2994_v54 }
 0x2ea   : > { %v2468_v31 = vadd.f32 %v13040_v28, %v2379_v46  ;;  %4077 = vmatpush.bf16.msrb.mxu2 %v4062_v24  ;;  %v8147_v28 = vld [vmem:[#allocation13 + $0x20] sm:$0xf]  ;;  %v3720_v62 = vpack.c.bf16 %v3073_v19, %v3073_v19  ;;  %v8155_v24 = vld [vmem:[#allocation13 + $0x30] sm:$0xf] }
 0x2eb   : > { %v8148_v35 = vor.u32 %v9513_v14, %v8147_v28  ;;  %v4097_v48 = vpack.c.b16 %v4094_v56, %v4093_v55  ;;  %v14846_v19 = vld [vmem:[#allocation64_spill] sm:$0xff] }
 0x2ec   : > { %v2534_v38 = vmul.f32 0.17677669, %v2468_v31  ;;  %v4096_v7 = vunpack.c.l.b16 %v3720_v62  ;;  %v2627_v62 = vld [vmem:[%s14784_s10 + $0xb0] sm:$0xff] }
 0x2ed   : > { %2724 = vperm.xlu1 %10008, %v2622_v26   ;;  %v9514_v26 = vld [vmem:[#allocation13 + $0x34] sm:$0xf] }
 0x2ee   : > { %v10011_v59 = vpack.i.bf16 %v2538_v2, %v2534_v38  ;;  %v4098_v44 = vpack.c.b16 %v4096_v7, %v4095_v0  ;;  %v9515_v2 = vld [vmem:[#allocation13 + $0x34] sm:$0xf0]  ;;  %v2685_v28 = vpop.permute.xlu0 %2684 }
 0x2ef   : > { %v2080_v15 = vpop.permute.xlu1 %2079  ;;  %v13303_v50 = vpop.f32.mrf.mxu0  ;;  %v8156_v38 = vor.u32 %v9515_v2, %v8155_v24  ;;  %v2989_v34 = vadd.f32 %v13260_v20, %v2685_v28  ;;  %v9516_v24 = vld [vmem:[#allocation13 + $0x44] sm:$0xf]  ;;  %v8165_v2 = vld [vmem:[#allocation13 + $0x48] sm:$0xf0] }
 0x2f0   : > { %v2382_v11 = vadd.f32 %v13051_v1, %v2080_v15  ;;  %10012 = vxpose.xlu0.b32.cont [2/4] (short) (narrow) %v10011_v59, 16  ;;  %4110 = vmatpush.bf16.msrb.mxu3 %v4098_v44  ;;  %v13323_v46 = vpop.f32.mrf.mxu3  ;;  %v2394_v59 = vadd.f32 %v13177_v13, %v2105_v10  ;;  %v13335_v15 = vpop.f32.mrf.mxu2 }
 0x2f1   : > { %v13306_v42 = vpop.f32.mrf.mxu1  ;;  %v3078_v56 = vadd.f32 %v13263_v8, %v2989_v34 }
 0x2f2   : > { %v2471_v33 = vadd.f32 %v13056_v58, %v2382_v11  ;;  %v14848_v11 = vld [vmem:[#allocation66_spill] sm:$0xff] }
 0x2f4   : > { %4111 = vmatpush.bf16.msrb.mxu3 %v4097_v48  ;;  %v2535_v25 = vmul.f32 0.17677669, %v2471_v33 }
 0x2f5   : > { %2149 = vperm.xlu1 %10008, %v2019_v47   ;;  %3553 = vmatmul.bf16.gmra.mxu0 %v8148_v35  ;;  %v2483_v35 = vadd.f32 %v14848_v11, %v2394_v59  ;;  %v8168_v59 = vor.u32 %v9516_v24, %v8165_v2  ;;  %v2626_v11 = vld [vmem:[%s14784_s10 + $0xa8] sm:$0xff] }
 0x2f6   : > { %3642 = vmatmul.bf16.gmra.mxu1 %v8152_v63  ;;  %v3724_v63 = vpack.c.bf16 %v3083_v30, %v3083_v30  ;;  %v13351_v18 = vpop.permute.xlu0 %2114 }
 0x2f7   : > { %v2085_v1 = vpop.permute.xlu1 %2084  ;;  %v13312_v58 = vpop.f32.mrf.mxu0  ;;  %v2540_v49 = vmul.f32 0.17677669, %v2483_v35 }
 0x2f8   : > { %v2384_v16 = vadd.f32 %v13084_v40, %v2085_v1  ;;  %v8157_v40 = vld [vmem:[#allocation13 + $0x38] sm:$0xf0]  ;;  %v13338_v10 = vpop.f32.mrf.mxu3  ;;  %v2628_v1 = vld [vmem:[%s14784_s10 + $0xb8] sm:$0xff]  ;;  %v4130_v55 = vunpack.c.l.b16 %v3724_v63 }
 0x2f9   : > { %v13317_v12 = vpop.f32.mrf.mxu1  ;;  %v8160_v3 = vor.u32 %v9514_v26, %v8157_v40  ;;  %v9519_v63 = vld [vmem:[#allocation13 + $0x54] sm:$0xf0] }
 0x2fa   : > { %v2473_v17 = vadd.f32 %v14845_v41, %v2384_v16  ;;  %v3001_v16 = vpop.f32.mrf.mxu2  ;;  %v8163_v41 = vld [vmem:[#allocation13 + $0x40] sm:$0xf] }
 0x2fc   : > { %v2536_v33 = vmul.f32 0.17677669, %v2473_v17  ;;  %v9517_v17 = vld [vmem:[#allocation13 + $0x44] sm:$0xf0] }
 0x2fd   : > { %2154 = vperm.xlu1 %10008, %v2020_v27   ;;  %v8164_v54 = vor.u32 %v9517_v17, %v8163_v41  ;;  %v13376_v17 = vpop.permute.xlu2 %2144 }
 0x2ff   : > { %v2100_v31 = vpop.permute.xlu1 %2099  ;;  %v13325_v29 = vpop.f32.mrf.mxu0 }
 0x300   : > { %v2392_v57 = vadd.f32 %v14846_v19, %v2100_v31  ;;  %v3090_v8 = vpop.f32.mrf.mxu3 }
 0x301   : > { %v13329_v14 = vpop.f32.mrf.mxu1 }
 0x302   : > { %v2481_v51 = vadd.f32 %v14847_v9, %v2392_v57 }
 0x304   : > { %v2539_v6 = vmul.f32 0.17677669, %v2481_v51  ;;  %v2715_v51 = vpop.permute.xlu0 %2714 }
 0x305   : > { %2749 = vperm.xlu1 %10008, %v2627_v62   ;;  %3558 = vmatmul.bf16.gmra.mxu0 %v8156_v38  ;;  %v2625_v38 = vld [vmem:[%s14784_s10 + $0xa0] sm:$0xff] }
 0x306   : > { %v10013_v13 = vpack.i.bf16 %v2539_v6, %v2535_v25  ;;  %3647 = vmatmul.bf16.gmra.mxu1 %v8160_v3 }
 0x307   : > { %v2690_v47 = vpop.permute.xlu1 %2689  ;;  %v13341_v21 = vpop.f32.mrf.mxu0 }
 0x308   : > { %v2992_v0 = vadd.f32 %v13277_v53, %v2690_v47  ;;  %10014 = vxpose.xlu0.b32.cont [3/4] (short) (narrow) %v10013_v13, 16  ;;  %v10015_v53 = vpack.i.bf16 %v2540_v49, %v2536_v33  ;;  %v3092_v35 = vpop.f32.mrf.mxu3  ;;  %v8171_v47 = vld [vmem:[#allocation13 + $0x50] sm:$0xf]  ;;  %v8173_v49 = vld [vmem:[#allocation13 + $0x58] sm:$0xf0] }
 0x309   : > { %v13344_v7 = vpop.f32.mrf.mxu1 }
 0x30a   : > { %v3081_v44 = vadd.f32 %v13287_v5, %v2992_v0  ;;  %v3722_v5 = vpack.c.bf16 %v3078_v56, %v3078_v56  ;;  %v9518_v0 = vld [vmem:[#allocation13 + $0x54] sm:$0xf] }
 0x30c   : > { %v3723_v20 = vpack.c.bf16 %v3081_v44, %v3081_v44  ;;  %v4128_v28 = vunpack.c.l.b16 %v3722_v5 }
 0x30d   : > { %2754 = vperm.xlu1 %10008, %v2628_v1   ;;  %v8172_v1 = vor.u32 %v9519_v63, %v8171_v47  ;;  %v14849_v47 = vld [vmem:[#allocation67_spill] sm:$0xff] }
 0x30e   : > { %v4129_v48 = vunpack.c.l.b16 %v3723_v20 }
 0x30f   : > { %v2680_v27 = vpop.permute.xlu1 %2679  ;;  %v13353_v26 = vpop.f32.mrf.mxu0 }
 0x310   : > { %v4132_v31 = vpack.c.b16 %v4130_v55, %v4129_v48  ;;  %v2987_v40 = vadd.f32 %v13235_v60, %v2680_v27  ;;  %10016 = vxpose.xlu0.b32.end [4/4] (short) (narrow) %v10015_v53, 16  ;;  %v3003_v60 = vpop.f32.mrf.mxu2  ;;  %v2700_v55 = vpop.permute.xlu0 %2699  ;;  %v2022_v53 = vld [vmem:[%s14783_s0 + $0xd8] sm:$0xff]  ;;  %v8176_v48 = vor.u32 %v9518_v0, %v8173_v49 }
 0x311   : > { %v13356_v19 = vpop.f32.mrf.mxu1  ;;  %v3004_v30 = vadd.f32 %v3003_v60, %v2715_v51  ;;  %v2997_v5 = vadd.f32 %v13315_v32, %v2700_v55  ;;  %v9520_v51 = vld [vmem:[#allocation13 + $0x64] sm:$0xf] }
 0x312   : > { %v3076_v57 = vadd.f32 %v13244_v4, %v2987_v40  ;;  %4144 = vmatpush.bf16.msra.mxu2 %v4132_v31  ;;  %v2023_v40 = vld [vmem:[%s14783_s0 + $0xe0] sm:$0xff] }
 0x313   : > { %v3093_v13 = vadd.f32 %v3092_v35, %v3004_v30 }
 0x314   : > { %v3721_v9 = vpack.c.bf16 %v3076_v57, %v3076_v57 }
 0x315   : > { %2739 = vperm.xlu1 %10008, %v2625_v38   ;;  %3563 = vmatmul.bf16.gmra.mxu0 %v8164_v54  ;;  %v3728_v33 = vpack.c.bf16 %v3093_v13, %v3093_v13 }
 0x316   : > { %v4127_v62 = vunpack.c.l.b16 %v3721_v9  ;;  %3652 = vmatmul.bf16.gmra.mxu1 %v8168_v59  ;;  %v13391_v59 = vpop.permute.xlu2 %2179  ;;  %v9521_v9 = vld [vmem:[#allocation13 + $0x64] sm:$0xf0] }
 0x317   : > { %v2110_v3 = vpop.permute.xlu1 %2109  ;;  %v13362_v25 = vpop.f32.mrf.mxu0  ;;  %v4164_v27 = vunpack.c.l.b16 %v3728_v33 }
 0x318   : > { %v4131_v6 = vpack.c.b16 %v4128_v28, %v4127_v62  ;;  %v13385_v54 = vpop.permute.xlu0 %2124  ;;  %v8179_v28 = vld [vmem:[#allocation13 + $0x60] sm:$0xf]  ;;  %v8181_v62 = vld [vmem:[#allocation13 + $0x68] sm:$0xf0]  ;;  %v2397_v63 = vadd.f32 %v14849_v47, %v2110_v3 }
 0x319   : > { %v13364_v4 = vpop.f32.mrf.mxu1  ;;  %v8184_v35 = vor.u32 %v9520_v51, %v8181_v62  ;;  %v8125_v51 = vld [vmem:[#allocation11 + $0xf8] sm:$0xf0] }
 0x31a   : > { %4145 = vmatpush.bf16.msra.mxu2 %v4131_v6  ;;  %v8180_v6 = vor.u32 %v9521_v9, %v8179_v28  ;;  %v9507_v28 = vld [vmem:[#allocation11 + $0xf4] sm:$0xf0] }
 0x31d   : > { %2744 = vperm.xlu1 %10008, %v2626_v11   ;;  %v2024_v11 = vld [vmem:[%s14783_s0 + $0xe8] sm:$0xff] }
 0x31e   : > { %v3218_v55 = vpop.permute.xlu2 %3217 }
 0x31f   : > { %v2710_v34 = vpop.permute.xlu1 %2709  ;;  %v13369_v56 = vpop.f32.mrf.mxu0 }
 0x320   : > { %v3002_v44 = vadd.f32 %v3001_v16, %v2710_v34  ;;  %v2135_v0 = vpop.permute.xlu0 %2134 }
 0x321   : > { %v13374_v41 = vpop.f32.mrf.mxu1 }
 0x322   : > { %v3091_v20 = vadd.f32 %v3090_v8, %v3002_v44  ;;  %v3086_v8 = vadd.f32 %v13323_v46, %v2997_v5 }
 0x324   : > { %v3727_v24 = vpack.c.bf16 %v3091_v20, %v3091_v20  ;;  %v3725_v60 = vpack.c.bf16 %v3086_v8, %v3086_v8  ;;  %v2486_v20 = vadd.f32 %v13206_v43, %v2397_v63 }
 0x325   : > { %2164 = vperm.xlu1 %10008, %v2022_v53   ;;  %3568 = vmatmul.bf16.gmra.mxu0 %v8172_v1 }
 0x326   : > { %v4163_v2 = vunpack.c.l.b16 %v3727_v24  ;;  %3657 = vmatmul.bf16.gmra.mxu1 %v8176_v48  ;;  %v4161_v13 = vunpack.c.l.b16 %v3725_v60  ;;  %v13408_v48 = vpop.f32.mrf.mxu2  ;;  %v13422_v62 = vpop.permute.xlu2 %3242  ;;  %v2631_v60 = vld [vmem:[%s14784_s10 + $0xd0] sm:$0xff] }
 0x327   : > { %v13378_v16 = vpop.permute.xlu1 %2119  ;;  %v13387_v57 = vpop.f32.mrf.mxu0 }
 0x328   : > { %v4166_v31 = vpack.c.b16 %v4164_v27, %v4163_v2  ;;  %v2541_v2 = vmul.f32 0.17677669, %v2486_v20 }
 0x329   : > { %v13389_v38 = vpop.f32.mrf.mxu1 }
 0x32a   : > { %4178 = vmatpush.bf16.msra.mxu3 %v4166_v31 }
 0x32d   : > { %2169 = vperm.xlu1 %10008, %v2023_v40  }
 0x32f   : > { %v2705_v32 = vpop.permute.xlu1 %2704  ;;  %v13399_v49 = vpop.f32.mrf.mxu0 }
 0x330   : > { %v2999_v30 = vadd.f32 %v13335_v15, %v2705_v32  ;;  %v2399_v15 = vadd.f32 %v13220_v61, %v13351_v18  ;;  %v2026_v61 = vld [vmem:[%s14783_s0 + $0xf8] sm:$0xff]  ;;  %v13415_v18 = vpop.f32.mrf.mxu3 }
 0x331   : > { %v13404_v44 = vpop.f32.mrf.mxu1 }
 0x332   : > { %v3088_v46 = vadd.f32 %v13338_v10, %v2999_v30  ;;  %v2409_v10 = vadd.f32 %v13303_v50, %v2135_v0  ;;  %v2488_v50 = vadd.f32 %v13231_v36, %v2399_v15  ;;  %v9506_v36 = vld [vmem:[#allocation11 + $0xf4] sm:$0xf]  ;;  %v2404_v0 = vadd.f32 %v13266_v39, %v13385_v54 }
 0x333   : > { %v8128_v30 = vor.u32 %v9506_v36, %v8125_v51  ;;  %v9523_v36 = vld [vmem:[#allocation13 + $0x74] sm:$0xf0] }
 0x334   : > { %v3726_v34 = vpack.c.bf16 %v3088_v46, %v3088_v46  ;;  %v2498_v24 = vadd.f32 %v13306_v42, %v2409_v10  ;;  %v2542_v5 = vmul.f32 0.17677669, %v2488_v50  ;;  %v2493_v10 = vadd.f32 %v13268_v37, %v2404_v0 }
 0x335   : > { %2174 = vperm.xlu1 %10008, %v2024_v11   ;;  %3573 = vmatmul.bf16.gmra.mxu0 %v8180_v6  ;;  %v13428_v6 = vpop.f32.mrf.mxu2  ;;  %v2402_v11 = vadd.f32 %v13246_v23, %v13378_v16  ;;  %v2414_v23 = vadd.f32 %v13325_v29, %v13376_v17 }
 0x336   : > { %v4162_v33 = vunpack.c.l.b16 %v3726_v34  ;;  %3662 = vmatmul.bf16.gmra.mxu1 %v8184_v35  ;;  %v2546_v31 = vmul.f32 0.17677669, %v2498_v24  ;;  %3129 = vmatmul.bf16.gmra.mxu3 %v8128_v30  ;;  %v2544_v54 = vmul.f32 0.17677669, %v2493_v10  ;;  %v9522_v30 = vld [vmem:[#allocation13 + $0x74] sm:$0xf] }
 0x337   : > { %v2130_v1 = vpop.permute.xlu1 %2129  ;;  %v13418_v8 = vpop.f32.mrf.mxu0 }
 0x338   : > { %v2407_v3 = vadd.f32 %v13284_v22, %v2130_v1  ;;  %v4165_v53 = vpack.c.b16 %v4162_v33, %v4161_v13  ;;  %v10047_v46 = vpack.i.bf16 %v2546_v31, %v2542_v5  ;;  %v13432_v35 = vpop.f32.mrf.mxu3  ;;  %v2632_v33 = vld [vmem:[%s14784_s10 + $0xd8] sm:$0xff]  ;;  %v2503_v1 = vadd.f32 %v13329_v14, %v2414_v23 }
 0x339   : > { %v13420_v9 = vpop.f32.mrf.mxu1 }
 0x33a   : > { %v2496_v27 = vadd.f32 %v13289_v52, %v2407_v3  ;;  %4179 = vmatpush.bf16.msra.mxu3 %v4165_v53  ;;  %v8123_v52 = vld [vmem:[#allocation11 + $0xf0] sm:$0xf]  ;;  %v2548_v29 = vmul.f32 0.17677669, %v2503_v1  ;;  %v2629_v53 = vld [vmem:[%s14784_s10 + $0xc0] sm:$0xff] }
 0x33b   : > { %v8124_v32 = vor.u32 %v9507_v28, %v8123_v52 }
 0x33c   : > { %v2545_v43 = vmul.f32 0.17677669, %v2496_v27  ;;  %v10051_v24 = vpack.i.bf16 %v2548_v29, %v2544_v54 }
 0x33d   : > { %2184 = vperm.xlu1 %10008, %v2026_v61   ;;  %3040 = vmatmul.bf16.gmra.mxu2 %v8124_v32  ;;  %v8187_v32 = vld [vmem:[#allocation13 + $0x70] sm:$0xf] }
 0x33e   : > { %v10045_v22 = vpack.i.bf16 %v2545_v43, %v2541_v2 }
 0x33f   : > { %v2140_v40 = vpop.permute.xlu1 %2139  ;;  %v13436_v63 = vpop.f32.mrf.mxu0 }
 0x340   : > { %10046 = vxpose.xlu2.b32.start [1/4] (short) (narrow) %v10045_v22, 16  ;;  %v2412_v42 = vadd.f32 %v13312_v58, %v2140_v40  ;;  %v2491_v58 = vadd.f32 %v13254_v45, %v2402_v11  ;;  %v3011_v45 = vpop.f32.mrf.mxu2  ;;  %v3100_v3 = vpop.f32.mrf.mxu3  ;;  %v2630_v22 = vld [vmem:[%s14784_s10 + $0xc8] sm:$0xff]  ;;  %v2635_v40 = vld [vmem:[%s14784_s10 + $0xf0] sm:$0xff]  ;;  %v2636_v11 = vld [vmem:[%s14784_s10 + $0xf8] sm:$0xff] }
 0x341   : > { %v13438_v34 = vpop.f32.mrf.mxu1 }
 0x342   : > { %v2501_v13 = vadd.f32 %v13317_v12, %v2412_v42  ;;  %v13447_v12 = vpop.permute.xlu2 %3262  ;;  %v2543_v15 = vmul.f32 0.17677669, %v2491_v58 }
 0x344   : > { %v2547_v16 = vmul.f32 0.17677669, %v2501_v13 }
 0x345   : > { %2769 = vperm.xlu1 %10008, %v2631_v60   ;;  %v8188_v60 = vor.u32 %v9523_v36, %v8187_v32 }
 0x346   : > { %v10049_v20 = vpack.i.bf16 %v2547_v16, %v2543_v15 }
 0x347   : > { %v2730_v47 = vpop.permute.xlu1 %2729  ;;  %3578 = vmatmul.bf16.gmra.mxu0 %v8188_v60 }
 0x348   : > { %10048 = vxpose.xlu2.b32.cont [2/4] (short) (narrow) %v10047_v46, 16  ;;  %v3013_v14 = vpop.f32.mrf.mxu2  ;;  %v3102_v43 = vpop.f32.mrf.mxu3  ;;  %v8189_v46 = vld [vmem:[#allocation13 + $0x78] sm:$0xf0]  ;;  %v3012_v0 = vadd.f32 %v3011_v45, %v2730_v47 }
 0x349   : > { %v8192_v58 = vor.u32 %v9522_v30, %v8189_v46 }
 0x34a   : > { %v13456_v37 = vpop.permute.xlu2 %3277 }
 0x34b   : > { %3667 = vmatmul.bf16.gmra.mxu1 %v8192_v58 }
 0x34d   : > { %2774 = vperm.xlu1 %10008, %v2632_v33  }
 0x34f   : > { %v2735_v39 = vpop.permute.xlu1 %2734 }
 0x350   : > { %10050 = vxpose.xlu2.b32.cont [3/4] (short) (narrow) %v10049_v20, 16  ;;  %v13468_v52 = vpop.f32.mrf.mxu3  ;;  %v3014_v51 = vadd.f32 %v3013_v14, %v2735_v39  ;;  %v3101_v20 = vadd.f32 %v3100_v3, %v3012_v0  ;;  %v3187_v0 = vld [vmem:[%s14825_s20 + $0x20] sm:$0xff] }
 0x352   : > { %v3544_v17 = vpop.f32.mrf.mxu0  ;;  %v13461_v31 = vpop.permute.xlu2 %3272  ;;  %v3103_v33 = vadd.f32 %v3102_v43, %v3014_v51 }
 0x353   : > { %v3545_v27 = vadd.f32 %v3544_v17, %v3218_v55  ;;  %v3633_v61 = vpop.f32.mrf.mxu1  ;;  %v13463_v55 = vpop.f32.mrf.mxu2 }
 0x354   : > { %v3732_v29 = vpack.c.bf16 %v3103_v33, %v3103_v33 }
 0x355   : > { %v13454_v50 = vadd.f32 %v3633_v61, %v3545_v27  ;;  %2759 = vperm.xlu1 %10008, %v2629_v53   ;;  %v2633_v27 = vld [vmem:[%s14784_s10 + $0xe0] sm:$0xff] }
 0x357   : > { %v2720_v2 = vpop.permute.xlu1 %2719 }
 0x358   : > { %10052 = vxpose.xlu2.b32.end [4/4] (short) (narrow) %v10051_v24, 16  ;;  %v13477_v16 = vpop.f32.mrf.mxu3  ;;  %v3007_v39 = vadd.f32 %v13408_v48, %v2720_v2  ;;  %v3731_v24 = vpack.c.bf16 %v3101_v20, %v3101_v20  ;;  %v13488_v2 = vpop.permute.xlu0 %2159 }
 0x35b   : > { %v13475_v13 = vpop.f32.mrf.mxu2 }
 0x35d   : > { %2764 = vperm.xlu1 %10008, %v2630_v22  }
 0x35f   : > { %v2725_v5 = vpop.permute.xlu1 %2724 }
 0x360   : > { %v3009_v10 = vadd.f32 %v13428_v6, %v2725_v5  ;;  %v3096_v6 = vadd.f32 %v13415_v18, %v3007_v39  ;;  %v4198_v5 = vunpack.c.l.b16 %v3732_v29  ;;  %v3110_v32 = vpop.f32.mrf.mxu3 }
 0x362   : > { %v3098_v47 = vadd.f32 %v13432_v35, %v3009_v10  ;;  %v3729_v60 = vpack.c.bf16 %v3096_v6, %v3096_v6 }
 0x363   : > { %v3021_v3 = vpop.f32.mrf.mxu2 }
 0x364   : > { %v4195_v33 = vunpack.c.l.b16 %v3729_v60 }
 0x365   : > { %2789 = vperm.xlu1 %10008, %v2635_v40   ;;  %v3730_v40 = vpack.c.bf16 %v3098_v47, %v3098_v47 }
 0x367   : > { %v13470_v28 = vpop.permute.xlu1 %2149 }
 0x369   : > { %v10035_v42 = vpop.trf.xlu2 }
 0x36a   : > { %v10039_v23 = vunpack.i.h.bf16 %v10035_v42  ;;  %v10036_v15 = vunpack.i.l.bf16 %v10035_v42  ;;  %v4197_v42 = vunpack.c.l.b16 %v3731_v24 }
 0x36b   : > { %v3023_v20 = vpop.f32.mrf.mxu2 }
 0x36c   : > { %v4035_v54 = vpack.c.bf16 %v10039_v23, %v10039_v23  ;;  %v4033_v17 = vpack.c.bf16 %v10036_v15, %v10036_v15  ;;  %v4200_v18 = vpack.c.b16 %v4198_v5, %v4197_v42  ;;  %v3189_v23 = vld [vmem:[%s14825_s20 + $0x30] sm:$0xff]  ;;  %v3196_v5 = vld [vmem:[%s14825_s20 + $0x68] sm:$0xff]  ;;  %v3198_v42 = vld [vmem:[%s14825_s20 + $0x78] sm:$0xff] }
 0x36d   : > { %2794 = vperm.xlu1 %10008, %v2636_v11   ;;  %v4196_v11 = vunpack.c.l.b16 %v3730_v40 }
 0x36e   : > { %v4086_v14 = vunpack.c.l.b16 %v4035_v54  ;;  %v4051_v22 = vunpack.c.l.b16 %v4033_v17  ;;  %v13498_v54 = vpop.permute.xlu0 %2784  ;;  %v3112_v17 = vpop.f32.mrf.mxu3 }
 0x36f   : > { %v13480_v1 = vpop.permute.xlu1 %2154  ;;  %v4199_v10 = vpack.c.b16 %v4196_v11, %v4195_v33 }
 0x371   : > { %v10040_v53 = vpop.trf.xlu2 }
 0x372   : > { %v10044_v45 = vunpack.i.h.bf16 %v10040_v53  ;;  %v10041_v61 = vunpack.i.l.bf16 %v10040_v53 }
 0x373   : > { %v3026_v11 = vpop.f32.mrf.mxu2 }
 0x374   : > { %v4036_v43 = vpack.c.bf16 %v10044_v45, %v10044_v45  ;;  %v4034_v48 = vpack.c.bf16 %v10041_v61, %v10041_v61  ;;  %v3185_v45 = vld [vmem:[%s14825_s20 + $0x10] sm:$0xff] }
 0x375   : > { %2779 = vperm.xlu1 %10008, %v2633_v27   ;;  %v3190_v27 = vld [vmem:[%s14825_s20 + $0x38] sm:$0xff] }
 0x376   : > { %v4087_v35 = vunpack.c.l.b16 %v4036_v43  ;;  %v4052_v36 = vunpack.c.l.b16 %v4034_v48  ;;  %v3191_v48 = vld [vmem:[%s14825_s20 + $0x40] sm:$0xff] }
 0x377   : > { %v2750_v51 = vpop.permute.xlu1 %2749 }
 0x378   : > { %v4088_v30 = vpack.c.b16 %v4087_v35, %v4086_v14  ;;  %v4053_v46 = vpack.c.b16 %v4052_v36, %v4051_v22  ;;  %v3022_v58 = vadd.f32 %v3021_v3, %v2750_v51  ;;  %v13506_v3 = vpop.permute.xlu0 %3222 }
 0x37a   : > { %8258 = vmatmul.msk.bf16.vlgmr.msrb.gmra.mxu3 %vm4066_vm7, %v4088_v30  ;;  %8257 = vmatmul.msk.bf16.vlgmr.msrb.gmra.mxu2 %vm4066_vm7, %v4053_v46  ;;  %v3111_v15 = vadd.f32 %v3110_v32, %v3022_v58 }
 0x37b   : > { %4212 = vmatpush.bf16.msrb.mxu2 %v4200_v18 }
 0x37c   : > { %v3735_v53 = vpack.c.bf16 %v3111_v15, %v3111_v15  ;;  %v13530_v15 = vpop.f32.mrf.mxu2 }
 0x37d   : > { %3237 = vperm.xlu1 %10008, %v3187_v0  }
 0x37e   : > { %3247 = vperm.xlu0 %10007, %v3189_v23   ;;  %v4231_v24 = vunpack.c.l.b16 %v3735_v53 }
 0x37f   : > { %v2755_v39 = vpop.permute.xlu1 %2754  ;;  %4213 = vmatpush.bf16.msrb.mxu2 %v4199_v10 }
 0x380   : > { %v3024_v29 = vadd.f32 %v3023_v20, %v2755_v39  ;;  %v13524_v60 = vpop.permute.xlu0 %3232 }
 0x382   : > { %v3113_v47 = vadd.f32 %v3112_v17, %v3024_v29 }
 0x384   : > { %v3736_v61 = vpack.c.bf16 %v3113_v47, %v3113_v47 }
 0x385   : > { %3227 = vperm.xlu1 %10008, %v3185_v45  }
 0x386   : > { %v4232_v6 = vunpack.c.l.b16 %v3736_v61  ;;  %3252 = vperm.xlu0 %10007, %v3190_v27  }
 0x387   : > { %v2740_v14 = vpop.permute.xlu1 %2739 }
 0x388   : > { %v4234_v43 = vpack.c.b16 %v4232_v6, %v4231_v24  ;;  %v3017_v22 = vadd.f32 %v13463_v55, %v2740_v14  ;;  %v3193_v55 = vld [vmem:[%s14825_s20 + $0x50] sm:$0xff] }
 0x38a   : > { %4246 = vmatpush.bf16.msrb.mxu3 %v4234_v43  ;;  %v3106_v40 = vadd.f32 %v13468_v52, %v3017_v22 }
 0x38c   : > { %v3733_v36 = vpack.c.bf16 %v3106_v40, %v3106_v40 }
 0x38d   : > { %3257 = vperm.xlu1 %10008, %v3191_v48   ;;  %v3031_v48 = vpop.f32.mrf.mxu2 }
 0x38e   : > { %3282 = vperm.xlu0 %10007, %v3196_v5   ;;  %v4229_v52 = vunpack.c.l.b16 %v3733_v36 }
 0x38f   : > { %v2745_v35 = vpop.permute.xlu1 %2744 }
 0x390   : > { %v3019_v32 = vadd.f32 %v13475_v13, %v2745_v35 }
 0x392   : > { %v3108_v51 = vadd.f32 %v13477_v16, %v3019_v32  ;;  %v13528_v16 = vpop.f32.mrf.mxu3 }
 0x394   : > { %v3734_v30 = vpack.c.bf16 %v3108_v51, %v3108_v51 }
 0x395   : > { %3267 = vperm.xlu1 %10008, %v3193_v55   ;;  %v3033_v35 = vpop.f32.mrf.mxu2  ;;  %v13536_v55 = vpop.f32.mrf.mxu0 }
 0x396   : > { %v4230_v46 = vunpack.c.l.b16 %v3734_v30  ;;  %3292 = vperm.xlu0 %10007, %v3198_v42   ;;  %v13539_v30 = vpop.f32.mrf.mxu1 }
 0x397   : > { %v13526_v18 = vpop.permute.xlu1 %2164 }
 0x398   : > { %v4233_v13 = vpack.c.b16 %v4230_v46, %v4229_v52  ;;  %v2417_v52 = vadd.f32 %v13341_v21, %v13470_v28 }
 0x39a   : > { %4247 = vmatpush.bf16.msrb.mxu3 %v4233_v13  ;;  %v13532_v29 = vpop.f32.mrf.mxu3  ;;  %v3197_v13 = vld [vmem:[%s14825_s20 + $0x70] sm:$0xff] }
 0x39c   : > { %v10017_v58 = vpop.trf.xlu0 }
 0x39d   : > { %v10021_v0 = vunpack.i.h.bf16 %v10017_v58  ;;  %v10018_v23 = vunpack.i.l.bf16 %v10017_v58 }
 0x39f   : > { %v2170_v33 = vpop.permute.xlu1 %2169  ;;  %v4039_v10 = vpack.c.bf16 %v10021_v0, %v10021_v0  ;;  %v4037_v20 = vpack.c.bf16 %v10018_v23, %v10018_v23 }
 0x3a0   : > { %v2427_v42 = vadd.f32 %v13387_v57, %v2170_v33 }
 0x3a1   : > { %v4154_v47 = vunpack.c.l.b16 %v4039_v10  ;;  %v4120_v45 = vunpack.c.l.b16 %v4037_v20  ;;  %v13547_v10 = vpop.f32.mrf.mxu2  ;;  %v2506_v20 = vadd.f32 %v13344_v7, %v2417_v52 }
 0x3a2   : > { %v3120_v5 = vpop.f32.mrf.mxu3  ;;  %v2516_v0 = vadd.f32 %v13389_v38, %v2427_v42  ;;  %v2419_v38 = vadd.f32 %v13353_v26, %v13480_v1  ;;  %v2432_v26 = vadd.f32 %v13418_v8, %v13391_v59 }
 0x3a4   : > { %v10022_v39 = vpop.trf.xlu0 }
 0x3a5   : > { %v10026_v17 = vunpack.i.h.bf16 %v10022_v39  ;;  %v10023_v53 = vunpack.i.l.bf16 %v10022_v39 }
 0x3a7   : > { %v4040_v27 = vpack.c.bf16 %v10026_v17, %v10026_v17  ;;  %v4038_v61 = vpack.c.bf16 %v10023_v53, %v10023_v53  ;;  %v2175_v24 = vpop.permute.xlu1 %2174  ;;  %v2553_v17 = vmul.f32 0.17677669, %v2516_v0  ;;  %v13553_v53 = vpop.f32.mrf.mxu0 }
 0x3a8   : > { %v2429_v21 = vadd.f32 %v13399_v49, %v2175_v24  ;;  %v2422_v24 = vadd.f32 %v13362_v25, %v13488_v2 }
 0x3a9   : > { %v4155_v6 = vunpack.c.l.b16 %v4040_v27  ;;  %v4121_v14 = vunpack.c.l.b16 %v4038_v61  ;;  %v3038_v49 = vpop.f32.mrf.mxu2 }
 0x3aa   : > { %v3122_v36 = vpop.f32.mrf.mxu3 }
 0x3ab   : > { %v4122_v43 = vpack.c.b16 %v4121_v14, %v4120_v45  ;;  %v4156_v22 = vpack.c.b16 %v4155_v6, %v4154_v47  ;;  %v2549_v47 = vmul.f32 0.17677669, %v2506_v20  ;;  %v13557_v6 = vpop.f32.mrf.mxu1  ;;  %v2518_v14 = vadd.f32 %v13404_v44, %v2429_v21 }
 0x3ad   : > { %8259 = vmatmul.msk.bf16.vlgmr.msra.gmra.mxu2 %vm4066_vm7, %v4122_v43  ;;  %8260 = vmatmul.msk.bf16.vlgmr.msra.gmra.mxu3 %vm4066_vm7, %v4156_v22  ;;  %v10063_v7 = vpack.i.bf16 %v2553_v17, %v2549_v47  ;;  %v2508_v22 = vadd.f32 %v13356_v19, %v2419_v38  ;;  %v2554_v1 = vmul.f32 0.17677669, %v2518_v14  ;;  %v2521_v19 = vadd.f32 %v13420_v9, %v2432_v26  ;;  %v9524_v17 = vld [vmem:[#allocation13 + $0x84] sm:$0xf]  ;;  %v8197_v38 = vld [vmem:[#allocation13 + $0x88] sm:$0xf0] }
 0x3ae   : > { %v2424_v9 = vadd.f32 %v13369_v56, %v13526_v18  ;;  %v8200_v56 = vor.u32 %v9524_v17, %v8197_v38 }
 0x3af   : > { %v2185_v40 = vpop.permute.xlu1 %2184 }
 0x3b0   : > { %3672 = vmatmul.bf16.gmra.mxu1 %v8200_v56 }
 0x3b2   : > { %v13550_v39 = vpop.f32.mrf.mxu3 }
 0x3b3   : > { %v13573_v25 = vpop.f32.mrf.mxu1 }
 0x3b7   : > { %v2770_v32 = vpop.permute.xlu1 %2769 }
 0x3b8   : > { %v3032_v51 = vadd.f32 %v3031_v48, %v2770_v32 }
 0x3ba   : > { %v3121_v46 = vadd.f32 %v3120_v5, %v3032_v51  ;;  %v13565_v5 = vpop.f32.mrf.mxu3 }
 0x3bb   : > { %v13583_v18 = vpop.f32.mrf.mxu1 }
 0x3bc   : > { %v3739_v57 = vpack.c.bf16 %v3121_v46, %v3121_v46  ;;  %v2555_v46 = vmul.f32 0.17677669, %v2521_v19 }
 0x3be   : > { %v4265_v45 = vunpack.c.l.b16 %v3739_v57 }
 0x3bf   : > { %v2775_v58 = vpop.permute.xlu1 %2774 }
 0x3c0   : > { %v3034_v23 = vadd.f32 %v3033_v35, %v2775_v58  ;;  %v2550_v35 = vmul.f32 0.17677669, %v2508_v22  ;;  %v3041_v8 = vpop.f32.mrf.mxu2 }
 0x3c1   : > { %3287 = vperm.xlu2 %10006, %v3197_v13  }
 0x3c2   : > { %v3123_v33 = vadd.f32 %v3122_v36, %v3034_v23  ;;  %v2511_v36 = vadd.f32 %v13364_v4, %v2422_v24  ;;  %v10065_v51 = vpack.i.bf16 %v2554_v1, %v2550_v35  ;;  %v3130_v4 = vpop.f32.mrf.mxu3 }
 0x3c4   : > { %v3740_v28 = vpack.c.bf16 %v3123_v33, %v3123_v33  ;;  %v2551_v52 = vmul.f32 0.17677669, %v2511_v36  ;;  %v8195_v33 = vld [vmem:[#allocation13 + $0x80] sm:$0xf] }
 0x3c6   : > { %v4266_v27 = vunpack.c.l.b16 %v3740_v28 }
 0x3c7   : > { %v2760_v61 = vpop.permute.xlu1 %2759 }
 0x3c8   : > { %v4268_v43 = vpack.c.b16 %v4266_v27, %v4265_v45  ;;  %v3027_v48 = vadd.f32 %v3026_v11, %v2760_v61  ;;  %v13570_v11 = vpop.f32.mrf.mxu0 }
 0x3ca   : > { %10064 = vxpose.xlu1.b32.start [1/4] (short) (narrow) %v10063_v7, 16  ;;  %4280 = vmatpush.bf16.msra.mxu2 %v4268_v43  ;;  %v3116_v32 = vadd.f32 %v13528_v16, %v3027_v48  ;;  %v2434_v16 = vadd.f32 %v13436_v63, %v2185_v40  ;;  %v2513_v40 = vadd.f32 %v13374_v41, %v2424_v9  ;;  %v3043_v7 = vpop.f32.mrf.mxu2  ;;  %v3132_v22 = vpop.f32.mrf.mxu3 }
 0x3cb   : > { %v3039_v41 = vadd.f32 %v3038_v49, %v13498_v54 }
 0x3cc   : > { %v3737_v2 = vpack.c.bf16 %v3116_v32, %v3116_v32  ;;  %v2523_v20 = vadd.f32 %v13438_v34, %v2434_v16  ;;  %v2552_v14 = vmul.f32 0.17677669, %v2513_v40  ;;  %v13589_v16 = vpop.f32.mrf.mxu1 }
 0x3ce   : > { %v4263_v58 = vunpack.c.l.b16 %v3737_v2  ;;  %v2556_v45 = vmul.f32 0.17677669, %v2523_v20 }
 0x3cf   : > { %v2765_v44 = vpop.permute.xlu1 %2764 }
 0x3d0   : > { %v3029_v42 = vadd.f32 %v13530_v15, %v2765_v44  ;;  %v10067_v15 = vpack.i.bf16 %v2555_v46, %v2551_v52  ;;  %v13580_v63 = vpop.f32.mrf.mxu0  ;;  %v10069_v48 = vpack.i.bf16 %v2556_v45, %v2552_v14  ;;  %v3128_v46 = vadd.f32 %v13565_v5, %v3039_v41 }
 0x3d2   : > { %v3118_v59 = vadd.f32 %v13532_v29, %v3029_v42  ;;  %10066 = vxpose.xlu1.b32.cont [2/4] (short) (narrow) %v10065_v51, 16  ;;  %v9525_v29 = vld [vmem:[#allocation13 + $0x84] sm:$0xf0]  ;;  %v3742_v20 = vpack.c.bf16 %v3128_v46, %v3128_v46 }
 0x3d3   : > { %v8196_v47 = vor.u32 %v9525_v29, %v8195_v33 }
 0x3d4   : > { %v3738_v13 = vpack.c.bf16 %v3118_v59, %v3118_v59  ;;  %v4298_v33 = vunpack.c.l.b16 %v3742_v20 }
 0x3d5   : > { %3583 = vmatmul.bf16.gmra.mxu0 %v8196_v47 }
 0x3d6   : > { %v4264_v0 = vunpack.c.l.b16 %v3738_v13 }
 0x3d7   : > { %v2790_v23 = vpop.permute.xlu1 %2789 }
 0x3d8   : > { %v4267_v57 = vpack.c.b16 %v4264_v0, %v4263_v58  ;;  %v3042_v21 = vadd.f32 %v3041_v8, %v2790_v23  ;;  %v13586_v51 = vpop.f32.mrf.mxu0 }
 0x3d9   : > { %v10053_v28 = vpop.trf.xlu2 }
 0x3da   : > { %10068 = vxpose.xlu1.b32.cont [3/4] (short) (narrow) %v10067_v15, 16  ;;  %4281 = vmatpush.bf16.msra.mxu2 %v4267_v57  ;;  %v10057_v34 = vunpack.i.h.bf16 %v10053_v28  ;;  %v3131_v27 = vadd.f32 %v3130_v4, %v3042_v21  ;;  %v10054_v61 = vunpack.i.l.bf16 %v10053_v28  ;;  %v3648_v28 = vpop.f32.mrf.mxu1 }
 0x3dc   : > { %v4043_v24 = vpack.c.bf16 %v10057_v34, %v10057_v34  ;;  %v3743_v1 = vpack.c.bf16 %v3131_v27, %v3131_v27  ;;  %v4041_v35 = vpack.c.bf16 %v10054_v61, %v10054_v61 }
 0x3de   : > { %v4222_v42 = vunpack.c.l.b16 %v4043_v24  ;;  %v4188_v8 = vunpack.c.l.b16 %v4041_v35  ;;  %v4299_v13 = vunpack.c.l.b16 %v3743_v1 }
 0x3df   : > { %v2795_v43 = vpop.permute.xlu1 %2794 }
 0x3e0   : > { %v3044_v26 = vadd.f32 %v3043_v7, %v2795_v43  ;;  %v3559_v29 = vpop.f32.mrf.mxu0 }
 0x3e1   : > { %v10058_v32 = vpop.trf.xlu2 }
 0x3e2   : > { %v3133_v44 = vadd.f32 %v3132_v22, %v3044_v26  ;;  %v10062_v36 = vunpack.i.h.bf16 %v10058_v32  ;;  %10070 = vxpose.xlu1.b32.end [4/4] (short) (narrow) %v10069_v48, 16  ;;  %v10059_v19 = vunpack.i.l.bf16 %v10058_v32  ;;  %v3650_v43 = vpop.f32.mrf.mxu1  ;;  %v3745_v32 = vpack.c.bf16 %v13454_v50, %v13454_v50  ;;  %v3212_v50 = vld [vmem:[%s14825_s20 + $0xe8] sm:$0xff] }
 0x3e4   : > { %v3744_v2 = vpack.c.bf16 %v3133_v44, %v3133_v44  ;;  %v4044_v59 = vpack.c.bf16 %v10062_v36, %v10062_v36  ;;  %v4042_v52 = vpack.c.bf16 %v10059_v19, %v10059_v19  ;;  %v3200_v19 = vld [vmem:[%s14825_s20 + $0x88] sm:$0xff] }
 0x3e6   : > { %v4300_v54 = vunpack.c.l.b16 %v3744_v2  ;;  %v4223_v49 = vunpack.c.l.b16 %v4044_v59  ;;  %v4189_v4 = vunpack.c.l.b16 %v4042_v52  ;;  %v3199_v52 = vld [vmem:[%s14825_s20 + $0x80] sm:$0xff] }
 0x3e7   : > { %v2780_v9 = vpop.permute.xlu1 %2779 }
 0x3e8   : > { %v4302_v58 = vpack.c.b16 %v4300_v54, %v4299_v13  ;;  %v4224_v0 = vpack.c.b16 %v4223_v49, %v4222_v42  ;;  %v3037_v23 = vadd.f32 %v13547_v10, %v2780_v9  ;;  %v4190_v15 = vpack.c.b16 %v4189_v4, %v4188_v8  ;;  %v3561_v34 = vpop.f32.mrf.mxu0 }
 0x3e9   : > { %v3552_v10 = vadd.f32 %v13570_v11, %v13524_v60 }
 0x3ea   : > { %v3126_v57 = vadd.f32 %v13550_v39, %v3037_v23  ;;  %4314 = vmatpush.bf16.msra.mxu3 %v4302_v58  ;;  %8261 = vmatmul.msk.bf16.vlgmr.msrb.gmra.mxu2 %vm4066_vm7, %v4190_v15 }
 0x3eb   : > { %8262 = vmatmul.msk.bf16.vlgmr.msrb.gmra.mxu3 %vm4066_vm7, %v4224_v0  ;;  %v3641_v39 = vadd.f32 %v13573_v25, %v3552_v10 }
 0x3ec   : > { %v3741_v5 = vpack.c.bf16 %v3126_v57, %v3126_v57 }
 0x3ed   : > { %v3748_v14 = vpack.c.bf16 %v3641_v39, %v3641_v39 }
 0x3ee   : > { %v4297_v17 = vunpack.c.l.b16 %v3741_v5 }
 0x3ef   : > { %v13595_v21 = vpop.permute.xlu1 %3237  ;;  %v13604_v11 = vunpack.c.l.b16 %v3748_v14  ;;  %v8203_v14 = vld [vmem:[#allocation13 + $0x90] sm:$0xf] }
 0x3f0   : > { %v3248_v47 = vpop.permute.xlu0 %3247  ;;  %v4301_v38 = vpack.c.b16 %v4298_v33, %v4297_v17 }
 0x3f1   : > { %v3560_v40 = vadd.f32 %v3559_v29, %v3248_v47 }
 0x3f2   : > { %4315 = vmatpush.bf16.msra.mxu3 %v4301_v38 }
 0x3f3   : > { %v3649_v56 = vadd.f32 %v3648_v28, %v3560_v40 }
 0x3f5   : > { %v3751_v48 = vpack.c.bf16 %v3649_v56, %v3649_v56 }
 0x3f7   : > { %v3228_v45 = vpop.permute.xlu1 %3227 }
 0x3f8   : > { %v3550_v27 = vadd.f32 %v13553_v53, %v3228_v45  ;;  %v3253_v61 = vpop.permute.xlu0 %3252  ;;  %v13611_v53 = vunpack.c.l.b16 %v3751_v48 }
 0x3f9   : > { %v3562_v7 = vadd.f32 %v3561_v34, %v3253_v61 }
 0x3fa   : > { %v3639_v22 = vadd.f32 %v13557_v6, %v3550_v27 }
 0x3fb   : > { %v3651_v24 = vadd.f32 %v3650_v43, %v3562_v7  ;;  %v9527_v43 = vld [vmem:[#allocation13 + $0x94] sm:$0xf0] }
 0x3fc   : > { %v3747_v26 = vpack.c.bf16 %v3639_v22, %v3639_v22  ;;  %v9526_v22 = vld [vmem:[#allocation13 + $0x94] sm:$0xf] }
 0x3fd   : > { %v3752_v41 = vpack.c.bf16 %v3651_v24, %v3651_v24  ;;  %v13602_v60 = vpop.f32.mrf.mxu3  ;;  %v13608_v1 = vpop.f32.mrf.mxu2  ;;  %v8204_v24 = vor.u32 %v9527_v43, %v8203_v14 }
 0x3fe   : > { %v13606_v25 = vunpack.c.l.b16 %v3747_v26  ;;  %4326 = vmax.xlane.f32.xlu0 %v13602_v60  ;;  %4322 = vmax.xlane.f32.xlu2 %v13608_v1  ;;  %v8205_v26 = vld [vmem:[#allocation13 + $0x98] sm:$0xf0] }
 0x3ff   : > { %v13613_v35 = vunpack.c.l.b16 %v3752_v41  ;;  %v13641_v46 = vpop.permute.xlu1 %3257  ;;  %v8208_v41 = vor.u32 %v9526_v22, %v8205_v26  ;;  %3588 = vmatmul.bf16.gmra.mxu0 %v8204_v24 }
 0x400   : > { %v13659_v56 = vpop.permute.xlu0 %3282 }
 0x401   : > { %3677 = vmatmul.bf16.gmra.mxu1 %v8208_v41 }
 0x405   : > { %v13620_v44 = vpop.f32.mrf.mxu2  ;;  %v13623_v36 = vpop.f32.mrf.mxu3 }
 0x406   : > { %4324 = vmax.xlane.f32.xlu0 %v13620_v44 }
 0x407   : > { %v13643_v13 = vpop.permute.xlu1 %3267 }
 0x408   : > { %v13661_v45 = vpop.permute.xlu0 %3292 }
 0x40e   : > { %4328 = vmax.xlane.f32.xlu0 %v13623_v36 }
 0x416   : > { %3302 = vperm.xlu2 %10006, %v3200_v19  }
 0x430   : > { %v13629_v42 = vpop.f32.mrf.mxu2  ;;  %v13632_v2 = vpop.f32.mrf.mxu3 }
 0x431   : > { %4330 = vmax.xlane.f32.xlu0 %v13629_v42 }
 0x438   : > { %v4149_v59 = vpop.f32.mrf.mxu2  ;;  %v13634_v8 = vpop.f32.mrf.mxu3 }
 0x439   : > { %4332 = vmax.xlane.f32.xlu0 %v4149_v59 }
 0x441   : > { %4336 = vmax.xlane.f32.xlu0 %v13634_v8 }
 0x442   : > { %4334 = vmax.xlane.f32.xlu1 %v13632_v2 }
 0x45b   : > { %3297 = vperm.xlu1 %10008, %v3199_v52   ;;  %v13667_v52 = vpop.permute.xlu2 %3287 }
 0x46d   : > { %v13645_v54 = vpop.f32.mrf.mxu2 }
 0x46e   : > { %v10071_v49 = vpop.trf.xlu1  ;;  %4338 = vmax.xlane.f32.xlu0 %v13645_v54  ;;  %v13648_v4 = vpop.f32.mrf.mxu3 }
 0x46f   : > { %v10075_v9 = vunpack.i.h.bf16 %v10071_v49  ;;  %v10072_v58 = vunpack.i.l.bf16 %v10071_v49 }
 0x471   : > { %v4047_v15 = vpack.c.bf16 %v10075_v9, %v10075_v9  ;;  %v4045_v57 = vpack.c.bf16 %v10072_v58, %v10072_v58  ;;  %v4327_v34 = vpop.xlane.xlu0 %4326  ;;  %v8211_v9 = vld [vmem:[#allocation13 + $0xa0] sm:$0xf]  ;;  %v9529_v58 = vld [vmem:[#allocation13 + $0xa4] sm:$0xf0] }
 0x473   : > { %v4290_v17 = vunpack.c.l.b16 %v4047_v15  ;;  %v4256_v47 = vunpack.c.l.b16 %v4045_v57  ;;  %v8213_v57 = vld [vmem:[#allocation13 + $0xa8] sm:$0xf0] }
 0x475   : > { %v13650_v0 = vpop.f32.mrf.mxu2 }
 0x476   : > { %v10076_v23 = vpop.trf.xlu1  ;;  %4342 = vmax.xlane.f32.xlu0 %v13648_v4  ;;  %4340 = vmax.xlane.f32.xlu2 %v13650_v0  ;;  %v13654_v10 = vpop.f32.mrf.mxu3 }
 0x477   : > { %v10080_v20 = vunpack.i.h.bf16 %v10076_v23  ;;  %v10077_v5 = vunpack.i.l.bf16 %v10076_v23  ;;  %v9528_v23 = vld [vmem:[#allocation13 + $0xa4] sm:$0xf] }
 0x479   : > { %v4048_v33 = vpack.c.bf16 %v10080_v20, %v10080_v20  ;;  %v4046_v29 = vpack.c.bf16 %v10077_v5, %v10077_v5  ;;  %v13663_v27 = vpop.xlane.xlu0 %4324  ;;  %v8212_v20 = vor.u32 %v9529_v58, %v8211_v9  ;;  %v8216_v5 = vor.u32 %v9528_v23, %v8213_v57  ;;  %v8219_v23 = vld [vmem:[#allocation13 + $0xb0] sm:$0xf] }
 0x47b   : > { %v4291_v28 = vunpack.c.l.b16 %v4048_v33  ;;  %v4257_v38 = vunpack.c.l.b16 %v4046_v29  ;;  %3593 = vmatmul.bf16.gmra.mxu0 %v8212_v20  ;;  %3682 = vmatmul.bf16.gmra.mxu1 %v8216_v5  ;;  %v9530_v20 = vld [vmem:[#allocation13 + $0xb4] sm:$0xf]  ;;  %v8221_v5 = vld [vmem:[#allocation13 + $0xb8] sm:$0xf0] }
 0x47d   : > { %v4292_v40 = vpack.c.b16 %v4291_v28, %v4290_v17  ;;  %v4258_v39 = vpack.c.b16 %v4257_v38, %v4256_v47  ;;  %v4323_v28 = vpop.xlane.xlu2 %4322 }
 0x47e   : > { %4344 = vmax.xlane.f32.xlu0 %v13654_v10  ;;  %v4354_v38 = vsub.f32 %v13608_v1, %v4323_v28 }
 0x47f   : > { %8264 = vmatmul.msk.bf16.vlgmr.msra.gmra.mxu3 %vm4066_vm7, %v4292_v40  ;;  %8263 = vmatmul.msk.bf16.vlgmr.msra.gmra.mxu2 %vm4066_vm7, %v4258_v39 }
 0x480   : > { %v4370_v39 = vmul.f32 1.442695, %v4354_v38  ;;  %v3204_v38 = vld [vmem:[%s14825_s20 + $0xa8] sm:$0xff] }
 0x481   : > { %v13665_v61 = vpop.xlane.xlu0 %4328 }
 0x482   : > { %v4357_v58 = vsub.f32 %v13623_v36, %v13665_v61  ;;  %v3203_v36 = vld [vmem:[%s14825_s20 + $0xa0] sm:$0xff] }
 0x4a4   : > { %v4331_v7 = vpop.xlane.xlu0 %4330 }
 0x4a5   : > { %v4358_v15 = vsub.f32 %v13629_v42, %v4331_v7 }
 0x4a7   : > { %v4378_v17 = vmul.f32 1.442695, %v4358_v15  ;;  %v9531_v15 = vld [vmem:[#allocation13 + $0xb4] sm:$0xf0] }
 0x4a8   : > { %v8220_v57 = vor.u32 %v9531_v15, %v8219_v23  ;;  %v8235_v23 = vld [vmem:[#allocation13 + $0xd0] sm:$0xf]  ;;  %v9535_v15 = vld [vmem:[#allocation13 + $0xd4] sm:$0xf0] }
 0x4aa   : > { %3598 = vmatmul.bf16.gmra.mxu0 %v8220_v57  ;;  %v8236_v57 = vor.u32 %v9535_v15, %v8235_v23 }
 0x4ac   : > { %v4333_v48 = vpop.xlane.xlu0 %4332 }
 0x4ad   : > { %v4359_v49 = vsub.f32 %v4149_v59, %v4333_v48 }
 0x4af   : > { %v4380_v29 = vmul.f32 1.442695, %v4359_v49 }
 0x4b1   : > { %10193 = vpow2.f32 %v4380_v29 }
 0x4b2   : > { %10195 = vpow2.f32 %v4378_v17 }
 0x4b3   : > { %10197 = vpow2.f32 %v4370_v39  ;;  %v3201_v39 = vld [vmem:[%s14825_s20 + $0x90] sm:$0xff] }
 0x4b4   : > { %v4337_v19 = vpop.xlane.xlu0 %4336 }
 0x4b5   : > { %v4361_v42 = vsub.f32 %v13634_v8, %v4337_v19 }
 0x4b7   : > { %v4384_v7 = vmul.f32 1.442695, %v4361_v42  ;;  %v13679_v22 = vpop.eup %10193 }
 0x4b8   : > { %v13681_v48 = vpop.eup %10195 }
 0x4b9   : > { %10199 = vpow2.f32 %v4384_v7  ;;  %v13690_v26 = vpop.eup %10197  ;;  %v3205_v7 = vld [vmem:[%s14825_s20 + $0xb0] sm:$0xff] }
 0x4bf   : > { %v13692_v19 = vpop.eup %10199 }
 0x4e1   : > { %v4339_v33 = vpop.xlane.xlu0 %4338 }
 0x4e2   : > { %v4362_v59 = vsub.f32 %v13645_v54, %v4339_v33  ;;  %v4356_v54 = vsub.f32 %v13602_v60, %v4327_v34  ;;  %v4355_v60 = vsub.f32 %v13620_v44, %v13663_v27  ;;  %v8224_v33 = vor.u32 %v9530_v20, %v8221_v5  ;;  %v4335_v27 = vpop.xlane.xlu1 %4334  ;;  %v9534_v20 = vld [vmem:[#allocation13 + $0xd4] sm:$0xf]  ;;  %v8237_v5 = vld [vmem:[#allocation13 + $0xd8] sm:$0xf0] }
 0x4e3   : > { %v4376_v44 = vmul.f32 1.442695, %v4357_v58  ;;  %v4360_v17 = vsub.f32 %v13632_v2, %v4335_v27  ;;  %v3202_v2 = vld [vmem:[%s14825_s20 + $0x98] sm:$0xff]  ;;  %v13742_v58 = vpop.permute.xlu2 %3302 }
 0x4e4   : > { %v4386_v14 = vmul.f32 1.442695, %v4362_v59  ;;  %v4374_v41 = vmul.f32 1.442695, %v4356_v54  ;;  %3687 = vmatmul.bf16.gmra.mxu1 %v8224_v33  ;;  %v3206_v54 = vld [vmem:[%s14825_s20 + $0xb8] sm:$0xff]  ;;  %v8240_v33 = vor.u32 %v9534_v20, %v8237_v5 }
 0x4e5   : > { %v4382_v28 = vmul.f32 1.442695, %v4360_v17 }
 0x4e6   : > { %10201 = vpow2.f32 %v4386_v14  ;;  %v8227_v14 = vld [vmem:[#allocation13 + $0xc0] sm:$0xf] }
 0x4e9   : > { %v4343_v43 = vpop.xlane.xlu0 %4342 }
 0x4ea   : > { %v4364_v8 = vsub.f32 %v13648_v4, %v4343_v43  ;;  %v4372_v4 = vmul.f32 1.442695, %v4355_v60  ;;  %v9533_v43 = vld [vmem:[#allocation13 + $0xc4] sm:$0xf0] }
 0x4ec   : > { %v4390_v24 = vmul.f32 1.442695, %v4364_v8  ;;  %v13694_v49 = vpop.eup %10201  ;;  %v9532_v8 = vld [vmem:[#allocation13 + $0xc4] sm:$0xf] }
 0x4ee   : > { %10203 = vpow2.f32 %v4390_v24  ;;  %v8228_v24 = vor.u32 %v9533_v43, %v8227_v14 }
 0x4ef   : > { %10205 = vpow2.f32 %v4374_v41  ;;  %v8229_v41 = vld [vmem:[#allocation13 + $0xc8] sm:$0xf0] }
 0x4f0   : > { %10207 = vpow2.f32 %v4372_v4  ;;  %v8232_v60 = vor.u32 %v9532_v8, %v8229_v41  ;;  %3603 = vmatmul.bf16.gmra.mxu0 %v8228_v24  ;;  %v13740_v4 = vpop.permute.xlu1 %3297  ;;  %v9537_v24 = vld [vmem:[#allocation13 + $0xe4] sm:$0xf0]  ;;  %v9536_v41 = vld [vmem:[#allocation13 + $0xe4] sm:$0xf] }
 0x4f1   : > { %10209 = vpow2.f32 %v4376_v44  ;;  %v13744_v44 = vpop.f32.mrf.mxu0  ;;  %v4345_v27 = vpop.xlane.xlu0 %4344 }
 0x4f2   : > { %10211 = vpow2.f32 %v4382_v28  ;;  %v4341_v28 = vpop.xlane.xlu2 %4340  ;;  %v4365_v20 = vsub.f32 %v13654_v10, %v4345_v27 }
 0x4f4   : > { %v13701_v34 = vpop.eup %10203  ;;  %3692 = vmatmul.bf16.gmra.mxu1 %v8232_v60 }
 0x4f5   : > { %v13703_v9 = vpop.eup %10205 }
 0x4f6   : > { %v13709_v29 = vpop.eup %10207 }
 0x4f7   : > { %v13716_v61 = vpop.eup %10209 }
 0x4f8   : > { %v13722_v42 = vpop.eup %10211 }
 0x4f9   : > { %v13750_v43 = vpop.f32.mrf.mxu0 }
 0x500   : > { %3608 = vmatmul.bf16.gmra.mxu0 %v8236_v57 }
 0x502   : > { %v13670_v47 = vpop.f32.mrf.mxu3  ;;  %v13673_v40 = vpop.f32.mrf.mxu2 }
 0x503   : > { %4350 = vmax.xlane.f32.xlu2 %v13670_v47  ;;  %4346 = vmax.xlane.f32.xlu1 %v13673_v40 }
 0x504   : > { %3697 = vmatmul.bf16.gmra.mxu1 %v8240_v33 }
 0x50a   : > { %v13683_v1 = vpop.f32.mrf.mxu2  ;;  %v13728_v59 = vpop.f32.mrf.mxu3 }
 0x50b   : > { %4412 = vadd.xlane.f32.xlu2 %v13679_v22  ;;  %4410 = vadd.xlane.f32.xlu1 %v13681_v48 }
 0x50c   : > { %4348 = vmax.xlane.f32.xlu0 %v13683_v1 }
 0x513   : > { %4416 = vadd.xlane.f32.xlu2 %v13692_v19  ;;  %4418 = vadd.xlane.f32.xlu1 %v13694_v49 }
 0x514   : > { %4402 = vadd.xlane.f32.xlu0 %v13690_v26 }
 0x51b   : > { %4422 = vadd.xlane.f32.xlu2 %v13701_v34 }
 0x51c   : > { %4406 = vadd.xlane.f32.xlu0 %v13703_v9 }
 0x524   : > { %4404 = vadd.xlane.f32.xlu0 %v13709_v29 }
 0x52c   : > { %4408 = vadd.xlane.f32.xlu0 %v13716_v61  ;;  %3317 = vperm.xlu1 %10008, %v3203_v36  }
 0x534   : > { %4414 = vadd.xlane.f32.xlu0 %v13722_v42  ;;  %3322 = vperm.xlu1 %10008, %v3204_v38  }
 0x53c   : > { %4352 = vmax.xlane.f32.xlu0 %v13728_v59  ;;  %3312 = vperm.xlu1 %10008, %v3202_v2   ;;  %v13747_v2 = vpop.f32.mrf.mxu1 }
 0x544   : > { %v13757_v5 = vpop.f32.mrf.mxu1 }
 0x550   : > { %3307 = vperm.xlu0 %10007, %v3201_v39   ;;  %v4363_v39 = vsub.f32 %v13650_v0, %v4341_v28 }
 0x558   : > { %3327 = vperm.xlu0 %10007, %v3205_v7   ;;  %v4388_v7 = vmul.f32 1.442695, %v4363_v39  ;;  %v13768_v39 = vpop.f32.mrf.mxu1 }
 0x560   : > { %3332 = vperm.xlu0 %10007, %v3206_v54   ;;  %v8243_v54 = vld [vmem:[#allocation13 + $0xe0] sm:$0xf] }
 0x561   : > { %v8244_v15 = vor.u32 %v9537_v24, %v8243_v54  ;;  %v8251_v54 = vld [vmem:[#allocation13 + $0xf0] sm:$0xf]  ;;  %v9539_v24 = vld [vmem:[#allocation13 + $0xf4] sm:$0xf0] }
 0x563   : > { %3613 = vmatmul.bf16.gmra.mxu0 %v8244_v15  ;;  %v8252_v15 = vor.u32 %v9539_v24, %v8251_v54 }
 0x573   : > { %3618 = vmatmul.bf16.gmra.mxu0 %v8252_v15 }
 0x576   : > { %v4347_v17 = vpop.xlane.xlu1 %4346  ;;  %v4351_v57 = vpop.xlane.xlu2 %4350 }
 0x577   : > { %v4366_v36 = vsub.f32 %v13673_v40, %v4347_v17  ;;  %v8245_v40 = vld [vmem:[#allocation13 + $0xe8] sm:$0xf0]  ;;  %v4368_v10 = vsub.f32 %v13670_v47, %v4351_v57  ;;  %v9538_v47 = vld [vmem:[#allocation13 + $0xf4] sm:$0xf] }
 0x578   : > { %v8248_v0 = vor.u32 %v9536_v41, %v8245_v40  ;;  %v8253_v40 = vld [vmem:[#allocation13 + $0xf8] sm:$0xf0] }
 0x579   : > { %v4394_v38 = vmul.f32 1.442695, %v4366_v36  ;;  %v13763_v36 = vpop.f32.mrf.mxu0 }
 0x57a   : > { %3702 = vmatmul.bf16.gmra.mxu1 %v8248_v0  ;;  %v8256_v0 = vor.u32 %v9538_v47, %v8253_v40 }
 0x57b   : > { %10213 = vpow2.f32 %v4394_v38 }
 0x57c   : > { %10215 = vpow2.f32 %v4388_v7  ;;  %v4398_v7 = vmul.f32 1.442695, %v4368_v10 }
 0x57e   : > { %v4411_v27 = vpop.xlane.xlu1 %4410  ;;  %v4413_v38 = vpop.xlane.xlu2 %4412 }
 0x57f   : > { %v4349_v14 = vpop.xlane.xlu0 %4348 }
 0x580   : > { %v4367_v8 = vsub.f32 %v13683_v1, %v4349_v14  ;;  %v4392_v1 = vmul.f32 1.442695, %v4365_v20 }
 0x581   : > { %v13753_v60 = vpop.eup %10213 }
 0x582   : > { %v4396_v23 = vmul.f32 1.442695, %v4367_v8  ;;  %4426 = vadd.xlane.f32.xlu2 %v13753_v60  ;;  %v13759_v17 = vpop.eup %10215 }
 0x584   : > { %10217 = vpow2.f32 %v4396_v23  ;;  %v13773_v23 = vpop.f32.mrf.mxu0 }
 0x585   : > { %10219 = vpow2.f32 %v4392_v1 }
 0x587   : > { %v4403_v33 = vpop.xlane.xlu0 %4402 }
 0x588   : > { %10221 = vrcp.f32 %v4403_v33 }
 0x589   : > { %10223 = vrcp.f32 %v4411_v27 }
 0x58a   : > { %v13761_v28 = vpop.eup %10217  ;;  %4420 = vadd.xlane.f32.xlu0 %v13759_v17  ;;  %3707 = vmatmul.bf16.gmra.mxu1 %v8256_v0 }
 0x58b   : > { %4428 = vadd.xlane.f32.xlu1 %v13761_v28  ;;  %v13770_v8 = vpop.eup %10219 }
 0x58c   : > { %v13791_v15 = vpop.f32.mrf.mxu0 }
 0x58e   : > { %v10222_v41 = vpop.eup %10221 }
 0x58f   : > { %v4407_v14 = vpop.xlane.xlu0 %4406  ;;  %v10224_v20 = vpop.eup %10223  ;;  %v4450_v33 = vmul.f32 %v10222_v41, %v13690_v26 }
 0x590   : > { %10225 = vrcp.f32 %v4407_v14  ;;  %v13782_v14 = vpop.f32.mrf.mxu1  ;;  %v4454_v54 = vmul.f32 %v10224_v20, %v13681_v48 }
 0x591   : > { %10227 = vrcp.f32 %v4413_v38  ;;  %v3208_v38 = vld [vmem:[%s14825_s20 + $0xc8] sm:$0xff] }
 0x592   : > { %4424 = vadd.xlane.f32.xlu0 %v13770_v8  ;;  %10229 = vpow2.f32 %v4398_v7  ;;  %v4470_v0 = vpack.c.bf16 %v4454_v54, %v4454_v54 }
 0x596   : > { %v10226_v57 = vpop.eup %10225 }
 0x597   : > { %v10228_v1 = vpop.eup %10227  ;;  %v4452_v10 = vmul.f32 %v10226_v57, %v13703_v9  ;;  %v4405_v27 = vpop.xlane.xlu0 %4404  ;;  %v3547_v9 = vadd.f32 %v13536_v55, %v13506_v3  ;;  %v3207_v3 = vld [vmem:[%s14825_s20 + $0xc0] sm:$0xff]  ;;  %v4570_v55 = vunpack.c.l.b16 %v4470_v0 }
 0x598   : > { %10231 = vrcp.f32 %v4405_v27  ;;  %v13780_v7 = vpop.eup %10229  ;;  %v4455_v47 = vmul.f32 %v10228_v1, %v13679_v22  ;;  %v4417_v57 = vpop.xlane.xlu2 %4416  ;;  %v4466_v27 = vpack.c.bf16 %v4450_v33, %v4450_v33  ;;  %v3209_v1 = vld [vmem:[%s14825_s20 + $0xd0] sm:$0xff] }
 0x599   : > { %v7534_v24 = vadd.f32 %v4452_v10, %v4450_v33  ;;  %v3636_v22 = vadd.f32 %v13539_v30, %v3547_v9  ;;  %v3555_v30 = vadd.f32 %v13580_v63, %v13595_v21  ;;  %v3576_v0 = vpop.f32.mrf.mxu0  ;;  %v4468_v6 = vpack.c.bf16 %v4452_v10, %v4452_v10 }
 0x59a   : > { %4430 = vadd.xlane.f32.xlu0 %v13780_v7  ;;  %3342 = vperm.xlu2 %10006, %v3208_v38   ;;  %v4471_v40 = vpack.c.bf16 %v4455_v47, %v4455_v47 }
 0x59b   : > { %v13787_v26 = vadd.f32 %v7534_v24, %v4454_v54  ;;  %v13801_v24 = vpop.f32.mrf.mxu1  ;;  %v3644_v63 = vadd.f32 %v13583_v18, %v3555_v30  ;;  %v4533_v18 = vunpack.c.l.b16 %v4468_v6 }
 0x59c   : > { %v4571_v54 = vunpack.c.l.b16 %v4471_v40 }
 0x59e   : > { %v10232_v41 = vpop.eup %10231  ;;  %v4572_v40 = vpack.c.b16 %v4571_v54, %v4570_v55  ;;  %v3211_v54 = vld [vmem:[%s14825_s20 + $0xe0] sm:$0xff] }
 0x59f   : > { %v4451_v48 = vmul.f32 %v10232_v41, %v13709_v29  ;;  %v4409_v20 = vpop.xlane.xlu0 %4408  ;;  %v4496_v29 = vunpack.c.l.b16 %v4466_v27  ;;  %v3746_v41 = vpack.c.bf16 %v3636_v22, %v3636_v22 }
 0x5a0   : > { %10233 = vrcp.f32 %v4409_v20 }
 0x5a1   : > { %v4467_v38 = vpack.c.bf16 %v4451_v48, %v4451_v48  ;;  %10235 = vrcp.f32 %v4417_v57  ;;  %v3557_v57 = vadd.f32 %v13586_v51, %v13422_v62  ;;  %v4486_v62 = vunpack.c.l.b16 %v3745_v32 }
 0x5a2   : > { %3347 = vperm.xlu2 %10006, %v3209_v1  }
 0x5a3   : > { %v4497_v33 = vunpack.c.l.b16 %v4467_v38  ;;  %v4487_v38 = vunpack.c.l.b16 %v3746_v41  ;;  %v3646_v51 = vadd.f32 %v13589_v16, %v3557_v57  ;;  %v3665_v10 = vpop.f32.mrf.mxu1  ;;  %v3749_v41 = vpack.c.bf16 %v3644_v63, %v3644_v63 }
 0x5a4   : > { %3337 = vperm.xlu1 %10008, %v3207_v3  }
 0x5a5   : > { %v4498_v9 = vpack.c.b16 %v4497_v33, %v4496_v29  ;;  %v4490_v33 = vpack.c.b16 %v4487_v38, %v4486_v62  ;;  %v3750_v32 = vpack.c.bf16 %v3646_v51, %v3646_v51  ;;  %v3567_v51 = vadd.f32 %v13750_v43, %v13447_v12 }
 0x5a6   : > { %v10234_v20 = vpop.eup %10233  ;;  %v3575_v12 = vadd.f32 %v13791_v15, %v13456_v37  ;;  %v3572_v37 = vadd.f32 %v13773_v23, %v13461_v31 }
 0x5a7   : > { %v4453_v1 = vmul.f32 %v10234_v20, %v13716_v61  ;;  %4507 = vmatpush.bf16.xpose.msrb.mxu2 %v4498_v9  ;;  %v4415_v27 = vpop.xlane.xlu0 %4414  ;;  %v10236_v22 = vpop.eup %10235 }
 0x5a8   : > { %10237 = vrcp.f32 %v4415_v27  ;;  %v4457_v61 = vmul.f32 %v10236_v22, %v13692_v19  ;;  %v3579_v20 = vpop.f32.mrf.mxu0 }
 0x5a9   : > { %v4469_v21 = vpack.c.bf16 %v4453_v1, %v4453_v1  ;;  %v7541_v3 = vadd.f32 %v4453_v1, %v4451_v48  ;;  %v4524_v1 = vunpack.c.l.b16 %v3750_v32 }
 0x5aa   : > { %v4473_v16 = vpack.c.bf16 %v4457_v61, %v4457_v61 }
 0x5ab   : > { %v7542_v55 = vadd.f32 %v7541_v3, %v4455_v47  ;;  %v4534_v29 = vunpack.c.l.b16 %v4469_v21  ;;  %v4523_v47 = vunpack.c.l.b16 %v3749_v41  ;;  %v3668_v63 = vpop.f32.mrf.mxu1 }
 0x5ac   : > { %3362 = vperm.xlu1 %10008, %v3212_v50   ;;  %v4608_v22 = vunpack.c.l.b16 %v4473_v16  ;;  %v3565_v50 = vadd.f32 %v13744_v44, %v13641_v46  ;;  %v3577_v46 = vadd.f32 %v3576_v0, %v13659_v56  ;;  %v3570_v0 = vadd.f32 %v13763_v36, %v13643_v13 }
 0x5ad   : > { %v4535_v48 = vpack.c.b16 %v4534_v29, %v4533_v18  ;;  %v13819_v30 = vadd.f32 %v7542_v55, %v4457_v61  ;;  %v4527_v38 = vpack.c.b16 %v4524_v1, %v4523_v47  ;;  %v14850_v61 = vpack.c.b16 %v13604_v11, %v13606_v25 }
 0x5ae   : > { %v10238_v9 = vpop.eup %10237  ;;  %3357 = vperm.xlu0 %10007, %v3211_v54   ;;  %4508 = vmatmul.bf16.vlgmr.msrb.gmra.mxu2 %v4490_v33  ;;  %v3654_v54 = vadd.f32 %v13747_v2, %v3565_v50  ;;  %v3656_v29 = vadd.f32 %v13757_v5, %v3567_v51  ;;  %v14851_v11 = vpack.c.b16 %v13613_v35, %v13611_v53 }
 0x5af   : > { %4581 = vmatpush.bf16.xpose.msra.mxu2 %v4572_v40  ;;  %v4456_v19 = vmul.f32 %v10238_v9, %v13722_v42  ;;  %4544 = vmatpush.bf16.xpose.msrb.mxu3 %v4535_v48  ;;  %v3210_v40 = vld [vmem:[%s14825_s20 + $0xd8] sm:$0xff]  ;;  %v3666_v2 = vadd.f32 %v3665_v10, %v3577_v46  ;;  %v3664_v5 = vadd.f32 %v13801_v24, %v3575_v12 }
 0x5b0   : > { %v3214_v42 = vld [vmem:[%s14825_s20 + $0xf8] sm:$0xff]  ;;  %v3581_v3 = vpop.f32.mrf.mxu0  ;;  %v3753_v41 = vpack.c.bf16 %v3654_v54, %v3654_v54  ;;  %v3659_v15 = vadd.f32 %v13768_v39, %v3570_v0  ;;  %v3661_v24 = vadd.f32 %v13782_v14, %v3572_v37  ;;  %v3580_v13 = vadd.f32 %v3579_v20, %v13667_v52  ;;  %v4423_v54 = vpop.xlane.xlu2 %4422 }
 0x5b1   : > { %v4472_v57 = vpack.c.bf16 %v4456_v19, %v4456_v19  ;;  %v13823_v6 = vadd.f32 %v13787_v26, %v4456_v19  ;;  %v4353_v26 = vpop.xlane.xlu0 %4352  ;;  %v3758_v56 = vpack.c.bf16 %v3666_v2, %v3666_v2  ;;  %v3757_v53 = vpack.c.bf16 %v3664_v5, %v3664_v5 }
 0x5b2   : > { %v4369_v62 = vsub.f32 %v13728_v59, %v4353_v26  ;;  %v3754_v59 = vpack.c.bf16 %v3656_v29, %v3656_v29  ;;  %v4560_v44 = vunpack.c.l.b16 %v3753_v41  ;;  %v3755_v47 = vpack.c.bf16 %v3659_v15, %v3659_v15 }
 0x5b3   : > { %v4607_v27 = vunpack.c.l.b16 %v4472_v57  ;;  %v3670_v55 = vpop.f32.mrf.mxu1  ;;  %v4598_v35 = vunpack.c.l.b16 %v3758_v56  ;;  %v4597_v16 = vunpack.c.l.b16 %v3757_v53  ;;  %v3756_v57 = vpack.c.bf16 %v3661_v24, %v3661_v24 }
 0x5b4   : > { %3352 = vperm.xlu1 %10008, %v3210_v40   ;;  %v4400_v18 = vmul.f32 1.442695, %v4369_v62  ;;  %v4561_v43 = vunpack.c.l.b16 %v3754_v59  ;;  %v3582_v40 = vadd.f32 %v3581_v3, %v13661_v45  ;;  %v4562_v31 = vunpack.c.l.b16 %v3755_v47  ;;  %v3213_v45 = vld [vmem:[%s14825_s20 + $0xf0] sm:$0xff] }
 0x5b5   : > { %v4609_v21 = vpack.c.b16 %v4608_v22, %v4607_v27  ;;  %v4601_v19 = vpack.c.b16 %v4598_v35, %v4597_v16  ;;  %v3669_v23 = vadd.f32 %v3668_v63, %v3580_v13  ;;  %v4563_v39 = vunpack.c.l.b16 %v3756_v57  ;;  %v4419_v22 = vpop.xlane.xlu1 %4418 }
 0x5b6   : > { %4545 = vmatmul.bf16.vlgmr.msrb.gmra.mxu3 %v4527_v38  ;;  %10239 = vpow2.f32 %v4400_v18  ;;  %v4564_v9 = vpack.c.b16 %v4561_v43, %v4560_v44  ;;  %v3671_v27 = vadd.f32 %v3670_v55, %v3582_v40 }
 0x5b7   : > { %4618 = vmatpush.bf16.xpose.msra.mxu3 %v4609_v21  ;;  %v3759_v38 = vpack.c.bf16 %v3669_v23, %v3669_v23  ;;  %v4565_v14 = vpack.c.b16 %v4563_v39, %v4562_v31  ;;  %10241 = vrcp.f32 %v4419_v22 }
 0x5b8   : > { %v13841_v33 = vpop.f32.mrf.mxu0  ;;  %v3760_v21 = vpack.c.bf16 %v3671_v27, %v3671_v27 }
 0x5b9   : > { %v4599_v52 = vunpack.c.l.b16 %v3759_v38  ;;  %v3585_v56 = vadd.f32 %v13841_v33, %v13740_v4 }
 0x5ba   : > { %v4600_v3 = vunpack.c.l.b16 %v3760_v21 }
 0x5bb   : > { %v13849_v25 = vpop.f32.mrf.mxu1 }
 0x5bc   : > { %3372 = vperm.xlu1 %10008, %v3214_v42   ;;  %v13852_v48 = vpop.eup %10239  ;;  %v4602_v50 = vpack.c.b16 %v4600_v3, %v4599_v52  ;;  %v3674_v13 = vadd.f32 %v13849_v25, %v3585_v56 }
 0x5bd   : > { %v3318_v63 = vpop.permute.xlu1 %3317  ;;  %v10242_v44 = vpop.eup %10241 }
 0x5be   : > { %4513 = vmatmul.bf16.gmra.mxu2 %v14850_v61  ;;  %v3761_v23 = vpack.c.bf16 %v3674_v13, %v3674_v13 }
 0x5c0   : > { %v3586_v32 = vpop.f32.mrf.mxu0  ;;  %v4634_v3 = vunpack.c.l.b16 %v3761_v23 }
 0x5c1   : > { %v3587_v53 = vadd.f32 %v3586_v32, %v13742_v58 }
 0x5c2   : > { %v13871_v20 = vpop.permute.xlu0 %3307 }
 0x5c3   : > { %v13860_v10 = vpop.f32.mrf.mxu1 }
 0x5c5   : > { %v3323_v61 = vpop.permute.xlu1 %3322 }
 0x5c6   : > { %4550 = vmatmul.bf16.gmra.mxu3 %v14851_v11 }
 0x5c8   : > { %v13864_v36 = vpop.f32.mrf.mxu0 }
 0x5ca   : > { %v13878_v51 = vpop.permute.xlu0 %3327 }
 0x5cb   : > { %4432 = vadd.xlane.f32.xlu2 %v13852_v48  ;;  %v13867_v1 = vpop.f32.mrf.mxu1 }
 0x5cd   : > { %v13884_v41 = vpop.permute.xlu1 %3312 }
 0x5ce   : > { %4582 = vmatmul.bf16.vlgmr.msra.gmra.mxu2 %v4564_v9  ;;  %v4458_v9 = vmul.f32 %v10242_v44, %v13694_v49 }
 0x5d0   : > { %v13869_v42 = vpop.f32.mrf.mxu0  ;;  %v4474_v24 = vpack.c.bf16 %v4458_v9, %v4458_v9 }
 0x5d2   : > { %v13882_v29 = vpop.permute.xlu0 %3332  ;;  %v4644_v40 = vunpack.c.l.b16 %v4474_v24 }
 0x5d3   : > { %v13876_v26 = vpop.f32.mrf.mxu1 }
 0x5d6   : > { %4619 = vmatmul.bf16.vlgmr.msra.gmra.mxu3 %v4601_v19 }
 0x5d8   : > { %v3594_v62 = vpop.f32.mrf.mxu0 }
 0x5db   : > { %v13880_v55 = vpop.f32.mrf.mxu1 }
 0x5de   : > { %4587 = vmatmul.bf16.gmra.mxu2 %v4565_v14  ;;  %v3595_v14 = vadd.f32 %v3594_v62, %v3318_v63 }
 0x5e0   : > { %v3596_v18 = vpop.f32.mrf.mxu0  ;;  %v3684_v63 = vadd.f32 %v13880_v55, %v3595_v14 }
 0x5e1   : > { %v3597_v39 = vadd.f32 %v3596_v18, %v3323_v61  ;;  %v7537_v61 = vadd.f32 %v13823_v6, %v4458_v9  ;;  %v3592_v9 = vadd.f32 %v13869_v42, %v13884_v41 }
 0x5e2   : > { %v3765_v6 = vpack.c.bf16 %v3684_v63, %v3684_v63 }
 0x5e3   : > { %3367 = vperm.xlu2 %10006, %v3213_v45   ;;  %v3685_v59 = vpop.f32.mrf.mxu1 }
 0x5e6   : > { %4624 = vmatmul.bf16.gmra.mxu3 %v4602_v50  ;;  %v3686_v50 = vadd.f32 %v3685_v59, %v3597_v39  ;;  %v3590_v59 = vadd.f32 %v13864_v36, %v13871_v20  ;;  %v4671_v20 = vunpack.c.l.b16 %v3765_v6 }
 0x5e8   : > { %v13886_v12 = vpop.f32.mrf.mxu0  ;;  %v3679_v24 = vadd.f32 %v13867_v1, %v3590_v59 }
 0x5e9   : > { %v3600_v1 = vadd.f32 %v13886_v12, %v13878_v51 }
 0x5eb   : > { %v13888_v5 = vpop.f32.mrf.mxu1 }
 0x5f0   : > { %v13895_v35 = vpop.f32.mrf.mxu0 }
 0x5f1   : > { %v3602_v42 = vadd.f32 %v13895_v35, %v13882_v29 }
 0x5f3   : > { %v3690_v32 = vpop.f32.mrf.mxu1 }
 0x5f5   : > { %v4427_v46 = vpop.xlane.xlu2 %4426 }
 0x5f6   : > { %10243 = vrcp.f32 %v4427_v46 }
 0x5f8   : > { %v3604_v21 = vpop.f32.mrf.mxu0 }
 0x5fb   : > { %v3693_v62 = vpop.f32.mrf.mxu1 }
 0x5fc   : > { %v10244_v43 = vpop.eup %10243 }
 0x5fd   : > { %v4421_v11 = vpop.xlane.xlu0 %4420  ;;  %v4462_v0 = vmul.f32 %v10244_v43, %v13753_v60  ;;  %v3676_v60 = vadd.f32 %v13860_v10, %v3587_v53 }
 0x5fe   : > { %10245 = vrcp.f32 %v4421_v11  ;;  %v4429_v2 = vpop.xlane.xlu1 %4428 }
 0x5ff   : > { %10247 = vrcp.f32 %v4429_v2  ;;  %v4478_v57 = vpack.c.bf16 %v4462_v0, %v4462_v0  ;;  %v3762_v25 = vpack.c.bf16 %v3676_v60, %v3676_v60  ;;  %v3766_v2 = vpack.c.bf16 %v3686_v50, %v3686_v50 }
 0x600   : > { %10249 = vrcp.f32 %v4423_v54  ;;  %v3689_v60 = vadd.f32 %v13888_v5, %v3600_v1 }
 0x601   : > { %v4635_v46 = vunpack.c.l.b16 %v3762_v25 }
 0x603   : > { %v3695_v41 = vpop.f32.mrf.mxu1 }
 0x604   : > { %v10246_v37 = vpop.eup %10245 }
 0x605   : > { %v10248_v15 = vpop.eup %10247  ;;  %v4459_v16 = vmul.f32 %v10246_v37, %v13759_v17  ;;  %v4425_v19 = vpop.xlane.xlu0 %4424  ;;  %v4718_v17 = vunpack.c.l.b16 %v4478_v57  ;;  %v3763_v57 = vpack.c.bf16 %v3679_v24, %v3679_v24 }
 0x606   : > { %v10250_v47 = vpop.eup %10249  ;;  %v4463_v49 = vmul.f32 %v10248_v15, %v13761_v28  ;;  %10251 = vrcp.f32 %v4425_v19  ;;  %v4672_v15 = vunpack.c.l.b16 %v3766_v2  ;;  %v3681_v19 = vadd.f32 %v13876_v26, %v3592_v9 }
 0x607   : > { %v4475_v4 = vpack.c.bf16 %v4459_v16, %v4459_v16  ;;  %v4460_v58 = vmul.f32 %v10250_v47, %v13701_v34  ;;  %v7544_v45 = vadd.f32 %v13819_v30, %v4459_v16  ;;  %v3606_v16 = vpop.f32.mrf.mxu0 }
 0x608   : > { %v4479_v33 = vpack.c.bf16 %v4463_v49, %v4463_v49  ;;  %v4675_v13 = vpack.c.b16 %v4672_v15, %v4671_v20 }
 0x609   : > { %v4645_v31 = vunpack.c.l.b16 %v4475_v4  ;;  %v4476_v52 = vpack.c.bf16 %v4460_v58, %v4460_v58  ;;  %v7538_v43 = vadd.f32 %v7537_v61, %v4460_v58  ;;  %v3691_v4 = vadd.f32 %v3690_v32, %v3602_v42  ;;  %v3343_v58 = vpop.permute.xlu2 %3342 }
 0x60a   : > { %v4719_v27 = vunpack.c.l.b16 %v4479_v33  ;;  %v3607_v23 = vadd.f32 %v3606_v16, %v3343_v58 }
 0x60b   : > { %v4646_v22 = vpack.c.b16 %v4645_v31, %v4644_v40  ;;  %v4681_v11 = vunpack.c.l.b16 %v4476_v52  ;;  %v7539_v53 = vadd.f32 %v7538_v43, %v4462_v0  ;;  %v3764_v0 = vpack.c.bf16 %v3681_v19, %v3681_v19  ;;  %v3698_v39 = vpop.f32.mrf.mxu1  ;;  %v8323_v19 = vld [vmem:[#allocation14 + $0x70] sm:$0xf] }
 0x60c   : > { %v10252_v38 = vpop.eup %10251  ;;  %v4720_v28 = vpack.c.b16 %v4719_v27, %v4718_v17  ;;  %v3768_v40 = vpack.c.bf16 %v3691_v4, %v3691_v4  ;;  %v3767_v31 = vpack.c.bf16 %v3689_v60, %v3689_v60  ;;  %v3696_v51 = vadd.f32 %v3695_v41, %v3607_v23  ;;  %v8325_v60 = vld [vmem:[#allocation14 + $0x78] sm:$0xf0] }
 0x60d   : > { %v4461_v10 = vmul.f32 %v10252_v38, %v13770_v8  ;;  %4655 = vmatpush.bf16.xpose.msrb.mxu2 %v4646_v22  ;;  %v4431_v34 = vpop.xlane.xlu0 %4430  ;;  %v4638_v8 = vpack.c.b16 %v4635_v46, %v4634_v3  ;;  %v4637_v26 = vunpack.c.l.b16 %v3764_v0 }
 0x60e   : > { %10253 = vrcp.f32 %v4431_v34  ;;  %v4674_v27 = vunpack.c.l.b16 %v3768_v40  ;;  %v4673_v38 = vunpack.c.l.b16 %v3767_v31  ;;  %v3770_v14 = vpack.c.bf16 %v3696_v51, %v3696_v51 }
 0x60f   : > { %v4477_v54 = vpack.c.bf16 %v4461_v10, %v4461_v10  ;;  %v7545_v18 = vadd.f32 %v7544_v45, %v4461_v10  ;;  %v3609_v33 = vpop.f32.mrf.mxu0 }
 0x610   : > { %v4676_v32 = vpack.c.b16 %v4674_v27, %v4673_v38  ;;  %v4709_v45 = vunpack.c.l.b16 %v3770_v14  ;;  %v9552_v27 = vld [vmem:[#allocation14 + $0x64] sm:$0xf] }
 0x611   : > { %v4682_v44 = vunpack.c.l.b16 %v4477_v54  ;;  %v13906_v30 = vadd.f32 %v7545_v18, %v4463_v49  ;;  %v4636_v49 = vunpack.c.l.b16 %v3763_v57 }
 0x613   : > { %v4683_v56 = vpack.c.b16 %v4682_v44, %v4681_v11  ;;  %v4639_v35 = vpack.c.b16 %v4637_v26, %v4636_v49  ;;  %v9554_v26 = vld [vmem:[#allocation14 + $0x74] sm:$0xf] }
 0x614   : > { %v10254_v37 = vpop.eup %10253  ;;  %4656 = vmatmul.bf16.vlgmr.msrb.gmra.mxu2 %v4638_v8  ;;  %v8328_v40 = vor.u32 %v9554_v26, %v8325_v60  ;;  %v8291_v26 = vld [vmem:[#allocation14 + $0x30] sm:$0xf]  ;;  %v9547_v60 = vld [vmem:[#allocation14 + $0x34] sm:$0xf0] }
 0x615   : > { %4729 = vmatpush.bf16.xpose.msra.mxu2 %v4720_v28  ;;  %v13914_v55 = vmul.f32 %v10254_v37, %v13780_v7  ;;  %4692 = vmatpush.bf16.xpose.msrb.mxu3 %v4683_v56  ;;  %v3700_v28 = vpop.f32.mrf.mxu1 }
 0x616   : > { %v3338_v7 = vpop.permute.xlu1 %3337  ;;  %5056 = vmatpush.bf16.xpose.msra.mxu1 %v8328_v40 }
 0x617   : > { %v7540_v36 = vadd.f32 %v7539_v53, %v13914_v55  ;;  %v3605_v29 = vadd.f32 %v3604_v21, %v3338_v7  ;;  %v3611_v12 = vpop.f32.mrf.mxu0  ;;  %v3348_v21 = vpop.permute.xlu2 %3347  ;;  %v4480_v9 = vpack.c.bf16 %v13914_v55, %v13914_v55 }
 0x618   : > { %v3610_v3 = vadd.f32 %v3609_v33, %v3348_v21  ;;  %v8315_v33 = vld [vmem:[#allocation14 + $0x60] sm:$0xf] }
 0x619   : > { %v7548_v47 = vmul.f32 0.125, %v7540_v36  ;;  %v3694_v22 = vadd.f32 %v3693_v62, %v3605_v29  ;;  %v4755_v41 = vunpack.c.l.b16 %v4480_v9  ;;  %v9553_v29 = vld [vmem:[#allocation14 + $0x64] sm:$0xf0] }
 0x61a   : > { %v3699_v54 = vadd.f32 %v3698_v39, %v3610_v3  ;;  %v8316_v23 = vor.u32 %v9553_v29, %v8315_v33  ;;  %v8292_v33 = vor.u32 %v9547_v60, %v8291_v26  ;;  %v9546_v29 = vld [vmem:[#allocation14 + $0x34] sm:$0xf]  ;;  %v8347_v60 = vld [vmem:[#allocation14 + $0xa0] sm:$0xf] }
 0x61b   : > { %7550 = vst [vmem:[%s13921_s12] sm:$0xff] %v7548_v47  ;;  %v3769_v25 = vpack.c.bf16 %v3694_v22, %v3694_v22  ;;  %v9555_v47 = vld [vmem:[#allocation14 + $0x74] sm:$0xf0]  ;;  %v8317_v22 = vld [vmem:[#allocation14 + $0x68] sm:$0xf0] }
 0x61c   : > { %4693 = vmatmul.bf16.vlgmr.msrb.gmra.mxu3 %v4675_v13  ;;  %v3771_v63 = vpack.c.bf16 %v3699_v54, %v3699_v54  ;;  %v8324_v57 = vor.u32 %v9555_v47, %v8323_v19 }
 0x61d   : > { %v4708_v5 = vunpack.c.l.b16 %v3769_v25  ;;  %v3703_v18 = vpop.f32.mrf.mxu1  ;;  %v8320_v25 = vor.u32 %v9552_v27, %v8317_v22  ;;  %v9571_v27 = vld [vmem:[#allocation14 + $0xf4] sm:$0xf0] }
 0x61e   : > { %v3363_v17 = vpop.permute.xlu1 %3362  ;;  %v4710_v8 = vunpack.c.l.b16 %v3771_v63  ;;  %5042 = vmatpush.bf16.xpose.msra.mxu0 %v8324_v57  ;;  %v8299_v57 = vld [vmem:[#allocation14 + $0x40] sm:$0xf] }
 0x61f   : > { %v4712_v10 = vpack.c.b16 %v4709_v45, %v4708_v5  ;;  %v3614_v50 = vpop.f32.mrf.mxu0  ;;  %5057 = vmatpush.bf16.xpose.msra.mxu1 %v8320_v25 }
 0x620   : > { %v3358_v2 = vpop.permute.xlu0 %3357 }
 0x621   : > { %v3615_v56 = vadd.f32 %v3614_v50, %v3358_v2 }
 0x623   : > { %v3704_v15 = vadd.f32 %v3703_v18, %v3615_v56 }
 0x624   : > { %4661 = vmatmul.bf16.gmra.mxu2 %v4639_v35 }
 0x625   : > { %v3705_v43 = vpop.f32.mrf.mxu1  ;;  %v3773_v0 = vpack.c.bf16 %v3704_v15, %v3704_v15 }
 0x626   : > { %v3353_v52 = vpop.permute.xlu1 %3352  ;;  %5043 = vmatpush.bf16.xpose.msra.mxu0 %v8316_v23 }
 0x627   : > { %v3612_v34 = vadd.f32 %v3611_v12, %v3353_v52  ;;  %v3616_v62 = vpop.f32.mrf.mxu0  ;;  %v4745_v49 = vunpack.c.l.b16 %v3773_v0  ;;  %v8301_v0 = vld [vmem:[#allocation14 + $0x48] sm:$0xf0] }
 0x628   : > { %v3617_v6 = vadd.f32 %v3616_v62, %v3363_v17 }
 0x629   : > { %v3701_v61 = vadd.f32 %v3700_v28, %v3612_v34 }
 0x62a   : > { %v3706_v13 = vadd.f32 %v3705_v43, %v3617_v6 }
 0x62b   : > { %v3772_v46 = vpack.c.bf16 %v3701_v61, %v3701_v61 }
 0x62c   : > { %4698 = vmatmul.bf16.gmra.mxu3 %v4676_v32  ;;  %v3774_v1 = vpack.c.bf16 %v3706_v13, %v3706_v13 }
 0x62d   : > { %v4711_v11 = vunpack.c.l.b16 %v3772_v46  ;;  %v3708_v55 = vpop.f32.mrf.mxu1 }
 0x62e   : > { %v3373_v35 = vpop.permute.xlu1 %3372 }
 0x62f   : > { %v4713_v59 = vpack.c.b16 %v4711_v11, %v4710_v8  ;;  %v3619_v24 = vpop.f32.mrf.mxu0  ;;  %v8307_v11 = vld [vmem:[#allocation14 + $0x50] sm:$0xf]  ;;  %v9550_v8 = vld [vmem:[#allocation14 + $0x54] sm:$0xf] }
 0x631   : > { %v13930_v16 = vpop.f32.mrf.mxu2 }
 0x634   : > { %4730 = vmatmul.bf16.vlgmr.msra.gmra.mxu2 %v4712_v10 }
 0x635   : > { %v3710_v51 = vpop.f32.mrf.mxu1 }
 0x637   : > { %v3621_v58 = vpop.f32.mrf.mxu0 }
 0x638   : > { %v3622_v38 = vadd.f32 %v3621_v58, %v3373_v35  ;;  %v8293_v35 = vld [vmem:[#allocation14 + $0x38] sm:$0xf0] }
 0x639   : > { %v4511_v31 = vpop.f32.mrf.mxu2  ;;  %v4546_v45 = vpop.f32.mrf.mxu3 }
 0x63a   : > { %v3711_v32 = vadd.f32 %v3710_v51, %v3622_v38  ;;  %v9570_v38 = vld [vmem:[#allocation14 + $0xf4] sm:$0xf]  ;;  %v8389_v51 = vld [vmem:[#allocation14 + $0xf8] sm:$0xf0] }
 0x63c   : > { %v3776_v28 = vpack.c.bf16 %v3711_v32, %v3711_v32  ;;  %v8379_v32 = vld [vmem:[#allocation14 + $0xe0] sm:$0xf] }
 0x63e   : > { %v4433_v44 = vpop.xlane.xlu2 %4432  ;;  %v4748_v21 = vunpack.c.l.b16 %v3776_v28 }
 0x63f   : > { %10255 = vrcp.f32 %v4433_v44  ;;  %v9551_v44 = vld [vmem:[#allocation14 + $0x54] sm:$0xf0] }
 0x640   : > { %v8308_v2 = vor.u32 %v9551_v44, %v8307_v11  ;;  %v8371_v11 = vld [vmem:[#allocation14 + $0xd0] sm:$0xf]  ;;  %v9567_v44 = vld [vmem:[#allocation14 + $0xd4] sm:$0xf0] }
 0x641   : > { %v4514_v5 = vpop.f32.mrf.mxu2  ;;  %v4548_v3 = vpop.f32.mrf.mxu3 }
 0x642   : > { %5044 = vmatpush.bf16.xpose.msra.mxu0 %v8308_v2  ;;  %v8373_v2 = vld [vmem:[#allocation14 + $0xd8] sm:$0xf0] }
 0x644   : > { %4735 = vmatmul.bf16.gmra.mxu2 %v4713_v59  ;;  %v8309_v59 = vld [vmem:[#allocation14 + $0x58] sm:$0xf0] }
 0x645   : > { %v10256_v37 = vpop.eup %10255  ;;  %v8312_v43 = vor.u32 %v9550_v8, %v8309_v59  ;;  %v9566_v8 = vld [vmem:[#allocation14 + $0xd4] sm:$0xf] }
 0x646   : > { %v4465_v53 = vmul.f32 %v10256_v37, %v13852_v48  ;;  %v3368_v4 = vpop.permute.xlu2 %3367 }
 0x647   : > { %v3620_v17 = vadd.f32 %v3619_v24, %v3368_v4  ;;  %5058 = vmatpush.bf16.xpose.msra.mxu1 %v8312_v43  ;;  %v8372_v43 = vor.u32 %v9567_v44, %v8371_v11 }
 0x648   : > { %v4481_v36 = vpack.c.bf16 %v4465_v53, %v4465_v53  ;;  %v7547_v20 = vadd.f32 %v13906_v30, %v4465_v53  ;;  %v4746_v30 = vunpack.c.l.b16 %v3774_v1 }
 0x649   : > { %v3709_v12 = vadd.f32 %v3708_v55, %v3620_v17  ;;  %v4516_v34 = vpop.f32.mrf.mxu2  ;;  %v4551_v61 = vpop.f32.mrf.mxu3  ;;  %v8387_v17 = vld [vmem:[#allocation14 + $0xf0] sm:$0xf] }
 0x64a   : > { %v7549_v42 = vmul.f32 0.125, %v7547_v20  ;;  %v4756_v7 = vunpack.c.l.b16 %v4481_v36  ;;  %v4749_v39 = vpack.c.b16 %v4746_v30, %v4745_v49  ;;  %v8388_v22 = vor.u32 %v9571_v27, %v8387_v17  ;;  %v9558_v17 = vld [vmem:[#allocation14 + $0x94] sm:$0xf]  ;;  %v8341_v27 = vld [vmem:[#allocation14 + $0x98] sm:$0xf0] }
 0x64b   : > { %v3775_v14 = vpack.c.bf16 %v3709_v12, %v3709_v12  ;;  %v8392_v12 = vor.u32 %v9570_v38, %v8389_v51  ;;  %v8344_v38 = vor.u32 %v9558_v17, %v8341_v27  ;;  %v9602_v17 = vld [vmem:[#allocation16 + $0xf4] sm:$0xf]  ;;  %v8517_v27 = vld [vmem:[#allocation16 + $0xf8] sm:$0xf0] }
 0x64c   : > { %7551 = vst [vmem:[%s13921_s12 + $0x8] sm:$0xff] %v7549_v42  ;;  %v4757_v48 = vpack.c.b16 %v4756_v7, %v4755_v41  ;;  %v9549_v42 = vld [vmem:[#allocation14 + $0x44] sm:$0xf0]  ;;  %v9548_v41 = vld [vmem:[#allocation14 + $0x44] sm:$0xf]  ;;  %5070 = vmatpush.bf16.xpose.msrb.mxu2 %v8388_v22 }
 0x64d   : > { %v4747_v52 = vunpack.c.l.b16 %v3775_v14  ;;  %v8300_v7 = vor.u32 %v9549_v42, %v8299_v57  ;;  %v9569_v14 = vld [vmem:[#allocation14 + $0xe4] sm:$0xf0]  ;;  %v9543_v57 = vld [vmem:[#allocation14 + $0x14] sm:$0xf0]  ;;  %v8355_v42 = vld [vmem:[#allocation14 + $0xb0] sm:$0xf] }
 0x64e   : > { %4766 = vmatpush.bf16.xpose.msra.mxu3 %v4757_v48  ;;  %v8380_v28 = vor.u32 %v9569_v14, %v8379_v32  ;;  %v9540_v32 = vld [vmem:[#allocation14 + $0x4] sm:$0xf] }
 0x64f   : > { %v4750_v10 = vpack.c.b16 %v4748_v21, %v4747_v52  ;;  %5045 = vmatpush.bf16.xpose.msra.mxu0 %v8300_v7  ;;  %v9568_v52 = vld [vmem:[#allocation14 + $0xe4] sm:$0xf]  ;;  %v9542_v7 = vld [vmem:[#allocation14 + $0x14] sm:$0xf] }
 0x651   : > { %v4583_v50 = vpop.f32.mrf.mxu2  ;;  %v4553_v18 = vpop.f32.mrf.mxu3 }
 0x654   : > { %5071 = vmatpush.bf16.xpose.msrb.mxu2 %v8380_v28  ;;  %v8331_v28 = vld [vmem:[#allocation14 + $0x80] sm:$0xf] }
 0x655   : > { %4767 = vmatmul.bf16.vlgmr.msra.gmra.mxu3 %v4749_v39 }
 0x656   : > { %5084 = vmatpush.bf16.xpose.msrb.mxu3 %v8392_v12  ;;  %v8267_v12 = vld [vmem:[#allocation14] sm:$0xf] }
 0x657   : > { %5046 = vmatpush.bf16.xpose.msra.mxu0 %v8292_v33 }
 0x659   : > { %v13934_v54 = vpop.f32.mrf.mxu2  ;;  %v13938_v63 = vpop.f32.mrf.mxu3 }
 0x65c   : > { %5072 = vmatpush.bf16.xpose.msrb.mxu2 %v8372_v43 }
 0x661   : > { %v13936_v46 = vpop.f32.mrf.mxu2  ;;  %v13942_v56 = vpop.f32.mrf.mxu3 }
 0x665   : > { %4772 = vmatmul.bf16.gmra.mxu3 %v4750_v10 }
 0x669   : > { %v13940_v62 = vpop.f32.mrf.mxu2  ;;  %v13945_v9 = vpop.f32.mrf.mxu3 }
 0x671   : > { %v13947_v24 = vpop.f32.mrf.mxu3 }
 0x697   : > { %v4657_v37 = vpop.f32.mrf.mxu2 }
 0x698   : > { %v10081_v6 = vpack.i.bf16 %v4657_v37, %v13930_v16  ;;  %v8304_v16 = vor.u32 %v9548_v41, %v8301_v0  ;;  %v8376_v37 = vor.u32 %v9566_v8, %v8373_v2  ;;  %v8277_v0 = vld [vmem:[#allocation14 + $0x18] sm:$0xf0]  ;;  %v4876_v8 = vld [vmem:[%s14852_s14] sm:$0x3] }
 0x699   : > { %v4878_v2 = vperm.slane %v4876_v8, 0 }
 0x69a   : > { %10082 = vxpose.xlu2.b32.start [1/16] (narrow) %v10081_v6, 16  ;;  %5059 = vmatpush.bf16.xpose.msra.mxu1 %v8304_v16 }
 0x69f   : > { %v4659_v53 = vpop.f32.mrf.mxu2  ;;  %v4694_v19 = vpop.f32.mrf.mxu3 }
 0x6a0   : > { %v10083_v15 = vpack.i.bf16 %v4659_v53, %v4511_v31  ;;  %v10089_v55 = vpack.i.bf16 %v4694_v19, %v4546_v45  ;;  %v8296_v31 = vor.u32 %v9546_v29, %v8293_v35  ;;  %v8381_v45 = vld [vmem:[#allocation14 + $0xe8] sm:$0xf0]  ;;  %v8363_v53 = vld [vmem:[#allocation14 + $0xc0] sm:$0xf] }
 0x6a1   : > { %v8384_v21 = vor.u32 %v9568_v52, %v8381_v45  ;;  %v8365_v19 = vld [vmem:[#allocation14 + $0xc8] sm:$0xf0]  ;;  %v9557_v52 = vld [vmem:[#allocation14 + $0x84] sm:$0xf0] }
 0x6a2   : > { %10084 = vxpose.xlu2.b32.cont [2/16] (narrow) %v10083_v15, 16  ;;  %5060 = vmatpush.bf16.xpose.msra.mxu1 %v8296_v31  ;;  %v9565_v15 = vld [vmem:[#allocation14 + $0xc4] sm:$0xf0]  ;;  %v8339_v31 = vld [vmem:[#allocation14 + $0x90] sm:$0xf]  ;;  %v8332_v45 = vor.u32 %v9557_v52, %v8331_v28 }
 0x6a3   : > { %5085 = vmatpush.bf16.xpose.msrb.mxu3 %v8384_v21  ;;  %v9556_v21 = vld [vmem:[#allocation14 + $0x84] sm:$0xf] }
 0x6a7   : > { %v4662_v36 = vpop.f32.mrf.mxu2  ;;  %v4696_v48 = vpop.f32.mrf.mxu3 }
 0x6a8   : > { %v10085_v20 = vpack.i.bf16 %v4662_v36, %v4514_v5  ;;  %v10091_v1 = vpack.i.bf16 %v4696_v48, %v4548_v3  ;;  %v9545_v3 = vld [vmem:[#allocation14 + $0x24] sm:$0xf0]  ;;  %v8364_v36 = vor.u32 %v9565_v15, %v8363_v53  ;;  %v9562_v48 = vld [vmem:[#allocation14 + $0xb4] sm:$0xf] }
 0x6aa   : > { %10086 = vxpose.xlu2.b32.cont [3/16] (narrow) %v10085_v20, 16  ;;  %v9564_v20 = vld [vmem:[#allocation14 + $0xc4] sm:$0xf]  ;;  %5073 = vmatpush.bf16.xpose.msrb.mxu2 %v8364_v36 }
 0x6ab   : > { %5086 = vmatpush.bf16.xpose.msrb.mxu3 %v8376_v37  ;;  %v4879_v37 = vperm.slane %v4876_v8, 1 }
 0x6af   : > { %v4664_v47 = vpop.f32.mrf.mxu2  ;;  %v4699_v49 = vpop.f32.mrf.mxu3 }
 0x6b0   : > { %v10087_v13 = vpack.i.bf16 %v4664_v47, %v4516_v34  ;;  %v10093_v4 = vpack.i.bf16 %v4699_v49, %v4551_v61  ;;  %v8283_v34 = vld [vmem:[#allocation14 + $0x20] sm:$0xf]  ;;  %v9544_v61 = vld [vmem:[#allocation14 + $0x24] sm:$0xf]  ;;  %v8368_v47 = vor.u32 %v9564_v20, %v8365_v19 }
 0x6b2   : > { %10088 = vxpose.xlu2.b32.cont [4/16] (narrow) %v10087_v13, 16  ;;  %v8275_v13 = vld [vmem:[#allocation14 + $0x10] sm:$0xf] }
 0x6b3   : > { %5087 = vmatpush.bf16.xpose.msrb.mxu3 %v8368_v47  ;;  %v8276_v41 = vor.u32 %v9543_v57, %v8275_v13  ;;  %v10327_v47 = vld [vmem:[%s11098_s27] sm:$0xff]  ;;  %v10328_v57 = vld [vmem:[%s11098_s27 + $0x8] sm:$0xff] }
 0x6b7   : > { %v4701_v30 = vpop.f32.mrf.mxu3  ;;  %v4731_v58 = vpop.f32.mrf.mxu2 }
 0x6b8   : > { %v10095_v40 = vpack.i.bf16 %v4701_v30, %v4553_v18  ;;  %v10097_v23 = vpack.i.bf16 %v4731_v58, %v4583_v50  ;;  %v8284_v50 = vor.u32 %v9545_v3, %v8283_v34  ;;  %v8285_v18 = vld [vmem:[#allocation14 + $0x28] sm:$0xf0]  ;;  %v9561_v30 = vld [vmem:[#allocation14 + $0xa4] sm:$0xf0]  ;;  %v9560_v58 = vld [vmem:[#allocation14 + $0xa4] sm:$0xf] }
 0x6b9   : > { %v8348_v29 = vor.u32 %v9561_v30, %v8347_v60  ;;  %v8451_v30 = vld [vmem:[#allocation16 + $0x70] sm:$0xf] }
 0x6ba   : > { %10090 = vxpose.xlu2.b32.cont [5/16] (narrow) %v10089_v55, 16  ;;  %5047 = vmatpush.bf16.xpose.msra.mxu0 %v8284_v50  ;;  %v9563_v55 = vld [vmem:[#allocation14 + $0xb4] sm:$0xf0] }
 0x6bf   : > { %v4733_v39 = vpop.f32.mrf.mxu2 }
 0x6c0   : > { %v10099_v25 = vpack.i.bf16 %v4733_v39, %v13934_v54  ;;  %v8288_v54 = vor.u32 %v9544_v61, %v8285_v18  ;;  %v9559_v39 = vld [vmem:[#allocation14 + $0x94] sm:$0xf0] }
 0x6c1   : > { %v8340_v22 = vor.u32 %v9559_v39, %v8339_v31  ;;  %v9603_v31 = vld [vmem:[#allocation16 + $0xf4] sm:$0xf0] }
 0x6c2   : > { %10092 = vxpose.xlu2.b32.cont [6/16] (narrow) %v10091_v1, 16  ;;  %5061 = vmatpush.bf16.xpose.msra.mxu1 %v8288_v54  ;;  %v8280_v1 = vor.u32 %v9542_v7, %v8277_v0 }
 0x6c3   : > { %5048 = vmatpush.bf16.xpose.msra.mxu0 %v8276_v41 }
 0x6c7   : > { %v4736_v5 = vpop.f32.mrf.mxu2 }
 0x6c8   : > { %v10101_v10 = vpack.i.bf16 %v4736_v5, %v13936_v46  ;;  %v8269_v5 = vld [vmem:[#allocation14 + $0x8] sm:$0xf0] }
 0x6ca   : > { %10094 = vxpose.xlu2.b32.cont [7/16] (narrow) %v10093_v4, 16  ;;  %5062 = vmatpush.bf16.xpose.msra.mxu1 %v8280_v1  ;;  %v8356_v4 = vor.u32 %v9563_v55, %v8355_v42 }
 0x6cc   : > { %5074 = vmatpush.bf16.xpose.msrb.mxu2 %v8356_v4 }
 0x6cf   : > { %v4738_v59 = vpop.f32.mrf.mxu2 }
 0x6d0   : > { %v10103_v46 = vpack.i.bf16 %v4738_v59, %v13940_v62  ;;  %v8357_v62 = vld [vmem:[#allocation14 + $0xb8] sm:$0xf0] }
 0x6d1   : > { %v8360_v26 = vor.u32 %v9562_v48, %v8357_v62 }
 0x6d2   : > { %10096 = vxpose.xlu2.b32.cont [8/16] (narrow) %v10095_v40, 16  ;;  %v8349_v40 = vld [vmem:[#allocation14 + $0xa8] sm:$0xf0] }
 0x6d3   : > { %5088 = vmatpush.bf16.xpose.msrb.mxu3 %v8360_v26  ;;  %v8352_v35 = vor.u32 %v9560_v58, %v8349_v40  ;;  %v10330_v26 = vld [vmem:[%s11098_s27 + $0x18] sm:$0xff] }
 0x6d4   : > { %5075 = vmatpush.bf16.xpose.msrb.mxu2 %v8348_v29  ;;  %v9587_v58 = vld [vmem:[#allocation16 + $0x74] sm:$0xf0]  ;;  %v9586_v40 = vld [vmem:[#allocation16 + $0x74] sm:$0xf]  ;;  %v8453_v29 = vld [vmem:[#allocation16 + $0x78] sm:$0xf0] }
 0x6d8   : > { %v4768_v6 = vpop.f32.mrf.mxu3 }
 0x6d9   : > { %v10105_v16 = vpack.i.bf16 %v4768_v6, %v13938_v63 }
 0x6da   : > { %10098 = vxpose.xlu2.b32.cont [9/16] (narrow) %v10097_v23, 16 }
 0x6db   : > { %5089 = vmatpush.bf16.xpose.msrb.mxu3 %v8352_v35  ;;  %v8515_v35 = vld [vmem:[#allocation16 + $0xf0] sm:$0xf] }
 0x6dc   : > { %5076 = vmatpush.bf16.xpose.msrb.mxu2 %v8340_v22  ;;  %v8516_v39 = vor.u32 %v9603_v31, %v8515_v35  ;;  %v8520_v22 = vor.u32 %v9602_v17, %v8517_v27  ;;  %v8421_v35 = vld [vmem:[#allocation16 + $0x38] sm:$0xf0]  ;;  %v8483_v31 = vld [vmem:[#allocation16 + $0xb0] sm:$0xf]  ;;  %v9594_v17 = vld [vmem:[#allocation16 + $0xb4] sm:$0xf] }
 0x6dd   : > { %v8485_v27 = vld [vmem:[#allocation16 + $0xb8] sm:$0xf0] }
 0x6e0   : > { %v4770_v49 = vpop.f32.mrf.mxu3 }
 0x6e1   : > { %v10107_v33 = vpack.i.bf16 %v4770_v49, %v13942_v56  ;;  %v10329_v49 = vld [vmem:[%s11098_s27 + $0x10] sm:$0xff]  ;;  %s9829_s27 = sshll.u32 %s10792_s24, 4 }
 0x6e2   : > { %10100 = vxpose.xlu2.b32.cont [10/16] (narrow) %v10099_v25, 16  ;;  %v9541_v25 = vld [vmem:[#allocation14 + $0x4] sm:$0xf0]  ;;  %s7591_s8 = scalar_lea.hbm %s14884_s4, %s9829_s27 }
 0x6e3   : > { %5090 = vmatpush.bf16.xpose.msrb.mxu3 %v8344_v38  ;;  %v8268_v14 = vor.u32 %v9541_v25, %v8267_v12  ;;  %v8443_v38 = vld [vmem:[#allocation16 + $0x60] sm:$0xf]  ;;  %v8445_v12 = vld [vmem:[#allocation16 + $0x68] sm:$0xf0]  ;;  %s7594_s19 = sshll.u32 %s7591_s8, 4  ;;  %s7595_s19 = int_to_ptr.hbm [resolvable:$true] %s7594_s19 }
 0x6e4   : > { %5077 = vmatpush.bf16.xpose.msrb.mxu2 %v8332_v45  ;;  %v8507_v25 = vld [vmem:[#allocation16 + $0xe0] sm:$0xf]  ;;  %s10676_s15 = sshra.s32 %s7595_s19, 4  ;;  %s10677_s15 = int_to_ptr.hbm [resolvable:$true] %s10676_s15 }
 0x6e5   : > { %5049 = vmatpush.bf16.xpose.msra.mxu0 %v8268_v14  ;;  %v9600_v14 = vld [vmem:[#allocation16 + $0xe4] sm:$0xf]  ;;  %s10678_s16 = scalar_lea.hbm %s10677_s15, 16  ;;  %p10683_p11 = scmp.lt.s32.totalorder %s10677_s15, %s14884_s4 }
 0x6e6   : > { %p10679_p1 = scmp.ne.s32.totalorder %s10677_s15, %s10678_s16  ;;  %p10684_p12 = scmp.lt.s32.totalorder %s10682_s26, %s10678_s16 }
 0x6e8   : > { %v4773_v63 = vpop.f32.mrf.mxu3  ;;  %p10680_p9 = pnand %p10679_p1, %p11057_p5  ;;  %p10685_p13 = por %p10684_p12, %p10683_p11 }
 0x6e9   : > { %v10109_v23 = vpack.i.bf16 %v4773_v63, %v13945_v9  ;;  %v8272_v9 = vor.u32 %v9540_v32, %v8269_v5  ;;  %v8452_v63 = vor.u32 %v9587_v58, %v8451_v30  ;;  %v9601_v32 = vld [vmem:[#allocation16 + $0xe4] sm:$0xf0]  ;;  %v8509_v5 = vld [vmem:[#allocation16 + $0xe8] sm:$0xf0] }
 0x6ea   : > { %10102 = vxpose.xlu2.b32.cont [11/16] (narrow) %v10101_v10, 16  ;;  %v8333_v10 = vld [vmem:[#allocation14 + $0x88] sm:$0xf0]  ;;  %v8512_v45 = vor.u32 %v9600_v14, %v8509_v5  ;;  %v8475_v5 = vld [vmem:[#allocation16 + $0xa0] sm:$0xf]  ;;  %p10681_p10 = pneg %p10680_p9 }
 0x6eb   : > { %v8336_v34 = vor.u32 %v9556_v21, %v8333_v10  ;;  %5063 = vmatpush.bf16.xpose.msra.mxu1 %v8272_v9  ;;  %v8508_v9 = vor.u32 %v9601_v32, %v8507_v25  ;;  %v8435_v21 = vld [vmem:[#allocation16 + $0x50] sm:$0xf]  ;;  %v9583_v10 = vld [vmem:[#allocation16 + $0x54] sm:$0xf0]  ;;  %v9577_v25 = vld [vmem:[#allocation16 + $0x24] sm:$0xf0] }
 0x6ec   : > { %5988 = vmatpush.bf16.xpose.msra.mxu2 %v8516_v39  ;;  %v9576_v32 = vld [vmem:[#allocation16 + $0x24] sm:$0xf]  ;;  %v8413_v14 = vld [vmem:[#allocation16 + $0x28] sm:$0xf0]  ;;  %p10686_p0 = pnand %p10685_p13, %p10681_p10 }
 0x6ed   : > { %5091 = vmatpush.bf16.xpose.msrb.mxu3 %v8336_v34  ;;  %5960 = vmatpush.bf16.xpose.msrb.mxu0 %v8452_v63  ;;  %v9582_v34 = vld [vmem:[#allocation16 + $0x54] sm:$0xf]  ;;  %v9579_v63 = vld [vmem:[#allocation16 + $0x34] sm:$0xf0] }
 0x6f0   : > { %v4775_v51 = vpop.f32.mrf.mxu3 }
 0x6f1   : > { %v10111_v56 = vpack.i.bf16 %v4775_v51, %v13947_v24  ;;  %v9585_v51 = vld [vmem:[#allocation16 + $0x64] sm:$0xf0] }
 0x6f2   : > { %10104 = vxpose.xlu2.b32.cont [12/16] (narrow) %v10103_v46, 16  ;;  %v8444_v28 = vor.u32 %v9585_v51, %v8443_v38 }
 0x6f4   : > { %5989 = vmatpush.bf16.xpose.msra.mxu2 %v8508_v9  ;;  %v8477_v9 = vld [vmem:[#allocation16 + $0xa8] sm:$0xf0] }
 0x6f5   : > { %6002 = vmatpush.bf16.xpose.msra.mxu3 %v8520_v22  ;;  %5961 = vmatpush.bf16.xpose.msrb.mxu0 %v8444_v28  ;;  %v9593_v28 = vld [vmem:[#allocation16 + $0xa4] sm:$0xf0] }
 0x6fa   : > { %10106 = vxpose.xlu2.b32.cont [13/16] (narrow) %v10105_v16, 16 }
 0x6fd   : > { %6003 = vmatpush.bf16.xpose.msra.mxu3 %v8512_v45 }
 0x702   : > { %10108 = vxpose.xlu2.b32.cont [14/16] (narrow) %v10107_v33, 16 }
 0x70a   : > { %10110 = vxpose.xlu2.b32.cont [15/16] (narrow) %v10109_v23, 16  ;;  %v8456_v23 = vor.u32 %v9586_v40, %v8453_v29  ;;  %v8419_v40 = vld [vmem:[#allocation16 + $0x30] sm:$0xf]  ;;  %v9578_v29 = vld [vmem:[#allocation16 + $0x34] sm:$0xf] }
 0x70b   : > { %v8420_v22 = vor.u32 %v9579_v63, %v8419_v40  ;;  %v8424_v38 = vor.u32 %v9578_v29, %v8421_v35  ;;  %v8645_v40 = vld [vmem:[#allocation16 + $0x1f8] sm:$0xf0] }
 0x70c   : > { %5974 = vmatpush.bf16.xpose.msrb.mxu1 %v8456_v23  ;;  %v9595_v23 = vld [vmem:[#allocation16 + $0xb4] sm:$0xf0] }
 0x70d   : > { %v8484_v51 = vor.u32 %v9595_v23, %v8483_v31 }
 0x712   : > { %10112 = vxpose.xlu2.b32.end [16/16] (narrow) %v10111_v56, 16  ;;  %v9584_v56 = vld [vmem:[#allocation16 + $0x64] sm:$0xf] }
 0x713   : > { %v8448_v52 = vor.u32 %v9584_v56, %v8445_v12  ;;  %v8488_v56 = vor.u32 %v9594_v17, %v8485_v27  ;;  %v8411_v12 = vld [vmem:[#allocation16 + $0x20] sm:$0xf]  ;;  %v9617_v17 = vld [vmem:[#allocation16 + $0x164] sm:$0xf0]  ;;  %v9616_v27 = vld [vmem:[#allocation16 + $0x164] sm:$0xf] }
 0x714   : > { %v8412_v45 = vor.u32 %v9577_v25, %v8411_v12  ;;  %v8637_v12 = vld [vmem:[#allocation16 + $0x1e8] sm:$0xf0] }
 0x715   : > { %5975 = vmatpush.bf16.xpose.msrb.mxu1 %v8448_v52  ;;  %v9592_v52 = vld [vmem:[#allocation16 + $0xa4] sm:$0xf] }
 0x733   : > { %v10113_v3 = vpop.trf.xlu2 }
 0x734   : > { %v10117_v50 = vunpack.i.h.bf16 %v10113_v3  ;;  %v10114_v24 = vunpack.i.l.bf16 %v10113_v3  ;;  %v8437_v3 = vld [vmem:[#allocation16 + $0x58] sm:$0xf0] }
 0x73b   : > { %v10118_v61 = vpop.trf.xlu2 }
 0x73c   : > { %v10122_v18 = vunpack.i.h.bf16 %v10118_v61  ;;  %v10119_v11 = vunpack.i.l.bf16 %v10118_v61  ;;  %v9598_v61 = vld [vmem:[#allocation16 + $0xd4] sm:$0xf] }
 0x73e   : > { %v4842_v54 = vpack.c.bf16 %v10119_v11, %v10114_v24  ;;  %v4843_v44 = vpack.c.bf16 %v10122_v18, %v10117_v50  ;;  %v8499_v50 = vld [vmem:[#allocation16 + $0xd0] sm:$0xf]  ;;  %v9599_v24 = vld [vmem:[#allocation16 + $0xd4] sm:$0xf0]  ;;  %v8501_v18 = vld [vmem:[#allocation16 + $0xd8] sm:$0xf0] }
 0x740   : > { %5050 = vmatmul.bf16.vlgmr.msra.gmra.mxu0 %v4842_v54  ;;  %5064 = vmatmul.bf16.vlgmr.msra.gmra.mxu1 %v4843_v44 }
 0x741   : > { %5078 = vmatmul.bf16.vlgmr.msrb.gmra.mxu2 %v4842_v54  ;;  %5092 = vmatmul.bf16.vlgmr.msrb.gmra.mxu3 %v4843_v44  ;;  %v8436_v54 = vor.u32 %v9583_v10, %v8435_v21  ;;  %v14853_v44 = vld [vmem:[#allocation33_spill] sm:$0xff]  ;;  %v8416_v21 = vor.u32 %v9576_v32, %v8413_v14  ;;  %v8476_v10 = vor.u32 %v9593_v28, %v8475_v5  ;;  %v8563_v28 = vld [vmem:[#allocation16 + $0x150] sm:$0xf] }
 0x743   : > { %5962 = vmatpush.bf16.xpose.msrb.mxu0 %v8436_v54  ;;  %v9590_v54 = vld [vmem:[#allocation16 + $0x94] sm:$0xf] }
 0x7bd   : > { %v5051_v59 = vpop.f32.mrf.mxu0  ;;  %v5065_v6 = vpop.f32.mrf.mxu1 }
 0x7be   : > { %v5052_v43 = vadd.f32 %v5051_v59, %v4878_v2  ;;  %v8500_v59 = vor.u32 %v9599_v24, %v8499_v50  ;;  %v9575_v50 = vld [vmem:[#allocation16 + $0x14] sm:$0xf0]  ;;  %v9574_v24 = vld [vmem:[#allocation16 + $0x14] sm:$0xf] }
 0x7c0   : > { %v5066_v15 = vadd.f32 %v5065_v6, %v5052_v43  ;;  %v8504_v43 = vor.u32 %v9598_v61, %v8501_v18  ;;  %5990 = vmatpush.bf16.xpose.msra.mxu2 %v8500_v59  ;;  %v8405_v61 = vld [vmem:[#allocation16 + $0x18] sm:$0xf0]  ;;  %v8467_v18 = vld [vmem:[#allocation16 + $0x90] sm:$0xf] }
 0x7c1   : > { %v8408_v59 = vor.u32 %v9574_v24, %v8405_v61 }
 0x7c2   : > { %v13960_v13 = vadd.f32 %v10327_v47, %v5066_v15  ;;  %v8427_v15 = vld [vmem:[#allocation16 + $0x40] sm:$0xf]  ;;  %6004 = vmatpush.bf16.xpose.msra.mxu3 %v8504_v43 }
 0x7c3   : > { %v8491_v47 = vld [vmem:[#allocation16 + $0xc0] sm:$0xf] }
 0x7c4   : > { %v5079_v46 = vpop.f32.mrf.mxu2  ;;  %v5093_v53 = vpop.f32.mrf.mxu3 }
 0x7c5   : > { %v5080_v36 = vadd.f32 %v5079_v46, %v4879_v37  ;;  %v5053_v20 = vpop.f32.mrf.mxu0  ;;  %v5067_v0 = vpop.f32.mrf.mxu1 }
 0x7c6   : > { %v5054_v41 = vadd.f32 %v5053_v20, %v4878_v2  ;;  %v8440_v2 = vor.u32 %v9582_v34, %v8437_v3  ;;  %v9580_v20 = vld [vmem:[#allocation16 + $0x44] sm:$0xf]  ;;  %v8480_v34 = vor.u32 %v9592_v52, %v8477_v9  ;;  %v8403_v3 = vld [vmem:[#allocation16 + $0x10] sm:$0xf]  ;;  %v9615_v52 = vld [vmem:[#allocation16 + $0x154] sm:$0xf0] }
 0x7c7   : > { %v5094_v19 = vadd.f32 %v5093_v53, %v5080_v36  ;;  %v9581_v36 = vld [vmem:[#allocation16 + $0x44] sm:$0xf0]  ;;  %v9614_v9 = vld [vmem:[#allocation16 + $0x154] sm:$0xf] }
 0x7c8   : > { %v5068_v55 = vadd.f32 %v5067_v0, %v5054_v41  ;;  %5976 = vmatpush.bf16.xpose.msrb.mxu1 %v8440_v2  ;;  %v8493_v0 = vld [vmem:[#allocation16 + $0xc8] sm:$0xf0]  ;;  %v8404_v2 = vor.u32 %v9575_v50, %v8403_v3  ;;  %v8629_v3 = vld [vmem:[#allocation16 + $0x1d8] sm:$0xf0]  ;;  %v8564_v50 = vor.u32 %v9615_v52, %v8563_v28 }
 0x7c9   : > { %v13963_v42 = vadd.f32 %v10328_v57, %v5094_v19  ;;  %v8429_v19 = vld [vmem:[#allocation16 + $0x48] sm:$0xf0]  ;;  %v9597_v57 = vld [vmem:[#allocation16 + $0xc4] sm:$0xf0] }
 0x7ca   : > { %v13968_v4 = vadd.f32 %v10329_v49, %v5068_v55  ;;  %v8428_v55 = vor.u32 %v9581_v36, %v8427_v15  ;;  %v9573_v15 = vld [vmem:[#allocation16 + $0x4] sm:$0xf0]  ;;  %v9572_v36 = vld [vmem:[#allocation16 + $0x4] sm:$0xf] }
 0x7cb   : > { %v5104_v7 = vadd.f32 %v13963_v42, %v13960_v13 }
 0x7cc   : > { %v5081_v16 = vpop.f32.mrf.mxu2  ;;  %v5095_v62 = vpop.f32.mrf.mxu3  ;;  %5963 = vmatpush.bf16.xpose.msrb.mxu0 %v8428_v55 }
 0x7cd   : > { %v5082_v48 = vadd.f32 %v5081_v16, %v4879_v37  ;;  %5105 = vadd.xlane.f32.xlu0 %v5104_v7  ;;  %v9596_v7 = vld [vmem:[#allocation16 + $0xc4] sm:$0xf] }
 0x7ce   : > { %v8496_v49 = vor.u32 %v9596_v7, %v8493_v0  ;;  %v8579_v7 = vld [vmem:[#allocation16 + $0x170] sm:$0xf]  ;;  %v9619_v0 = vld [vmem:[#allocation16 + $0x174] sm:$0xf0] }
 0x7cf   : > { %v5096_v1 = vadd.f32 %v5095_v62, %v5082_v48  ;;  %v8432_v62 = vor.u32 %v9580_v20, %v8429_v19  ;;  %v8397_v20 = vld [vmem:[#allocation16 + $0x8] sm:$0xf0]  ;;  %v8459_v19 = vld [vmem:[#allocation16 + $0x80] sm:$0xf]  ;;  %v8580_v29 = vor.u32 %v9619_v0, %v8579_v7  ;;  %v8547_v7 = vld [vmem:[#allocation16 + $0x130] sm:$0xf] }
 0x7d0   : > { %6005 = vmatpush.bf16.xpose.msra.mxu3 %v8496_v49  ;;  %v8400_v49 = vor.u32 %v9572_v36, %v8397_v20  ;;  %v9628_v36 = vld [vmem:[#allocation16 + $0x1c4] sm:$0xf]  ;;  %v8621_v20 = vld [vmem:[#allocation16 + $0x1c8] sm:$0xf0]  ;;  %v9611_v0 = vld [vmem:[#allocation16 + $0x134] sm:$0xf0] }
 0x7d1   : > { %v13971_v60 = vadd.f32 %v10330_v26, %v5096_v1  ;;  %v8492_v1 = vor.u32 %v9597_v57, %v8491_v47  ;;  %5977 = vmatpush.bf16.xpose.msrb.mxu1 %v8432_v62  ;;  %v9589_v47 = vld [vmem:[#allocation16 + $0x84] sm:$0xf0]  ;;  %v9588_v57 = vld [vmem:[#allocation16 + $0x84] sm:$0xf]  ;;  %v8643_v62 = vld [vmem:[#allocation16 + $0x1f0] sm:$0xf] }
 0x7d3   : > { %v5107_v33 = vadd.f32 %v13971_v60, %v13968_v4  ;;  %5991 = vmatpush.bf16.xpose.msra.mxu2 %v8492_v1  ;;  %v9635_v1 = vld [vmem:[#allocation16 + $0x1f4] sm:$0xf0] }
 0x7d4   : > { %5964 = vmatpush.bf16.xpose.msrb.mxu0 %v8420_v22  ;;  %v8644_v31 = vor.u32 %v9635_v1, %v8643_v62  ;;  %v8573_v22 = vld [vmem:[#allocation16 + $0x168] sm:$0xf0]  ;;  %v8611_v62 = vld [vmem:[#allocation16 + $0x1b0] sm:$0xf]  ;;  %v9627_v1 = vld [vmem:[#allocation16 + $0x1b4] sm:$0xf0] }
 0x7d5   : > { %5108 = vadd.xlane.f32.xlu1 %v5107_v33  ;;  %v8576_v32 = vor.u32 %v9616_v27, %v8573_v22  ;;  %v8603_v27 = vld [vmem:[#allocation16 + $0x1a0] sm:$0xf]  ;;  %v9625_v22 = vld [vmem:[#allocation16 + $0x1a4] sm:$0xf0] }
 0x7d8   : > { %6006 = vmatpush.bf16.xpose.msra.mxu3 %v8488_v56  ;;  %v9632_v56 = vld [vmem:[#allocation16 + $0x1e4] sm:$0xf] }
 0x7d9   : > { %5978 = vmatpush.bf16.xpose.msrb.mxu1 %v8424_v38  ;;  %v8635_v38 = vld [vmem:[#allocation16 + $0x1e0] sm:$0xf]  ;;  %v8640_v5 = vor.u32 %v9632_v56, %v8637_v12  ;;  %v9624_v56 = vld [vmem:[#allocation16 + $0x1a4] sm:$0xf]  ;;  %v8605_v12 = vld [vmem:[#allocation16 + $0x1a8] sm:$0xf0] }
 0x7db   : > { %5992 = vmatpush.bf16.xpose.msra.mxu2 %v8484_v51  ;;  %v9633_v51 = vld [vmem:[#allocation16 + $0x1e4] sm:$0xf0] }
 0x7dc   : > { %5965 = vmatpush.bf16.xpose.msrb.mxu0 %v8412_v45  ;;  %v8636_v14 = vor.u32 %v9633_v51, %v8635_v38  ;;  %v8565_v45 = vld [vmem:[#allocation16 + $0x158] sm:$0xf0] }
 0x7dd   : > { %v8568_v24 = vor.u32 %v9614_v9, %v8565_v45  ;;  %v8531_v9 = vld [vmem:[#allocation16 + $0x110] sm:$0xf]  ;;  %v9607_v45 = vld [vmem:[#allocation16 + $0x114] sm:$0xf0] }
 0x7e0   : > { %6007 = vmatpush.bf16.xpose.msra.mxu3 %v8480_v34  ;;  %v9630_v34 = vld [vmem:[#allocation16 + $0x1d4] sm:$0xf] }
 0x7e1   : > { %5979 = vmatpush.bf16.xpose.msrb.mxu1 %v8416_v21  ;;  %v8627_v21 = vld [vmem:[#allocation16 + $0x1d0] sm:$0xf] }
 0x7e3   : > { %5993 = vmatpush.bf16.xpose.msra.mxu2 %v8476_v10  ;;  %v9631_v10 = vld [vmem:[#allocation16 + $0x1d4] sm:$0xf0] }
 0x7e4   : > { %5966 = vmatpush.bf16.xpose.msrb.mxu0 %v8404_v2  ;;  %v8628_v61 = vor.u32 %v9631_v10, %v8627_v21  ;;  %v9606_v21 = vld [vmem:[#allocation16 + $0x114] sm:$0xf]  ;;  %v8533_v10 = vld [vmem:[#allocation16 + $0x118] sm:$0xf0] }
 0x7e9   : > { %5980 = vmatpush.bf16.xpose.msrb.mxu1 %v8408_v59  ;;  %v8557_v59 = vld [vmem:[#allocation16 + $0x148] sm:$0xf0] }
 0x7f1   : > { %5981 = vmatpush.bf16.xpose.msrb.mxu1 %v8400_v49 }
 0x840   : > { %v5106_v11 = vpop.xlane.xlu0 %5105 }
 0x841   : > { %v5110_v8 = vmul.f32 %v5106_v11, %v14853_v44  ;;  %v9591_v11 = vld [vmem:[#allocation16 + $0x94] sm:$0xf0] }
 0x842   : > { %v8468_v43 = vor.u32 %v9591_v11, %v8467_v18  ;;  %v8632_v18 = vor.u32 %v9630_v34, %v8629_v3  ;;  %v8555_v11 = vld [vmem:[#allocation16 + $0x140] sm:$0xf]  ;;  %v8595_v3 = vld [vmem:[#allocation16 + $0x190] sm:$0xf] }
 0x843   : > { %v13977_v37 = vsub.f32 %v13960_v13, %v5110_v8  ;;  %v13980_v6 = vsub.f32 %v13963_v42, %v5110_v8  ;;  %v8469_v8 = vld [vmem:[#allocation16 + $0x98] sm:$0xf0] }
 0x844   : > { %5994 = vmatpush.bf16.xpose.msra.mxu2 %v8468_v43  ;;  %v8619_v43 = vld [vmem:[#allocation16 + $0x1c0] sm:$0xf] }
 0x845   : > { %v5116_v46 = vmul.f32 %v13977_v37, %v13977_v37  ;;  %v5117_v53 = vmul.f32 %v13980_v6, %v13980_v6 }
 0x847   : > { %v5120_v41 = vadd.f32 %v5117_v53, %v5116_v46  ;;  %v8472_v46 = vor.u32 %v9590_v54, %v8469_v8  ;;  %v8395_v53 = vld [vmem:[#allocation16] sm:$0xf]  ;;  %v9613_v54 = vld [vmem:[#allocation16 + $0x144] sm:$0xf0]  ;;  %v9612_v8 = vld [vmem:[#allocation16 + $0x144] sm:$0xf] }
 0x848   : > { %v5109_v16 = vpop.xlane.xlu1 %5108  ;;  %v8396_v55 = vor.u32 %v9573_v15, %v8395_v53  ;;  %v8556_v2 = vor.u32 %v9613_v54, %v8555_v11  ;;  %v8560_v53 = vor.u32 %v9612_v8, %v8557_v59  ;;  %v8532_v8 = vor.u32 %v9607_v45, %v8531_v9  ;;  %v9666_v9 = vld [vmem:[#allocation16 + $0x2f4] sm:$0xf] }
 0x849   : > { %v5111_v48 = vmul.f32 %v5109_v16, %v14853_v44  ;;  %5121 = vadd.xlane.f32.xlu0 %v5120_v41  ;;  %6008 = vmatpush.bf16.xpose.msra.mxu3 %v8472_v46  ;;  %v8461_v41 = vld [vmem:[#allocation16 + $0x88] sm:$0xf0]  ;;  %v9618_v16 = vld [vmem:[#allocation16 + $0x174] sm:$0xf]  ;;  %v9629_v46 = vld [vmem:[#allocation16 + $0x1c4] sm:$0xf0] }
 0x84a   : > { %v8464_v63 = vor.u32 %v9588_v57, %v8461_v41  ;;  %5967 = vmatpush.bf16.xpose.msrb.mxu0 %v8396_v55  ;;  %v8620_v15 = vor.u32 %v9629_v46, %v8619_v43  ;;  %v8548_v55 = vor.u32 %v9611_v0, %v8547_v7  ;;  %v8525_v7 = vld [vmem:[#allocation16 + $0x108] sm:$0xf0] }
 0x84b   : > { %v13988_v26 = vsub.f32 %v13968_v4, %v5111_v48  ;;  %v13991_v33 = vsub.f32 %v13971_v60, %v5111_v48  ;;  %v8581_v48 = vld [vmem:[#allocation16 + $0x178] sm:$0xf0] }
 0x84c   : > { %v8584_v35 = vor.u32 %v9618_v16, %v8581_v48  ;;  %v9610_v16 = vld [vmem:[#allocation16 + $0x134] sm:$0xf]  ;;  %v8549_v48 = vld [vmem:[#allocation16 + $0x138] sm:$0xf0] }
 0x84d   : > { %v5118_v30 = vmul.f32 %v13988_v26, %v13988_v26  ;;  %v5119_v58 = vmul.f32 %v13991_v33, %v13991_v33  ;;  %v8552_v49 = vor.u32 %v9610_v16, %v8549_v48  ;;  %v8587_v16 = vld [vmem:[#allocation16 + $0x180] sm:$0xf] }
 0x84e   : > { %6030 = vmatpush.bf16.xpose.msra.mxu1 %v8584_v35 }
 0x84f   : > { %v5123_v39 = vadd.f32 %v5119_v58, %v5118_v30  ;;  %v8460_v30 = vor.u32 %v9589_v47, %v8459_v19  ;;  %v9634_v58 = vld [vmem:[#allocation16 + $0x1f4] sm:$0xf]  ;;  %v8624_v19 = vor.u32 %v9628_v36, %v8621_v20  ;;  %v8523_v20 = vld [vmem:[#allocation16 + $0x100] sm:$0xf] }
 0x850   : > { %v8648_v23 = vor.u32 %v9634_v58, %v8645_v40  ;;  %v9626_v58 = vld [vmem:[#allocation16 + $0x1b4] sm:$0xf]  ;;  %v8613_v40 = vld [vmem:[#allocation16 + $0x1b8] sm:$0xf0] }
 0x851   : > { %5124 = vadd.xlane.f32.xlu1 %v5123_v39  ;;  %5995 = vmatpush.bf16.xpose.msra.mxu2 %v8460_v30  ;;  %v8571_v39 = vld [vmem:[#allocation16 + $0x160] sm:$0xf]  ;;  %v8612_v30 = vor.u32 %v9627_v1, %v8611_v62 }
 0x852   : > { %6009 = vmatpush.bf16.xpose.msra.mxu3 %v8464_v63  ;;  %6016 = vmatpush.bf16.xpose.msra.mxu0 %v8580_v29  ;;  %v8572_v25 = vor.u32 %v9617_v17, %v8571_v39  ;;  %v8616_v29 = vor.u32 %v9626_v58, %v8613_v40  ;;  %v9608_v39 = vld [vmem:[#allocation16 + $0x124] sm:$0xf]  ;;  %v8541_v17 = vld [vmem:[#allocation16 + $0x128] sm:$0xf0] }
 0x856   : > { %6031 = vmatpush.bf16.xpose.msra.mxu1 %v8576_v32 }
 0x859   : > { %6044 = vmatpush.bf16.xpose.msrb.mxu2 %v8644_v31  ;;  %v8539_v31 = vld [vmem:[#allocation16 + $0x120] sm:$0xf] }
 0x85a   : > { %6058 = vmatpush.bf16.xpose.msrb.mxu3 %v8648_v23  ;;  %6017 = vmatpush.bf16.xpose.msra.mxu0 %v8572_v25  ;;  %v9609_v23 = vld [vmem:[#allocation16 + $0x124] sm:$0xf0] }
 0x85b   : > { %v8540_v32 = vor.u32 %v9609_v23, %v8539_v31 }
 0x85e   : > { %6032 = vmatpush.bf16.xpose.msra.mxu1 %v8568_v24 }
 0x861   : > { %6045 = vmatpush.bf16.xpose.msrb.mxu2 %v8636_v14  ;;  %v8544_v14 = vor.u32 %v9608_v39, %v8541_v17 }
 0x862   : > { %6059 = vmatpush.bf16.xpose.msrb.mxu3 %v8640_v5  ;;  %6018 = vmatpush.bf16.xpose.msra.mxu0 %v8564_v50  ;;  %v8604_v5 = vor.u32 %v9625_v22, %v8603_v27  ;;  %v9623_v50 = vld [vmem:[#allocation16 + $0x194] sm:$0xf0] }
 0x863   : > { %v8596_v59 = vor.u32 %v9623_v50, %v8595_v3  ;;  %v8699_v50 = vld [vmem:[#allocation16 + $0x260] sm:$0xf] }
 0x866   : > { %6033 = vmatpush.bf16.xpose.msra.mxu1 %v8560_v53  ;;  %v5102_v53 = vld [vmem:[#allocation8] sm:$0x3] }
 0x867   : > { %v5156_v48 = vperm.slane %v5102_v53, 1 }
 0x869   : > { %6046 = vmatpush.bf16.xpose.msrb.mxu2 %v8628_v61  ;;  %v9622_v61 = vld [vmem:[#allocation16 + $0x194] sm:$0xf] }
 0x86a   : > { %6060 = vmatpush.bf16.xpose.msrb.mxu3 %v8632_v18  ;;  %6019 = vmatpush.bf16.xpose.msra.mxu0 %v8556_v2  ;;  %v8597_v18 = vld [vmem:[#allocation16 + $0x198] sm:$0xf0]  ;;  %v8536_v2 = vor.u32 %v9606_v21, %v8533_v10 }
 0x86b   : > { %v8600_v46 = vor.u32 %v9622_v61, %v8597_v18  ;;  %v9648_v61 = vld [vmem:[#allocation16 + $0x264] sm:$0xf]  ;;  %v8701_v18 = vld [vmem:[#allocation16 + $0x268] sm:$0xf0] }
 0x86e   : > { %6034 = vmatpush.bf16.xpose.msra.mxu1 %v8552_v49  ;;  %v9620_v49 = vld [vmem:[#allocation16 + $0x184] sm:$0xf] }
 0x871   : > { %6047 = vmatpush.bf16.xpose.msrb.mxu2 %v8620_v15 }
 0x872   : > { %6061 = vmatpush.bf16.xpose.msrb.mxu3 %v8624_v19  ;;  %6020 = vmatpush.bf16.xpose.msra.mxu0 %v8548_v55  ;;  %v5103_v19 = vld [vmem:[#allocation10] sm:$0x3]  ;;  %v9621_v55 = vld [vmem:[#allocation16 + $0x184] sm:$0xf0] }
 0x873   : > { %v5165_v31 = vperm.slane %v5103_v19, 1 }
 0x876   : > { %6035 = vmatpush.bf16.xpose.msra.mxu1 %v8544_v14 }
 0x879   : > { %6048 = vmatpush.bf16.xpose.msrb.mxu2 %v8612_v30  ;;  %v8589_v30 = vld [vmem:[#allocation16 + $0x188] sm:$0xf0] }
 0x87a   : > { %6062 = vmatpush.bf16.xpose.msrb.mxu3 %v8616_v29  ;;  %6021 = vmatpush.bf16.xpose.msra.mxu0 %v8540_v32  ;;  %v8588_v29 = vor.u32 %v9621_v55, %v8587_v16  ;;  %v8592_v39 = vor.u32 %v9620_v49, %v8589_v30  ;;  %v8771_v32 = vld [vmem:[#allocation16 + $0x2f0] sm:$0xf]  ;;  %v9644_v49 = vld [vmem:[#allocation16 + $0x244] sm:$0xf]  ;;  %v8685_v30 = vld [vmem:[#allocation16 + $0x248] sm:$0xf0] }
 0x87e   : > { %6036 = vmatpush.bf16.xpose.msra.mxu1 %v8536_v2  ;;  %v8765_v2 = vld [vmem:[#allocation16 + $0x2e8] sm:$0xf0] }
 0x881   : > { %6049 = vmatpush.bf16.xpose.msrb.mxu2 %v8604_v5 }
 0x882   : > { %6022 = vmatpush.bf16.xpose.msra.mxu0 %v8532_v8  ;;  %v9664_v8 = vld [vmem:[#allocation16 + $0x2e4] sm:$0xf] }
 0x889   : > { %6050 = vmatpush.bf16.xpose.msrb.mxu2 %v8596_v59 }
 0x891   : > { %6051 = vmatpush.bf16.xpose.msrb.mxu2 %v8588_v29  ;;  %v8749_v29 = vld [vmem:[#allocation16 + $0x2c8] sm:$0xf0] }
 0x8bc   : > { %v5122_v47 = vpop.xlane.xlu0 %5121 }
 0x8bd   : > { %v5126_v57 = vmul.f32 %v5122_v47, %v14853_v44  ;;  %v9605_v47 = vld [vmem:[#allocation16 + $0x104] sm:$0xf0] }
 0x8be   : > { %v8524_v40 = vor.u32 %v9605_v47, %v8523_v20  ;;  %v9646_v20 = vld [vmem:[#allocation16 + $0x254] sm:$0xf]  ;;  %v8755_v47 = vld [vmem:[#allocation16 + $0x2d0] sm:$0xf] }
 0x8bf   : > { %v5128_v41 = vadd.f32 1e-05, %v5126_v57  ;;  %v9604_v57 = vld [vmem:[#allocation16 + $0x104] sm:$0xf] }
 0x8c0   : > { %6023 = vmatpush.bf16.xpose.msra.mxu0 %v8524_v40  ;;  %v9661_v40 = vld [vmem:[#allocation16 + $0x2c4] sm:$0xf0] }
 0x8c1   : > { %10257 = vrsqrt.f32 %v5128_v41  ;;  %vm5136_vm9 = vweird.f32 %v5128_v41 }
 0x8c4   : > { %v5125_v63 = vpop.xlane.xlu1 %5124 }
 0x8c5   : > { %v5127_v35 = vmul.f32 %v5125_v63, %v14853_v44  ;;  %v8608_v44 = vor.u32 %v9624_v56, %v8605_v12  ;;  %v8528_v63 = vor.u32 %v9604_v57, %v8525_v7  ;;  %v9651_v56 = vld [vmem:[#allocation16 + $0x274] sm:$0xf0]  ;;  %v9650_v12 = vld [vmem:[#allocation16 + $0x274] sm:$0xf] }
 0x8c6   : > { %v9663_v57 = vld [vmem:[#allocation16 + $0x2d4] sm:$0xf0]  ;;  %v9662_v7 = vld [vmem:[#allocation16 + $0x2d4] sm:$0xf] }
 0x8c7   : > { %v10258_v38 = vpop.eup %10257  ;;  %v5129_v51 = vadd.f32 1e-05, %v5127_v35  ;;  %6063 = vmatpush.bf16.xpose.msrb.mxu3 %v8608_v44  ;;  %v5164_v35 = vperm.slane %v5103_v19, 0  ;;  %6037 = vmatpush.bf16.xpose.msra.mxu1 %v8528_v63  ;;  %v8693_v19 = vld [vmem:[#allocation16 + $0x258] sm:$0xf0] }
 0x8c8   : > { %v5131_v25 = vmul.f32 %v10258_v38, %v5128_v41  ;;  %vm5137_vm8 = vweird.f32 %v10258_v38  ;;  %v5155_v41 = vperm.slane %v5102_v53, 0  ;;  %v8768_v53 = vor.u32 %v9664_v8, %v8765_v2  ;;  %v9660_v63 = vld [vmem:[#allocation16 + $0x2c4] sm:$0xf]  ;;  %v8723_v8 = vld [vmem:[#allocation16 + $0x290] sm:$0xf] }
 0x8c9   : > { %10259 = vrsqrt.f32 %v5129_v51  ;;  %vm5138_vm10 = vmor %vm5136_vm9, %vm5137_vm8  ;;  %vm5146_vm12 = vweird.f32 %v5129_v51  ;;  %v8696_v55 = vor.u32 %v9646_v20, %v8693_v19  ;;  %v9655_v2 = vld [vmem:[#allocation16 + $0x294] sm:$0xf0]  ;;  %v8651_v20 = vld [vmem:[#allocation16 + $0x200] sm:$0xf] }
 0x8ca   : > { %v5132_v28 = vmul.f32 %v10258_v38, %v5131_v25  ;;  %v8709_v25 = vld [vmem:[#allocation16 + $0x278] sm:$0xf0]  ;;  %v9637_v19 = vld [vmem:[#allocation16 + $0x204] sm:$0xf0] }
 0x8cb   : > { %v8712_v10 = vor.u32 %v9650_v12, %v8709_v25 }
 0x8cc   : > { %v5133_v52 = vmul.f32 0.5, %v5132_v28 }
 0x8ce   : > { %v5134_v34 = vsub.f32 1.5, %v5133_v52  ;;  %v9667_v52 = vld [vmem:[#allocation16 + $0x2f4] sm:$0xf0] }
 0x8cf   : > { %v10260_v24 = vpop.eup %10259  ;;  %6064 = vmatpush.bf16.xpose.msrb.mxu3 %v8600_v46 }
 0x8d0   : > { %v5135_v11 = vmul.f32 %v10258_v38, %v5134_v34  ;;  %v5141_v54 = vmul.f32 %v10260_v24, %v5129_v51  ;;  %vm5147_vm11 = vweird.f32 %v10260_v24  ;;  %v8707_v51 = vld [vmem:[#allocation16 + $0x270] sm:$0xf]  ;;  %v8772_v34 = vor.u32 %v9667_v52, %v8771_v32  ;;  %v8669_v52 = vld [vmem:[#allocation16 + $0x228] sm:$0xf0] }
 0x8d1   : > { %vm5148_vm13 = vmor %vm5146_vm12, %vm5147_vm11  ;;  %v8708_v21 = vor.u32 %v9651_v56, %v8707_v51  ;;  %v9658_v51 = vld [vmem:[#allocation16 + $0x2b4] sm:$0xf]  ;;  %v8741_v56 = vld [vmem:[#allocation16 + $0x2b8] sm:$0xf0] }
 0x8d2   : > { %v5142_v43 = vmul.f32 %v10260_v24, %v5141_v54  ;;  %v5139_v15 = vsel %vm5138_vm10, %v10258_v38, %v5135_v11  ;;  %v8763_v11 = vld [vmem:[#allocation16 + $0x2e0] sm:$0xf]  ;;  %v9665_v54 = vld [vmem:[#allocation16 + $0x2e4] sm:$0xf0] }
 0x8d3   : > { %v5150_v62 = vmul.f32 %v5139_v15, %v13977_v37  ;;  %v5151_v1 = vmul.f32 %v5139_v15, %v13980_v6  ;;  %v8764_v46 = vor.u32 %v9665_v54, %v8763_v11  ;;  %v8691_v15 = vld [vmem:[#allocation16 + $0x250] sm:$0xf]  ;;  %v9638_v11 = vld [vmem:[#allocation16 + $0x214] sm:$0xf]  ;;  %v8661_v54 = vld [vmem:[#allocation16 + $0x218] sm:$0xf0] }
 0x8d4   : > { %v5143_v36 = vmul.f32 0.5, %v5142_v43  ;;  %v8704_v43 = vor.u32 %v9648_v61, %v8701_v18  ;;  %v8659_v61 = vld [vmem:[#allocation16 + $0x210] sm:$0xf]  ;;  %v9639_v18 = vld [vmem:[#allocation16 + $0x214] sm:$0xf0] }
 0x8d5   : > { %v5159_v17 = vmul.f32 %v5155_v41, %v5150_v62  ;;  %v5160_v27 = vmul.f32 %v5156_v48, %v5151_v1  ;;  %v8683_v62 = vld [vmem:[#allocation16 + $0x240] sm:$0xf]  ;;  %v9645_v1 = vld [vmem:[#allocation16 + $0x244] sm:$0xf0] }
 0x8d6   : > { %v5144_v0 = vsub.f32 1.5, %v5143_v36  ;;  %v9647_v36 = vld [vmem:[#allocation16 + $0x254] sm:$0xf0] }
 0x8d7   : > { %6065 = vmatpush.bf16.xpose.msrb.mxu3 %v8592_v39  ;;  %v5168_v14 = vadd.f32 %v5164_v35, %v5159_v17  ;;  %v5169_v5 = vadd.f32 %v5165_v31, %v5160_v27  ;;  %v8692_v16 = vor.u32 %v9647_v36, %v8691_v15  ;;  %v8752_v39 = vor.u32 %v9660_v63, %v8749_v29  ;;  %v8675_v17 = vld [vmem:[#allocation16 + $0x230] sm:$0xf]  ;;  %v9643_v27 = vld [vmem:[#allocation16 + $0x234] sm:$0xf0]  ;;  %v9698_v63 = vld [vmem:[#allocation16 + $0x3f4] sm:$0xf] }
 0x8d8   : > { %v5145_v58 = vmul.f32 %v10260_v24, %v5144_v0  ;;  %v8757_v0 = vld [vmem:[#allocation16 + $0x2d8] sm:$0xf0]  ;;  %v8676_v12 = vor.u32 %v9643_v27, %v8675_v17  ;;  %v8724_v15 = vor.u32 %v9655_v2, %v8723_v8  ;;  %v9676_v8 = vld [vmem:[#allocation16 + $0x344] sm:$0xf]  ;;  %v8813_v2 = vld [vmem:[#allocation16 + $0x348] sm:$0xf0] }
 0x8d9   : > { %v8901_v29 = vld [vmem:[#allocation16 + $0x3f8] sm:$0xf0] }
 0x8da   : > { %v5149_v23 = vsel %vm5148_vm13, %v10260_v24, %v5145_v58  ;;  %v9649_v24 = vld [vmem:[#allocation16 + $0x264] sm:$0xf0]  ;;  %v8747_v58 = vld [vmem:[#allocation16 + $0x2c0] sm:$0xf]  ;;  %v8904_v27 = vor.u32 %v9698_v63, %v8901_v29  ;;  %v9672_v63 = vld [vmem:[#allocation16 + $0x324] sm:$0xf] }
 0x8db   : > { %v5152_v22 = vmul.f32 %v5149_v23, %v13988_v26  ;;  %v5153_v37 = vmul.f32 %v5149_v23, %v13991_v33  ;;  %v8773_v26 = vld [vmem:[#allocation16 + $0x2f8] sm:$0xf0]  ;;  %v8700_v59 = vor.u32 %v9649_v24, %v8699_v50  ;;  %v8748_v23 = vor.u32 %v9661_v40, %v8747_v58  ;;  %v9699_v40 = vld [vmem:[#allocation16 + $0x3f4] sm:$0xf0]  ;;  %v8797_v29 = vld [vmem:[#allocation16 + $0x328] sm:$0xf0] }
 0x8dc   : > { %v8776_v3 = vor.u32 %v9666_v9, %v8773_v26  ;;  %v8731_v9 = vld [vmem:[#allocation16 + $0x2a0] sm:$0xf]  ;;  %v9657_v26 = vld [vmem:[#allocation16 + $0x2a4] sm:$0xf0] }
 0x8dd   : > { %v5161_v6 = vmul.f32 %v5155_v41, %v5152_v22  ;;  %v5162_v38 = vmul.f32 %v5156_v48, %v5153_v37  ;;  %v8756_v41 = vor.u32 %v9663_v57, %v8755_v47  ;;  %v8760_v48 = vor.u32 %v9662_v7, %v8757_v0  ;;  %v9642_v22 = vld [vmem:[#allocation16 + $0x234] sm:$0xf]  ;;  %v8677_v37 = vld [vmem:[#allocation16 + $0x238] sm:$0xf0]  ;;  %v9636_v47 = vld [vmem:[#allocation16 + $0x204] sm:$0xf] }
 0x8de   : > { %v8680_v25 = vor.u32 %v9642_v22, %v8677_v37  ;;  %v8732_v50 = vor.u32 %v9657_v26, %v8731_v9  ;;  %v8653_v57 = vld [vmem:[#allocation16 + $0x208] sm:$0xf0]  ;;  %v8715_v7 = vld [vmem:[#allocation16 + $0x280] sm:$0xf]  ;;  %v9653_v0 = vld [vmem:[#allocation16 + $0x284] sm:$0xf0] }
 0x8df   : > { %v5170_v28 = vadd.f32 %v5164_v35, %v5161_v6  ;;  %v5171_v44 = vadd.f32 %v5165_v31, %v5162_v38  ;;  %v8684_v35 = vor.u32 %v9645_v1, %v8683_v62  ;;  %v8688_v31 = vor.u32 %v9644_v49, %v8685_v30  ;;  %v8739_v6 = vld [vmem:[#allocation16 + $0x2b0] sm:$0xf]  ;;  %v9659_v38 = vld [vmem:[#allocation16 + $0x2b4] sm:$0xf0]  ;;  %v9682_v62 = vld [vmem:[#allocation16 + $0x374] sm:$0xf] }
 0x8e0   : > { %v8740_v32 = vor.u32 %v9659_v38, %v8739_v6  ;;  %v8837_v1 = vld [vmem:[#allocation16 + $0x378] sm:$0xf0]  ;;  %v8899_v49 = vld [vmem:[#allocation16 + $0x3f0] sm:$0xf]  ;;  %v8652_v30 = vor.u32 %v9637_v19, %v8651_v20  ;;  %v8656_v58 = vor.u32 %v9636_v47, %v8653_v57  ;;  %v8827_v22 = vld [vmem:[#allocation16 + $0x360] sm:$0xf] }
 0x8e1   : > { %v14003_v45 = vpack.c.bf16 %v5170_v28, %v5168_v14  ;;  %v14005_v33 = vpack.c.bf16 %v5171_v44, %v5169_v5  ;;  %v8744_v14 = vor.u32 %v9658_v51, %v8741_v56  ;;  %v8667_v5 = vld [vmem:[#allocation16 + $0x220] sm:$0xf]  ;;  %v9641_v28 = vld [vmem:[#allocation16 + $0x224] sm:$0xf0]  ;;  %v9640_v44 = vld [vmem:[#allocation16 + $0x224] sm:$0xf]  ;;  %v8900_v17 = vor.u32 %v9699_v40, %v8899_v49 }
 0x8e2   : > { %v9681_v37 = vld [vmem:[#allocation16 + $0x364] sm:$0xf0]  ;;  %v9680_v6 = vld [vmem:[#allocation16 + $0x364] sm:$0xf]  ;;  %v8829_v38 = vld [vmem:[#allocation16 + $0x368] sm:$0xf0] }
 0x8e3   : > { %5968 = vmatmul.bf16.vlgmr.msrb.gmra.mxu0 %v14003_v45  ;;  %5982 = vmatmul.bf16.vlgmr.msrb.gmra.mxu1 %v14005_v33  ;;  %v8891_v51 = vld [vmem:[#allocation16 + $0x3e0] sm:$0xf]  ;;  %v9697_v56 = vld [vmem:[#allocation16 + $0x3e4] sm:$0xf0]  ;;  %v9678_v9 = vld [vmem:[#allocation16 + $0x354] sm:$0xf] }
 0x8e4   : > { %5996 = vmatmul.bf16.vlgmr.msra.gmra.mxu2 %v14003_v45  ;;  %6010 = vmatmul.bf16.vlgmr.msra.gmra.mxu3 %v14005_v33  ;;  %v8821_v26 = vld [vmem:[#allocation16 + $0x358] sm:$0xf0]  ;;  %v8803_v47 = vld [vmem:[#allocation16 + $0x330] sm:$0xf]  ;;  %v9675_v57 = vld [vmem:[#allocation16 + $0x334] sm:$0xf0] }
 0x8e5   : > { %6072 = vmatpush.bf16.xpose.msrb.mxu0 %v8708_v21  ;;  %6086 = vmatpush.bf16.xpose.msrb.mxu1 %v8712_v10  ;;  %v9656_v21 = vld [vmem:[#allocation16 + $0x2a4] sm:$0xf]  ;;  %v8733_v10 = vld [vmem:[#allocation16 + $0x2a8] sm:$0xf0]  ;;  %v9673_v40 = vld [vmem:[#allocation16 + $0x324] sm:$0xf0] }
 0x8e6   : > { %6100 = vmatpush.bf16.xpose.msra.mxu2 %v8772_v34  ;;  %6114 = vmatpush.bf16.xpose.msra.mxu3 %v8776_v3  ;;  %v8668_v34 = vor.u32 %v9641_v28, %v8667_v5  ;;  %v8672_v3 = vor.u32 %v9640_v44, %v8669_v52  ;;  %v8736_v24 = vor.u32 %v9656_v21, %v8733_v10  ;;  %v8819_v44 = vld [vmem:[#allocation16 + $0x350] sm:$0xf]  ;;  %v9679_v52 = vld [vmem:[#allocation16 + $0x354] sm:$0xf0] }
 0x8e7   : > { %v8892_v5 = vor.u32 %v9697_v56, %v8891_v51  ;;  %v8883_v21 = vld [vmem:[#allocation16 + $0x3d0] sm:$0xf]  ;;  %v9695_v10 = vld [vmem:[#allocation16 + $0x3d4] sm:$0xf0]  ;;  %v9670_v51 = vld [vmem:[#allocation16 + $0x314] sm:$0xf] }
 0x8e8   : > { %v8789_v56 = vld [vmem:[#allocation16 + $0x318] sm:$0xf0] }
 0x8ed   : > { %6073 = vmatpush.bf16.xpose.msrb.mxu0 %v8700_v59  ;;  %6087 = vmatpush.bf16.xpose.msrb.mxu1 %v8704_v43  ;;  %v9654_v59 = vld [vmem:[#allocation16 + $0x294] sm:$0xf]  ;;  %v8725_v43 = vld [vmem:[#allocation16 + $0x298] sm:$0xf0] }
 0x8ee   : > { %6101 = vmatpush.bf16.xpose.msra.mxu2 %v8764_v46  ;;  %6115 = vmatpush.bf16.xpose.msra.mxu3 %v8768_v53  ;;  %v8660_v46 = vor.u32 %v9639_v18, %v8659_v61  ;;  %v8664_v53 = vor.u32 %v9638_v11, %v8661_v54  ;;  %v8728_v36 = vor.u32 %v9654_v59, %v8725_v43  ;;  %v8811_v11 = vld [vmem:[#allocation16 + $0x340] sm:$0xf]  ;;  %v9677_v54 = vld [vmem:[#allocation16 + $0x344] sm:$0xf0] }
 0x8ef   : > { %v8884_v61 = vor.u32 %v9695_v10, %v8883_v21  ;;  %v8875_v59 = vld [vmem:[#allocation16 + $0x3c0] sm:$0xf]  ;;  %v9693_v43 = vld [vmem:[#allocation16 + $0x3c4] sm:$0xf0]  ;;  %v9668_v21 = vld [vmem:[#allocation16 + $0x304] sm:$0xf] }
 0x8f0   : > { %v8876_v20 = vor.u32 %v9693_v43, %v8875_v59  ;;  %v8781_v10 = vld [vmem:[#allocation16 + $0x308] sm:$0xf0]  ;;  %v9155_v59 = vld [vmem:[#allocation19 + $0x1c8] sm:$0xf] }
 0x8f1   : > { %v9761_v43 = vld [vmem:[#allocation19 + $0x1e4] sm:$0xf0] }
 0x8f3   : > { %6024 = vmatmul.bf16.vlgmr.msra.gmra.mxu0 %v14003_v45  ;;  %6038 = vmatmul.bf16.vlgmr.msra.gmra.mxu1 %v14005_v33 }
 0x8f4   : > { %6052 = vmatmul.bf16.vlgmr.msrb.gmra.mxu2 %v14003_v45  ;;  %6066 = vmatmul.bf16.vlgmr.msrb.gmra.mxu3 %v14005_v33 }
 0x8f5   : > { %6074 = vmatpush.bf16.xpose.msrb.mxu0 %v8692_v16  ;;  %6088 = vmatpush.bf16.xpose.msrb.mxu1 %v8696_v55  ;;  %v9652_v16 = vld [vmem:[#allocation16 + $0x284] sm:$0xf]  ;;  %v8717_v55 = vld [vmem:[#allocation16 + $0x288] sm:$0xf0] }
 0x8f6   : > { %6102 = vmatpush.bf16.xpose.msra.mxu2 %v8756_v41  ;;  %6116 = vmatpush.bf16.xpose.msra.mxu3 %v8760_v48  ;;  %v8835_v41 = vld [vmem:[#allocation16 + $0x370] sm:$0xf]  ;;  %v9683_v48 = vld [vmem:[#allocation16 + $0x374] sm:$0xf0] }
 0x8fd   : > { %6075 = vmatpush.bf16.xpose.msrb.mxu0 %v8684_v35  ;;  %6089 = vmatpush.bf16.xpose.msrb.mxu1 %v8688_v31  ;;  %v8716_v35 = vor.u32 %v9653_v0, %v8715_v7  ;;  %v8720_v31 = vor.u32 %v9652_v16, %v8717_v55  ;;  %v9674_v7 = vld [vmem:[#allocation16 + $0x334] sm:$0xf]  ;;  %v8805_v0 = vld [vmem:[#allocation16 + $0x338] sm:$0xf0]  ;;  %v8867_v16 = vld [vmem:[#allocation16 + $0x3b0] sm:$0xf] }
 0x8fe   : > { %6103 = vmatpush.bf16.xpose.msra.mxu2 %v8748_v23  ;;  %6117 = vmatpush.bf16.xpose.msra.mxu3 %v8752_v39  ;;  %v8836_v23 = vor.u32 %v9683_v48, %v8835_v41  ;;  %v8840_v39 = vor.u32 %v9682_v62, %v8837_v1  ;;  %v9691_v55 = vld [vmem:[#allocation16 + $0x3b4] sm:$0xf0]  ;;  %v9690_v41 = vld [vmem:[#allocation16 + $0x3b4] sm:$0xf]  ;;  %v8869_v48 = vld [vmem:[#allocation16 + $0x3b8] sm:$0xf0]  ;;  %v8804_v62 = vor.u32 %v9675_v57, %v8803_v47 }
 0x8ff   : > { %v8808_v1 = vor.u32 %v9674_v7, %v8805_v0  ;;  %v8868_v49 = vor.u32 %v9691_v55, %v8867_v16  ;;  %v9752_v47 = vld [vmem:[#allocation19 + $0x19c] sm:$0xf0]  ;;  %v9748_v57 = vld [vmem:[#allocation19 + $0x184] sm:$0xf]  ;;  %v14019_v0 = vld [vmem:[#allocation17] sm:$0xff] }
 0x900   : > { %v9117_v7 = vld [vmem:[#allocation19 + $0x1a0] sm:$0xf0]  ;;  %v9757_v16 = vld [vmem:[#allocation19 + $0x1cc] sm:$0xf] }
 0x901   : > { %v9157_v55 = vld [vmem:[#allocation19 + $0x1e8] sm:$0xf0] }
 0x905   : > { %6076 = vmatpush.bf16.xpose.msrb.mxu0 %v8676_v12  ;;  %6090 = vmatpush.bf16.xpose.msrb.mxu1 %v8680_v25  ;;  %v9696_v12 = vld [vmem:[#allocation16 + $0x3e4] sm:$0xf]  ;;  %v8893_v25 = vld [vmem:[#allocation16 + $0x3e8] sm:$0xf0] }
 0x906   : > { %6104 = vmatpush.bf16.xpose.msra.mxu2 %v8740_v32  ;;  %6118 = vmatpush.bf16.xpose.msra.mxu3 %v8744_v14  ;;  %v8828_v32 = vor.u32 %v9681_v37, %v8827_v22  ;;  %v8832_v14 = vor.u32 %v9680_v6, %v8829_v38  ;;  %v8896_v28 = vor.u32 %v9696_v12, %v8893_v25  ;;  %v8787_v6 = vld [vmem:[#allocation16 + $0x310] sm:$0xf]  ;;  %v9671_v38 = vld [vmem:[#allocation16 + $0x314] sm:$0xf0] }
 0x907   : > { %v8851_v12 = vld [vmem:[#allocation16 + $0x390] sm:$0xf]  ;;  %v9687_v25 = vld [vmem:[#allocation16 + $0x394] sm:$0xf0] }
 0x90d   : > { %6077 = vmatpush.bf16.xpose.msrb.mxu0 %v8668_v34  ;;  %6091 = vmatpush.bf16.xpose.msrb.mxu1 %v8672_v3  ;;  %v9694_v34 = vld [vmem:[#allocation16 + $0x3d4] sm:$0xf]  ;;  %v8885_v3 = vld [vmem:[#allocation16 + $0x3d8] sm:$0xf0] }
 0x90e   : > { %6105 = vmatpush.bf16.xpose.msra.mxu2 %v8732_v50  ;;  %6119 = vmatpush.bf16.xpose.msra.mxu3 %v8736_v24  ;;  %v8820_v50 = vor.u32 %v9679_v52, %v8819_v44  ;;  %v8824_v24 = vor.u32 %v9678_v9, %v8821_v26  ;;  %v8888_v18 = vor.u32 %v9694_v34, %v8885_v3  ;;  %v8779_v9 = vld [vmem:[#allocation16 + $0x300] sm:$0xf]  ;;  %v9669_v26 = vld [vmem:[#allocation16 + $0x304] sm:$0xf0] }
 0x90f   : > { %v8852_v44 = vor.u32 %v9687_v25, %v8851_v12  ;;  %v8843_v34 = vld [vmem:[#allocation16 + $0x380] sm:$0xf]  ;;  %v9685_v3 = vld [vmem:[#allocation16 + $0x384] sm:$0xf0] }
 0x915   : > { %6078 = vmatpush.bf16.xpose.msrb.mxu0 %v8660_v46  ;;  %6092 = vmatpush.bf16.xpose.msrb.mxu1 %v8664_v53  ;;  %v9692_v46 = vld [vmem:[#allocation16 + $0x3c4] sm:$0xf]  ;;  %v8877_v53 = vld [vmem:[#allocation16 + $0x3c8] sm:$0xf0] }
 0x916   : > { %6106 = vmatpush.bf16.xpose.msra.mxu2 %v8724_v15  ;;  %6120 = vmatpush.bf16.xpose.msra.mxu3 %v8728_v36  ;;  %v8812_v15 = vor.u32 %v9677_v54, %v8811_v11  ;;  %v8816_v36 = vor.u32 %v9676_v8, %v8813_v2  ;;  %v8880_v19 = vor.u32 %v9692_v46, %v8877_v53  ;;  %v9756_v11 = vld [vmem:[#allocation19 + $0x1c4] sm:$0xf] }
 0x917   : > { %v9149_v54 = vld [vmem:[#allocation19 + $0x1e0] sm:$0xf0]  ;;  %v8780_v8 = vor.u32 %v9669_v26, %v8779_v9  ;;  %v8784_v2 = vor.u32 %v9668_v21, %v8781_v10  ;;  %v8844_v46 = vor.u32 %v9685_v3, %v8843_v34  ;;  %v9051_v9 = vld [vmem:[#allocation19 + $0x100] sm:$0xf]  ;;  %v9741_v3 = vld [vmem:[#allocation19 + $0x14c] sm:$0xf] }
 0x918   : > { %v9736_v26 = vld [vmem:[#allocation19 + $0x11c] sm:$0xf0]  ;;  %v9732_v21 = vld [vmem:[#allocation19 + $0x104] sm:$0xf] }
 0x919   : > { %v9053_v34 = vld [vmem:[#allocation19 + $0x120] sm:$0xf0] }
 0x91d   : > { %6079 = vmatpush.bf16.xpose.msrb.mxu0 %v8652_v30  ;;  %6093 = vmatpush.bf16.xpose.msrb.mxu1 %v8656_v58  ;;  %v8872_v30 = vor.u32 %v9690_v41, %v8869_v48  ;;  %v8795_v58 = vld [vmem:[#allocation16 + $0x320] sm:$0xf]  ;;  %v9160_v41 = vor.u32 %v9757_v16, %v9157_v55  ;;  %v9123_v48 = vld [vmem:[#allocation19 + $0x188] sm:$0xf]  ;;  %v9019_v55 = vld [vmem:[#allocation19 + $0xc0] sm:$0xf] }
 0x91e   : > { %6107 = vmatpush.bf16.xpose.msra.mxu2 %v8716_v35  ;;  %6121 = vmatpush.bf16.xpose.msra.mxu3 %v8720_v31  ;;  %v8859_v35 = vld [vmem:[#allocation16 + $0x3a0] sm:$0xf]  ;;  %v9689_v31 = vld [vmem:[#allocation16 + $0x3a4] sm:$0xf0] }
 0x91f   : > { %v8860_v22 = vor.u32 %v9689_v31, %v8859_v35  ;;  %v9083_v35 = vld [vmem:[#allocation19 + $0x140] sm:$0xf] }
 0x920   : > { %v9744_v31 = vld [vmem:[#allocation19 + $0x15c] sm:$0xf0] }
 0x924   : > { %6080 = vmatmul.bf16.vlgmr.msrb.gmra.mxu0 %v14003_v45  ;;  %6094 = vmatmul.bf16.vlgmr.msrb.gmra.mxu1 %v14005_v33 }
 0x925   : > { %6128 = vmatpush.bf16.xpose.msra.mxu0 %v8836_v23  ;;  %6142 = vmatpush.bf16.xpose.msra.mxu1 %v8840_v39  ;;  %v9688_v23 = vld [vmem:[#allocation16 + $0x3a4] sm:$0xf]  ;;  %v8861_v39 = vld [vmem:[#allocation16 + $0x3a8] sm:$0xf0] }
 0x926   : > { %6156 = vmatpush.bf16.xpose.msrb.mxu2 %v8900_v17  ;;  %6170 = vmatpush.bf16.xpose.msrb.mxu3 %v8904_v27  ;;  %v8796_v17 = vor.u32 %v9673_v40, %v8795_v58  ;;  %v8800_v27 = vor.u32 %v9672_v63, %v8797_v29  ;;  %v8864_v37 = vor.u32 %v9688_v23, %v8861_v39  ;;  %v9740_v23 = vld [vmem:[#allocation19 + $0x144] sm:$0xf] }
 0x927   : > { %6108 = vmatmul.bf16.vlgmr.msra.gmra.mxu2 %v14003_v45  ;;  %6122 = vmatmul.bf16.vlgmr.msra.gmra.mxu3 %v14005_v33  ;;  %v9085_v39 = vld [vmem:[#allocation19 + $0x160] sm:$0xf0] }
 0x92d   : > { %6129 = vmatpush.bf16.xpose.msra.mxu0 %v8828_v32  ;;  %6143 = vmatpush.bf16.xpose.msra.mxu1 %v8832_v14  ;;  %v9686_v32 = vld [vmem:[#allocation16 + $0x394] sm:$0xf]  ;;  %v8853_v14 = vld [vmem:[#allocation16 + $0x398] sm:$0xf0] }
 0x92e   : > { %6157 = vmatpush.bf16.xpose.msrb.mxu2 %v8892_v5  ;;  %6171 = vmatpush.bf16.xpose.msrb.mxu3 %v8896_v28  ;;  %v8788_v5 = vor.u32 %v9671_v38, %v8787_v6  ;;  %v8792_v28 = vor.u32 %v9670_v51, %v8789_v56  ;;  %v8856_v52 = vor.u32 %v9686_v32, %v8853_v14  ;;  %v5305_v6 = vperm.slane %v14019_v0, 1  ;;  %v9745_v38 = vld [vmem:[#allocation19 + $0x164] sm:$0xf0] }
 0x92f   : > { %v9084_v51 = vor.u32 %v9744_v31, %v9083_v35  ;;  %v9088_v56 = vor.u32 %v9740_v23, %v9085_v39  ;;  %v9027_v35 = vld [vmem:[#allocation19 + $0xc8] sm:$0xf] }
 0x930   : > { %v9729_v31 = vld [vmem:[#allocation19 + $0xe4] sm:$0xf0] }
 0x935   : > { %6130 = vmatpush.bf16.xpose.msra.mxu0 %v8820_v50  ;;  %6144 = vmatpush.bf16.xpose.msra.mxu1 %v8824_v24  ;;  %v9684_v50 = vld [vmem:[#allocation16 + $0x384] sm:$0xf]  ;;  %v8845_v24 = vld [vmem:[#allocation16 + $0x388] sm:$0xf0] }
 0x936   : > { %6158 = vmatpush.bf16.xpose.msrb.mxu2 %v8884_v61  ;;  %6172 = vmatpush.bf16.xpose.msrb.mxu3 %v8888_v18  ;;  %v9147_v61 = vld [vmem:[#allocation19 + $0x1c0] sm:$0xf]  ;;  %v8848_v53 = vor.u32 %v9684_v50, %v8845_v24  ;;  %v9093_v50 = vld [vmem:[#allocation19 + $0x168] sm:$0xf0] }
 0x937   : > { %v9760_v18 = vld [vmem:[#allocation19 + $0x1dc] sm:$0xf0] }
 0x93d   : > { %6131 = vmatpush.bf16.xpose.msra.mxu0 %v8812_v15  ;;  %6145 = vmatpush.bf16.xpose.msra.mxu1 %v8816_v36  ;;  %v9148_v15 = vor.u32 %v9760_v18, %v9147_v61  ;;  %v9152_v36 = vor.u32 %v9756_v11, %v9149_v54  ;;  %v9096_v61 = vor.u32 %v9741_v3, %v9093_v50  ;;  %v9059_v11 = vld [vmem:[#allocation19 + $0x108] sm:$0xf] }
 0x93e   : > { %6159 = vmatpush.bf16.xpose.msrb.mxu2 %v8876_v20  ;;  %6173 = vmatpush.bf16.xpose.msrb.mxu3 %v8880_v19  ;;  %v9156_v20 = vor.u32 %v9761_v43, %v9155_v59  ;;  %v9115_v19 = vld [vmem:[#allocation19 + $0x180] sm:$0xf]  ;;  %v9737_v54 = vld [vmem:[#allocation19 + $0x124] sm:$0xf0]  ;;  %v9056_v59 = vor.u32 %v9732_v21, %v9053_v34  ;;  %v5306_v43 = vperm.slane %v14019_v0, 2 }
 0x93f   : > { %v9725_v21 = vld [vmem:[#allocation19 + $0xcc] sm:$0xf]  ;;  %v8995_v50 = vld [vmem:[#allocation19 + $0x88] sm:$0xf] }
 0x940   : > { %v9029_v34 = vld [vmem:[#allocation19 + $0xe8] sm:$0xf0] }
 0x945   : > { %6132 = vmatpush.bf16.xpose.msra.mxu0 %v8804_v62  ;;  %6146 = vmatpush.bf16.xpose.msra.mxu1 %v8808_v1  ;;  %v9753_v62 = vld [vmem:[#allocation19 + $0x1a4] sm:$0xf0]  ;;  %v9116_v1 = vor.u32 %v9752_v47, %v9115_v19 }
 0x946   : > { %6160 = vmatpush.bf16.xpose.msrb.mxu2 %v8868_v49  ;;  %6174 = vmatpush.bf16.xpose.msrb.mxu3 %v8872_v30  ;;  %v9120_v49 = vor.u32 %v9748_v57, %v9117_v7  ;;  %v5304_v30 = vperm.slane %v14019_v0, 0  ;;  %v9124_v58 = vor.u32 %v9753_v62, %v9123_v48  ;;  %v9724_v62 = vld [vmem:[#allocation19 + $0xc4] sm:$0xf] }
 0x94d   : > { %6133 = vmatpush.bf16.xpose.msra.mxu0 %v8796_v17  ;;  %6147 = vmatpush.bf16.xpose.msra.mxu1 %v8800_v27  ;;  %v9749_v17 = vld [vmem:[#allocation19 + $0x18c] sm:$0xf] }
 0x94e   : > { %6161 = vmatpush.bf16.xpose.msrb.mxu2 %v8860_v22  ;;  %6175 = vmatpush.bf16.xpose.msrb.mxu3 %v8864_v37  ;;  %v9125_v27 = vld [vmem:[#allocation19 + $0x1a8] sm:$0xf0] }
 0x94f   : > { %v9128_v37 = vor.u32 %v9749_v17, %v9125_v27 }
 0x955   : > { %6134 = vmatpush.bf16.xpose.msra.mxu0 %v8788_v5  ;;  %6148 = vmatpush.bf16.xpose.msra.mxu1 %v8792_v28 }
 0x956   : > { %6162 = vmatpush.bf16.xpose.msrb.mxu2 %v8852_v44  ;;  %6176 = vmatpush.bf16.xpose.msrb.mxu3 %v8856_v52 }
 0x95d   : > { %6135 = vmatpush.bf16.xpose.msra.mxu0 %v8780_v8  ;;  %6149 = vmatpush.bf16.xpose.msra.mxu1 %v8784_v2  ;;  %v9052_v2 = vor.u32 %v9736_v26, %v9051_v9  ;;  %v8989_v9 = vld [vmem:[#allocation19 + $0xa0] sm:$0xf0] }
 0x95e   : > { %6163 = vmatpush.bf16.xpose.msrb.mxu2 %v8844_v46  ;;  %6177 = vmatpush.bf16.xpose.msrb.mxu3 %v8848_v53  ;;  %v9060_v53 = vor.u32 %v9737_v54, %v9059_v11 }
 0x960   : > { %v5969_v40 = vpop.f32.mrf.mxu0  ;;  %v5983_v63 = vpop.f32.mrf.mxu1 }
 0x961   : > { %v5970_v29 = vadd.f32 %v5969_v40, %v5304_v30  ;;  %v9061_v40 = vld [vmem:[#allocation19 + $0x128] sm:$0xf0] }
 0x963   : > { %v14026_v22 = vadd.f32 %v5983_v63, %v5970_v29  ;;  %v5307_v63 = vperm.slane %v14019_v0, 3 }
 0x964   : > { %6136 = vmatmul.bf16.vlgmr.msra.gmra.mxu0 %v14003_v45  ;;  %6150 = vmatmul.bf16.vlgmr.msra.gmra.mxu1 %v14005_v33 }
 0x965   : > { %7302 = vmatpush.bf16.xpose.msrb.mxu0 %v9148_v15  ;;  %7316 = vmatpush.bf16.xpose.msrb.mxu1 %v9152_v36 }
 0x966   : > { %7330 = vmatpush.bf16.xpose.msra.mxu2 %v9156_v20  ;;  %7344 = vmatpush.bf16.xpose.msra.mxu3 %v9160_v41  ;;  %v9728_v41 = vld [vmem:[#allocation19 + $0xdc] sm:$0xf0] }
 0x967   : > { %6164 = vmatmul.bf16.vlgmr.msrb.gmra.mxu2 %v14003_v45  ;;  %6178 = vmatmul.bf16.vlgmr.msrb.gmra.mxu3 %v14005_v33  ;;  %v9091_v45 = vld [vmem:[#allocation19 + $0x148] sm:$0xf]  ;;  %v8905_v33 = vmul.f32 -1.702, %v14026_v22  ;;  %v5997_v32 = vpop.f32.mrf.mxu2  ;;  %v6011_v14 = vpop.f32.mrf.mxu3  ;;  %v9020_v17 = vor.u32 %v9728_v41, %v9019_v55 }
 0x968   : > { %v9092_v12 = vor.u32 %v9745_v38, %v9091_v45  ;;  %v5998_v5 = vadd.f32 %v5997_v32, %v5305_v6  ;;  %v5971_v28 = vpop.f32.mrf.mxu0  ;;  %v5985_v44 = vpop.f32.mrf.mxu1 }
 0x969   : > { %v6216_v25 = vmul.f32 1.442695, %v8905_v33  ;;  %v5972_v52 = vadd.f32 %v5971_v28, %v5304_v30 }
 0x96a   : > { %v14030_v10 = vadd.f32 %v6011_v14, %v5998_v5  ;;  %v8987_v5 = vld [vmem:[#allocation19 + $0x80] sm:$0xf] }
 0x96b   : > { %10261 = vpow2.f32 %v6216_v25  ;;  %v14032_v24 = vadd.f32 %v5985_v44, %v5972_v52  ;;  %v9720_v44 = vld [vmem:[#allocation19 + $0x9c] sm:$0xf0]  ;;  %v9716_v52 = vld [vmem:[#allocation19 + $0x84] sm:$0xf] }
 0x96c   : > { %v8906_v18 = vmul.f32 -1.702, %v14030_v10  ;;  %v8988_v54 = vor.u32 %v9720_v44, %v8987_v5  ;;  %v9717_v5 = vld [vmem:[#allocation19 + $0x8c] sm:$0xf] }
 0x96d   : > { %7303 = vmatpush.bf16.xpose.msrb.mxu0 %v9116_v1  ;;  %7317 = vmatpush.bf16.xpose.msrb.mxu1 %v9120_v49  ;;  %v8913_v8 = vmul.f32 -1.702, %v14032_v24  ;;  %v9021_v1 = vld [vmem:[#allocation19 + $0xe0] sm:$0xf0]  ;;  %v9733_v49 = vld [vmem:[#allocation19 + $0x10c] sm:$0xf] }
 0x96e   : > { %7331 = vmatpush.bf16.xpose.msra.mxu2 %v9124_v58  ;;  %7345 = vmatpush.bf16.xpose.msra.mxu3 %v9128_v37  ;;  %v6218_v46 = vmul.f32 1.442695, %v8906_v18  ;;  %v9064_v29 = vor.u32 %v9733_v49, %v9061_v40  ;;  %v9024_v27 = vor.u32 %v9724_v62, %v9021_v1  ;;  %v8955_v49 = vld [vmem:[#allocation19 + $0x40] sm:$0xf]  ;;  %v8965_v44 = vld [vmem:[#allocation19 + $0x68] sm:$0xf0] }
 0x96f   : > { %v6232_v36 = vmul.f32 1.442695, %v8913_v8  ;;  %v5999_v20 = vpop.f32.mrf.mxu2  ;;  %v6013_v7 = vpop.f32.mrf.mxu3  ;;  %v8992_v8 = vor.u32 %v9716_v52, %v8989_v9  ;;  %v9712_v40 = vld [vmem:[#allocation19 + $0x5c] sm:$0xf0] }
 0x970   : > { %10263 = vpow2.f32 %v6218_v46  ;;  %v6000_v47 = vadd.f32 %v5999_v20, %v5305_v6  ;;  %v6025_v57 = vpop.f32.mrf.mxu0  ;;  %v6039_v48 = vpop.f32.mrf.mxu1  ;;  %v9028_v6 = vor.u32 %v9729_v31, %v9027_v35  ;;  %v9032_v46 = vor.u32 %v9725_v21, %v9029_v34 }
 0x971   : > { %v10262_v15 = vpop.eup %10261  ;;  %10265 = vpow2.f32 %v6232_v36  ;;  %v6026_v16 = vadd.f32 %v6025_v57, %v5306_v43 }
 0x972   : > { %v14037_v19 = vadd.f32 1.0, %v10262_v15  ;;  %v14042_v30 = vadd.f32 %v6013_v7, %v6000_v47 }
 0x973   : > { %v14044_v58 = vadd.f32 %v6039_v48, %v6026_v16 }
 0x974   : > { %10267 = vrcp.f32 %v14037_v19  ;;  %v8914_v23 = vmul.f32 -1.702, %v14042_v30  ;;  %v6273_v36 = vand.u32 2147483647, %v14037_v19  ;;  %v6275_v57 = vand.u32 2147483648, %v14037_v19 }
 0x975   : > { %7304 = vmatpush.bf16.xpose.msrb.mxu0 %v9084_v51  ;;  %7318 = vmatpush.bf16.xpose.msrb.mxu1 %v9088_v56  ;;  %v8907_v39 = vmul.f32 -1.702, %v14044_v58  ;;  %vm6269_vm14 = vweird.f32 %v14037_v19 }
 0x976   : > { %7332 = vmatpush.bf16.xpose.msra.mxu2 %v9092_v12  ;;  %7346 = vmatpush.bf16.xpose.msra.mxu3 %v9096_v61  ;;  %v10264_v37 = vpop.eup %10263  ;;  %v6234_v33 = vmul.f32 1.442695, %v8914_v23  ;;  %v9721_v61 = vld [vmem:[#allocation19 + $0xa4] sm:$0xf0]  ;;  %v9708_v23 = vld [vmem:[#allocation19 + $0x44] sm:$0xf] }
 0x977   : > { %v10266_v45 = vpop.eup %10265  ;;  %v14049_v38 = vadd.f32 1.0, %v10264_v37  ;;  %v6053_v51 = vpop.f32.mrf.mxu2  ;;  %v6220_v25 = vmul.f32 1.442695, %v8907_v39  ;;  %v8957_v39 = vld [vmem:[#allocation19 + $0x60] sm:$0xf0]  ;;  %vm14095_vm0 = vcmp.eq.f32.partialorder %v6273_v36, 8.507059e+37 }
 0x978   : > { %v14053_v12 = vadd.f32 1.0, %v10266_v45  ;;  %v6054_v32 = vadd.f32 %v6053_v51, %v5307_v63  ;;  %v6027_v28 = vpop.f32.mrf.mxu0  ;;  %v6067_v26 = vpop.f32.mrf.mxu3  ;;  %v8956_v51 = vor.u32 %v9712_v40, %v8955_v49  ;;  %v9700_v49 = vld [vmem:[#allocation19 + $0x4] sm:$0xf] }
 0x979   : > { %10269 = vrcp.f32 %v14049_v38  ;;  %v6028_v11 = vadd.f32 %v6027_v28, %v5306_v43  ;;  %v6288_v7 = vand.u32 2147483647, %v14049_v38  ;;  %v6290_v45 = vand.u32 2147483648, %v14049_v38  ;;  %v8997_v28 = vld [vmem:[#allocation19 + $0xa8] sm:$0xf0] }
 0x97a   : > { %v14051_v56 = vpop.eup %10267  ;;  %10271 = vrcp.f32 %v14053_v12  ;;  %v14061_v3 = vadd.f32 %v6067_v26, %v6054_v32  ;;  %v6395_v21 = vand.u32 2147483648, %v14053_v12  ;;  %vm6389_vm3 = vweird.f32 %v14053_v12  ;;  %v8925_v40 = vld [vmem:[#allocation19 + $0x20] sm:$0xf0] }
 0x97b   : > { %v6265_v14 = vmul.f32 %v14051_v56, %v14037_v19  ;;  %10273 = vpow2.f32 %v6234_v33  ;;  %vm6270_vm15 = vweird.f32 %v14051_v56  ;;  %v6393_v33 = vand.u32 2147483647, %v14053_v12  ;;  %v9750_v19 = vld [vmem:[#allocation19 + $0x194] sm:$0xf] }
 0x97c   : > { %10275 = vpow2.f32 %v6220_v25  ;;  %vm14109_vm2 = vmor %vm6269_vm14, %vm6270_vm15  ;;  %vm14124_vm6 = vcmp.eq.f32.partialorder %v6288_v7, 8.507059e+37  ;;  %vm6284_vm8 = vweird.f32 %v14049_v38 }
 0x97d   : > { %7305 = vmatpush.bf16.xpose.msrb.mxu0 %v9052_v2  ;;  %7319 = vmatpush.bf16.xpose.msrb.mxu1 %v9056_v59  ;;  %v6266_v18 = vsub.f32 1.0, %v6265_v14  ;;  %v8908_v2 = vmul.f32 -1.702, %v14061_v3  ;;  %v6041_v59 = vpop.f32.mrf.mxu1  ;;  %v8960_v14 = vor.u32 %v9708_v23, %v8957_v39  ;;  %vm14116_vm4 = vcmp.eq.f32.partialorder %v6393_v33, 8.507059e+37  ;;  %v9762_v23 = vld [vmem:[#allocation19 + $0x1ec] sm:$0xf0] }
 0x97e   : > { %7333 = vmatpush.bf16.xpose.msra.mxu2 %v9060_v53  ;;  %7347 = vmatpush.bf16.xpose.msra.mxu3 %v9064_v29  ;;  %v8996_v53 = vor.u32 %v9721_v61, %v8995_v50  ;;  %v14069_v20 = vadd.f32 %v6041_v59, %v6028_v11  ;;  %v8963_v50 = vld [vmem:[#allocation19 + $0x48] sm:$0xf]  ;;  %v9758_v39 = vld [vmem:[#allocation19 + $0x1d4] sm:$0xf] }
 0x97f   : > { %v14066_v15 = vpop.eup %10269  ;;  %v6222_v16 = vmul.f32 1.442695, %v8908_v2  ;;  %v6055_v55 = vpop.f32.mrf.mxu2  ;;  %v6267_v48 = vmul.f32 %v14051_v56, %v6266_v18  ;;  %v9713_v61 = vld [vmem:[#allocation19 + $0x64] sm:$0xf0]  ;;  %v9000_v2 = vor.u32 %v9717_v5, %v8997_v28  ;;  %v8928_v5 = vor.u32 %v9700_v49, %v8925_v40  ;;  %v9709_v28 = vld [vmem:[#allocation19 + $0x4c] sm:$0xf] }
 0x980   : > { %v14071_v47 = vpop.eup %10271  ;;  %v6280_v43 = vmul.f32 %v14066_v15, %v14049_v38  ;;  %v8915_v1 = vmul.f32 -1.702, %v14069_v20  ;;  %v6069_v9 = vpop.f32.mrf.mxu3  ;;  %vm6285_vm5 = vweird.f32 %v14066_v15  ;;  %v8964_v7 = vor.u32 %v9713_v61, %v8963_v50  ;;  %v9171_v50 = vld [vmem:[#allocation19 + $0x1d8] sm:$0xf]  ;;  %v9759_v40 = vld [vmem:[#allocation19 + $0x1dc] sm:$0xf] }
 0x981   : > { %v10274_v41 = vpop.eup %10273  ;;  %v6385_v62 = vmul.f32 %v14071_v47, %v14053_v12  ;;  %10277 = vpow2.f32 %v6222_v16  ;;  %v6268_v25 = vadd.f32 %v14051_v56, %v6267_v48  ;;  %vm6390_vm1 = vweird.f32 %v14071_v47  ;;  %v8923_v16 = vld [vmem:[#allocation19] sm:$0xf]  ;;  %vm14157_vm9 = vmor %vm6284_vm8, %vm6285_vm5  ;;  %v9763_v61 = vld [vmem:[#allocation19 + $0x1f4] sm:$0xf0] }
 0x982   : > { %v10276_v29 = vpop.eup %10275  ;;  %v6281_v35 = vsub.f32 1.0, %v6280_v43  ;;  %v14083_v31 = vadd.f32 1.0, %v10274_v41  ;;  %v6236_v37 = vmul.f32 1.442695, %v8915_v1  ;;  %vm14130_vm7 = vmor %vm6389_vm3, %vm6390_vm1  ;;  %v6396_v48 = vor.u32 1.1754944e-38, %v6395_v21 }
 0x983   : > { %v6272_v59 = vsel %vm14109_vm2, %v14051_v56, %v6268_v25 }
 0x984   : > { %10279 = vrcp.f32 %v14083_v31  ;;  %v6282_v52 = vmul.f32 %v14066_v15, %v6281_v35  ;;  %v6408_v43 = vand.u32 2147483647, %v14083_v31  ;;  %v6410_v1 = vand.u32 2147483648, %v14083_v31  ;;  %v9163_v35 = vld [vmem:[#allocation19 + $0x1d0] sm:$0xf] }
 0x985   : > { %7306 = vmatpush.bf16.xpose.msrb.mxu0 %v9020_v17  ;;  %7320 = vmatpush.bf16.xpose.msrb.mxu1 %v9024_v27  ;;  %v6386_v17 = vsub.f32 1.0, %v6385_v62  ;;  %v14085_v27 = vadd.f32 1.0, %v10276_v29  ;;  %vm6404_vm11 = vweird.f32 %v14083_v31 }
 0x986   : > { %7334 = vmatpush.bf16.xpose.msra.mxu2 %v9028_v6  ;;  %7348 = vmatpush.bf16.xpose.msra.mxu3 %v9032_v46  ;;  %v6056_v6 = vadd.f32 %v6055_v55, %v5307_v63  ;;  %v6276_v63 = vor.u32 1.1754944e-38, %v6275_v57  ;;  %v6283_v56 = vadd.f32 %v14066_v15, %v6282_v52  ;;  %v9704_v55 = vld [vmem:[#allocation19 + $0x1c] sm:$0xf0]  ;;  %v9164_v52 = vor.u32 %v9762_v23, %v9163_v35 }
 0x987   : > { %v6387_v32 = vmul.f32 %v14071_v47, %v6386_v17  ;;  %10281 = vrcp.f32 %v14085_v27  ;;  %v10278_v18 = vpop.eup %10277  ;;  %v8924_v38 = vor.u32 %v9704_v55, %v8923_v16  ;;  %vm14177_vm12 = vcmp.eq.f32.partialorder %v6408_v43, 8.507059e+37  ;;  %v9131_v43 = vld [vmem:[#allocation19 + $0x190] sm:$0xf]  ;;  %v9133_v16 = vld [vmem:[#allocation19 + $0x1b0] sm:$0xf0] }
 0x988   : > { %10283 = vpow2.f32 %v6236_v37  ;;  %v14103_v34 = vadd.f32 %v6069_v9, %v6056_v6  ;;  %v14134_v12 = vadd.f32 1.0, %v10278_v18  ;;  %v6287_v25 = vsel %vm14157_vm9, %v14066_v15, %v6283_v56  ;;  %v8931_v9 = vld [vmem:[#allocation19 + $0x8] sm:$0xf]  ;;  %v9701_v55 = vld [vmem:[#allocation19 + $0xc] sm:$0xf] }
 0x989   : > { %v6388_v26 = vadd.f32 %v14071_v47, %v6387_v32  ;;  %v9705_v15 = vld [vmem:[#allocation19 + $0x24] sm:$0xf0]  ;;  %vm6299_vm15 = vweird.f32 %v14085_v27 }
 0x98a   : > { %v14137_v36 = vpop.eup %10279  ;;  %10285 = vrcp.f32 %v14134_v12  ;;  %v8932_v56 = vor.u32 %v9705_v15, %v8931_v9 }
 0x98b   : > { %v6392_v57 = vsel %vm14130_vm7, %v14071_v47, %v6388_v26  ;;  %v6400_v62 = vmul.f32 %v14137_v36, %v14083_v31  ;;  %v6277_v47 = vsel %vm14095_vm0, %v6276_v63, %v6272_v59  ;;  %vm6405_vm10 = vweird.f32 %v14137_v36 }
 0x98c   : > { %v6397_v6 = vsel %vm14116_vm4, %v6396_v48, %v6392_v57  ;;  %v6504_v26 = vmul.f32 %v6277_v47, %v14026_v22  ;;  %vm6406_vm13 = vmor %vm6404_vm11, %vm6405_vm10  ;;  %v6411_v31 = vor.u32 1.1754944e-38, %v6410_v1  ;;  %v9172_v57 = vor.u32 %v9763_v61, %v9171_v50  ;;  %v8933_v48 = vld [vmem:[#allocation19 + $0x28] sm:$0xf0]  ;;  %v9173_v47 = vld [vmem:[#allocation19 + $0x1f8] sm:$0xf0] }
 0x98d   : > { %7307 = vmatpush.bf16.xpose.msrb.mxu0 %v8988_v54  ;;  %7321 = vmatpush.bf16.xpose.msrb.mxu1 %v8992_v8  ;;  %v14113_v54 = vor.u32 1.1754944e-38, %v6290_v45  ;;  %v14144_v41 = vpop.eup %10281  ;;  %v6401_v45 = vsub.f32 1.0, %v6400_v62  ;;  %v6512_v21 = vmul.f32 %v6397_v6, %v14032_v24  ;;  %v9136_v6 = vor.u32 %v9750_v19, %v9133_v16  ;;  %v9742_v50 = vld [vmem:[#allocation19 + $0x154] sm:$0xf]  ;;  %v9751_v8 = vld [vmem:[#allocation19 + $0x19c] sm:$0xf] }
 0x98e   : > { %7335 = vmatpush.bf16.xpose.msra.mxu2 %v8996_v53  ;;  %v8916_v53 = vmul.f32 -1.702, %v14103_v34  ;;  %7349 = vmatpush.bf16.xpose.msra.mxu3 %v9000_v2  ;;  %v6295_v29 = vmul.f32 %v14144_v41, %v14085_v27  ;;  %v10284_v17 = vpop.eup %10283  ;;  %v8968_v2 = vor.u32 %v9709_v28, %v8965_v44  ;;  %vm6300_vm14 = vweird.f32 %v14144_v41  ;;  %v9101_v61 = vld [vmem:[#allocation19 + $0x170] sm:$0xf0] }
 0x98f   : > { %v6402_v63 = vmul.f32 %v14137_v36, %v6401_v45  ;;  %v6292_v24 = vsel %vm14124_vm6, %v14113_v54, %v6287_v25  ;;  %v14193_v49 = vpack.c.bf16 %v6512_v21, %v6504_v26  ;;  %v8936_v45 = vor.u32 %v9701_v55, %v8933_v48  ;;  %vm14212_vm0 = vmor %vm6299_vm15, %vm6300_vm14  ;;  %v9099_v26 = vld [vmem:[#allocation19 + $0x150] sm:$0xf] }
 0x990   : > { %v6238_v33 = vmul.f32 1.442695, %v8916_v53  ;;  %v6296_v32 = vsub.f32 1.0, %v6295_v29  ;;  %v14174_v18 = vpop.eup %10285  ;;  %v6505_v1 = vmul.f32 %v6292_v24, %v14030_v10  ;;  %v9176_v25 = vor.u32 %v9759_v40, %v9173_v47  ;;  %v9746_v21 = vld [vmem:[#allocation19 + $0x16c] sm:$0xf0] }
 0x991   : > { %v6403_v11 = vadd.f32 %v14137_v36, %v6402_v63  ;;  %v6310_v46 = vmul.f32 %v14174_v18, %v14134_v12  ;;  %vm6315_vm3 = vweird.f32 %v14174_v18  ;;  %vm6314_vm7 = vweird.f32 %v14134_v12 }
 0x992   : > { %10287 = vpow2.f32 %v6238_v33  ;;  %v6297_v59 = vmul.f32 %v14144_v41, %v6296_v32  ;;  %v9755_v33 = vld [vmem:[#allocation19 + $0x1b4] sm:$0xf0]  ;;  %v6320_v19 = vand.u32 2147483648, %v14134_v12  ;;  %v6318_v48 = vand.u32 2147483647, %v14134_v12  ;;  %vm14240_vm8 = vmor %vm6314_vm7, %vm6315_vm3 }
 0x993   : > { %v6407_v53 = vsel %vm6406_vm13, %v14137_v36, %v6403_v11  ;;  %v6311_v23 = vsub.f32 1.0, %v6310_v46  ;;  %v5308_v46 = vperm.slane %v14019_v0, 4 }
 0x994   : > { %v6412_v54 = vsel %vm14177_vm12, %v6411_v31, %v6407_v53  ;;  %v6298_v35 = vadd.f32 %v14144_v41, %v6297_v59  ;;  %v9100_v59 = vor.u32 %v9746_v21, %v9099_v26  ;;  %vm6319_vm10 = vcmp.eq.f32.partialorder %v6318_v48, 8.507059e+37  ;;  %v9739_v26 = vld [vmem:[#allocation19 + $0x134] sm:$0xf0] }
 0x995   : > { %7308 = vmatpush.bf16.xpose.msrb.mxu0 %v8956_v51  ;;  %7322 = vmatpush.bf16.xpose.msrb.mxu1 %v8960_v14  ;;  %v9165_v51 = vld [vmem:[#allocation19 + $0x1f0] sm:$0xf0]  ;;  %v14166_v14 = vadd.f32 1.0, %v10284_v17  ;;  %v6513_v36 = vmul.f32 %v6412_v54, %v14042_v30  ;;  %v9139_v30 = vld [vmem:[#allocation19 + $0x198] sm:$0xf] }
 0x996   : > { %7336 = vmatpush.bf16.xpose.msra.mxu2 %v8964_v7  ;;  %v9168_v22 = vor.u32 %v9758_v39, %v9165_v51  ;;  %7350 = vmatpush.bf16.xpose.msra.mxu3 %v8968_v2  ;;  %v9754_v7 = vld [vmem:[#allocation19 + $0x1ac] sm:$0xf0]  ;;  %v6305_v51 = vand.u32 2147483648, %v14085_v27  ;;  %v9140_v63 = vor.u32 %v9755_v33, %v9139_v30  ;;  %v9734_v33 = vld [vmem:[#allocation19 + $0x114] sm:$0xf] }
 0x997   : > { %10289 = vrcp.f32 %v14166_v14  ;;  %v9132_v17 = vor.u32 %v9754_v7, %v9131_v43  ;;  %v14200_v37 = vpack.c.bf16 %v6513_v36, %v6505_v1  ;;  %v6425_v44 = vand.u32 2147483648, %v14166_v14  ;;  %v9107_v43 = vld [vmem:[#allocation19 + $0x158] sm:$0xf] }
 0x998   : > { %v10288_v62 = vpop.eup %10287  ;;  %v6306_v15 = vor.u32 1.1754944e-38, %v6305_v51  ;;  %vm6419_vm4 = vweird.f32 %v14166_v14  ;;  %v9747_v7 = vld [vmem:[#allocation19 + $0x174] sm:$0xf0] }
 0x999   : > { %v14198_v39 = vadd.f32 1.0, %v10288_v62  ;;  %v6426_v31 = vor.u32 1.1754944e-38, %v6425_v44  ;;  %v9108_v12 = vor.u32 %v9747_v7, %v9107_v43  ;;  %v9731_v48 = vld [vmem:[#allocation19 + $0xf4] sm:$0xf0] }
 0x99b   : > { %10291 = vrcp.f32 %v14198_v39  ;;  %vm6434_vm11 = vweird.f32 %v14198_v39 }
 0x99d   : > { %7309 = vmatpush.bf16.xpose.msrb.mxu0 %v8924_v38  ;;  %7323 = vmatpush.bf16.xpose.msrb.mxu1 %v8928_v5  ;;  %v10290_v29 = vpop.eup %10289  ;;  %v6303_v38 = vand.u32 2147483647, %v14085_v27  ;;  %v6423_v5 = vand.u32 2147483647, %v14166_v14  ;;  %v6312_v27 = vmul.f32 %v14174_v18, %v6311_v23 }
 0x99e   : > { %7337 = vmatpush.bf16.xpose.msra.mxu2 %v8932_v56  ;;  %v6415_v10 = vmul.f32 %v10290_v29, %v14166_v14  ;;  %vm6420_vm1 = vweird.f32 %v10290_v29  ;;  %7351 = vmatpush.bf16.xpose.msra.mxu3 %v8936_v45  ;;  %v6321_v45 = vor.u32 1.1754944e-38, %v6320_v19 }
 0x99f   : > { %vm6304_vm2 = vcmp.eq.f32.partialorder %v6303_v38, 8.507059e+37  ;;  %vm14223_vm5 = vcmp.eq.f32.partialorder %v6423_v5, 8.507059e+37  ;;  %vm6421_vm6 = vmor %vm6419_vm4, %vm6420_vm1  ;;  %v6313_v53 = vadd.f32 %v14174_v18, %v6312_v27  ;;  %v9069_v38 = vld [vmem:[#allocation19 + $0x130] sm:$0xf0] }
 0x9a0   : > { %v6416_v32 = vsub.f32 1.0, %v6415_v10  ;;  %v9067_v10 = vld [vmem:[#allocation19 + $0x110] sm:$0xf]  ;;  %v9072_v27 = vor.u32 %v9734_v33, %v9069_v38  ;;  %v9045_v33 = vld [vmem:[#allocation19 + $0xf8] sm:$0xf0] }
 0x9a1   : > { %v10292_v2 = vpop.eup %10291  ;;  %v6081_v36 = vpop.f32.mrf.mxu0 }
 0x9a2   : > { %v6417_v9 = vmul.f32 %v10290_v29, %v6416_v32  ;;  %v6430_v14 = vmul.f32 %v10292_v2, %v14198_v39  ;;  %v6095_v40 = vpop.f32.mrf.mxu1  ;;  %vm6435_vm9 = vweird.f32 %v10292_v2  ;;  %v9109_v32 = vld [vmem:[#allocation19 + $0x178] sm:$0xf0] }
 0x9a3   : > { %vm6436_vm12 = vmor %vm6434_vm11, %vm6435_vm9 }
 0x9a4   : > { %7310 = vmatmul.bf16.vlgmr.msrb.gmra.mxu0 %v14193_v49  ;;  %7324 = vmatmul.bf16.vlgmr.msrb.gmra.mxu1 %v14200_v37  ;;  %v6418_v11 = vadd.f32 %v10290_v29, %v6417_v9  ;;  %v6431_v1 = vsub.f32 1.0, %v6430_v14  ;;  %v9075_v9 = vld [vmem:[#allocation19 + $0x118] sm:$0xf]  ;;  %v9730_v14 = vld [vmem:[#allocation19 + $0xec] sm:$0xf0] }
 0x9a5   : > { %7358 = vmatpush.bf16.xpose.msra.mxu0 %v9164_v52  ;;  %7372 = vmatpush.bf16.xpose.msra.mxu1 %v9168_v22  ;;  %v6302_v52 = vsel %vm14212_vm0, %v14144_v41, %v6298_v35  ;;  %v9141_v22 = vld [vmem:[#allocation19 + $0x1b8] sm:$0xf0]  ;;  %v6440_v35 = vand.u32 2147483648, %v14198_v39 }
 0x9a6   : > { %7386 = vmatpush.bf16.xpose.msrb.mxu2 %v9172_v57  ;;  %7400 = vmatpush.bf16.xpose.msrb.mxu3 %v9176_v25  ;;  %v6307_v24 = vsel %vm6304_vm2, %v6306_v15, %v6302_v52  ;;  %v6422_v56 = vsel %vm6421_vm6, %v10290_v29, %v6418_v11  ;;  %v9104_v57 = vor.u32 %v9742_v50, %v9101_v61  ;;  %v6438_v29 = vand.u32 2147483647, %v14198_v39  ;;  %v9743_v25 = vld [vmem:[#allocation19 + $0x15c] sm:$0xf] }
 0x9a7   : > { %v6427_v54 = vsel %vm14223_vm5, %v6426_v31, %v6422_v56  ;;  %v9144_v16 = vor.u32 %v9751_v8, %v9141_v22  ;;  %v6506_v55 = vmul.f32 %v6307_v24, %v14044_v58  ;;  %v6082_v58 = vadd.f32 %v6081_v36, %v5308_v46  ;;  %v9035_v56 = vld [vmem:[#allocation19 + $0xd0] sm:$0xf] }
 0x9a8   : > { %v6514_v62 = vmul.f32 %v6427_v54, %v14069_v20  ;;  %v6317_v20 = vsel %vm14240_vm8, %v14174_v18, %v6313_v53  ;;  %v5309_v18 = vperm.slane %v14019_v0, 5  ;;  %v6441_v28 = vor.u32 1.1754944e-38, %v6440_v35  ;;  %v9735_v0 = vld [vmem:[#allocation19 + $0x11c] sm:$0xf] }
 0x9a9   : > { %v14253_v30 = vadd.f32 %v6095_v40, %v6082_v58  ;;  %v6322_v5 = vsel %vm6319_vm10, %v6321_v45, %v6317_v20  ;;  %vm6439_vm13 = vcmp.eq.f32.partialorder %v6438_v29, 8.507059e+37  ;;  %v9112_v50 = vor.u32 %v9743_v25, %v9109_v32  ;;  %v6083_v22 = vpop.f32.mrf.mxu0  ;;  %v9722_v20 = vld [vmem:[#allocation19 + $0xac] sm:$0xf0]  ;;  %v9727_v45 = vld [vmem:[#allocation19 + $0xdc] sm:$0xf] }
 0x9aa   : > { %v14251_v23 = vpack.c.bf16 %v6514_v62, %v6506_v55  ;;  %v6109_v15 = vpop.f32.mrf.mxu2  ;;  %v6507_v61 = vmul.f32 %v6322_v5, %v14061_v3  ;;  %v6123_v8 = vpop.f32.mrf.mxu3  ;;  %v9076_v24 = vor.u32 %v9739_v26, %v9075_v9  ;;  %v9036_v19 = vor.u32 %v9730_v14, %v9035_v56  ;;  %v9043_v55 = vld [vmem:[#allocation19 + $0xd8] sm:$0xf] }
 0x9ab   : > { %v8909_v44 = vmul.f32 -1.702, %v14253_v30  ;;  %v6110_v41 = vadd.f32 %v6109_v15, %v5309_v18  ;;  %v6097_v53 = vpop.f32.mrf.mxu1  ;;  %v9044_v35 = vor.u32 %v9731_v48, %v9043_v55  ;;  %v9011_v32 = vld [vmem:[#allocation19 + $0x98] sm:$0xf]  ;;  %v9714_v15 = vld [vmem:[#allocation19 + $0x6c] sm:$0xf0] }
 0x9ac   : > { %7338 = vmatmul.bf16.vlgmr.msra.gmra.mxu2 %v14251_v23  ;;  %v9723_v5 = vld [vmem:[#allocation19 + $0xb4] sm:$0xf0]  ;;  %v9706_v48 = vld [vmem:[#allocation19 + $0x2c] sm:$0xf0] }
 0x9ad   : > { %7359 = vmatpush.bf16.xpose.msra.mxu0 %v9132_v17  ;;  %7373 = vmatpush.bf16.xpose.msra.mxu1 %v9136_v6  ;;  %v6432_v17 = vmul.f32 %v10292_v2, %v6431_v1  ;;  %v9738_v6 = vld [vmem:[#allocation19 + $0x12c] sm:$0xf0]  ;;  %v6224_v21 = vmul.f32 1.442695, %v8909_v44  ;;  %v8979_v56 = vld [vmem:[#allocation19 + $0x58] sm:$0xf] }
 0x9ae   : > { %7387 = vmatpush.bf16.xpose.msrb.mxu2 %v9140_v63  ;;  %7401 = vmatpush.bf16.xpose.msrb.mxu3 %v9144_v16  ;;  %v9068_v63 = vor.u32 %v9738_v6, %v9067_v10  ;;  %v9718_v10 = vld [vmem:[#allocation19 + $0x94] sm:$0xf]  ;;  %v9715_v14 = vld [vmem:[#allocation19 + $0x74] sm:$0xf0] }
 0x9af   : > { %v6433_v51 = vadd.f32 %v10292_v2, %v6432_v17  ;;  %10293 = vpow2.f32 %v6224_v21  ;;  %v9005_v6 = vld [vmem:[#allocation19 + $0xb0] sm:$0xf0]  ;;  %v8971_v21 = vld [vmem:[#allocation19 + $0x50] sm:$0xf]  ;;  %v8980_v55 = vor.u32 %v9715_v14, %v8979_v56  ;;  %v9816_v56 = vld [vmem:[#allocation19 + $0x39c] sm:$0xf0] }
 0x9b0   : > { %v9008_v25 = vor.u32 %v9718_v10, %v9005_v6  ;;  %v9820_v10 = vld [vmem:[#allocation19 + $0x3c4] sm:$0xf] }
 0x9b1   : > { %v6437_v52 = vsel %vm6436_vm12, %v10292_v2, %v6433_v51  ;;  %v6084_v2 = vadd.f32 %v6083_v22, %v5308_v46  ;;  %v9077_v46 = vld [vmem:[#allocation19 + $0x138] sm:$0xf0]  ;;  %v9812_v14 = vld [vmem:[#allocation19 + $0x384] sm:$0xf] }
 0x9b2   : > { %v6442_v39 = vsel %vm6439_vm13, %v6441_v28, %v6437_v52  ;;  %v6111_v36 = vpop.f32.mrf.mxu2  ;;  %v9080_v40 = vor.u32 %v9735_v0, %v9077_v46  ;;  %v6125_v58 = vpop.f32.mrf.mxu3  ;;  %v9048_v52 = vor.u32 %v9727_v45, %v9045_v33 }
 0x9b3   : > { %v6515_v11 = vmul.f32 %v6442_v39, %v14103_v34  ;;  %v14268_v3 = vadd.f32 %v6097_v53, %v6084_v2  ;;  %v9726_v34 = vld [vmem:[#allocation19 + $0xd4] sm:$0xf]  ;;  %v6112_v29 = vadd.f32 %v6111_v36, %v5309_v18  ;;  %v9012_v39 = vor.u32 %v9723_v5, %v9011_v32 }
 0x9b4   : > { %v8972_v2 = vor.u32 %v9714_v15, %v8971_v21 }
 0x9b5   : > { %7360 = vmatpush.bf16.xpose.msra.mxu0 %v9100_v59  ;;  %7374 = vmatpush.bf16.xpose.msra.mxu1 %v9104_v57  ;;  %v14264_v31 = vpack.c.bf16 %v6515_v11, %v6507_v61  ;;  %v14266_v59 = vadd.f32 %v6123_v8, %v6110_v41  ;;  %v9037_v57 = vld [vmem:[#allocation19 + $0xf0] sm:$0xf0]  ;;  %v8917_v7 = vmul.f32 -1.702, %v14268_v3  ;;  %v10294_v62 = vpop.eup %10293  ;;  %v14276_v17 = vadd.f32 %v6125_v58, %v6112_v29  ;;  %v9719_v41 = vld [vmem:[#allocation19 + $0x9c] sm:$0xf] }
 0x9b6   : > { %7388 = vmatpush.bf16.xpose.msrb.mxu2 %v9108_v12  ;;  %7402 = vmatpush.bf16.xpose.msrb.mxu3 %v9112_v50  ;;  %v9040_v16 = vor.u32 %v9726_v34, %v9037_v57  ;;  %v14273_v47 = vadd.f32 1.0, %v10294_v62  ;;  %v9003_v12 = vld [vmem:[#allocation19 + $0x90] sm:$0xf]  ;;  %v9710_v61 = vld [vmem:[#allocation19 + $0x54] sm:$0xf] }
 0x9b7   : > { %v8910_v43 = vmul.f32 -1.702, %v14266_v59  ;;  %7352 = vmatmul.bf16.vlgmr.msra.gmra.mxu3 %v14264_v31  ;;  %v6240_v1 = vmul.f32 1.442695, %v8917_v7  ;;  %v8918_v38 = vmul.f32 -1.702, %v14276_v17  ;;  %v9004_v51 = vor.u32 %v9722_v20, %v9003_v12 }
 0x9b8   : > { %v8973_v11 = vld [vmem:[#allocation19 + $0x70] sm:$0xf0]  ;;  %v9013_v8 = vld [vmem:[#allocation19 + $0xb8] sm:$0xf0]  ;;  %v6335_v46 = vand.u32 2147483648, %v14273_v47  ;;  %vm6329_vm15 = vweird.f32 %v14273_v47 }
 0x9b9   : > { %v6226_v54 = vmul.f32 1.442695, %v8910_v43  ;;  %v8976_v53 = vor.u32 %v9710_v61, %v8973_v11  ;;  %v9016_v57 = vor.u32 %v9719_v41, %v9013_v8  ;;  %v9702_v62 = vld [vmem:[#allocation19 + $0x14] sm:$0xf]  ;;  %v9403_v29 = vld [vmem:[#allocation19 + $0x3c0] sm:$0xf] }
 0x9ba   : > { %v6336_v45 = vor.u32 1.1754944e-38, %v6335_v46  ;;  %v9825_v61 = vld [vmem:[#allocation19 + $0x3e4] sm:$0xf0]  ;;  %v9373_v46 = vld [vmem:[#allocation19 + $0x3a0] sm:$0xf0] }
 0x9bb   : > { %10295 = vpow2.f32 %v6226_v54 }
 0x9bc   : > { %10297 = vpow2.f32 %v6240_v1  ;;  %v8941_v1 = vld [vmem:[#allocation19 + $0x30] sm:$0xf0] }
 0x9bd   : > { %7361 = vmatpush.bf16.xpose.msra.mxu0 %v9068_v63  ;;  %7375 = vmatpush.bf16.xpose.msra.mxu1 %v9072_v27  ;;  %10299 = vrcp.f32 %v14273_v47  ;;  %v6242_v63 = vmul.f32 1.442695, %v8918_v38  ;;  %v9711_v38 = vld [vmem:[#allocation19 + $0x5c] sm:$0xf]  ;;  %v8944_v5 = vor.u32 %v9702_v62, %v8941_v1  ;;  %v9413_v62 = vld [vmem:[#allocation19 + $0x3e8] sm:$0xf0] }
 0x9be   : > { %7389 = vmatpush.bf16.xpose.msrb.mxu2 %v9076_v24  ;;  %7403 = vmatpush.bf16.xpose.msrb.mxu3 %v9080_v40  ;;  %v6333_v24 = vand.u32 2147483647, %v14273_v47 }
 0x9c0   : > { %vm14300_vm0 = vcmp.eq.f32.partialorder %v6333_v24, 8.507059e+37 }
 0x9c1   : > { %v10296_v18 = vpop.eup %10295 }
 0x9c2   : > { %v10298_v28 = vpop.eup %10297  ;;  %v14279_v44 = vadd.f32 1.0, %v10296_v18 }
 0x9c3   : > { %v14281_v27 = vpop.eup %10299  ;;  %v14283_v9 = vadd.f32 1.0, %v10298_v28 }
 0x9c4   : > { %v6325_v26 = vmul.f32 %v14281_v27, %v14273_v47  ;;  %10301 = vrcp.f32 %v14279_v44  ;;  %vm6330_vm14 = vweird.f32 %v14281_v27  ;;  %v9405_v47 = vld [vmem:[#allocation19 + $0x3e0] sm:$0xf0]  ;;  %vm6344_vm7 = vweird.f32 %v14279_v44 }
 0x9c5   : > { %7362 = vmatpush.bf16.xpose.msra.mxu0 %v9036_v19  ;;  %7376 = vmatpush.bf16.xpose.msra.mxu1 %v9040_v16  ;;  %10303 = vrcp.f32 %v14283_v9  ;;  %v8939_v19 = vld [vmem:[#allocation19 + $0x10] sm:$0xf]  ;;  %vm14308_vm1 = vmor %vm6329_vm15, %vm6330_vm14  ;;  %v6455_v33 = vand.u32 2147483648, %v14283_v9  ;;  %vm6449_vm3 = vweird.f32 %v14283_v9 }
 0x9c6   : > { %7390 = vmatpush.bf16.xpose.msrb.mxu2 %v9044_v35  ;;  %v6326_v50 = vsub.f32 1.0, %v6325_v26  ;;  %10305 = vpow2.f32 %v6242_v63  ;;  %7404 = vmatpush.bf16.xpose.msrb.mxu3 %v9048_v52  ;;  %v9824_v35 = vld [vmem:[#allocation19 + $0x3dc] sm:$0xf0]  ;;  %v8940_v32 = vor.u32 %v9706_v48, %v8939_v19  ;;  %v9408_v63 = vor.u32 %v9820_v10, %v9405_v47  ;;  %v8947_v52 = vld [vmem:[#allocation19 + $0x18] sm:$0xf] }
 0x9c7   : > { %v9404_v28 = vor.u32 %v9824_v35, %v9403_v29  ;;  %v6456_v11 = vor.u32 1.1754944e-38, %v6455_v33  ;;  %v6348_v19 = vand.u32 2147483647, %v14279_v44  ;;  %v9821_v48 = vld [vmem:[#allocation19 + $0x3cc] sm:$0xf]  ;;  %v9376_v29 = vor.u32 %v9812_v14, %v9373_v46 }
 0x9c8   : > { %v6327_v22 = vmul.f32 %v14281_v27, %v6326_v50  ;;  %v9411_v50 = vld [vmem:[#allocation19 + $0x3c8] sm:$0xf]  ;;  %v9805_v14 = vld [vmem:[#allocation19 + $0x34c] sm:$0xf] }
 0x9c9   : > { %v9412_v24 = vor.u32 %v9825_v61, %v9411_v50  ;;  %v9817_v10 = vld [vmem:[#allocation19 + $0x3a4] sm:$0xf0]  ;;  %vm6349_vm10 = vcmp.eq.f32.partialorder %v6348_v19, 8.507059e+37 }
 0x9ca   : > { %v14291_v34 = vpop.eup %10301  ;;  %v6328_v0 = vadd.f32 %v14281_v27, %v6327_v22  ;;  %v9347_v61 = vld [vmem:[#allocation19 + $0x348] sm:$0xf] }
 0x9cb   : > { %v10304_v43 = vpop.eup %10303  ;;  %v6340_v7 = vmul.f32 %v14291_v34, %v14279_v44  ;;  %vm6345_vm6 = vweird.f32 %v14291_v34  ;;  %v9801_v19 = vld [vmem:[#allocation19 + $0x324] sm:$0xf0] }
 0x9cc   : > { %v10306_v54 = vpop.eup %10305  ;;  %v6445_v16 = vmul.f32 %v10304_v43, %v14283_v9  ;;  %v6332_v6 = vsel %vm14308_vm1, %v14281_v27, %v6328_v0  ;;  %vm6450_vm2 = vweird.f32 %v10304_v43  ;;  %v9707_v27 = vld [vmem:[#allocation19 + $0x34] sm:$0xf0]  ;;  %vm14335_vm8 = vmor %vm6344_vm7, %vm6345_vm6 }
 0x9cd   : > { %7363 = vmatpush.bf16.xpose.msra.mxu0 %v9004_v51  ;;  %7377 = vmatpush.bf16.xpose.msra.mxu1 %v9008_v25  ;;  %v14304_v40 = vadd.f32 1.0, %v10306_v54  ;;  %v6341_v12 = vsub.f32 1.0, %v6340_v7  ;;  %v8981_v51 = vld [vmem:[#allocation19 + $0x78] sm:$0xf0]  ;;  %v6453_v25 = vand.u32 2147483647, %v14283_v9  ;;  %v6337_v26 = vsel %vm14300_vm0, %v6336_v45, %v6332_v6  ;;  %vm6451_vm4 = vmor %vm6449_vm3, %vm6450_vm2 }
 0x9ce   : > { %7391 = vmatpush.bf16.xpose.msrb.mxu2 %v9012_v39  ;;  %v6446_v20 = vsub.f32 1.0, %v6445_v16  ;;  %7405 = vmatpush.bf16.xpose.msrb.mxu3 %v9016_v57  ;;  %v8984_v15 = vor.u32 %v9711_v38, %v8981_v51  ;;  %v8948_v9 = vor.u32 %v9707_v27, %v8947_v52  ;;  %v6508_v22 = vmul.f32 %v6337_v26, %v14253_v30  ;;  %v9703_v7 = vld [vmem:[#allocation19 + $0x1c] sm:$0xf]  ;;  %v9381_v27 = vld [vmem:[#allocation19 + $0x3a8] sm:$0xf0] }
 0x9cf   : > { %10307 = vrcp.f32 %v14304_v40  ;;  %v6342_v39 = vmul.f32 %v14291_v34, %v6341_v12  ;;  %vm6454_vm5 = vcmp.eq.f32.partialorder %v6453_v25, 8.507059e+37  ;;  %v8949_v30 = vld [vmem:[#allocation19 + $0x38] sm:$0xf0]  ;;  %v6350_v54 = vand.u32 2147483648, %v14279_v44  ;;  %v9808_v25 = vld [vmem:[#allocation19 + $0x35c] sm:$0xf0] }
 0x9d0   : > { %v6447_v18 = vmul.f32 %v10304_v43, %v6446_v20  ;;  %v6470_v1 = vand.u32 2147483648, %v14304_v40  ;;  %v8952_v35 = vor.u32 %v9703_v7, %v8949_v30  ;;  %v6468_v12 = vand.u32 2147483647, %v14304_v40  ;;  %v9379_v20 = vld [vmem:[#allocation19 + $0x388] sm:$0xf] }
 0x9d1   : > { %v6343_v57 = vadd.f32 %v14291_v34, %v6342_v39  ;;  %v6351_v47 = vor.u32 1.1754944e-38, %v6350_v54  ;;  %v9416_v6 = vor.u32 %v9821_v48, %v9413_v62  ;;  %vm6464_vm11 = vweird.f32 %v14304_v40  ;;  %v9315_v30 = vld [vmem:[#allocation19 + $0x308] sm:$0xf] }
 0x9d2   : > { %v6448_v21 = vadd.f32 %v10304_v43, %v6447_v18  ;;  %v6471_v38 = vor.u32 1.1754944e-38, %v6470_v1  ;;  %v9380_v51 = vor.u32 %v9817_v10, %v9379_v20  ;;  %vm6469_vm13 = vcmp.eq.f32.partialorder %v6468_v12, 8.507059e+37  ;;  %v9339_v18 = vld [vmem:[#allocation19 + $0x340] sm:$0xf]  ;;  %v9788_v20 = vld [vmem:[#allocation19 + $0x2c4] sm:$0xf] }
 0x9d3   : > { %v6347_v44 = vsel %vm14335_vm8, %v14291_v34, %v6343_v57  ;;  %v9340_v26 = vor.u32 %v9808_v25, %v9339_v18  ;;  %v9349_v57 = vld [vmem:[#allocation19 + $0x368] sm:$0xf0]  ;;  %v9277_v10 = vld [vmem:[#allocation19 + $0x2e0] sm:$0xf0]  ;;  %v9283_v18 = vld [vmem:[#allocation19 + $0x2c8] sm:$0xf] }
 0x9d4   : > { %v6452_v41 = vsel %vm6451_vm4, %v10304_v43, %v6448_v21  ;;  %v6352_v33 = vsel %vm6349_vm10, %v6351_v47, %v6347_v44  ;;  %v9352_v54 = vor.u32 %v9805_v14, %v9349_v57  ;;  %v9792_v44 = vld [vmem:[#allocation19 + $0x2dc] sm:$0xf0]  ;;  %v9793_v25 = vld [vmem:[#allocation19 + $0x2e4] sm:$0xf0] }
 0x9d5   : > { %7364 = vmatpush.bf16.xpose.msra.mxu0 %v8972_v2  ;;  %7378 = vmatpush.bf16.xpose.msra.mxu1 %v8976_v53  ;;  %v10308_v8 = vpop.eup %10307  ;;  %v6457_v2 = vsel %vm6454_vm5, %v6456_v11, %v6452_v41  ;;  %v9371_v53 = vld [vmem:[#allocation19 + $0x380] sm:$0xf]  ;;  %v9809_v11 = vld [vmem:[#allocation19 + $0x364] sm:$0xf0] }
 0x9d6   : > { %7392 = vmatpush.bf16.xpose.msrb.mxu2 %v8980_v55  ;;  %v6516_v0 = vmul.f32 %v6457_v2, %v14268_v3  ;;  %v6460_v43 = vmul.f32 %v10308_v8, %v14304_v40  ;;  %7406 = vmatpush.bf16.xpose.msrb.mxu3 %v8984_v15  ;;  %v9372_v36 = vor.u32 %v9816_v56, %v9371_v53  ;;  %vm6465_vm9 = vweird.f32 %v10308_v8  ;;  %v9813_v40 = vld [vmem:[#allocation19 + $0x38c] sm:$0xf]  ;;  %v14350_v15 = vld [vmem:[#allocation17] sm:$0xff]  ;;  %v9800_v2 = vld [vmem:[#allocation19 + $0x31c] sm:$0xf0] }
 0x9d7   : > { %vm6466_vm12 = vmor %vm6464_vm11, %vm6465_vm9  ;;  %v5310_v50 = vperm.slane %v14350_v15, 6  ;;  %v9384_v41 = vor.u32 %v9813_v40, %v9381_v27  ;;  %v9309_v53 = vld [vmem:[#allocation19 + $0x320] sm:$0xf0] }
 0x9d8   : > { %v14331_v16 = vpack.c.bf16 %v6516_v0, %v6508_v22  ;;  %v6461_v55 = vsub.f32 1.0, %v6460_v43  ;;  %v9307_v22 = vld [vmem:[#allocation19 + $0x300] sm:$0xf]  ;;  %v5311_v0 = vperm.slane %v14350_v15, 7 }
 0x9d9   : > { %v9308_v43 = vor.u32 %v9800_v2, %v9307_v22  ;;  %v9784_v15 = vld [vmem:[#allocation19 + $0x29c] sm:$0xf0]  ;;  %v9251_v2 = vld [vmem:[#allocation19 + $0x288] sm:$0xf] }
 0x9da   : > { %v6462_v58 = vmul.f32 %v10308_v8, %v6461_v55 }
 0x9dc   : > { %v6463_v45 = vadd.f32 %v10308_v8, %v6462_v58 }
 0x9dd   : > { %7365 = vmatpush.bf16.xpose.msra.mxu0 %v8940_v32  ;;  %7379 = vmatpush.bf16.xpose.msra.mxu1 %v8944_v5  ;;  %v9804_v5 = vld [vmem:[#allocation19 + $0x344] sm:$0xf] }
 0x9de   : > { %7393 = vmatpush.bf16.xpose.msrb.mxu2 %v8948_v9  ;;  %v6467_v34 = vsel %vm6466_vm12, %v10308_v8, %v6463_v45  ;;  %7407 = vmatpush.bf16.xpose.msrb.mxu3 %v8952_v35  ;;  %v9275_v35 = vld [vmem:[#allocation19 + $0x2c0] sm:$0xf]  ;;  %v9317_v45 = vld [vmem:[#allocation19 + $0x328] sm:$0xf0] }
 0x9df   : > { %v6472_v32 = vsel %vm6469_vm13, %v6471_v38, %v6467_v34  ;;  %v9276_v38 = vor.u32 %v9792_v44, %v9275_v35  ;;  %v9280_v34 = vor.u32 %v9788_v20, %v9277_v10  ;;  %v9777_v20 = vld [vmem:[#allocation19 + $0x264] sm:$0xf0] }
 0x9e0   : > { %v6517_v52 = vmul.f32 %v6472_v32, %v14276_v17  ;;  %v9348_v17 = vor.u32 %v9809_v11, %v9347_v61  ;;  %v9780_v61 = vld [vmem:[#allocation19 + $0x284] sm:$0xf] }
 0x9e1   : > { %v6151_v9 = vpop.f32.mrf.mxu1  ;;  %v9245_v11 = vld [vmem:[#allocation19 + $0x2a0] sm:$0xf0] }
 0x9e2   : > { %v9248_v22 = vor.u32 %v9780_v61, %v9245_v11  ;;  %v9421_v61 = vld [vmem:[#allocation19 + $0x3f0] sm:$0xf0] }
 0x9e4   : > { %7366 = vmatmul.bf16.vlgmr.msra.gmra.mxu0 %v14331_v16 }
 0x9e5   : > { %7414 = vmatpush.bf16.xpose.msrb.mxu0 %v9404_v28  ;;  %7428 = vmatpush.bf16.xpose.msrb.mxu1 %v9408_v63  ;;  %v9341_v28 = vld [vmem:[#allocation19 + $0x360] sm:$0xf0]  ;;  %v6509_v63 = vmul.f32 %v6352_v33, %v14266_v59  ;;  %v6137_v59 = vpop.f32.mrf.mxu0 }
 0x9e6   : > { %7442 = vmatpush.bf16.xpose.msra.mxu2 %v9412_v24  ;;  %7456 = vmatpush.bf16.xpose.msra.mxu3 %v9416_v6  ;;  %v9344_v21 = vor.u32 %v9804_v5, %v9341_v28  ;;  %v6138_v8 = vadd.f32 %v6137_v59, %v5310_v50  ;;  %v9796_v24 = vld [vmem:[#allocation19 + $0x304] sm:$0xf]  ;;  %v9797_v6 = vld [vmem:[#allocation19 + $0x30c] sm:$0xf] }
 0x9e7   : > { %v14348_v39 = vpack.c.bf16 %v6517_v52, %v6509_v63  ;;  %v9312_v7 = vor.u32 %v9796_v24, %v9309_v53  ;;  %v9320_v5 = vor.u32 %v9797_v6, %v9317_v45  ;;  %v9789_v59 = vld [vmem:[#allocation19 + $0x2cc] sm:$0xf]  ;;  %v9785_v24 = vld [vmem:[#allocation19 + $0x2a4] sm:$0xf0] }
 0x9e8   : > { %v14354_v56 = vadd.f32 %v6151_v9, %v6138_v8  ;;  %v9285_v9 = vld [vmem:[#allocation19 + $0x2e8] sm:$0xf0] }
 0x9e9   : > { %7380 = vmatmul.bf16.vlgmr.msra.gmra.mxu1 %v14348_v39  ;;  %v6153_v12 = vpop.f32.mrf.mxu1  ;;  %v9288_v14 = vor.u32 %v9789_v59, %v9285_v9  ;;  %v9773_v9 = vld [vmem:[#allocation19 + $0x24c] sm:$0xf] }
 0x9ea   : > { %v8911_v46 = vmul.f32 -1.702, %v14354_v56  ;;  %v6165_v48 = vpop.f32.mrf.mxu2  ;;  %v6179_v3 = vpop.f32.mrf.mxu3 }
 0x9eb   : > { %v6166_v62 = vadd.f32 %v6165_v48, %v5311_v0  ;;  %v9772_v48 = vld [vmem:[#allocation19 + $0x244] sm:$0xf] }
 0x9ec   : > { %v6228_v55 = vmul.f32 1.442695, %v8911_v46 }
 0x9ed   : > { %7415 = vmatpush.bf16.xpose.msrb.mxu0 %v9372_v36  ;;  %7429 = vmatpush.bf16.xpose.msrb.mxu1 %v9376_v29  ;;  %v6139_v1 = vpop.f32.mrf.mxu0  ;;  %v9316_v36 = vor.u32 %v9801_v19, %v9315_v30  ;;  %v14358_v58 = vadd.f32 %v6179_v3, %v6166_v62  ;;  %v9252_v30 = vor.u32 %v9785_v24, %v9251_v2  ;;  %v9213_v62 = vld [vmem:[#allocation19 + $0x260] sm:$0xf0] }
 0x9ee   : > { %7443 = vmatpush.bf16.xpose.msra.mxu2 %v9380_v51  ;;  %7457 = vmatpush.bf16.xpose.msra.mxu3 %v9384_v41  ;;  %10309 = vpow2.f32 %v6228_v55  ;;  %v6140_v29 = vadd.f32 %v6139_v1, %v5310_v50  ;;  %v9776_v55 = vld [vmem:[#allocation19 + $0x25c] sm:$0xf0]  ;;  %v9781_v1 = vld [vmem:[#allocation19 + $0x28c] sm:$0xf]  ;;  %v9216_v44 = vor.u32 %v9772_v48, %v9213_v62 }
 0x9ef   : > { %v8912_v33 = vmul.f32 -1.702, %v14358_v58 }
 0x9f0   : > { %v14360_v47 = vadd.f32 %v6153_v12, %v6140_v29  ;;  %v9219_v12 = vld [vmem:[#allocation19 + $0x248] sm:$0xf] }
 0x9f1   : > { %v6230_v32 = vmul.f32 1.442695, %v8912_v33  ;;  %v9179_v33 = vld [vmem:[#allocation19 + $0x200] sm:$0xf] }
 0x9f2   : > { %v8919_v51 = vmul.f32 -1.702, %v14360_v47  ;;  %v6167_v52 = vpop.f32.mrf.mxu2  ;;  %v6181_v50 = vpop.f32.mrf.mxu3 }
 0x9f3   : > { %10311 = vpow2.f32 %v6230_v32  ;;  %v6168_v27 = vadd.f32 %v6167_v52, %v5311_v0  ;;  %v9764_v32 = vld [vmem:[#allocation19 + $0x204] sm:$0xf] }
 0x9f4   : > { %v10310_v28 = vpop.eup %10309  ;;  %v6244_v63 = vmul.f32 1.442695, %v8919_v51  ;;  %v9181_v52 = vld [vmem:[#allocation19 + $0x220] sm:$0xf0] }
 0x9f5   : > { %7416 = vmatpush.bf16.xpose.msrb.mxu0 %v9340_v26  ;;  %7430 = vmatpush.bf16.xpose.msrb.mxu1 %v9344_v21  ;;  %v14364_v40 = vadd.f32 1.0, %v10310_v28  ;;  %v9284_v26 = vor.u32 %v9793_v25, %v9283_v18  ;;  %v9243_v21 = vld [vmem:[#allocation19 + $0x280] sm:$0xf]  ;;  %v14367_v41 = vadd.f32 %v6181_v50, %v6168_v27  ;;  %v9220_v18 = vor.u32 %v9777_v20, %v9219_v12  ;;  %v9419_v27 = vld [vmem:[#allocation19 + $0x3d0] sm:$0xf] }
 0x9f6   : > { %7444 = vmatpush.bf16.xpose.msra.mxu2 %v9348_v17  ;;  %7458 = vmatpush.bf16.xpose.msra.mxu3 %v9352_v54  ;;  %10313 = vpow2.f32 %v6244_v63  ;;  %v9244_v17 = vor.u32 %v9784_v15, %v9243_v21  ;;  %v9211_v54 = vld [vmem:[#allocation19 + $0x240] sm:$0xf]  ;;  %v9822_v50 = vld [vmem:[#allocation19 + $0x3d4] sm:$0xf]  ;;  %v9184_v24 = vor.u32 %v9764_v32, %v9181_v52  ;;  %v9387_v12 = vld [vmem:[#allocation19 + $0x390] sm:$0xf] }
 0x9f7   : > { %10315 = vrcp.f32 %v14364_v40  ;;  %v8920_v8 = vmul.f32 -1.702, %v14367_v41  ;;  %v9212_v29 = vor.u32 %v9776_v55, %v9211_v54  ;;  %v6363_v45 = vand.u32 2147483647, %v14364_v40  ;;  %v9768_v25 = vld [vmem:[#allocation19 + $0x21c] sm:$0xf0] }
 0x9f8   : > { %v6365_v21 = vand.u32 2147483648, %v14364_v40  ;;  %vm6359_vm15 = vweird.f32 %v14364_v40  ;;  %v9180_v2 = vor.u32 %v9768_v25, %v9179_v33  ;;  %v9818_v20 = vld [vmem:[#allocation19 + $0x3ac] sm:$0xf0] }
 0x9f9   : > { %v10312_v53 = vpop.eup %10311  ;;  %vm6364_vm2 = vcmp.eq.f32.partialorder %v6363_v45, 8.507059e+37 }
 0x9fa   : > { %v14370_v0 = vadd.f32 1.0, %v10312_v53 }
 0x9fc   : > { %v10314_v57 = vpop.eup %10313  ;;  %10317 = vrcp.f32 %v14370_v0  ;;  %v6378_v25 = vand.u32 2147483647, %v14370_v0  ;;  %v6380_v32 = vand.u32 2147483648, %v14370_v0  ;;  %vm6374_vm7 = vweird.f32 %v14370_v0 }
 0x9fd   : > { %7417 = vmatpush.bf16.xpose.msrb.mxu0 %v9308_v43  ;;  %7431 = vmatpush.bf16.xpose.msrb.mxu1 %v9312_v7  ;;  %v6246_v43 = vmul.f32 1.442695, %v8920_v8  ;;  %v14372_v46 = vpop.eup %10315  ;;  %v14374_v7 = vadd.f32 1.0, %v10314_v57  ;;  %v9187_v57 = vld [vmem:[#allocation19 + $0x208] sm:$0xf] }
 0x9fe   : > { %7445 = vmatpush.bf16.xpose.msra.mxu2 %v9316_v36  ;;  %7459 = vmatpush.bf16.xpose.msra.mxu3 %v9320_v5  ;;  %v6355_v19 = vmul.f32 %v14372_v46, %v14364_v40  ;;  %v9253_v36 = vld [vmem:[#allocation19 + $0x2a8] sm:$0xf0]  ;;  %vm6360_vm14 = vweird.f32 %v14372_v46  ;;  %vm6379_vm10 = vcmp.eq.f32.partialorder %v6378_v25, 8.507059e+37 }
 0x9ff   : > { %10319 = vrcp.f32 %v14374_v7  ;;  %v9256_v10 = vor.u32 %v9781_v1, %v9253_v36  ;;  %vm14396_vm0 = vmor %vm6359_vm15, %vm6360_vm14  ;;  %vm6479_vm3 = vweird.f32 %v14374_v7  ;;  %v9427_v36 = vld [vmem:[#allocation19 + $0x3d8] sm:$0xf] }
 0xa00   : > { %v6356_v3 = vsub.f32 1.0, %v6355_v19  ;;  %10321 = vpow2.f32 %v6246_v43  ;;  %v9769_v43 = vld [vmem:[#allocation19 + $0x224] sm:$0xf0]  ;;  %v9424_v19 = vor.u32 %v9822_v50, %v9421_v61  ;;  %v6381_v61 = vor.u32 1.1754944e-38, %v6380_v32 }
 0xa01   : > { %v9188_v1 = vor.u32 %v9769_v43, %v9187_v57 }
 0xa02   : > { %v6357_v35 = vmul.f32 %v14372_v46, %v6356_v3  ;;  %v14381_v6 = vpop.eup %10317 }
 0xa03   : > { %v6370_v51 = vmul.f32 %v14381_v6, %v14370_v0  ;;  %vm6375_vm6 = vweird.f32 %v14381_v6 }
 0xa04   : > { %v6358_v28 = vadd.f32 %v14372_v46, %v6357_v35  ;;  %vm14419_vm8 = vmor %vm6374_vm7, %vm6375_vm6 }
 0xa05   : > { %7418 = vmatpush.bf16.xpose.msrb.mxu0 %v9276_v38  ;;  %7432 = vmatpush.bf16.xpose.msrb.mxu1 %v9280_v34  ;;  %v10320_v38 = vpop.eup %10319  ;;  %v6483_v34 = vand.u32 2147483647, %v14374_v7  ;;  %v6371_v11 = vsub.f32 1.0, %v6370_v51  ;;  %v9389_v51 = vld [vmem:[#allocation19 + $0x3b0] sm:$0xf0] }
 0xa06   : > { %7446 = vmatpush.bf16.xpose.msra.mxu2 %v9284_v26  ;;  %7460 = vmatpush.bf16.xpose.msra.mxu3 %v9288_v14  ;;  %v10322_v5 = vpop.eup %10321  ;;  %v6475_v63 = vmul.f32 %v10320_v38, %v14374_v7  ;;  %v9826_v26 = vld [vmem:[#allocation19 + $0x3ec] sm:$0xf0]  ;;  %v6362_v40 = vsel %vm14396_vm0, %v14372_v46, %v6358_v28  ;;  %vm6480_vm1 = vweird.f32 %v10320_v38 }
 0xa07   : > { %v14391_v15 = vadd.f32 1.0, %v10322_v5  ;;  %v9420_v14 = vor.u32 %v9826_v26, %v9419_v27  ;;  %v6372_v55 = vmul.f32 %v14381_v6, %v6371_v11  ;;  %vm6481_vm4 = vmor %vm6479_vm3, %vm6480_vm1  ;;  %vm6484_vm5 = vcmp.eq.f32.partialorder %v6483_v34, 8.507059e+37  ;;  %v9765_v34 = vld [vmem:[#allocation19 + $0x20c] sm:$0xf] }
 0xa08   : > { %v6476_v59 = vsub.f32 1.0, %v6475_v63  ;;  %v9388_v63 = vor.u32 %v9818_v20, %v9387_v12  ;;  %v9331_v12 = vld [vmem:[#allocation19 + $0x318] sm:$0xf] }
 0xa09   : > { %10323 = vrcp.f32 %v14391_v15  ;;  %v6373_v45 = vadd.f32 %v14381_v6, %v6372_v55  ;;  %v6500_v52 = vand.u32 2147483648, %v14391_v15  ;;  %v6498_v0 = vand.u32 2147483647, %v14391_v15  ;;  %v9363_v55 = vld [vmem:[#allocation19 + $0x358] sm:$0xf] }
 0xa0a   : > { %v6477_v53 = vmul.f32 %v10320_v38, %v6476_v59  ;;  %vm6494_vm11 = vweird.f32 %v14391_v15  ;;  %v9823_v59 = vld [vmem:[#allocation19 + $0x3dc] sm:$0xf]  ;;  %v9803_v20 = vld [vmem:[#allocation19 + $0x334] sm:$0xf0] }
 0xa0b   : > { %vm6499_vm13 = vcmp.eq.f32.partialorder %v6498_v0, 8.507059e+37 }
 0xa0c   : > { %v6478_v48 = vadd.f32 %v10320_v38, %v6477_v53 }
 0xa0d   : > { %7419 = vmatpush.bf16.xpose.msrb.mxu0 %v9244_v17  ;;  %7433 = vmatpush.bf16.xpose.msrb.mxu1 %v9248_v22  ;;  %v9221_v17 = vld [vmem:[#allocation19 + $0x268] sm:$0xf0]  ;;  %v6485_v22 = vand.u32 2147483648, %v14374_v7  ;;  %v9814_v7 = vld [vmem:[#allocation19 + $0x394] sm:$0xf] }
 0xa0e   : > { %7447 = vmatpush.bf16.xpose.msra.mxu2 %v9252_v30  ;;  %7461 = vmatpush.bf16.xpose.msra.mxu3 %v9256_v10  ;;  %v6366_v30 = vor.u32 1.1754944e-38, %v6365_v21  ;;  %v9224_v54 = vor.u32 %v9773_v9, %v9221_v17  ;;  %v6482_v46 = vsel %vm6481_vm4, %v10320_v38, %v6478_v48  ;;  %v9392_v27 = vor.u32 %v9814_v7, %v9389_v51  ;;  %v9429_v9 = vld [vmem:[#allocation19 + $0x3f8] sm:$0xf0]  ;;  %v9819_v17 = vld [vmem:[#allocation19 + $0x3b4] sm:$0xf0] }
 0xa0f   : > { %v6486_v3 = vor.u32 1.1754944e-38, %v6485_v22  ;;  %v10324_v35 = vpop.eup %10323  ;;  %v6377_v21 = vsel %vm14419_vm8, %v14381_v6, %v6373_v45  ;;  %v9395_v6 = vld [vmem:[#allocation19 + $0x398] sm:$0xf]  ;;  %v6501_v22 = vor.u32 1.1754944e-38, %v6500_v52  ;;  %v9807_v7 = vld [vmem:[#allocation19 + $0x35c] sm:$0xf] }
 0xa10   : > { %v6367_v62 = vsel %vm6364_vm2, %v6366_v30, %v6362_v40  ;;  %v6490_v38 = vmul.f32 %v10324_v35, %v14391_v15  ;;  %vm6495_vm9 = vweird.f32 %v10324_v35  ;;  %v6382_v8 = vsel %vm6379_vm10, %v6381_v61, %v6377_v21  ;;  %v9357_v40 = vld [vmem:[#allocation19 + $0x370] sm:$0xf0]  ;;  %v9811_v48 = vld [vmem:[#allocation19 + $0x374] sm:$0xf0]  ;;  %v9794_v45 = vld [vmem:[#allocation19 + $0x2ec] sm:$0xf0] }
 0xa11   : > { %v6510_v10 = vmul.f32 %v6367_v62, %v14354_v56  ;;  %vm6496_vm12 = vmor %vm6494_vm11, %vm6495_vm9  ;;  %v6511_v15 = vmul.f32 %v6382_v8, %v14358_v58  ;;  %v9432_v30 = vor.u32 %v9823_v59, %v9429_v9  ;;  %v9815_v62 = vld [vmem:[#allocation19 + $0x39c] sm:$0xf]  ;;  %v9798_v58 = vld [vmem:[#allocation19 + $0x314] sm:$0xf] }
 0xa12   : > { %v6491_v56 = vsub.f32 1.0, %v6490_v38  ;;  %v9790_v38 = vld [vmem:[#allocation19 + $0x2d4] sm:$0xf]  ;;  %v9333_v52 = vld [vmem:[#allocation19 + $0x338] sm:$0xf0] }
 0xa13   : > { %v9293_v51 = vld [vmem:[#allocation19 + $0x2f0] sm:$0xf0]  ;;  %v9787_v59 = vld [vmem:[#allocation19 + $0x2b4] sm:$0xf0]  ;;  %v9227_v9 = vld [vmem:[#allocation19 + $0x250] sm:$0xf] }
 0xa14   : > { %v6492_v50 = vmul.f32 %v10324_v35, %v6491_v56  ;;  %v9296_v32 = vor.u32 %v9790_v38, %v9293_v51  ;;  %v9799_v56 = vld [vmem:[#allocation19 + $0x31c] sm:$0xf]  ;;  %v9774_v8 = vld [vmem:[#allocation19 + $0x254] sm:$0xf] }
 0xa15   : > { %7420 = vmatpush.bf16.xpose.msrb.mxu0 %v9212_v29  ;;  %7434 = vmatpush.bf16.xpose.msrb.mxu1 %v9216_v44  ;;  %v9827_v29 = vld [vmem:[#allocation19 + $0x3f4] sm:$0xf0]  ;;  %v6487_v44 = vsel %vm6484_vm5, %v6486_v3, %v6482_v46  ;;  %v9323_v3 = vld [vmem:[#allocation19 + $0x310] sm:$0xf]  ;;  %v9397_v46 = vld [vmem:[#allocation19 + $0x3b8] sm:$0xf0]  ;;  %v9336_v0 = vor.u32 %v9799_v56, %v9333_v52 }
 0xa16   : > { %7448 = vmatpush.bf16.xpose.msra.mxu2 %v9220_v18  ;;  %7462 = vmatpush.bf16.xpose.msra.mxu3 %v9224_v54  ;;  %v6518_v33 = vmul.f32 %v6487_v44, %v14360_v47  ;;  %v9189_v18 = vld [vmem:[#allocation19 + $0x228] sm:$0xf0]  ;;  %v9428_v5 = vor.u32 %v9827_v29, %v9427_v36  ;;  %v6493_v11 = vadd.f32 %v10324_v35, %v6492_v50  ;;  %v9325_v36 = vld [vmem:[#allocation19 + $0x330] sm:$0xf0]  ;;  %v9786_v47 = vld [vmem:[#allocation19 + $0x2ac] sm:$0xf0] }
 0xa17   : > { %v9192_v26 = vor.u32 %v9765_v34, %v9189_v18  ;;  %v9328_v44 = vor.u32 %v9798_v58, %v9325_v36  ;;  %v9332_v34 = vor.u32 %v9803_v20, %v9331_v12  ;;  %v9775_v58 = vld [vmem:[#allocation19 + $0x25c] sm:$0xf] }
 0xa18   : > { %v14415_v28 = vpack.c.bf16 %v6518_v33, %v6510_v10  ;;  %v9291_v10 = vld [vmem:[#allocation19 + $0x2d0] sm:$0xf]  ;;  %v9365_v33 = vld [vmem:[#allocation19 + $0x378] sm:$0xf0] }
 0xa19   : > { %v9292_v18 = vor.u32 %v9794_v45, %v9291_v10  ;;  %v9368_v25 = vor.u32 %v9807_v7, %v9365_v33  ;;  %v9237_v36 = vld [vmem:[#allocation19 + $0x278] sm:$0xf0] }
 0xa1a   : > { %7394 = vmatmul.bf16.vlgmr.msrb.gmra.mxu2 %v14415_v28 }
 0xa1d   : > { %7421 = vmatpush.bf16.xpose.msrb.mxu0 %v9180_v2  ;;  %7435 = vmatpush.bf16.xpose.msrb.mxu1 %v9184_v24  ;;  %v9810_v2 = vld [vmem:[#allocation19 + $0x36c] sm:$0xf0]  ;;  %v6497_v24 = vsel %vm6496_vm12, %v10324_v35, %v6493_v11  ;;  %v9400_v35 = vor.u32 %v9815_v62, %v9397_v46  ;;  %v9267_v11 = vld [vmem:[#allocation19 + $0x298] sm:$0xf] }
 0xa1e   : > { %7449 = vmatpush.bf16.xpose.msra.mxu2 %v9188_v1  ;;  %7463 = vmatpush.bf16.xpose.msra.mxu3 %v9192_v26  ;;  %v6502_v53 = vsel %vm6499_vm13, %v6501_v22, %v6497_v24  ;;  %v9802_v1 = vld [vmem:[#allocation19 + $0x32c] sm:$0xf0]  ;;  %v9261_v26 = vld [vmem:[#allocation19 + $0x2b0] sm:$0xf0]  ;;  %v9771_v46 = vld [vmem:[#allocation19 + $0x234] sm:$0xf0] }
 0xa1f   : > { %v6519_v57 = vmul.f32 %v6502_v53, %v14367_v41  ;;  %v9364_v41 = vor.u32 %v9811_v48, %v9363_v55  ;;  %v9324_v29 = vor.u32 %v9802_v1, %v9323_v3  ;;  %v9229_v22 = vld [vmem:[#allocation19 + $0x270] sm:$0xf0]  ;;  %v9779_v53 = vld [vmem:[#allocation19 + $0x274] sm:$0xf0] }
 0xa20   : > { %v9203_v1 = vld [vmem:[#allocation19 + $0x218] sm:$0xf] }
 0xa21   : > { %v14435_v54 = vpack.c.bf16 %v6519_v57, %v6511_v15  ;;  %v9195_v15 = vld [vmem:[#allocation19 + $0x210] sm:$0xf] }
 0xa22   : > { %v9770_v57 = vld [vmem:[#allocation19 + $0x22c] sm:$0xf0] }
 0xa23   : > { %7408 = vmatmul.bf16.vlgmr.msrb.gmra.mxu3 %v14435_v54  ;;  %v9196_v48 = vor.u32 %v9770_v57, %v9195_v15 }
 0xa24   : > { %7422 = vmatmul.bf16.vlgmr.msrb.gmra.mxu0 %v14193_v49  ;;  %7436 = vmatmul.bf16.vlgmr.msrb.gmra.mxu1 %v14200_v37  ;;  %v9355_v49 = vld [vmem:[#allocation19 + $0x350] sm:$0xf]  ;;  %v9806_v37 = vld [vmem:[#allocation19 + $0x354] sm:$0xf] }
 0xa25   : > { %7470 = vmatpush.bf16.xpose.msra.mxu0 %v9420_v14  ;;  %7484 = vmatpush.bf16.xpose.msra.mxu1 %v9424_v19  ;;  %v9396_v14 = vor.u32 %v9819_v17, %v9395_v6  ;;  %v9356_v43 = vor.u32 %v9810_v2, %v9355_v49  ;;  %v9360_v19 = vor.u32 %v9806_v37, %v9357_v40  ;;  %v9778_v6 = vld [vmem:[#allocation19 + $0x26c] sm:$0xf0]  ;;  %v9301_v17 = vld [vmem:[#allocation19 + $0x2f8] sm:$0xf0]  ;;  %v9235_v40 = vld [vmem:[#allocation19 + $0x258] sm:$0xf] }
 0xa26   : > { %7498 = vmatpush.bf16.xpose.msrb.mxu2 %v9428_v5  ;;  %7512 = vmatpush.bf16.xpose.msrb.mxu3 %v9432_v30  ;;  %v9795_v5 = vld [vmem:[#allocation19 + $0x2f4] sm:$0xf0]  ;;  %v9268_v49 = vor.u32 %v9787_v59, %v9267_v11  ;;  %v9228_v2 = vor.u32 %v9778_v6, %v9227_v9  ;;  %v9232_v37 = vor.u32 %v9774_v8, %v9229_v22  ;;  %v9766_v30 = vld [vmem:[#allocation19 + $0x214] sm:$0xf] }
 0xa27   : > { %v9236_v55 = vor.u32 %v9779_v53, %v9235_v40 }
 0xa2a   : > { %7450 = vmatmul.bf16.vlgmr.msra.gmra.mxu2 %v14251_v23  ;;  %v9299_v23 = vld [vmem:[#allocation19 + $0x2d8] sm:$0xf] }
 0xa2b   : > { %v9300_v21 = vor.u32 %v9795_v5, %v9299_v23 }
 0xa2d   : > { %7471 = vmatpush.bf16.xpose.msra.mxu0 %v9388_v63  ;;  %7485 = vmatpush.bf16.xpose.msra.mxu1 %v9392_v27  ;;  %v9259_v63 = vld [vmem:[#allocation19 + $0x290] sm:$0xf]  ;;  %v9782_v27 = vld [vmem:[#allocation19 + $0x294] sm:$0xf] }
 0xa2e   : > { %7499 = vmatpush.bf16.xpose.msrb.mxu2 %v9396_v14  ;;  %7513 = vmatpush.bf16.xpose.msrb.mxu3 %v9400_v35  ;;  %v9260_v50 = vor.u32 %v9786_v47, %v9259_v63  ;;  %v9264_v61 = vor.u32 %v9782_v27, %v9261_v26  ;;  %v9783_v14 = vld [vmem:[#allocation19 + $0x29c] sm:$0xf] }
 0xa2f   : > { %v9767_v35 = vld [vmem:[#allocation19 + $0x21c] sm:$0xf] }
 0xa33   : > { %7464 = vmatmul.bf16.vlgmr.msra.gmra.mxu3 %v14264_v31  ;;  %v9791_v31 = vld [vmem:[#allocation19 + $0x2dc] sm:$0xf] }
 0xa34   : > { %v9304_v24 = vor.u32 %v9791_v31, %v9301_v17 }
 0xa35   : > { %7472 = vmatpush.bf16.xpose.msra.mxu0 %v9356_v43  ;;  %7486 = vmatpush.bf16.xpose.msra.mxu1 %v9360_v19  ;;  %v9269_v43 = vld [vmem:[#allocation19 + $0x2b8] sm:$0xf0]  ;;  %v9197_v19 = vld [vmem:[#allocation19 + $0x230] sm:$0xf0] }
 0xa36   : > { %7500 = vmatpush.bf16.xpose.msrb.mxu2 %v9364_v41  ;;  %7514 = vmatpush.bf16.xpose.msrb.mxu3 %v9368_v25  ;;  %v9272_v62 = vor.u32 %v9783_v14, %v9269_v43  ;;  %v9200_v3 = vor.u32 %v9766_v30, %v9197_v19  ;;  %v9204_v41 = vor.u32 %v9771_v46, %v9203_v1 }
 0xa3d   : > { %7473 = vmatpush.bf16.xpose.msra.mxu0 %v9324_v29  ;;  %7487 = vmatpush.bf16.xpose.msra.mxu1 %v9328_v44  ;;  %v9240_v29 = vor.u32 %v9775_v58, %v9237_v36  ;;  %v9205_v44 = vld [vmem:[#allocation19 + $0x238] sm:$0xf0] }
 0xa3e   : > { %7501 = vmatpush.bf16.xpose.msrb.mxu2 %v9332_v34  ;;  %7515 = vmatpush.bf16.xpose.msrb.mxu3 %v9336_v0  ;;  %v9208_v12 = vor.u32 %v9767_v35, %v9205_v44 }
 0xa45   : > { %7474 = vmatpush.bf16.xpose.msra.mxu0 %v9292_v18  ;;  %7488 = vmatpush.bf16.xpose.msra.mxu1 %v9296_v32 }
 0xa46   : > { %7502 = vmatpush.bf16.xpose.msrb.mxu2 %v9300_v21  ;;  %7516 = vmatpush.bf16.xpose.msrb.mxu3 %v9304_v24 }
 0xa4d   : > { %7475 = vmatpush.bf16.xpose.msra.mxu0 %v9260_v50  ;;  %7489 = vmatpush.bf16.xpose.msra.mxu1 %v9264_v61 }
 0xa4e   : > { %7503 = vmatpush.bf16.xpose.msrb.mxu2 %v9268_v49  ;;  %7517 = vmatpush.bf16.xpose.msrb.mxu3 %v9272_v62 }
 0xa55   : > { %7476 = vmatpush.bf16.xpose.msra.mxu0 %v9228_v2  ;;  %7490 = vmatpush.bf16.xpose.msra.mxu1 %v9232_v37 }
 0xa56   : > { %7504 = vmatpush.bf16.xpose.msrb.mxu2 %v9236_v55  ;;  %7518 = vmatpush.bf16.xpose.msrb.mxu3 %v9240_v29 }
 0xa5d   : > { %7477 = vmatpush.bf16.xpose.msra.mxu0 %v9196_v48  ;;  %7491 = vmatpush.bf16.xpose.msra.mxu1 %v9200_v3 }
 0xa5e   : > { %7505 = vmatpush.bf16.xpose.msrb.mxu2 %v9204_v41  ;;  %7519 = vmatpush.bf16.xpose.msrb.mxu3 %v9208_v12 }
 0xa64   : > { %7478 = vmatmul.bf16.vlgmr.msra.gmra.mxu0 %v14331_v16  ;;  %7492 = vmatmul.bf16.vlgmr.msra.gmra.mxu1 %v14348_v39 }
 0xa65   : > { %7506 = vmatmul.bf16.vlgmr.msrb.gmra.mxu2 %v14415_v28  ;;  %7520 = vmatmul.bf16.vlgmr.msrb.gmra.mxu3 %v14435_v54 }
 0xa66   : > { %10689 = shalt.err (!%p10686_p0)
}
 0xa67   : > { %s10819_s14 = smov 128   ;;  %s10820_s27 = smov 8   ;;  %v7311_v16 = vpop.f32.mrf.mxu0  ;;  %v7325_v39 = vpop.f32.mrf.mxu1 }
 0xa68   : > { %9871 = dma.vmem_to_hbm [thread:$0]  (%p11057_p5), %s7593_s3, 256, %s7595_s19, %s7558_s11, %s10819_s14, %s10819_s14, %s10820_s27   ;;  %v7339_v28 = vpop.f32.mrf.mxu2  ;;  %v7353_v10 = vpop.f32.mrf.mxu3 }
 0xa69   : > { %s14885_s8 = sld [smem:[#allocation100_spill]]  ;;  %s14466_s3 = scalar_lea.vmem [#allocation20], %s7858_s13 }
 0xa6a   : > { %s9828_s13 = sshll.u32 %s10792_s24, 5  ;;  %s14886_s15 = sld [smem:[#allocation101_spill]] }
 0xa6b   : > { %s7573_s29 = sshll.u32 %s14466_s3, 4  ;;  %s7553_s24 = scalar_lea.sflag [#allocation4], %s11092_s6  ;;  %s7574_s29 = int_to_ptr.vmem [resolvable:$true] %s7573_s29 }
 0xa6f   : > { %v6656_v54 = vld [vmem:[%s14885_s8] sm:$0x3]  ;;  %v7313_v7 = vpop.f32.mrf.mxu0  ;;  %v7327_v45 = vpop.f32.mrf.mxu1 }
 0xa70   : > { %v6658_v20 = vperm.slane %v6656_v54, 0  ;;  %v7341_v38 = vpop.f32.mrf.mxu2  ;;  %v7355_v25 = vpop.f32.mrf.mxu3  ;;  %v6659_v40 = vperm.slane %v6656_v54, 1  ;;  %s7572_s16 = scalar_lea.hbm %s14886_s15, %s9828_s13  ;;  %s10710_s27 = scalar_lea.hbm %s14886_s15, 64 }
 0xa71   : > { %s7575_s17 = sshll.u32 %s7572_s16, 4  ;;  %s7576_s17 = int_to_ptr.hbm [resolvable:$true] %s7575_s17 }
 0xa72   : > { %v7312_v33 = vadd.f32 %v7311_v16, %v6658_v20  ;;  %v7314_v23 = vadd.f32 %v7313_v7, %v6658_v20  ;;  %s10704_s26 = sshra.s32 %s7576_s17, 4  ;;  %s10705_s26 = int_to_ptr.hbm [resolvable:$true] %s10704_s26 }
 0xa73   : > { %s10706_s12 = scalar_lea.hbm %s10705_s26, 32  ;;  %p10711_p3 = scmp.lt.s32.totalorder %s10705_s26, %s14886_s15 }
 0xa74   : > { %v7326_v51 = vadd.f32 %v7325_v39, %v7312_v33  ;;  %v7328_v47 = vadd.f32 %v7327_v45, %v7314_v23  ;;  %p10707_p2 = scmp.ne.s32.totalorder %s10705_s26, %s10706_s12  ;;  %p10712_p1 = scmp.lt.s32.totalorder %s10710_s27, %s10706_s12 }
 0xa76   : > { %v7340_v18 = vadd.f32 %v7339_v28, %v7326_v51  ;;  %v7342_v27 = vadd.f32 %v7341_v38, %v7328_v47  ;;  %p10708_p6 = pnand %p10707_p2, %p11057_p5  ;;  %p10713_p9 = por %p10712_p1, %p10711_p3 }
 0xa77   : > { %v7367_v34 = vpop.f32.mrf.mxu0  ;;  %v7381_v32 = vpop.f32.mrf.mxu1 }
 0xa78   : > { %v7354_v5 = vadd.f32 %v7353_v10, %v7340_v18  ;;  %v7356_v0 = vadd.f32 %v7355_v25, %v7342_v27  ;;  %p10709_p8 = pneg %p10708_p6 }
 0xa7a   : > { %v7368_v63 = vadd.f32 %v7367_v34, %v7354_v5  ;;  %p10714_p10 = pnand %p10713_p9, %p10709_p8 }
 0xa7c   : > { %v7382_v52 = vadd.f32 %v7381_v32, %v7368_v63 }
 0xa7f   : > { %v7369_v21 = vpop.f32.mrf.mxu0  ;;  %v7383_v11 = vpop.f32.mrf.mxu1 }
 0xa80   : > { %v7370_v59 = vadd.f32 %v7369_v21, %v7356_v0 }
 0xa82   : > { %v7384_v6 = vadd.f32 %v7383_v11, %v7370_v59 }
 0xa9d   : > { %v7395_v56 = vpop.f32.mrf.mxu2 }
 0xa9e   : > { %v7396_v26 = vadd.f32 %v7395_v56, %v7382_v52 }
 0xaa1   : > { %v7423_v2 = vpop.f32.mrf.mxu0  ;;  %v7437_v24 = vpop.f32.mrf.mxu1 }
 0xaa2   : > { %v7424_v14 = vadd.f32 %v7423_v2, %v6659_v40 }
 0xaa4   : > { %v7438_v43 = vadd.f32 %v7437_v24, %v7424_v14 }
 0xaa5   : > { %v7397_v9 = vpop.f32.mrf.mxu2 }
 0xaa6   : > { %v7409_v50 = vpop.f32.mrf.mxu3  ;;  %v7398_v17 = vadd.f32 %v7397_v9, %v7384_v6 }
 0xaa7   : > { %v7410_v61 = vadd.f32 %v7409_v50, %v7396_v26 }
 0xaa9   : > { %v7526_v31 = vadd.f32 %v7410_v61, %v13960_v13  ;;  %v7425_v53 = vpop.f32.mrf.mxu0  ;;  %v7439_v15 = vpop.f32.mrf.mxu1 }
 0xaaa   : > { %v7426_v55 = vadd.f32 %v7425_v53, %v6659_v40 }
 0xaab   : > { %7530 = vst [vmem:[%s14466_s3] sm:$0xff] %v7526_v31 }
 0xaac   : > { %v7440_v46 = vadd.f32 %v7439_v15, %v7426_v55 }
 0xaad   : > { %v7451_v37 = vpop.f32.mrf.mxu2 }
 0xaae   : > { %v7411_v8 = vpop.f32.mrf.mxu3  ;;  %v7452_v19 = vadd.f32 %v7451_v37, %v7438_v43 }
 0xaaf   : > { %v7412_v22 = vadd.f32 %v7411_v8, %v7398_v17 }
 0xab1   : > { %v7528_v49 = vadd.f32 %v7412_v22, %v13968_v4 }
 0xab3   : > { %7532 = vst [vmem:[%s14466_s3 + $0x10] sm:$0xff] %v7528_v49 }
 0xab5   : > { %v7453_v57 = vpop.f32.mrf.mxu2 }
 0xab6   : > { %v7465_v13 = vpop.f32.mrf.mxu3  ;;  %v7454_v58 = vadd.f32 %v7453_v57, %v7440_v46 }
 0xab7   : > { %v7466_v48 = vadd.f32 %v7465_v13, %v7452_v19 }
 0xabe   : > { %v7467_v62 = vpop.f32.mrf.mxu3 }
 0xabf   : > { %v7468_v29 = vadd.f32 %v7467_v62, %v7454_v58 }
 0xae1   : > { %v7479_v30 = vpop.f32.mrf.mxu0  ;;  %v7493_v1 = vpop.f32.mrf.mxu1 }
 0xae2   : > { %v7480_v3 = vadd.f32 %v7479_v30, %v7466_v48 }
 0xae4   : > { %v7494_v36 = vadd.f32 %v7493_v1, %v7480_v3 }
 0xae8   : > { %v7507_v4 = vpop.f32.mrf.mxu2  ;;  %v7521_v44 = vpop.f32.mrf.mxu3 }
 0xae9   : > { %v7481_v41 = vpop.f32.mrf.mxu0  ;;  %v7508_v35 = vadd.f32 %v7507_v4, %v7494_v36  ;;  %v7495_v28 = vpop.f32.mrf.mxu1 }
 0xaea   : > { %v7482_v12 = vadd.f32 %v7481_v41, %v7468_v29 }
 0xaeb   : > { %v7522_v16 = vadd.f32 %v7521_v44, %v7508_v35 }
 0xaec   : > { %v7496_v20 = vadd.f32 %v7495_v28, %v7482_v12 }
 0xaed   : > { %v7527_v39 = vadd.f32 %v7522_v16, %v13963_v42 }
 0xaef   : > { %7531 = vst [vmem:[%s14466_s3 + $0x8] sm:$0xff] %v7527_v39 }
 0xaf0   : > { %v7509_v54 = vpop.f32.mrf.mxu2  ;;  %v7523_v10 = vpop.f32.mrf.mxu3 }
 0xaf1   : > { %v7510_v7 = vadd.f32 %v7509_v54, %v7496_v20 }
 0xaf3   : > { %v7524_v45 = vadd.f32 %v7523_v10, %v7510_v7 }
 0xaf5   : > { %v7529_v33 = vadd.f32 %v7524_v45, %v13971_v60 }
 0xaf7   : > { %7533 = vst [vmem:[%s14466_s3 + $0x18] sm:$0xff] %v7529_v33 }
 0xaf8   : > { %10717 = shalt.err (!%p10714_p10)
}
 0xaf9   : > { %s10821_s6 = smov 256   ;;  %s10822_s8 = smov 16  }
 0xafa   : > { %9870 = dma.vmem_to_hbm [thread:$0]  (%p11057_p5), %s7574_s29, 512, %s7576_s17, %s7553_s24, %s10821_s6, %s10821_s6, %s10822_s8  }
 0xafb PF: > { %s7609_s3 = sand.u32 1, %s10780_s1   ;;  %p9910_p11 = pnand %p7850_p4, %p11065_p7 }
 0xafc   : > { %s7610_s13 = scalar_lea.sflag [#allocation4], %s7609_s3 }
 0xafd   : > { %p9911_p12 = pneg %p9910_p11 }
 0xaff   : > { %10771 = dma.done.wait (%p9911_p12), %s7610_s13, 512  }
 0xb00   : > { %10773 = vsyncadd (%p9911_p12), %s7610_s13, 4294966784  ;;  %s7620_s19 = scalar_lea.sflag [#allocation22], %s7609_s3 }
 0xb01   : > { %10775 = dma.done.wait (%p9911_p12), %s7620_s19, 256  }
 0xb02   : > { %10777 = vsyncadd (%p9911_p12), %s7620_s19, 4294967040  ;;  %s47_s25 = sadd.s32 1, %s10800_s25   ;;  %s14887_s5 = sld [smem:[#allocation32_spill]] }
 0xb03   : > { %p44_p13 = scmp.ge.s32.totalorder %s47_s25, 4   ;;  %s14888_s1 = smov %s10784_s22 }
 0xb04   : > { %s14889_s22 = smov %s10788_s23  ;;  %s14890_s23 = smov %s11063_s28 }
 0xb05   : > { %s14891_s24 = smov %s10796_s2  ;;  %46 = sbr.rel (!%p44_p13) target bundleno = 35 (0x23), region = 210 }
 0xb08   : > { %s14892_s2 = smov %s14887_s5 }
 0xb0a   :  { %7626 = vsyncpa [#allocation3], 1 }
 0xb0b   :  { %7628 = vsyncpa [#allocation3 + $0x1], 1 }
 0xb0c   :  { %7629 = vsyncpa [#allocation6], 1 }
 0xb0d   :  { %7631 = vsyncpa [#allocation6 + $0x1], 1 }
 0xb0e   :  { %7632 = vsyncpa [#allocation9], 1 }
 0xb0f   :  { %7633 = vsyncpa [#allocation12], 1 }
 0xb10   :  { %7634 = vsyncpa [#allocation15], 1 }
 0xb11   :  { %7635 = vsyncpa [#allocation18], 1 }
 0xb12   :  { %7636 = vsyncpa [#allocation4], 1 }
 0xb13   :  { %7638 = vsyncpa [#allocation4 + $0x1], 1 }
 0xb14   :  { %7639 = vsyncpa [#allocation22], 1 }
 0xb15   :  { %7641 = vsyncpa [#allocation22 + $0x1], 1 }

</bundles_post_ra>
